<compile_context>
chip_gen: v5e
topology: v5e:2x2
jax: 0.10.0
libtpu: 0.0.40
codegen_flags: <defaults>
</compile_context>

<pallas_src>
import functools

import jax
import jax.numpy as jnp
from jax import lax
from jax.experimental import pallas as pl
from jax.experimental.pallas import tpu as pltpu


def _lstm_kernel(x_ref,      # (T, B, 1)   time-major input (D_in == 1)
                 wih0_ref,   # (1, 4HP)    layer-0 input weight row (permuted [i,f,o,g], padded)
                 b0_ref,     # (1, 4HP)    layer-0 bias (b_ih0 + b_hh0)
                 wbig_ref,   # (2HP, 8HP)  block weight [[Whh0, Wih1], [0, Whh1]]
                 b1_ref,     # (1, 4HP)    layer-1 bias (b_ih1 + b_hh1)
                 wfc_ref,    # (HP, DP)    fc weight (transposed, padded)
                 bfc_ref,    # (1, DP)     fc bias (padded)
                 out_ref,    # (B, DP)     padded output (lane-dense store)
                 xproj_ref): # (T, B, 4HP) VMEM scratch: layer-0 input projection
    T, B, _ = x_ref.shape
    G = b1_ref.shape[1]          # 4 * HP
    HP = G // 4
    H3 = 3 * HP

    # Layer-0 input projection for ALL timesteps: D_in == 1, so this is a
    # single rank-1 VPU broadcast-multiply (no MXU, no extra XLA dispatch).
    xproj_ref[...] = x_ref[...] * wih0_ref[...] + b0_ref[...]

    # Hoist the loop-invariant layer-1 bias broadcast (not CSE'd by JAX).
    b1 = jnp.broadcast_to(b1_ref[...], (B, G))

    def cell(gates, c_prev):
        # Gate order [i, f, o, g]; HP is a multiple of 128 so every slice is
        # vreg-aligned (no lane rotates): one sigmoid slab + one tanh slab.
        s = jax.nn.sigmoid(gates[:, :H3])
        g = jnp.tanh(gates[:, H3:])
        c = s[:, HP:2 * HP] * c_prev + s[:, :HP] * g
        h = s[:, 2 * HP:H3] * jnp.tanh(c)
        return h, c

    zeros = jnp.zeros((B, HP), jnp.float32)

    # ---- prologue: layer-0 step 0 (h0(-1) == 0 -> no recurrent matmul) ----
    h0, c0 = cell(xproj_ref[0], zeros)

    # ---- wavefront recurrence: one fused matmul per iteration computes
    #      layer-0(t) recurrent gates and layer-1(t-1) gates; both operands
    #      (h0(t-1), h1(t-2)) are ready at step start and the two cell
    #      updates afterwards are independent of each other. ----
    def wave_step(t, carry):
        h0, c0, h1, c1 = carry                         # h0(t-1), c0(t-1), h1(t-2), c1(t-2)
        hcat = jnp.concatenate([h0, h1], axis=1)       # whole-vreg placement
        gg = jnp.dot(hcat, wbig_ref[...], preferred_element_type=jnp.float32)
        h1, c1 = cell(gg[:, G:] + b1, c1)              # layer-1, step t-1
        h0, c0 = cell(gg[:, :G] + xproj_ref[t], c0)    # layer-0, step t
        return h0, c0, h1, c1

    h0, c0, h1, c1 = lax.fori_loop(1, T, wave_step, (h0, c0, zeros, zeros),
                                   unroll=True)

    # ---- epilogue: layer-1 step T-1 (layer-1 half of W_big only) ----
    hcat = jnp.concatenate([h0, h1], axis=1)
    g1 = jnp.dot(hcat, wbig_ref[:, G:2 * G],
                 preferred_element_type=jnp.float32) + b1
    h1, _ = cell(g1, c1)

    # ---- final Linear on the last timestep (padded, lane-dense store) ----
    out_ref[...] = (jnp.dot(h1, wfc_ref[...], preferred_element_type=jnp.float32)
                    + bfc_ref[...])


@functools.partial(jax.jit, static_argnames=("output_dim",))
def lstm_model_forward(x, kp, *, output_dim=1):
    """x: (B, T, D_in) batch-first like the PyTorch module (D_in must be 1)."""
    B, T, D_in = x.shape
    assert D_in == 1, "rank-1 input projection is folded into the kernel"
    # TODO(synk): D_in > 1 would reinstate a wrapper einsum or an in-kernel
    #             K=D_in matmul for the layer-0 input projection.
    G = kp["b1"].shape[1]        # 4 * HP
    DP = kp["wfc"].shape[1]

    xk = jnp.transpose(x, (1, 0, 2))       # (T, B, 1) time-major (tiny copy)

    vmem = pl.BlockSpec(memory_space=pltpu.MemorySpace.VMEM)
    out_padded = pl.pallas_call(
        _lstm_kernel,
        out_shape=jax.ShapeDtypeStruct((B, DP), jnp.float32),
        in_specs=[vmem] * 7,
        out_specs=vmem,
        scratch_shapes=[pltpu.VMEM((T, B, G), jnp.float32)],
    )(xk, kp["wih0"], kp["b0"], kp["wbig"], kp["b1"], kp["wfc"], kp["bfc"])
    return out_padded[:, :output_dim]


def init_params(key, input_dim, hidden_dim, output_dim):
    """Raw PyTorch-style parameters, U(-1/sqrt(H), 1/sqrt(H)) init."""
    H = hidden_dim
    bound = 1.0 / jnp.sqrt(jnp.float32(H))
    ks = jax.random.split(key, 10)

    def u(k, shape):
        return jax.random.uniform(k, shape, jnp.float32, -bound, bound)

    return {
        # layer 0 (input_dim -> H), PyTorch gate order [i, f, g, o]
        "w_ih0": u(ks[0], (4 * H, input_dim)),
        "w_hh0": u(ks[1], (4 * H, H)),
        "b_ih0": u(ks[2], (4 * H,)),
        "b_hh0": u(ks[3], (4 * H,)),
        # layer 1 (H -> H)
        "w_ih1": u(ks[4], (4 * H, H)),
        "w_hh1": u(ks[5], (4 * H, H)),
        "b_ih1": u(ks[6], (4 * H,)),
        "b_hh1": u(ks[7], (4 * H,)),
        # fc: H -> output_dim
        "w_fc": u(ks[8], (output_dim, H)),
        "b_fc": u(ks[9], (output_dim,)),
    }


def prepare_kernel_params(raw, lane=128):
    """Transpose, combine biases, permute gates [i,f,g,o] -> [i,f,o,g], pad the
    hidden/gate/output dims to the 128-lane width (exact zero padding), and
    build the wavefront block weight W_big = [[Whh0, Wih1], [0, Whh1]]."""
    H = raw["w_hh0"].shape[1]
    D_out = raw["w_fc"].shape[0]
    HP = ((H + lane - 1) // lane) * lane
    DP = ((D_out + lane - 1) // lane) * lane

    def perm(m):        # m: (..., 4H) columns in PyTorch [i, f, g, o] order
        i, f, g, o = jnp.split(m, 4, axis=-1)
        return jnp.concatenate([i, f, o, g], axis=-1)

    def pad_gate_cols(m):   # (..., 4H) -> (..., 4HP), zero-pad each gate block
        blocks = jnp.split(m, 4, axis=-1)
        widths = [(0, 0)] * (m.ndim - 1) + [(0, HP - H)]
        return jnp.concatenate([jnp.pad(b, widths) for b in blocks], axis=-1)

    def pad_rows(m):        # (H, X) -> (HP, X)
        return jnp.pad(m, ((0, HP - H), (0, 0)))

    wih0 = pad_gate_cols(perm(raw["w_ih0"].T))                          # (1, 4HP)
    b0 = pad_gate_cols(perm((raw["b_ih0"] + raw["b_hh0"])[None, :]))    # (1, 4HP)
    whh0 = pad_rows(pad_gate_cols(perm(raw["w_hh0"].T)))                # (HP, 4HP)
    wih1 = pad_rows(pad_gate_cols(perm(raw["w_ih1"].T)))                # (HP, 4HP)
    whh1 = pad_rows(pad_gate_cols(perm(raw["w_hh1"].T)))                # (HP, 4HP)
    b1 = pad_gate_cols(perm((raw["b_ih1"] + raw["b_hh1"])[None, :]))    # (1, 4HP)

    wbig = jnp.concatenate(
        [jnp.concatenate([whh0, wih1], axis=1),
         jnp.concatenate([jnp.zeros_like(whh0), whh1], axis=1)], axis=0)  # (2HP, 8HP)

    wfc = jnp.pad(raw["w_fc"].T, ((0, HP - H), (0, DP - D_out)))        # (HP, DP)
    bfc = jnp.pad(raw["b_fc"][None, :], ((0, 0), (0, DP - D_out)))      # (1, DP)

    return {"wih0": wih0, "b0": b0, "wbig": wbig, "b1": b1,
            "wfc": wfc, "bfc": bfc}


def reference_forward(x, raw):
    """Pure-JAX reference matching PyTorch nn.LSTM (2 layers) + nn.Linear."""
    B, T, _ = x.shape
    H = raw["w_hh0"].shape[1]

    def cell(x_t, h, c, w_ih, w_hh, b_ih, b_hh):
        g = x_t @ w_ih.T + h @ w_hh.T + b_ih + b_hh
        i = jax.nn.sigmoid(g[:, 0 * H:1 * H])
        f = jax.nn.sigmoid(g[:, 1 * H:2 * H])
        gg = jnp.tanh(g[:, 2 * H:3 * H])
        o = jax.nn.sigmoid(g[:, 3 * H:4 * H])
        c = f * c + i * gg
        h = o * jnp.tanh(c)
        return h, c

    h0 = c0 = h1 = c1 = jnp.zeros((B, H), jnp.float32)
    for t in range(T):
        h0, c0 = cell(x[:, t, :], h0, c0,
                      raw["w_ih0"], raw["w_hh0"], raw["b_ih0"], raw["b_hh0"])
        h1, c1 = cell(h0, h1, c1,
                      raw["w_ih1"], raw["w_hh1"], raw["b_ih1"], raw["b_hh1"])
    return h1 @ raw["w_fc"].T + raw["b_fc"]


if __name__ == "__main__":
    input_dim = 1
    hidden_dim = 64
    output_dim = 1
    batch = 2
    seq_len = 8

    key = jax.random.PRNGKey(0)
    k_param, k_x = jax.random.split(key)
    raw = init_params(k_param, input_dim, hidden_dim, output_dim)
    kp = prepare_kernel_params(raw)
    x = jax.random.normal(k_x, (batch, seq_len, input_dim), jnp.float32)

    out = lstm_model_forward(x, kp, output_dim=output_dim)
    out = jax.block_until_ready(out)

    ref = reference_forward(x, raw)
    assert out.shape == (batch, output_dim), out.shape
    assert jnp.allclose(out, ref, atol=1e-5, rtol=1e-5), (out, ref)

    print("KERNEL_OK")
</pallas_src>

<mosaic_0001>
module attributes {stable_mosaic.version = 11 : i64} {
  func.func @_lstm_kernel(%arg0: memref<8x2x1xf32, #tpu.memory_space<vmem>>, %arg1: memref<1x512xf32, #tpu.memory_space<vmem>>, %arg2: memref<1x512xf32, #tpu.memory_space<vmem>>, %arg3: memref<256x1024xf32, #tpu.memory_space<vmem>>, %arg4: memref<1x512xf32, #tpu.memory_space<vmem>>, %arg5: memref<128x128xf32, #tpu.memory_space<vmem>>, %arg6: memref<1x128xf32, #tpu.memory_space<vmem>>, %arg7: memref<2x128xf32, #tpu.memory_space<vmem>>, %arg8: memref<8x2x512xf32, #tpu.memory_space<vmem>>) attributes {dimension_semantics = [], scalar_prefetch = 0 : i64, scratch_operands = 1 : i64, tpu.core_type = #tpu.core_type<tc>} {
    %c0 = arith.constant 0 : index
    %c0_0 = arith.constant 0 : index
    %c0_1 = arith.constant 0 : index
    %0 = vector.load %arg0[%c0, %c0_0, %c0_1] : memref<8x2x1xf32, #tpu.memory_space<vmem>>, vector<8x2x1xf32>
    %c0_2 = arith.constant 0 : index
    %c0_3 = arith.constant 0 : index
    %1 = vector.load %arg1[%c0_2, %c0_3] : memref<1x512xf32, #tpu.memory_space<vmem>>, vector<1x512xf32>
    %2 = vector.shape_cast %1 : vector<1x512xf32> to vector<1x1x512xf32>
    %3 = vector.broadcast %0 : vector<8x2x1xf32> to vector<8x2x512xf32>
    %4 = vector.broadcast %2 : vector<1x1x512xf32> to vector<8x2x512xf32>
    %5 = arith.mulf %3, %4 : vector<8x2x512xf32>
    %c0_4 = arith.constant 0 : index
    %c0_5 = arith.constant 0 : index
    %6 = vector.load %arg2[%c0_4, %c0_5] : memref<1x512xf32, #tpu.memory_space<vmem>>, vector<1x512xf32>
    %7 = vector.shape_cast %6 : vector<1x512xf32> to vector<1x1x512xf32>
    %8 = vector.broadcast %7 : vector<1x1x512xf32> to vector<8x2x512xf32>
    %9 = arith.addf %5, %8 : vector<8x2x512xf32>
    %c0_6 = arith.constant 0 : index
    %c0_7 = arith.constant 0 : index
    %c0_8 = arith.constant 0 : index
    %10 = vector.load %arg8[%c0_6, %c0_7, %c0_8] : memref<8x2x512xf32, #tpu.memory_space<vmem>>, vector<8x2x512xf32>
    tpu.vector_store %arg8[%c0_6, %c0_7, %c0_8], %9 {strides = array<i32>} : memref<8x2x512xf32, #tpu.memory_space<vmem>>, vector<8x2x512xf32>,
    %c0_9 = arith.constant 0 : index
    %c0_10 = arith.constant 0 : index
    %11 = vector.load %arg4[%c0_9, %c0_10] : memref<1x512xf32, #tpu.memory_space<vmem>>, vector<1x512xf32>
    %12 = vector.shape_cast %11 : vector<1x512xf32> to vector<1x512xf32>
    %13 = vector.broadcast %12 : vector<1x512xf32> to vector<2x512xf32>
    %cst = arith.constant 0.000000e+00 : f32
    %14 = vector.broadcast %cst : f32 to vector<2x128xf32>
    %c0_11 = arith.constant 0 : index
    %c0_12 = arith.constant 0 : index
    %c0_13 = arith.constant 0 : index
    %15 = vector.load %arg8[%c0_11, %c0_12, %c0_13] : memref<8x2x512xf32, #tpu.memory_space<vmem>>, vector<1x2x512xf32>
    %16 = vector.shape_cast %15 : vector<1x2x512xf32> to vector<2x512xf32>
    %17 = vector.extract_strided_slice %16 {offsets = [0, 0], sizes = [2, 384], strides = [1, 1]} : vector<2x512xf32> to vector<2x384xf32>
    %18 = arith.negf %17 : vector<2x384xf32>
    %19 = math.exp %18 : vector<2x384xf32>
    %cst_14 = arith.constant 1.000000e+00 : f32
    %20 = vector.broadcast %cst_14 : f32 to vector<2x384xf32>
    %21 = arith.addf %20, %19 : vector<2x384xf32>
    %22 = arith.divf %20, %21 : vector<2x384xf32>
    %23 = vector.extract_strided_slice %16 {offsets = [0, 384], sizes = [2, 128], strides = [1, 1]} : vector<2x512xf32> to vector<2x128xf32>
    %24 = math.tanh %23 : vector<2x128xf32>
    %25 = vector.extract_strided_slice %22 {offsets = [0, 128], sizes = [2, 128], strides = [1, 1]} : vector<2x384xf32> to vector<2x128xf32>
    %26 = arith.mulf %25, %14 : vector<2x128xf32>
    %27 = vector.extract_strided_slice %22 {offsets = [0, 0], sizes = [2, 128], strides = [1, 1]} : vector<2x384xf32> to vector<2x128xf32>
    %28 = arith.mulf %27, %24 : vector<2x128xf32>
    %29 = arith.addf %26, %28 : vector<2x128xf32>
    %30 = vector.extract_strided_slice %22 {offsets = [0, 256], sizes = [2, 128], strides = [1, 1]} : vector<2x384xf32> to vector<2x128xf32>
    %31 = math.tanh %29 : vector<2x128xf32>
    %32 = arith.mulf %30, %31 : vector<2x128xf32>
    %c1_i32 = arith.constant 1 : i32
    %33 = tpu.concatenate %32, %14 in 1 : vector<2x128xf32>, vector<2x128xf32> -> vector<2x256xf32>
    %c0_15 = arith.constant 0 : index
    %c0_16 = arith.constant 0 : index
    %34 = vector.load %arg3[%c0_15, %c0_16] : memref<256x1024xf32, #tpu.memory_space<vmem>>, vector<256x1024xf32>
    %cst_17 = arith.constant dense<0.000000e+00> : vector<2x1024xf32>
    %35 = tpu.matmul %33, %34, %cst_17 {dimension_numbers = #tpu.dot_dimension_numbers<[1], [0], [0], [1], [0, 0, 1, 1], [], []>} : vector<2x256xf32>, vector<256x1024xf32>, vector<2x1024xf32> -> vector<2x1024xf32>
    %36 = vector.extract_strided_slice %35 {offsets = [0, 512], sizes = [2, 512], strides = [1, 1]} : vector<2x1024xf32> to vector<2x512xf32>
    %37 = arith.addf %36, %13 : vector<2x512xf32>
    %38 = vector.extract_strided_slice %37 {offsets = [0, 0], sizes = [2, 384], strides = [1, 1]} : vector<2x512xf32> to vector<2x384xf32>
    %39 = arith.negf %38 : vector<2x384xf32>
    %40 = math.exp %39 : vector<2x384xf32>
    %cst_18 = arith.constant 1.000000e+00 : f32
    %41 = vector.broadcast %cst_18 : f32 to vector<2x384xf32>
    %42 = arith.addf %41, %40 : vector<2x384xf32>
    %43 = arith.divf %41, %42 : vector<2x384xf32>
    %44 = vector.extract_strided_slice %37 {offsets = [0, 384], sizes = [2, 128], strides = [1, 1]} : vector<2x512xf32> to vector<2x128xf32>
    %45 = math.tanh %44 : vector<2x128xf32>
    %46 = vector.extract_strided_slice %43 {offsets = [0, 128], sizes = [2, 128], strides = [1, 1]} : vector<2x384xf32> to vector<2x128xf32>
    %47 = arith.mulf %46, %14 : vector<2x128xf32>
    %48 = vector.extract_strided_slice %43 {offsets = [0, 0], sizes = [2, 128], strides = [1, 1]} : vector<2x384xf32> to vector<2x128xf32>
    %49 = arith.mulf %48, %45 : vector<2x128xf32>
    %50 = arith.addf %47, %49 : vector<2x128xf32>
    %51 = vector.extract_strided_slice %43 {offsets = [0, 256], sizes = [2, 128], strides = [1, 1]} : vector<2x384xf32> to vector<2x128xf32>
    %52 = math.tanh %50 : vector<2x128xf32>
    %53 = arith.mulf %51, %52 : vector<2x128xf32>
    %54 = vector.extract_strided_slice %35 {offsets = [0, 0], sizes = [2, 512], strides = [1, 1]} : vector<2x1024xf32> to vector<2x512xf32>
    %55 = arith.index_cast %c1_i32 : i32 to index
    %c0_19 = arith.constant 0 : index
    %c0_20 = arith.constant 0 : index
    %56 = vector.load %arg8[%55, %c0_19, %c0_20] : memref<8x2x512xf32, #tpu.memory_space<vmem>>, vector<1x2x512xf32>
    %57 = vector.shape_cast %56 : vector<1x2x512xf32> to vector<2x512xf32>
    %58 = arith.addf %54, %57 : vector<2x512xf32>
    %59 = vector.extract_strided_slice %58 {offsets = [0, 0], sizes = [2, 384], strides = [1, 1]} : vector<2x512xf32> to vector<2x384xf32>
    %60 = arith.negf %59 : vector<2x384xf32>
    %61 = math.exp %60 : vector<2x384xf32>
    %cst_21 = arith.constant 1.000000e+00 : f32
    %62 = vector.broadcast %cst_21 : f32 to vector<2x384xf32>
    %63 = arith.addf %62, %61 : vector<2x384xf32>
    %64 = arith.divf %62, %63 : vector<2x384xf32>
    %65 = vector.extract_strided_slice %58 {offsets = [0, 384], sizes = [2, 128], strides = [1, 1]} : vector<2x512xf32> to vector<2x128xf32>
    %66 = math.tanh %65 : vector<2x128xf32>
    %67 = vector.extract_strided_slice %64 {offsets = [0, 128], sizes = [2, 128], strides = [1, 1]} : vector<2x384xf32> to vector<2x128xf32>
    %68 = arith.mulf %67, %29 : vector<2x128xf32>
    %69 = vector.extract_strided_slice %64 {offsets = [0, 0], sizes = [2, 128], strides = [1, 1]} : vector<2x384xf32> to vector<2x128xf32>
    %70 = arith.mulf %69, %66 : vector<2x128xf32>
    %71 = arith.addf %68, %70 : vector<2x128xf32>
    %72 = vector.extract_strided_slice %64 {offsets = [0, 256], sizes = [2, 128], strides = [1, 1]} : vector<2x384xf32> to vector<2x128xf32>
    %73 = math.tanh %71 : vector<2x128xf32>
    %74 = arith.mulf %72, %73 : vector<2x128xf32>
    %c2_i32 = arith.constant 2 : i32
    %75 = tpu.concatenate %74, %53 in 1 : vector<2x128xf32>, vector<2x128xf32> -> vector<2x256xf32>
    %c0_22 = arith.constant 0 : index
    %c0_23 = arith.constant 0 : index
    %76 = vector.load %arg3[%c0_22, %c0_23] : memref<256x1024xf32, #tpu.memory_space<vmem>>, vector<256x1024xf32>
    %cst_24 = arith.constant dense<0.000000e+00> : vector<2x1024xf32>
    %77 = tpu.matmul %75, %76, %cst_24 {dimension_numbers = #tpu.dot_dimension_numbers<[1], [0], [0], [1], [0, 0, 1, 1], [], []>} : vector<2x256xf32>, vector<256x1024xf32>, vector<2x1024xf32> -> vector<2x1024xf32>
    %78 = vector.extract_strided_slice %77 {offsets = [0, 512], sizes = [2, 512], strides = [1, 1]} : vector<2x1024xf32> to vector<2x512xf32>
    %79 = arith.addf %78, %13 : vector<2x512xf32>
    %80 = vector.extract_strided_slice %79 {offsets = [0, 0], sizes = [2, 384], strides = [1, 1]} : vector<2x512xf32> to vector<2x384xf32>
    %81 = arith.negf %80 : vector<2x384xf32>
    %82 = math.exp %81 : vector<2x384xf32>
    %cst_25 = arith.constant 1.000000e+00 : f32
    %83 = vector.broadcast %cst_25 : f32 to vector<2x384xf32>
    %84 = arith.addf %83, %82 : vector<2x384xf32>
    %85 = arith.divf %83, %84 : vector<2x384xf32>
    %86 = vector.extract_strided_slice %79 {offsets = [0, 384], sizes = [2, 128], strides = [1, 1]} : vector<2x512xf32> to vector<2x128xf32>
    %87 = math.tanh %86 : vector<2x128xf32>
    %88 = vector.extract_strided_slice %85 {offsets = [0, 128], sizes = [2, 128], strides = [1, 1]} : vector<2x384xf32> to vector<2x128xf32>
    %89 = arith.mulf %88, %50 : vector<2x128xf32>
    %90 = vector.extract_strided_slice %85 {offsets = [0, 0], sizes = [2, 128], strides = [1, 1]} : vector<2x384xf32> to vector<2x128xf32>
    %91 = arith.mulf %90, %87 : vector<2x128xf32>
    %92 = arith.addf %89, %91 : vector<2x128xf32>
    %93 = vector.extract_strided_slice %85 {offsets = [0, 256], sizes = [2, 128], strides = [1, 1]} : vector<2x384xf32> to vector<2x128xf32>
    %94 = math.tanh %92 : vector<2x128xf32>
    %95 = arith.mulf %93, %94 : vector<2x128xf32>
    %96 = vector.extract_strided_slice %77 {offsets = [0, 0], sizes = [2, 512], strides = [1, 1]} : vector<2x1024xf32> to vector<2x512xf32>
    %97 = arith.index_cast %c2_i32 : i32 to index
    %c0_26 = arith.constant 0 : index
    %c0_27 = arith.constant 0 : index
    %98 = vector.load %arg8[%97, %c0_26, %c0_27] : memref<8x2x512xf32, #tpu.memory_space<vmem>>, vector<1x2x512xf32>
    %99 = vector.shape_cast %98 : vector<1x2x512xf32> to vector<2x512xf32>
    %100 = arith.addf %96, %99 : vector<2x512xf32>
    %101 = vector.extract_strided_slice %100 {offsets = [0, 0], sizes = [2, 384], strides = [1, 1]} : vector<2x512xf32> to vector<2x384xf32>
    %102 = arith.negf %101 : vector<2x384xf32>
    %103 = math.exp %102 : vector<2x384xf32>
    %cst_28 = arith.constant 1.000000e+00 : f32
    %104 = vector.broadcast %cst_28 : f32 to vector<2x384xf32>
    %105 = arith.addf %104, %103 : vector<2x384xf32>
    %106 = arith.divf %104, %105 : vector<2x384xf32>
    %107 = vector.extract_strided_slice %100 {offsets = [0, 384], sizes = [2, 128], strides = [1, 1]} : vector<2x512xf32> to vector<2x128xf32>
    %108 = math.tanh %107 : vector<2x128xf32>
    %109 = vector.extract_strided_slice %106 {offsets = [0, 128], sizes = [2, 128], strides = [1, 1]} : vector<2x384xf32> to vector<2x128xf32>
    %110 = arith.mulf %109, %71 : vector<2x128xf32>
    %111 = vector.extract_strided_slice %106 {offsets = [0, 0], sizes = [2, 128], strides = [1, 1]} : vector<2x384xf32> to vector<2x128xf32>
    %112 = arith.mulf %111, %108 : vector<2x128xf32>
    %113 = arith.addf %110, %112 : vector<2x128xf32>
    %114 = vector.extract_strided_slice %106 {offsets = [0, 256], sizes = [2, 128], strides = [1, 1]} : vector<2x384xf32> to vector<2x128xf32>
    %115 = math.tanh %113 : vector<2x128xf32>
    %116 = arith.mulf %114, %115 : vector<2x128xf32>
    %c3_i32 = arith.constant 3 : i32
    %117 = tpu.concatenate %116, %95 in 1 : vector<2x128xf32>, vector<2x128xf32> -> vector<2x256xf32>
    %c0_29 = arith.constant 0 : index
    %c0_30 = arith.constant 0 : index
    %118 = vector.load %arg3[%c0_29, %c0_30] : memref<256x1024xf32, #tpu.memory_space<vmem>>, vector<256x1024xf32>
    %cst_31 = arith.constant dense<0.000000e+00> : vector<2x1024xf32>
    %119 = tpu.matmul %117, %118, %cst_31 {dimension_numbers = #tpu.dot_dimension_numbers<[1], [0], [0], [1], [0, 0, 1, 1], [], []>} : vector<2x256xf32>, vector<256x1024xf32>, vector<2x1024xf32> -> vector<2x1024xf32>
    %120 = vector.extract_strided_slice %119 {offsets = [0, 512], sizes = [2, 512], strides = [1, 1]} : vector<2x1024xf32> to vector<2x512xf32>
    %121 = arith.addf %120, %13 : vector<2x512xf32>
    %122 = vector.extract_strided_slice %121 {offsets = [0, 0], sizes = [2, 384], strides = [1, 1]} : vector<2x512xf32> to vector<2x384xf32>
    %123 = arith.negf %122 : vector<2x384xf32>
    %124 = math.exp %123 : vector<2x384xf32>
    %cst_32 = arith.constant 1.000000e+00 : f32
    %125 = vector.broadcast %cst_32 : f32 to vector<2x384xf32>
    %126 = arith.addf %125, %124 : vector<2x384xf32>
    %127 = arith.divf %125, %126 : vector<2x384xf32>
    %128 = vector.extract_strided_slice %121 {offsets = [0, 384], sizes = [2, 128], strides = [1, 1]} : vector<2x512xf32> to vector<2x128xf32>
    %129 = math.tanh %128 : vector<2x128xf32>
    %130 = vector.extract_strided_slice %127 {offsets = [0, 128], sizes = [2, 128], strides = [1, 1]} : vector<2x384xf32> to vector<2x128xf32>
    %131 = arith.mulf %130, %92 : vector<2x128xf32>
    %132 = vector.extract_strided_slice %127 {offsets = [0, 0], sizes = [2, 128], strides = [1, 1]} : vector<2x384xf32> to vector<2x128xf32>
    %133 = arith.mulf %132, %129 : vector<2x128xf32>
    %134 = arith.addf %131, %133 : vector<2x128xf32>
    %135 = vector.extract_strided_slice %127 {offsets = [0, 256], sizes = [2, 128], strides = [1, 1]} : vector<2x384xf32> to vector<2x128xf32>
    %136 = math.tanh %134 : vector<2x128xf32>
    %137 = arith.mulf %135, %136 : vector<2x128xf32>
    %138 = vector.extract_strided_slice %119 {offsets = [0, 0], sizes = [2, 512], strides = [1, 1]} : vector<2x1024xf32> to vector<2x512xf32>
    %139 = arith.index_cast %c3_i32 : i32 to index
    %c0_33 = arith.constant 0 : index
    %c0_34 = arith.constant 0 : index
    %140 = vector.load %arg8[%139, %c0_33, %c0_34] : memref<8x2x512xf32, #tpu.memory_space<vmem>>, vector<1x2x512xf32>
    %141 = vector.shape_cast %140 : vector<1x2x512xf32> to vector<2x512xf32>
    %142 = arith.addf %138, %141 : vector<2x512xf32>
    %143 = vector.extract_strided_slice %142 {offsets = [0, 0], sizes = [2, 384], strides = [1, 1]} : vector<2x512xf32> to vector<2x384xf32>
    %144 = arith.negf %143 : vector<2x384xf32>
    %145 = math.exp %144 : vector<2x384xf32>
    %cst_35 = arith.constant 1.000000e+00 : f32
    %146 = vector.broadcast %cst_35 : f32 to vector<2x384xf32>
    %147 = arith.addf %146, %145 : vector<2x384xf32>
    %148 = arith.divf %146, %147 : vector<2x384xf32>
    %149 = vector.extract_strided_slice %142 {offsets = [0, 384], sizes = [2, 128], strides = [1, 1]} : vector<2x512xf32> to vector<2x128xf32>
    %150 = math.tanh %149 : vector<2x128xf32>
    %151 = vector.extract_strided_slice %148 {offsets = [0, 128], sizes = [2, 128], strides = [1, 1]} : vector<2x384xf32> to vector<2x128xf32>
    %152 = arith.mulf %151, %113 : vector<2x128xf32>
    %153 = vector.extract_strided_slice %148 {offsets = [0, 0], sizes = [2, 128], strides = [1, 1]} : vector<2x384xf32> to vector<2x128xf32>
    %154 = arith.mulf %153, %150 : vector<2x128xf32>
    %155 = arith.addf %152, %154 : vector<2x128xf32>
    %156 = vector.extract_strided_slice %148 {offsets = [0, 256], sizes = [2, 128], strides = [1, 1]} : vector<2x384xf32> to vector<2x128xf32>
    %157 = math.tanh %155 : vector<2x128xf32>
    %158 = arith.mulf %156, %157 : vector<2x128xf32>
    %c4_i32 = arith.constant 4 : i32
    %159 = tpu.concatenate %158, %137 in 1 : vector<2x128xf32>, vector<2x128xf32> -> vector<2x256xf32>
    %c0_36 = arith.constant 0 : index
    %c0_37 = arith.constant 0 : index
    %160 = vector.load %arg3[%c0_36, %c0_37] : memref<256x1024xf32, #tpu.memory_space<vmem>>, vector<256x1024xf32>
    %cst_38 = arith.constant dense<0.000000e+00> : vector<2x1024xf32>
    %161 = tpu.matmul %159, %160, %cst_38 {dimension_numbers = #tpu.dot_dimension_numbers<[1], [0], [0], [1], [0, 0, 1, 1], [], []>} : vector<2x256xf32>, vector<256x1024xf32>, vector<2x1024xf32> -> vector<2x1024xf32>
    %162 = vector.extract_strided_slice %161 {offsets = [0, 512], sizes = [2, 512], strides = [1, 1]} : vector<2x1024xf32> to vector<2x512xf32>
    %163 = arith.addf %162, %13 : vector<2x512xf32>
    %164 = vector.extract_strided_slice %163 {offsets = [0, 0], sizes = [2, 384], strides = [1, 1]} : vector<2x512xf32> to vector<2x384xf32>
    %165 = arith.negf %164 : vector<2x384xf32>
    %166 = math.exp %165 : vector<2x384xf32>
    %cst_39 = arith.constant 1.000000e+00 : f32
    %167 = vector.broadcast %cst_39 : f32 to vector<2x384xf32>
    %168 = arith.addf %167, %166 : vector<2x384xf32>
    %169 = arith.divf %167, %168 : vector<2x384xf32>
    %170 = vector.extract_strided_slice %163 {offsets = [0, 384], sizes = [2, 128], strides = [1, 1]} : vector<2x512xf32> to vector<2x128xf32>
    %171 = math.tanh %170 : vector<2x128xf32>
    %172 = vector.extract_strided_slice %169 {offsets = [0, 128], sizes = [2, 128], strides = [1, 1]} : vector<2x384xf32> to vector<2x128xf32>
    %173 = arith.mulf %172, %134 : vector<2x128xf32>
    %174 = vector.extract_strided_slice %169 {offsets = [0, 0], sizes = [2, 128], strides = [1, 1]} : vector<2x384xf32> to vector<2x128xf32>
    %175 = arith.mulf %174, %171 : vector<2x128xf32>
    %176 = arith.addf %173, %175 : vector<2x128xf32>
    %177 = vector.extract_strided_slice %169 {offsets = [0, 256], sizes = [2, 128], strides = [1, 1]} : vector<2x384xf32> to vector<2x128xf32>
    %178 = math.tanh %176 : vector<2x128xf32>
    %179 = arith.mulf %177, %178 : vector<2x128xf32>
    %180 = vector.extract_strided_slice %161 {offsets = [0, 0], sizes = [2, 512], strides = [1, 1]} : vector<2x1024xf32> to vector<2x512xf32>
    %181 = arith.index_cast %c4_i32 : i32 to index
    %c0_40 = arith.constant 0 : index
    %c0_41 = arith.constant 0 : index
    %182 = vector.load %arg8[%181, %c0_40, %c0_41] : memref<8x2x512xf32, #tpu.memory_space<vmem>>, vector<1x2x512xf32>
    %183 = vector.shape_cast %182 : vector<1x2x512xf32> to vector<2x512xf32>
    %184 = arith.addf %180, %183 : vector<2x512xf32>
    %185 = vector.extract_strided_slice %184 {offsets = [0, 0], sizes = [2, 384], strides = [1, 1]} : vector<2x512xf32> to vector<2x384xf32>
    %186 = arith.negf %185 : vector<2x384xf32>
    %187 = math.exp %186 : vector<2x384xf32>
    %cst_42 = arith.constant 1.000000e+00 : f32
    %188 = vector.broadcast %cst_42 : f32 to vector<2x384xf32>
    %189 = arith.addf %188, %187 : vector<2x384xf32>
    %190 = arith.divf %188, %189 : vector<2x384xf32>
    %191 = vector.extract_strided_slice %184 {offsets = [0, 384], sizes = [2, 128], strides = [1, 1]} : vector<2x512xf32> to vector<2x128xf32>
    %192 = math.tanh %191 : vector<2x128xf32>
    %193 = vector.extract_strided_slice %190 {offsets = [0, 128], sizes = [2, 128], strides = [1, 1]} : vector<2x384xf32> to vector<2x128xf32>
    %194 = arith.mulf %193, %155 : vector<2x128xf32>
    %195 = vector.extract_strided_slice %190 {offsets = [0, 0], sizes = [2, 128], strides = [1, 1]} : vector<2x384xf32> to vector<2x128xf32>
    %196 = arith.mulf %195, %192 : vector<2x128xf32>
    %197 = arith.addf %194, %196 : vector<2x128xf32>
    %198 = vector.extract_strided_slice %190 {offsets = [0, 256], sizes = [2, 128], strides = [1, 1]} : vector<2x384xf32> to vector<2x128xf32>
    %199 = math.tanh %197 : vector<2x128xf32>
    %200 = arith.mulf %198, %199 : vector<2x128xf32>
    %c5_i32 = arith.constant 5 : i32
    %201 = tpu.concatenate %200, %179 in 1 : vector<2x128xf32>, vector<2x128xf32> -> vector<2x256xf32>
    %c0_43 = arith.constant 0 : index
    %c0_44 = arith.constant 0 : index
    %202 = vector.load %arg3[%c0_43, %c0_44] : memref<256x1024xf32, #tpu.memory_space<vmem>>, vector<256x1024xf32>
    %cst_45 = arith.constant dense<0.000000e+00> : vector<2x1024xf32>
    %203 = tpu.matmul %201, %202, %cst_45 {dimension_numbers = #tpu.dot_dimension_numbers<[1], [0], [0], [1], [0, 0, 1, 1], [], []>} : vector<2x256xf32>, vector<256x1024xf32>, vector<2x1024xf32> -> vector<2x1024xf32>
    %204 = vector.extract_strided_slice %203 {offsets = [0, 512], sizes = [2, 512], strides = [1, 1]} : vector<2x1024xf32> to vector<2x512xf32>
    %205 = arith.addf %204, %13 : vector<2x512xf32>
    %206 = vector.extract_strided_slice %205 {offsets = [0, 0], sizes = [2, 384], strides = [1, 1]} : vector<2x512xf32> to vector<2x384xf32>
    %207 = arith.negf %206 : vector<2x384xf32>
    %208 = math.exp %207 : vector<2x384xf32>
    %cst_46 = arith.constant 1.000000e+00 : f32
    %209 = vector.broadcast %cst_46 : f32 to vector<2x384xf32>
    %210 = arith.addf %209, %208 : vector<2x384xf32>
    %211 = arith.divf %209, %210 : vector<2x384xf32>
    %212 = vector.extract_strided_slice %205 {offsets = [0, 384], sizes = [2, 128], strides = [1, 1]} : vector<2x512xf32> to vector<2x128xf32>
    %213 = math.tanh %212 : vector<2x128xf32>
    %214 = vector.extract_strided_slice %211 {offsets = [0, 128], sizes = [2, 128], strides = [1, 1]} : vector<2x384xf32> to vector<2x128xf32>
    %215 = arith.mulf %214, %176 : vector<2x128xf32>
    %216 = vector.extract_strided_slice %211 {offsets = [0, 0], sizes = [2, 128], strides = [1, 1]} : vector<2x384xf32> to vector<2x128xf32>
    %217 = arith.mulf %216, %213 : vector<2x128xf32>
    %218 = arith.addf %215, %217 : vector<2x128xf32>
    %219 = vector.extract_strided_slice %211 {offsets = [0, 256], sizes = [2, 128], strides = [1, 1]} : vector<2x384xf32> to vector<2x128xf32>
    %220 = math.tanh %218 : vector<2x128xf32>
    %221 = arith.mulf %219, %220 : vector<2x128xf32>
    %222 = vector.extract_strided_slice %203 {offsets = [0, 0], sizes = [2, 512], strides = [1, 1]} : vector<2x1024xf32> to vector<2x512xf32>
    %223 = arith.index_cast %c5_i32 : i32 to index
    %c0_47 = arith.constant 0 : index
    %c0_48 = arith.constant 0 : index
    %224 = vector.load %arg8[%223, %c0_47, %c0_48] : memref<8x2x512xf32, #tpu.memory_space<vmem>>, vector<1x2x512xf32>
    %225 = vector.shape_cast %224 : vector<1x2x512xf32> to vector<2x512xf32>
    %226 = arith.addf %222, %225 : vector<2x512xf32>
    %227 = vector.extract_strided_slice %226 {offsets = [0, 0], sizes = [2, 384], strides = [1, 1]} : vector<2x512xf32> to vector<2x384xf32>
    %228 = arith.negf %227 : vector<2x384xf32>
    %229 = math.exp %228 : vector<2x384xf32>
    %cst_49 = arith.constant 1.000000e+00 : f32
    %230 = vector.broadcast %cst_49 : f32 to vector<2x384xf32>
    %231 = arith.addf %230, %229 : vector<2x384xf32>
    %232 = arith.divf %230, %231 : vector<2x384xf32>
    %233 = vector.extract_strided_slice %226 {offsets = [0, 384], sizes = [2, 128], strides = [1, 1]} : vector<2x512xf32> to vector<2x128xf32>
    %234 = math.tanh %233 : vector<2x128xf32>
    %235 = vector.extract_strided_slice %232 {offsets = [0, 128], sizes = [2, 128], strides = [1, 1]} : vector<2x384xf32> to vector<2x128xf32>
    %236 = arith.mulf %235, %197 : vector<2x128xf32>
    %237 = vector.extract_strided_slice %232 {offsets = [0, 0], sizes = [2, 128], strides = [1, 1]} : vector<2x384xf32> to vector<2x128xf32>
    %238 = arith.mulf %237, %234 : vector<2x128xf32>
    %239 = arith.addf %236, %238 : vector<2x128xf32>
    %240 = vector.extract_strided_slice %232 {offsets = [0, 256], sizes = [2, 128], strides = [1, 1]} : vector<2x384xf32> to vector<2x128xf32>
    %241 = math.tanh %239 : vector<2x128xf32>
    %242 = arith.mulf %240, %241 : vector<2x128xf32>
    %c6_i32 = arith.constant 6 : i32
    %243 = tpu.concatenate %242, %221 in 1 : vector<2x128xf32>, vector<2x128xf32> -> vector<2x256xf32>
    %c0_50 = arith.constant 0 : index
    %c0_51 = arith.constant 0 : index
    %244 = vector.load %arg3[%c0_50, %c0_51] : memref<256x1024xf32, #tpu.memory_space<vmem>>, vector<256x1024xf32>
    %cst_52 = arith.constant dense<0.000000e+00> : vector<2x1024xf32>
    %245 = tpu.matmul %243, %244, %cst_52 {dimension_numbers = #tpu.dot_dimension_numbers<[1], [0], [0], [1], [0, 0, 1, 1], [], []>} : vector<2x256xf32>, vector<256x1024xf32>, vector<2x1024xf32> -> vector<2x1024xf32>
    %246 = vector.extract_strided_slice %245 {offsets = [0, 512], sizes = [2, 512], strides = [1, 1]} : vector<2x1024xf32> to vector<2x512xf32>
    %247 = arith.addf %246, %13 : vector<2x512xf32>
    %248 = vector.extract_strided_slice %247 {offsets = [0, 0], sizes = [2, 384], strides = [1, 1]} : vector<2x512xf32> to vector<2x384xf32>
    %249 = arith.negf %248 : vector<2x384xf32>
    %250 = math.exp %249 : vector<2x384xf32>
    %cst_53 = arith.constant 1.000000e+00 : f32
    %251 = vector.broadcast %cst_53 : f32 to vector<2x384xf32>
    %252 = arith.addf %251, %250 : vector<2x384xf32>
    %253 = arith.divf %251, %252 : vector<2x384xf32>
    %254 = vector.extract_strided_slice %247 {offsets = [0, 384], sizes = [2, 128], strides = [1, 1]} : vector<2x512xf32> to vector<2x128xf32>
    %255 = math.tanh %254 : vector<2x128xf32>
    %256 = vector.extract_strided_slice %253 {offsets = [0, 128], sizes = [2, 128], strides = [1, 1]} : vector<2x384xf32> to vector<2x128xf32>
    %257 = arith.mulf %256, %218 : vector<2x128xf32>
    %258 = vector.extract_strided_slice %253 {offsets = [0, 0], sizes = [2, 128], strides = [1, 1]} : vector<2x384xf32> to vector<2x128xf32>
    %259 = arith.mulf %258, %255 : vector<2x128xf32>
    %260 = arith.addf %257, %259 : vector<2x128xf32>
    %261 = vector.extract_strided_slice %253 {offsets = [0, 256], sizes = [2, 128], strides = [1, 1]} : vector<2x384xf32> to vector<2x128xf32>
    %262 = math.tanh %260 : vector<2x128xf32>
    %263 = arith.mulf %261, %262 : vector<2x128xf32>
    %264 = vector.extract_strided_slice %245 {offsets = [0, 0], sizes = [2, 512], strides = [1, 1]} : vector<2x1024xf32> to vector<2x512xf32>
    %265 = arith.index_cast %c6_i32 : i32 to index
    %c0_54 = arith.constant 0 : index
    %c0_55 = arith.constant 0 : index
    %266 = vector.load %arg8[%265, %c0_54, %c0_55] : memref<8x2x512xf32, #tpu.memory_space<vmem>>, vector<1x2x512xf32>
    %267 = vector.shape_cast %266 : vector<1x2x512xf32> to vector<2x512xf32>
    %268 = arith.addf %264, %267 : vector<2x512xf32>
    %269 = vector.extract_strided_slice %268 {offsets = [0, 0], sizes = [2, 384], strides = [1, 1]} : vector<2x512xf32> to vector<2x384xf32>
    %270 = arith.negf %269 : vector<2x384xf32>
    %271 = math.exp %270 : vector<2x384xf32>
    %cst_56 = arith.constant 1.000000e+00 : f32
    %272 = vector.broadcast %cst_56 : f32 to vector<2x384xf32>
    %273 = arith.addf %272, %271 : vector<2x384xf32>
    %274 = arith.divf %272, %273 : vector<2x384xf32>
    %275 = vector.extract_strided_slice %268 {offsets = [0, 384], sizes = [2, 128], strides = [1, 1]} : vector<2x512xf32> to vector<2x128xf32>
    %276 = math.tanh %275 : vector<2x128xf32>
    %277 = vector.extract_strided_slice %274 {offsets = [0, 128], sizes = [2, 128], strides = [1, 1]} : vector<2x384xf32> to vector<2x128xf32>
    %278 = arith.mulf %277, %239 : vector<2x128xf32>
    %279 = vector.extract_strided_slice %274 {offsets = [0, 0], sizes = [2, 128], strides = [1, 1]} : vector<2x384xf32> to vector<2x128xf32>
    %280 = arith.mulf %279, %276 : vector<2x128xf32>
    %281 = arith.addf %278, %280 : vector<2x128xf32>
    %282 = vector.extract_strided_slice %274 {offsets = [0, 256], sizes = [2, 128], strides = [1, 1]} : vector<2x384xf32> to vector<2x128xf32>
    %283 = math.tanh %281 : vector<2x128xf32>
    %284 = arith.mulf %282, %283 : vector<2x128xf32>
    %c7_i32 = arith.constant 7 : i32
    %285 = tpu.concatenate %284, %263 in 1 : vector<2x128xf32>, vector<2x128xf32> -> vector<2x256xf32>
    %c0_57 = arith.constant 0 : index
    %c0_58 = arith.constant 0 : index
    %286 = vector.load %arg3[%c0_57, %c0_58] : memref<256x1024xf32, #tpu.memory_space<vmem>>, vector<256x1024xf32>
    %cst_59 = arith.constant dense<0.000000e+00> : vector<2x1024xf32>
    %287 = tpu.matmul %285, %286, %cst_59 {dimension_numbers = #tpu.dot_dimension_numbers<[1], [0], [0], [1], [0, 0, 1, 1], [], []>} : vector<2x256xf32>, vector<256x1024xf32>, vector<2x1024xf32> -> vector<2x1024xf32>
    %288 = vector.extract_strided_slice %287 {offsets = [0, 512], sizes = [2, 512], strides = [1, 1]} : vector<2x1024xf32> to vector<2x512xf32>
    %289 = arith.addf %288, %13 : vector<2x512xf32>
    %290 = vector.extract_strided_slice %289 {offsets = [0, 0], sizes = [2, 384], strides = [1, 1]} : vector<2x512xf32> to vector<2x384xf32>
    %291 = arith.negf %290 : vector<2x384xf32>
    %292 = math.exp %291 : vector<2x384xf32>
    %cst_60 = arith.constant 1.000000e+00 : f32
    %293 = vector.broadcast %cst_60 : f32 to vector<2x384xf32>
    %294 = arith.addf %293, %292 : vector<2x384xf32>
    %295 = arith.divf %293, %294 : vector<2x384xf32>
    %296 = vector.extract_strided_slice %289 {offsets = [0, 384], sizes = [2, 128], strides = [1, 1]} : vector<2x512xf32> to vector<2x128xf32>
    %297 = math.tanh %296 : vector<2x128xf32>
    %298 = vector.extract_strided_slice %295 {offsets = [0, 128], sizes = [2, 128], strides = [1, 1]} : vector<2x384xf32> to vector<2x128xf32>
    %299 = arith.mulf %298, %260 : vector<2x128xf32>
    %300 = vector.extract_strided_slice %295 {offsets = [0, 0], sizes = [2, 128], strides = [1, 1]} : vector<2x384xf32> to vector<2x128xf32>
    %301 = arith.mulf %300, %297 : vector<2x128xf32>
    %302 = arith.addf %299, %301 : vector<2x128xf32>
    %303 = vector.extract_strided_slice %295 {offsets = [0, 256], sizes = [2, 128], strides = [1, 1]} : vector<2x384xf32> to vector<2x128xf32>
    %304 = math.tanh %302 : vector<2x128xf32>
    %305 = arith.mulf %303, %304 : vector<2x128xf32>
    %306 = vector.extract_strided_slice %287 {offsets = [0, 0], sizes = [2, 512], strides = [1, 1]} : vector<2x1024xf32> to vector<2x512xf32>
    %307 = arith.index_cast %c7_i32 : i32 to index
    %c0_61 = arith.constant 0 : index
    %c0_62 = arith.constant 0 : index
    %308 = vector.load %arg8[%307, %c0_61, %c0_62] : memref<8x2x512xf32, #tpu.memory_space<vmem>>, vector<1x2x512xf32>
    %309 = vector.shape_cast %308 : vector<1x2x512xf32> to vector<2x512xf32>
    %310 = arith.addf %306, %309 : vector<2x512xf32>
    %311 = vector.extract_strided_slice %310 {offsets = [0, 0], sizes = [2, 384], strides = [1, 1]} : vector<2x512xf32> to vector<2x384xf32>
    %312 = arith.negf %311 : vector<2x384xf32>
    %313 = math.exp %312 : vector<2x384xf32>
    %cst_63 = arith.constant 1.000000e+00 : f32
    %314 = vector.broadcast %cst_63 : f32 to vector<2x384xf32>
    %315 = arith.addf %314, %313 : vector<2x384xf32>
    %316 = arith.divf %314, %315 : vector<2x384xf32>
    %317 = vector.extract_strided_slice %310 {offsets = [0, 384], sizes = [2, 128], strides = [1, 1]} : vector<2x512xf32> to vector<2x128xf32>
    %318 = math.tanh %317 : vector<2x128xf32>
    %319 = vector.extract_strided_slice %316 {offsets = [0, 128], sizes = [2, 128], strides = [1, 1]} : vector<2x384xf32> to vector<2x128xf32>
    %320 = arith.mulf %319, %281 : vector<2x128xf32>
    %321 = vector.extract_strided_slice %316 {offsets = [0, 0], sizes = [2, 128], strides = [1, 1]} : vector<2x384xf32> to vector<2x128xf32>
    %322 = arith.mulf %321, %318 : vector<2x128xf32>
    %323 = arith.addf %320, %322 : vector<2x128xf32>
    %324 = vector.extract_strided_slice %316 {offsets = [0, 256], sizes = [2, 128], strides = [1, 1]} : vector<2x384xf32> to vector<2x128xf32>
    %325 = math.tanh %323 : vector<2x128xf32>
    %326 = arith.mulf %324, %325 : vector<2x128xf32>
    %c7_i32_64 = arith.constant 7 : i32
    %327 = tpu.concatenate %326, %305 in 1 : vector<2x128xf32>, vector<2x128xf32> -> vector<2x256xf32>
    %c0_65 = arith.constant 0 : index
    %c512 = arith.constant 512 : index
    %328 = vector.load %arg3[%c0_65, %c512] : memref<256x1024xf32, #tpu.memory_space<vmem>>, vector<256x512xf32>
    %cst_66 = arith.constant dense<0.000000e+00> : vector<2x512xf32>
    %329 = tpu.matmul %327, %328, %cst_66 {dimension_numbers = #tpu.dot_dimension_numbers<[1], [0], [0], [1], [0, 0, 1, 1], [], []>} : vector<2x256xf32>, vector<256x512xf32>, vector<2x512xf32> -> vector<2x512xf32>
    %330 = arith.addf %329, %13 : vector<2x512xf32>
    %331 = vector.extract_strided_slice %330 {offsets = [0, 0], sizes = [2, 384], strides = [1, 1]} : vector<2x512xf32> to vector<2x384xf32>
    %332 = arith.negf %331 : vector<2x384xf32>
    %333 = math.exp %332 : vector<2x384xf32>
    %cst_67 = arith.constant 1.000000e+00 : f32
    %334 = vector.broadcast %cst_67 : f32 to vector<2x384xf32>
    %335 = arith.addf %334, %333 : vector<2x384xf32>
    %336 = arith.divf %334, %335 : vector<2x384xf32>
    %337 = vector.extract_strided_slice %330 {offsets = [0, 384], sizes = [2, 128], strides = [1, 1]} : vector<2x512xf32> to vector<2x128xf32>
    %338 = math.tanh %337 : vector<2x128xf32>
    %339 = vector.extract_strided_slice %336 {offsets = [0, 128], sizes = [2, 128], strides = [1, 1]} : vector<2x384xf32> to vector<2x128xf32>
    %340 = arith.mulf %339, %302 : vector<2x128xf32>
    %341 = vector.extract_strided_slice %336 {offsets = [0, 0], sizes = [2, 128], strides = [1, 1]} : vector<2x384xf32> to vector<2x128xf32>
    %342 = arith.mulf %341, %338 : vector<2x128xf32>
    %343 = arith.addf %340, %342 : vector<2x128xf32>
    %344 = vector.extract_strided_slice %336 {offsets = [0, 256], sizes = [2, 128], strides = [1, 1]} : vector<2x384xf32> to vector<2x128xf32>
    %345 = math.tanh %343 : vector<2x128xf32>
    %346 = arith.mulf %344, %345 : vector<2x128xf32>
    %c0_68 = arith.constant 0 : index
    %c0_69 = arith.constant 0 : index
    %347 = vector.load %arg5[%c0_68, %c0_69] : memref<128x128xf32, #tpu.memory_space<vmem>>, vector<128x128xf32>
    %cst_70 = arith.constant dense<0.000000e+00> : vector<2x128xf32>
    %348 = tpu.matmul %346, %347, %cst_70 {dimension_numbers = #tpu.dot_dimension_numbers<[1], [0], [0], [1], [0, 0, 1, 1], [], []>} : vector<2x128xf32>, vector<128x128xf32>, vector<2x128xf32> -> vector<2x128xf32>
    %c0_71 = arith.constant 0 : index
    %c0_72 = arith.constant 0 : index
    %349 = vector.load %arg6[%c0_71, %c0_72] : memref<1x128xf32, #tpu.memory_space<vmem>>, vector<1x128xf32>
    %350 = vector.broadcast %349 : vector<1x128xf32> to vector<2x128xf32>
    %351 = arith.addf %348, %350 : vector<2x128xf32>
    %c0_73 = arith.constant 0 : index
    %c0_74 = arith.constant 0 : index
    %352 = vector.load %arg7[%c0_73, %c0_74] : memref<2x128xf32, #tpu.memory_space<vmem>>, vector<2x128xf32>
    tpu.vector_store %arg7[%c0_73, %c0_74], %351 {strides = array<i32>} : memref<2x128xf32, #tpu.memory_space<vmem>>, vector<2x128xf32>,
    return
  }
}

</mosaic_0001>

<bundles_post_ra>
// kernel: lstm_model_forward.1
= control target key start
LH: loop header
LB: loop body
LE: loop exit
PB: predicated region body
PF: predicated region fallthrough
CT: control target
= control target key end

     0   :  { %12 = vsyncpa [#allocation4], 0  ;;  %s9420_s0 = inlined_call_operand.vmem [shape: f32[8,2,1], index: 0, kind: input, shape index: {}]   ;;  %s9421_s1 = inlined_call_operand.vmem [shape: f32[1,512], index: 1, kind: input, shape index: {}]   ;;  %s9422_s2 = inlined_call_operand.vmem [shape: f32[1,512], index: 2, kind: input, shape index: {}]   ;;  %s9423_s3 = inlined_call_operand.hbm [shape: f32[256,1024], index: 3, kind: input, shape index: {}]   ;;  %s9424_s4 = inlined_call_operand.vmem [shape: f32[1,512], index: 4, kind: input, shape index: {}]   ;;  %s9425_s5 = inlined_call_operand.hbm [shape: f32[128,128], index: 5, kind: input, shape index: {}]   ;;  %s9426_s6 = inlined_call_operand.vmem [shape: f32[1,128], index: 6, kind: input, shape index: {}]   ;;  %s9427_s7 = inlined_call_operand.vmem [shape: f32[2,128], index: 7, kind: output, shape index: {}]  }
   0x1   :  { %s24_s26 = sshll.u32 %s9423_s3, 4  ;;  %s25_s26 = int_to_ptr.hbm [resolvable:$true] %s24_s26 }
   0x2   :  { %13 = vsyncpa [#allocation6], 0  ;;  %s5375_s27 = smov [#allocation3]   ;;  %s39_s8 = sshll.u32 %s9425_s5, 4  ;;  %s40_s8 = int_to_ptr.hbm [resolvable:$true] %s39_s8 }
   0x3   :  { %s26_s28 = sshll.u32 %s5375_s27, 4  ;;  %s5376_s9 = smov 1024   ;;  %s27_s28 = int_to_ptr.vmem [resolvable:$true] %s26_s28 }
   0x4   :  { %s5377_s10 = smov 64   ;;  %s5378_s11 = smov [#allocation5]  }
   0x5   :  { %32 = dma.hbm_to_vmem [thread:$0]  %s25_s26, 32768, %s27_s28, [#allocation4], %s5376_s9, %s5376_s9, %s5377_s10  }
   0x6   :  { %s41_s12 = sshll.u32 %s5378_s11, 4  ;;  %s5379_s13 = smov 128   ;;  %s42_s12 = int_to_ptr.vmem [resolvable:$true] %s41_s12 }
   0x7   :  { %s5380_s14 = smov 8  }
   0x8   :  { %47 = dma.hbm_to_vmem [thread:$0]  %s40_s8, 2048, %s42_s12, [#allocation6], %s5379_s13, %s5379_s13, %s5380_s14  }
   0x9   :  { %5371 = dma.done.wait [#allocation4], 32768  }
   0xa   :  { %5372 = vsyncadd [#allocation4], 4294934528 }
   0xb   :  { %5373 = dma.done.wait [#allocation6], 2048  }
   0xc   :  { %5374 = vsyncadd [#allocation6], 4294965248  ;;  %v5381_v0 = vmov 0   ;;  %v58_v1 = vld [vmem:[%s9420_s0] sm:$0x3]  ;;  %v453_v4 = vld [vmem:[#allocation3 + $0x3c0] sm:$0xff] }
   0xd   :  { %4303 = vset.pattern.permute.xlu0 %v5381_v0  ;;  %4304 = vset.pattern.permute.xlu1 %v5381_v0  ;;  %v60_v2 = vld [vmem:[%s9420_s0 + $0x4] sm:$0x3]  ;;  %v62_v3 = vld [vmem:[%s9420_s0 + $0x8] sm:$0x3]  ;;  %v454_v6 = vld [vmem:[#allocation3 + $0x3c8] sm:$0xff]  ;;  %vm246_vm0 = vcmask 1041408  }
   0xe   :  { %4305 = vset.pattern.permute.xlu2 %v5381_v0  ;;  %69 = vperm.xlu0 %4303, %v58_v1   ;;  %v581_v5 = vld [vmem:[#allocation3 + $0x7c0] sm:$0xff]  ;;  %v582_v7 = vld [vmem:[#allocation3 + $0x7c8] sm:$0xff]  ;;  %v59_v15 = vld [vmem:[%s9420_s0 + $0x2] sm:$0x3]  ;;  %vm248_vm1 = vcmask 1045508   ;;  %vm250_vm2 = vcmask 1043456  }
   0xf   :  { %79 = vperm.xlu1 %4304, %v60_v2   ;;  %89 = vperm.xlu2 %4305, %v62_v3   ;;  %v445_v8 = vld [vmem:[#allocation3 + $0x380] sm:$0xff]  ;;  %v446_v10 = vld [vmem:[#allocation3 + $0x388] sm:$0xff]  ;;  %v61_v16 = vld [vmem:[%s9420_s0 + $0x6] sm:$0x3] }
  0x10   :  { %589 = vmatpush.msra.mxu0 %v453_v4  ;;  %609 = vmatpush.msra.mxu1 %v581_v5  ;;  %v573_v9 = vld [vmem:[#allocation3 + $0x780] sm:$0xff]  ;;  %v574_v11 = vld [vmem:[#allocation3 + $0x788] sm:$0xff] }
  0x11   :  { %629 = vmatpush.msra.mxu2 %v454_v6  ;;  %649 = vmatpush.msra.mxu3 %v582_v7  ;;  %v437_v12 = vld [vmem:[#allocation3 + $0x340] sm:$0xff]  ;;  %v438_v14 = vld [vmem:[#allocation3 + $0x348] sm:$0xff] }
  0x12   :  { %590 = vmatpush.msra.mxu0 %v445_v8  ;;  %610 = vmatpush.msra.mxu1 %v573_v9  ;;  %v565_v13 = vld [vmem:[#allocation3 + $0x740] sm:$0xff]  ;;  %v566_v17 = vld [vmem:[#allocation3 + $0x748] sm:$0xff]  ;;  %v455_v8 = vld [vmem:[#allocation3 + $0x3d0] sm:$0xff] }
  0x13   :  { %630 = vmatpush.msra.mxu2 %v446_v10  ;;  %650 = vmatpush.msra.mxu3 %v574_v11  ;;  %v63_v18 = vld [vmem:[%s9420_s0 + $0xa] sm:$0x3]  ;;  %v430_v21 = vld [vmem:[#allocation3 + $0x308] sm:$0xff]  ;;  %v64_v31 = vld [vmem:[%s9420_s0 + $0xc] sm:$0x3] }
  0x14   :  { %591 = vmatpush.msra.mxu0 %v437_v12  ;;  %611 = vmatpush.msra.mxu1 %v565_v13  ;;  %v429_v19 = vld [vmem:[#allocation3 + $0x300] sm:$0xff]  ;;  %v558_v22 = vld [vmem:[#allocation3 + $0x708] sm:$0xff]  ;;  %v583_v9 = vld [vmem:[#allocation3 + $0x7d0] sm:$0xff] }
  0x15   :  { %631 = vmatpush.msra.mxu2 %v438_v14  ;;  %651 = vmatpush.msra.mxu3 %v566_v17  ;;  %v557_v20 = vld [vmem:[#allocation3 + $0x700] sm:$0xff]  ;;  %v422_v25 = vld [vmem:[#allocation3 + $0x2c8] sm:$0xff]  ;;  %v456_v10 = vld [vmem:[#allocation3 + $0x3d8] sm:$0xff] }
  0x16   :  { %74 = vperm.xlu0 %4303, %v59_v15   ;;  %v421_v23 = vld [vmem:[#allocation3 + $0x2c0] sm:$0xff]  ;;  %592 = vmatpush.msra.mxu0 %v429_v19  ;;  %v550_v26 = vld [vmem:[#allocation3 + $0x6c8] sm:$0xff]  ;;  %v584_v11 = vld [vmem:[#allocation3 + $0x7d8] sm:$0xff] }
  0x17   :  { %84 = vperm.xlu1 %4304, %v61_v16   ;;  %94 = vperm.xlu2 %4305, %v63_v18   ;;  %v549_v24 = vld [vmem:[#allocation3 + $0x6c0] sm:$0xff]  ;;  %v414_v29 = vld [vmem:[#allocation3 + $0x288] sm:$0xff]  ;;  %v447_v12 = vld [vmem:[#allocation3 + $0x390] sm:$0xff] }
  0x18   :  { %612 = vmatpush.msra.mxu1 %v557_v20  ;;  %632 = vmatpush.msra.mxu2 %v430_v21  ;;  %v413_v27 = vld [vmem:[#allocation3 + $0x280] sm:$0xff]  ;;  %v542_v30 = vld [vmem:[#allocation3 + $0x688] sm:$0xff]  ;;  %v575_v13 = vld [vmem:[#allocation3 + $0x790] sm:$0xff] }
  0x19   :  { %652 = vmatpush.msra.mxu3 %v558_v22  ;;  %593 = vmatpush.msra.mxu0 %v421_v23  ;;  %v541_v28 = vld [vmem:[#allocation3 + $0x680] sm:$0xff]  ;;  %v406_v34 = vld [vmem:[#allocation3 + $0x248] sm:$0xff]  ;;  %v448_v14 = vld [vmem:[#allocation3 + $0x398] sm:$0xff] }
  0x1a   :  { %613 = vmatpush.msra.mxu1 %v549_v24  ;;  %633 = vmatpush.msra.mxu2 %v422_v25  ;;  %v405_v32 = vld [vmem:[#allocation3 + $0x240] sm:$0xff]  ;;  %v534_v35 = vld [vmem:[#allocation3 + $0x648] sm:$0xff]  ;;  %v66_v15 = vld [vmem:[%s9421_s1] sm:$0xf] }
  0x1b   :  { %653 = vmatpush.msra.mxu3 %v550_v26  ;;  %594 = vmatpush.msra.mxu0 %v413_v27  ;;  %v533_v33 = vld [vmem:[#allocation3 + $0x640] sm:$0xff]  ;;  %v398_v38 = vld [vmem:[#allocation3 + $0x208] sm:$0xff]  ;;  %v576_v16 = vld [vmem:[#allocation3 + $0x798] sm:$0xff]  ;;  %v5456_v25 = vperm.slane %v66_v15, 0  ;;  %v5458_v26 = vperm.slane %v66_v15, 1  ;;  %v5460_v27 = vperm.slane %v66_v15, 2 }
  0x1c   :  { %614 = vmatpush.msra.mxu1 %v541_v28  ;;  %634 = vmatpush.msra.mxu2 %v414_v29  ;;  %v397_v36 = vld [vmem:[#allocation3 + $0x200] sm:$0xff]  ;;  %v526_v39 = vld [vmem:[#allocation3 + $0x608] sm:$0xff]  ;;  %v439_v17 = vld [vmem:[#allocation3 + $0x350] sm:$0xff]  ;;  %v5462_v28 = vperm.slane %v66_v15, 3 }
  0x1d   :  { %654 = vmatpush.msra.mxu3 %v542_v30  ;;  %595 = vmatpush.msra.mxu0 %v405_v32  ;;  %v525_v37 = vld [vmem:[#allocation3 + $0x600] sm:$0xff]  ;;  %v390_v42 = vld [vmem:[#allocation3 + $0x1c8] sm:$0xff]  ;;  %v567_v18 = vld [vmem:[#allocation3 + $0x750] sm:$0xff]  ;;  %10018 = vst [vmem:[#allocation9_spill] sm:$0xff] %v5456_v25 }
  0x1e   :  { %99 = vperm.xlu0 %4303, %v64_v31   ;;  %615 = vmatpush.msra.mxu1 %v533_v33  ;;  %v389_v40 = vld [vmem:[#allocation3 + $0x1c0] sm:$0xff]  ;;  %v518_v43 = vld [vmem:[#allocation3 + $0x5c8] sm:$0xff]  ;;  %v440_v19 = vld [vmem:[#allocation3 + $0x358] sm:$0xff]  ;;  %10019 = vst [vmem:[#allocation10_spill] sm:$0xff] %v5458_v26 }
  0x1f   :  { %635 = vmatpush.msra.mxu2 %v406_v34  ;;  %655 = vmatpush.msra.mxu3 %v534_v35  ;;  %v517_v41 = vld [vmem:[#allocation3 + $0x5c0] sm:$0xff]  ;;  %v382_v46 = vld [vmem:[#allocation3 + $0x188] sm:$0xff]  ;;  %v148_v20 = vld [vmem:[%s9422_s2] sm:$0xf]  ;;  %10020 = vst [vmem:[#allocation11_spill] sm:$0xff] %v5460_v27 }
  0x20   :  { %596 = vmatpush.msra.mxu0 %v397_v36  ;;  %616 = vmatpush.msra.mxu1 %v525_v37  ;;  %v381_v44 = vld [vmem:[#allocation3 + $0x180] sm:$0xff]  ;;  %v510_v47 = vld [vmem:[#allocation3 + $0x588] sm:$0xff]  ;;  %v568_v21 = vld [vmem:[#allocation3 + $0x758] sm:$0xff]  ;;  %10021 = vst [vmem:[#allocation12_spill] sm:$0xff] %v5462_v28  ;;  %v5464_v33 = vperm.slane %v148_v20, 1  ;;  %v5466_v34 = vperm.slane %v148_v20, 2 }
  0x21   :  { %636 = vmatpush.msra.mxu2 %v398_v38  ;;  %656 = vmatpush.msra.mxu3 %v526_v39  ;;  %v509_v45 = vld [vmem:[#allocation3 + $0x580] sm:$0xff]  ;;  %v374_v50 = vld [vmem:[#allocation3 + $0x148] sm:$0xff]  ;;  %v431_v22 = vld [vmem:[#allocation3 + $0x310] sm:$0xff]  ;;  %v5468_v35 = vperm.slane %v148_v20, 3  ;;  %v5470_v37 = vperm.slane %v148_v20, 0 }
  0x22   :  { %597 = vmatpush.msra.mxu0 %v389_v40  ;;  %617 = vmatpush.msra.mxu1 %v517_v41  ;;  %v373_v48 = vld [vmem:[#allocation3 + $0x140] sm:$0xff]  ;;  %v502_v51 = vld [vmem:[#allocation3 + $0x548] sm:$0xff]  ;;  %v559_v23 = vld [vmem:[#allocation3 + $0x710] sm:$0xff]  ;;  %10022 = vst [vmem:[#allocation13_spill] sm:$0xff] %v5464_v33 }
  0x23   :  { %637 = vmatpush.msra.mxu2 %v390_v42  ;;  %657 = vmatpush.msra.mxu3 %v518_v43  ;;  %v501_v49 = vld [vmem:[#allocation3 + $0x540] sm:$0xff]  ;;  %v366_v54 = vld [vmem:[#allocation3 + $0x108] sm:$0xff]  ;;  %v432_v24 = vld [vmem:[#allocation3 + $0x318] sm:$0xff]  ;;  %10023 = vst [vmem:[#allocation14_spill] sm:$0xff] %v5466_v34 }
  0x24   :  { %598 = vmatpush.msra.mxu0 %v381_v44  ;;  %618 = vmatpush.msra.mxu1 %v509_v45  ;;  %v365_v52 = vld [vmem:[#allocation3 + $0x100] sm:$0xff]  ;;  %v494_v55 = vld [vmem:[#allocation3 + $0x508] sm:$0xff]  ;;  %v560_v29 = vld [vmem:[#allocation3 + $0x718] sm:$0xff]  ;;  %10024 = vst [vmem:[#allocation15_spill] sm:$0xff] %v5468_v35 }
  0x25   :  { %638 = vmatpush.msra.mxu2 %v382_v46  ;;  %658 = vmatpush.msra.mxu3 %v510_v47  ;;  %v493_v53 = vld [vmem:[#allocation3 + $0x500] sm:$0xff]  ;;  %v358_v58 = vld [vmem:[#allocation3 + $0xc8] sm:$0xff]  ;;  %v423_v30 = vld [vmem:[#allocation3 + $0x2d0] sm:$0xff]  ;;  %10025 = vst [vmem:[#allocation16_spill] sm:$0xff] %v5470_v37 }
  0x26   :  { %599 = vmatpush.msra.mxu0 %v373_v48  ;;  %619 = vmatpush.msra.mxu1 %v501_v49  ;;  %v357_v56 = vld [vmem:[#allocation3 + $0xc0] sm:$0xff]  ;;  %v486_v59 = vld [vmem:[#allocation3 + $0x4c8] sm:$0xff]  ;;  %v551_v31 = vld [vmem:[#allocation3 + $0x6d0] sm:$0xff] }
  0x27   :  { %639 = vmatpush.msra.mxu2 %v374_v50  ;;  %659 = vmatpush.msra.mxu3 %v502_v51  ;;  %v485_v57 = vld [vmem:[#allocation3 + $0x4c0] sm:$0xff]  ;;  %v350_v62 = vld [vmem:[#allocation3 + $0x88] sm:$0xff]  ;;  %v424_v32 = vld [vmem:[#allocation3 + $0x2d8] sm:$0xff] }
  0x28   :  { %600 = vmatpush.msra.mxu0 %v365_v52  ;;  %620 = vmatpush.msra.mxu1 %v493_v53  ;;  %v349_v60 = vld [vmem:[#allocation3 + $0x80] sm:$0xff]  ;;  %v478_v63 = vld [vmem:[#allocation3 + $0x488] sm:$0xff]  ;;  %v552_v36 = vld [vmem:[#allocation3 + $0x6d8] sm:$0xff] }
  0x29   :  { %640 = vmatpush.msra.mxu2 %v366_v54  ;;  %660 = vmatpush.msra.mxu3 %v494_v55  ;;  %v477_v61 = vld [vmem:[#allocation3 + $0x480] sm:$0xff]  ;;  %v342_v2 = vld [vmem:[#allocation3 + $0x48] sm:$0xff]  ;;  %v415_v39 = vld [vmem:[#allocation3 + $0x290] sm:$0xff] }
  0x2a   :  { %601 = vmatpush.msra.mxu0 %v357_v56  ;;  %621 = vmatpush.msra.mxu1 %v485_v57  ;;  %v341_v0 = vld [vmem:[#allocation3 + $0x40] sm:$0xff]  ;;  %v470_v3 = vld [vmem:[#allocation3 + $0x448] sm:$0xff]  ;;  %v543_v44 = vld [vmem:[#allocation3 + $0x690] sm:$0xff] }
  0x2b   :  { %641 = vmatpush.msra.mxu2 %v358_v58  ;;  %661 = vmatpush.msra.mxu3 %v486_v59  ;;  %v469_v1 = vld [vmem:[#allocation3 + $0x440] sm:$0xff]  ;;  %v334_v6 = vld [vmem:[#allocation3 + $0x8] sm:$0xff]  ;;  %v416_v45 = vld [vmem:[#allocation3 + $0x298] sm:$0xff] }
  0x2c   :  { %602 = vmatpush.msra.mxu0 %v349_v60  ;;  %622 = vmatpush.msra.mxu1 %v477_v61  ;;  %v333_v4 = vld [vmem:[#allocation3] sm:$0xff]  ;;  %v462_v7 = vld [vmem:[#allocation3 + $0x408] sm:$0xff]  ;;  %v544_v46 = vld [vmem:[#allocation3 + $0x698] sm:$0xff] }
  0x2d   :  { %642 = vmatpush.msra.mxu2 %v350_v62  ;;  %662 = vmatpush.msra.mxu3 %v478_v63  ;;  %v461_v5 = vld [vmem:[#allocation3 + $0x400] sm:$0xff]  ;;  %v407_v50 = vld [vmem:[#allocation3 + $0x250] sm:$0xff]  ;;  %v408_v52 = vld [vmem:[#allocation3 + $0x258] sm:$0xff] }
  0x2e   :  { %603 = vmatpush.msra.mxu0 %v341_v0  ;;  %623 = vmatpush.msra.mxu1 %v469_v1  ;;  %v535_v51 = vld [vmem:[#allocation3 + $0x650] sm:$0xff]  ;;  %v536_v57 = vld [vmem:[#allocation3 + $0x658] sm:$0xff] }
  0x2f   :  { %643 = vmatpush.msra.mxu2 %v342_v2  ;;  %663 = vmatpush.msra.mxu3 %v470_v3  ;;  %v399_v58 = vld [vmem:[#allocation3 + $0x210] sm:$0xff]  ;;  %v400_v62 = vld [vmem:[#allocation3 + $0x218] sm:$0xff] }
  0x30   :  { %604 = vmatpush.msra.mxu0 %v333_v4  ;;  %624 = vmatpush.msra.mxu1 %v461_v5  ;;  %v527_v59 = vld [vmem:[#allocation3 + $0x610] sm:$0xff]  ;;  %v528_v1 = vld [vmem:[#allocation3 + $0x618] sm:$0xff] }
  0x31   :  { %644 = vmatpush.msra.mxu2 %v334_v6  ;;  %664 = vmatpush.msra.mxu3 %v462_v7  ;;  %v391_v2 = vld [vmem:[#allocation3 + $0x1d0] sm:$0xff]  ;;  %v392_v7 = vld [vmem:[#allocation3 + $0x1d8] sm:$0xff] }
  0x32   :  { %669 = vmatpush.msrb.mxu0 %v455_v8  ;;  %689 = vmatpush.msrb.mxu1 %v583_v9  ;;  %v519_v6 = vld [vmem:[#allocation3 + $0x5d0] sm:$0xff] }
  0x33   :  { %709 = vmatpush.msrb.mxu2 %v456_v10  ;;  %729 = vmatpush.msrb.mxu3 %v584_v11  ;;  %v520_v10 = vld [vmem:[#allocation3 + $0x5d8] sm:$0xff]  ;;  %v383_v11 = vld [vmem:[#allocation3 + $0x190] sm:$0xff] }
  0x34   :  { %670 = vmatpush.msrb.mxu0 %v447_v12  ;;  %690 = vmatpush.msrb.mxu1 %v575_v13  ;;  %v511_v13 = vld [vmem:[#allocation3 + $0x590] sm:$0xff] }
  0x35   :  { %710 = vmatpush.msrb.mxu2 %v448_v14  ;;  %730 = vmatpush.msrb.mxu3 %v576_v16  ;;  %v384_v14 = vld [vmem:[#allocation3 + $0x198] sm:$0xff] }
  0x36   :  { %671 = vmatpush.msrb.mxu0 %v439_v17  ;;  %691 = vmatpush.msrb.mxu1 %v567_v18  ;;  %v512_v17 = vld [vmem:[#allocation3 + $0x598] sm:$0xff]  ;;  %v375_v18 = vld [vmem:[#allocation3 + $0x150] sm:$0xff] }
  0x37   :  { %711 = vmatpush.msrb.mxu2 %v440_v19  ;;  %731 = vmatpush.msrb.mxu3 %v568_v21  ;;  %v503_v21 = vld [vmem:[#allocation3 + $0x550] sm:$0xff] }
  0x38   :  { %672 = vmatpush.msrb.mxu0 %v431_v22  ;;  %692 = vmatpush.msrb.mxu1 %v559_v23  ;;  %v376_v22 = vld [vmem:[#allocation3 + $0x158] sm:$0xff] }
  0x39   :  { %712 = vmatpush.msrb.mxu2 %v432_v24  ;;  %732 = vmatpush.msrb.mxu3 %v560_v29 }
  0x3a   :  { %673 = vmatpush.msrb.mxu0 %v423_v30  ;;  %693 = vmatpush.msrb.mxu1 %v551_v31  ;;  %v504_v30 = vld [vmem:[#allocation3 + $0x558] sm:$0xff] }
  0x3b   :  { %713 = vmatpush.msrb.mxu2 %v424_v32  ;;  %733 = vmatpush.msrb.mxu3 %v552_v36  ;;  %v367_v32 = vld [vmem:[#allocation3 + $0x110] sm:$0xff] }
  0x3c   :  { %674 = vmatpush.msrb.mxu0 %v415_v39  ;;  %694 = vmatpush.msrb.mxu1 %v543_v44  ;;  %v495_v36 = vld [vmem:[#allocation3 + $0x510] sm:$0xff]  ;;  %v368_v39 = vld [vmem:[#allocation3 + $0x118] sm:$0xff] }
  0x3d   :  { %714 = vmatpush.msrb.mxu2 %v416_v45  ;;  %734 = vmatpush.msrb.mxu3 %v544_v46  ;;  %v359_v46 = vld [vmem:[#allocation3 + $0xd0] sm:$0xff] }
  0x3e   :  { %675 = vmatpush.msrb.mxu0 %v407_v50  ;;  %695 = vmatpush.msrb.mxu1 %v535_v51  ;;  %v488_v50 = vld [vmem:[#allocation3 + $0x4d8] sm:$0xff]  ;;  %v351_v51 = vld [vmem:[#allocation3 + $0x90] sm:$0xff] }
  0x3f   :  { %715 = vmatpush.msrb.mxu2 %v408_v52  ;;  %735 = vmatpush.msrb.mxu3 %v536_v57  ;;  %v479_v52 = vld [vmem:[#allocation3 + $0x490] sm:$0xff] }
  0x40   :  { %676 = vmatpush.msrb.mxu0 %v399_v58  ;;  %696 = vmatpush.msrb.mxu1 %v527_v59  ;;  %v343_v59 = vld [vmem:[#allocation3 + $0x50] sm:$0xff] }
  0x41   :  { %716 = vmatpush.msrb.mxu2 %v400_v62  ;;  %736 = vmatpush.msrb.mxu3 %v528_v1  ;;  %v472_v62 = vld [vmem:[#allocation3 + $0x458] sm:$0xff]  ;;  %v463_v1 = vld [vmem:[#allocation3 + $0x410] sm:$0xff] }
  0x42   :  { %677 = vmatpush.msrb.mxu0 %v391_v2  ;;  %697 = vmatpush.msrb.mxu1 %v519_v6  ;;  %v336_v6 = vld [vmem:[#allocation3 + $0x18] sm:$0xff] }
  0x43   :  { %717 = vmatpush.msrb.mxu2 %v392_v7  ;;  %737 = vmatpush.msrb.mxu3 %v520_v10  ;;  %v5508_v7 = vld [vmem:[#allocation3 + $0x418] sm:$0xff] }
  0x44   :  { %678 = vmatpush.msrb.mxu0 %v383_v11  ;;  %698 = vmatpush.msrb.mxu1 %v511_v13  ;;  %v585_v11 = vld [vmem:[#allocation3 + $0x7e0] sm:$0xff] }
  0x45   :  { %718 = vmatpush.msrb.mxu2 %v384_v14  ;;  %738 = vmatpush.msrb.mxu3 %v512_v17  ;;  %v9428_v17 = vmov 0.0  }
  0x46   :  { %679 = vmatpush.msrb.mxu0 %v375_v18  ;;  %699 = vmatpush.msrb.mxu1 %v503_v21  ;;  %v577_v18 = vld [vmem:[#allocation3 + $0x7a0] sm:$0xff] }
  0x47   :  { %719 = vmatpush.msrb.mxu2 %v376_v22  ;;  %739 = vmatpush.msrb.mxu3 %v504_v30  ;;  %v570_v30 = vld [vmem:[#allocation3 + $0x768] sm:$0xff] }
  0x48   :  { %680 = vmatpush.msrb.mxu0 %v367_v32  ;;  %700 = vmatpush.msrb.mxu1 %v495_v36 }
  0x49   :  { %720 = vmatpush.msrb.mxu2 %v368_v39  ;;  %625 = vmatmul.f32.vlgmr.msra.gmra.mxu1 %v9428_v17 }
  0x4a   :  { %681 = vmatpush.msrb.mxu0 %v359_v46  ;;  %665 = vmatmul.f32.vlgmr.msra.gmra.mxu3 %v9428_v17 }
  0x4c   :  { %682 = vmatpush.msrb.mxu0 %v351_v51 }
  0x4e   :  { %683 = vmatpush.msrb.mxu0 %v343_v59 }
  0x80   :  { %v70_v38 = vpop.permute.xlu0 %69 }
  0x81   :  { %v116_v40 = vmul.f32 %v5456_v25, %v70_v38  ;;  %v117_v41 = vmul.f32 %v5458_v26, %v70_v38  ;;  %v118_v42 = vmul.f32 %v5460_v27, %v70_v38  ;;  %v119_v43 = vmul.f32 %v5462_v28, %v70_v38  ;;  %v80_v29 = vpop.permute.xlu1 %79 }
  0x82   :  { %v126_v44 = vmul.f32 %v5460_v27, %v80_v29  ;;  %v127_v45 = vmul.f32 %v5462_v28, %v80_v29 }
  0x83   :  { %v159_v47 = vadd.f32 %v5464_v33, %v117_v41  ;;  %v160_v48 = vadd.f32 %v5466_v34, %v118_v42  ;;  %v161_v49 = vadd.f32 %v5468_v35, %v119_v43  ;;  %v158_v53 = vadd.f32 %v5470_v37, %v116_v40  ;;  %v496_v40 = vld [vmem:[#allocation3 + $0x518] sm:$0xff] }
  0x84   :  { %v125_v43 = vmul.f32 %v5458_v26, %v80_v29  ;;  %740 = vmatpush.msrb.mxu3 %v496_v40  ;;  %v168_v57 = vadd.f32 %v5466_v34, %v126_v44  ;;  %v169_v58 = vadd.f32 %v5468_v35, %v127_v45  ;;  %v561_v40 = vld [vmem:[#allocation3 + $0x720] sm:$0xff] }
  0x85   :  { %v222_v54 = vrot.slane %v159_v47, 6  ;;  %v223_v55 = vrot.slane %v160_v48, 4  ;;  %v224_v56 = vrot.slane %v161_v49, 2  ;;  %v487_v47 = vld [vmem:[#allocation3 + $0x4d0] sm:$0xff]  ;;  %v360_v49 = vld [vmem:[#allocation3 + $0xd8] sm:$0xff] }
  0x86   :  { %701 = vmatpush.msrb.mxu1 %v487_v47  ;;  %721 = vmatpush.msrb.mxu2 %v360_v49 }
  0x87   :  { %v247_v60 = vsel %vm246_vm0, %v158_v53, %v222_v54  ;;  %v249_v61 = vsel %vm248_vm1, %v223_v55, %v224_v56  ;;  %v124_v53 = vmul.f32 %v5456_v25, %v80_v29  ;;  %v352_v54 = vld [vmem:[#allocation3 + $0x98] sm:$0xff]  ;;  %v167_v56 = vadd.f32 %v5464_v33, %v125_v43  ;;  %741 = vmatpush.msrb.mxu3 %v488_v50  ;;  %v569_v29 = vld [vmem:[#allocation3 + $0x760] sm:$0xff]  ;;  %v554_v50 = vld [vmem:[#allocation3 + $0x6e8] sm:$0xff] }
  0x88   :  { %v5483_v63 = vsel %vm250_vm2, %v247_v60, %v249_v61  ;;  %v75_v0 = vpop.permute.xlu0 %74  ;;  %v480_v55 = vld [vmem:[#allocation3 + $0x498] sm:$0xff]  ;;  %702 = vmatpush.msrb.mxu1 %v479_v52  ;;  %v471_v60 = vld [vmem:[#allocation3 + $0x450] sm:$0xff]  ;;  %722 = vmatpush.msrb.mxu2 %v352_v54  ;;  %v546_v54 = vld [vmem:[#allocation3 + $0x6a8] sm:$0xff] }
  0x89   :  { %v4249_v3 = vmul.f32 -1.442695, %v5483_v63  ;;  %v120_v4 = vmul.f32 %v5456_v25, %v75_v0  ;;  %v121_v5 = vmul.f32 %v5458_v26, %v75_v0  ;;  %v122_v8 = vmul.f32 %v5460_v27, %v75_v0  ;;  %v344_v61 = vld [vmem:[#allocation3 + $0x58] sm:$0xff]  ;;  %742 = vmatpush.msrb.mxu3 %v480_v55  ;;  %v85_v10 = vpop.permute.xlu1 %84 }
  0x8a   :  { %v123_v9 = vmul.f32 %v5462_v28, %v75_v0  ;;  %v335_v0 = vld [vmem:[#allocation3 + $0x10] sm:$0xff]  ;;  %v166_v2 = vadd.f32 %v5470_v37, %v124_v53  ;;  %703 = vmatpush.msrb.mxu1 %v471_v60  ;;  %723 = vmatpush.msrb.mxu2 %v344_v61  ;;  %v320_v13 = vrot.slane %v5483_v63, 6  ;;  %v129_v63 = vmul.f32 %v5458_v26, %v85_v10  ;;  %v545_v53 = vld [vmem:[#allocation3 + $0x6a0] sm:$0xff] }
  0x8b   :  { %4307 = vpow2.f32 %v4249_v3  ;;  %v163_v12 = vadd.f32 %v5464_v33, %v121_v5  ;;  %v164_v15 = vadd.f32 %v5466_v34, %v122_v8  ;;  %v162_v19 = vadd.f32 %v5470_v37, %v120_v4  ;;  %743 = vmatpush.msrb.mxu3 %v472_v62  ;;  %684 = vmatpush.msrb.mxu0 %v335_v0  ;;  %v537_v62 = vld [vmem:[#allocation3 + $0x660] sm:$0xff]  ;;  %v538_v0 = vld [vmem:[#allocation3 + $0x668] sm:$0xff] }
  0x8c   :  { %v165_v16 = vadd.f32 %v5468_v35, %v123_v9  ;;  %v228_v3 = vrot.slane %v167_v56, 6  ;;  %v229_v4 = vrot.slane %v168_v57, 4  ;;  %v230_v5 = vrot.slane %v169_v58, 2  ;;  %704 = vmatpush.msrb.mxu1 %v463_v1  ;;  %724 = vmatpush.msrb.mxu2 %v336_v6 }
  0x8d   :  { %v225_v20 = vrot.slane %v163_v12, 6  ;;  %v226_v23 = vrot.slane %v164_v15, 4  ;;  %v586_v12 = vld [vmem:[#allocation3 + $0x7e8] sm:$0xff]  ;;  %744 = vmatpush.msrb.mxu3 %v5508_v7  ;;  %v128_v43 = vmul.f32 %v5456_v25, %v85_v10  ;;  %v171_v44 = vadd.f32 %v5464_v33, %v129_v63  ;;  %705 = vmatmul.f32.vlgmr.msrb.gmra.mxu1 %v9428_v17 }
  0x8e   :  { %v227_v24 = vrot.slane %v165_v16, 2  ;;  %v255_v15 = vsel %vm246_vm0, %v166_v2, %v228_v3  ;;  %v256_v16 = vsel %vm248_vm1, %v229_v4, %v230_v5  ;;  %769 = vmatpush.msra.mxu1 %v585_v11  ;;  %745 = vmatmul.f32.vlgmr.msrb.gmra.mxu3 %v9428_v17  ;;  %v529_v2 = vld [vmem:[#allocation3 + $0x620] sm:$0xff]  ;;  %v530_v3 = vld [vmem:[#allocation3 + $0x628] sm:$0xff]  ;;  %v90_v4 = vpop.permute.xlu2 %89 }
  0x8f   :  { %v252_v31 = vsel %vm246_vm0, %v162_v19, %v225_v20  ;;  %v578_v19 = vld [vmem:[#allocation3 + $0x7a8] sm:$0xff]  ;;  %809 = vmatpush.msra.mxu3 %v586_v12  ;;  %v257_v32 = vsel %vm250_vm2, %v255_v15, %v256_v16  ;;  %v170_v56 = vadd.f32 %v5470_v37, %v128_v43  ;;  %v231_v57 = vrot.slane %v171_v44, 6  ;;  %v513_v11 = vld [vmem:[#allocation3 + $0x5a0] sm:$0xff] }
  0x90   :  { %v253_v38 = vsel %vm248_vm1, %v226_v23, %v227_v24  ;;  %v130_v23 = vmul.f32 %v5460_v27, %v85_v10  ;;  %v131_v24 = vmul.f32 %v5462_v28, %v85_v10  ;;  %770 = vmatpush.msra.mxu1 %v577_v18  ;;  %v133_v10 = vmul.f32 %v5458_v26, %v90_v4  ;;  %v514_v12 = vld [vmem:[#allocation3 + $0x5a8] sm:$0xff]  ;;  %v5569_v44 = vld [vmem:[#allocation3 + $0x3a0] sm:$0xff] }
  0x91   :  { %v4308_v41 = vpop.eup %4307  ;;  %v254_v42 = vsel %vm250_vm2, %v252_v31, %v253_v38  ;;  %810 = vmatpush.msra.mxu3 %v578_v19  ;;  %v258_v5 = vsel %vm246_vm0, %v170_v56, %v231_v57  ;;  %v134_v15 = vmul.f32 %v5460_v27, %v90_v4  ;;  %v135_v16 = vmul.f32 %v5462_v28, %v90_v4  ;;  %v498_v43 = vld [vmem:[#allocation3 + $0x528] sm:$0xff]  ;;  %v5582_v57 = vld [vmem:[#allocation3 + $0x320] sm:$0xff] }
  0x92   :  { %v5500_v48 = vadd.f32 1.0, %v4308_v41  ;;  %979 = vst [vmem:[#allocation1] ss:$4 sm:$0xff] %v254_v42  ;;  %v562_v41 = vld [vmem:[#allocation3 + $0x728] sm:$0xff]  ;;  %771 = vmatpush.msra.mxu1 %v569_v29  ;;  %v172_v47 = vadd.f32 %v5466_v34, %v130_v23  ;;  %v173_v49 = vadd.f32 %v5468_v35, %v131_v24  ;;  %v132_v24 = vmul.f32 %v5456_v25, %v90_v4  ;;  %v473_v4 = vld [vmem:[#allocation3 + $0x460] sm:$0xff] }
  0x93   :  { %811 = vmatpush.msra.mxu3 %v570_v30  ;;  %v175_v29 = vadd.f32 %v5464_v33, %v133_v10  ;;  %v482_v56 = vld [vmem:[#allocation3 + $0x4a8] sm:$0xff]  ;;  %v465_v10 = vld [vmem:[#allocation3 + $0x420] sm:$0xff] }
  0x94   :  { %4309 = vrcp.f32 %v5500_v48  ;;  %v313_v20 = vand.u32 2147483647, %v5500_v48  ;;  %v315_v21 = vand.u32 2147483648, %v5500_v48  ;;  %vm309_vm4 = vweird.f32 %v5500_v48  ;;  %772 = vmatpush.msra.mxu1 %v561_v40  ;;  %v5563_v40 = vld [vmem:[#allocation3 + $0x3e0] sm:$0xff] }
  0x95   :  { %4311 = vtanh.f32 %v320_v13  ;;  %812 = vmatpush.msra.mxu3 %v562_v41  ;;  %v232_v60 = vrot.slane %v172_v47, 4  ;;  %v233_v61 = vrot.slane %v173_v49, 2  ;;  %v5565_v41 = vld [vmem:[#allocation3 + $0x3e8] sm:$0xff]  ;;  %v489_v47 = vld [vmem:[#allocation3 + $0x4e0] sm:$0xff] }
  0x96   :  { %v316_v42 = vor.u32 1.1754944e-38, %v315_v21  ;;  %vm314_vm6 = vcmp.eq.f32.partialorder %v313_v20, 8.507059e+37  ;;  %v505_v20 = vld [vmem:[#allocation3 + $0x560] sm:$0xff]  ;;  %v506_v21 = vld [vmem:[#allocation3 + $0x568] sm:$0xff] }
  0x97   :  { %813 = vmatpush.msra.mxu3 %v554_v50  ;;  %v259_v6 = vsel %vm248_vm1, %v232_v60, %v233_v61  ;;  %v490_v49 = vld [vmem:[#allocation3 + $0x4e8] sm:$0xff]  ;;  %v234_v50 = vrot.slane %v175_v29, 6 }
  0x99   :  { %v5522_v31 = vld.sshfl [vmem:[#allocation1] sm:$0xff pattern:$0x73625140]  ;;  %v5525_v36 = vld.sshfl [vmem:[#allocation1 + $0x8] sm:$0xff pattern:$0x73625140]  ;;  %814 = vmatpush.msra.mxu3 %v546_v54 }
  0x9a   :  { %v4310_v8 = vpop.eup %4309  ;;  %v5527_v38 = vld.sshfl [vmem:[#allocation1 + $0x10] sm:$0xff pattern:$0x73625140]  ;;  %v5533_v45 = vld.sshfl [vmem:[#allocation1 + $0x18] sm:$0xff pattern:$0x73625140] }
  0x9b   :  { %v305_v9 = vmul.f32 %v4310_v8, %v5500_v48  ;;  %vm310_vm3 = vweird.f32 %v4310_v8  ;;  %v553_v48 = vld [vmem:[#allocation3 + $0x6e0] sm:$0xff]  ;;  %1445 = vst [vmem:[#allocation1] ss:$4 sm:$0xff] %v257_v32  ;;  %v4312_v55 = vpop.eup %4311  ;;  %815 = vmatpush.msra.mxu3 %v538_v0  ;;  %v176_v32 = vadd.f32 %v5466_v34, %v134_v15  ;;  %v5578_v54 = vld [vmem:[#allocation3 + $0x368] sm:$0xff] }
  0x9c   :  { %vm311_vm5 = vmor %vm309_vm4, %vm310_vm3  ;;  %773 = vmatpush.msra.mxu1 %v553_v48  ;;  %v174_v48 = vadd.f32 %v5470_v37, %v132_v24  ;;  %v5592_v0 = vld [vmem:[#allocation3 + $0x2e8] sm:$0xff] }
  0x9d   :  { %v306_v14 = vsub.f32 1.0, %v305_v9  ;;  %v522_v9 = vld [vmem:[#allocation3 + $0x5e8] sm:$0xff]  ;;  %816 = vmatpush.msra.mxu3 %v530_v3 }
  0x9e   :  { %774 = vmatpush.msra.mxu1 %v545_v53  ;;  %v5576_v53 = vld [vmem:[#allocation3 + $0x360] sm:$0xff]  ;;  %v261_v60 = vsel %vm246_vm0, %v174_v48, %v234_v50  ;;  %v5598_v3 = vld [vmem:[#allocation3 + $0x2a8] sm:$0xff]  ;;  %v100_v50 = vpop.permute.xlu0 %99 }
  0x9f   :  { %v307_v22 = vmul.f32 %v4310_v8, %v306_v14  ;;  %v260_v14 = vsel %vm250_vm2, %v258_v5, %v259_v6  ;;  %817 = vmatpush.msra.mxu3 %v522_v9  ;;  %v474_v5 = vld [vmem:[#allocation3 + $0x468] sm:$0xff] }
  0xa0   :  { %775 = vmatpush.msra.mxu1 %v537_v62  ;;  %v5590_v62 = vld [vmem:[#allocation3 + $0x2e0] sm:$0xff]  ;;  %v5634_v48 = vld [vmem:[#allocation3 + $0x1e8] sm:$0xff] }
  0xa1   :  { %v308_v39 = vadd.f32 %v4310_v8, %v307_v22  ;;  %818 = vmatpush.msra.mxu3 %v514_v12 }
  0xa2   :  { %776 = vmatpush.msra.mxu1 %v529_v2  ;;  %v5546_v13 = vld.sshfl [vmem:[#allocation1] sm:$0xff pattern:$0x73625140]  ;;  %v5551_v18 = vld.sshfl [vmem:[#allocation1 + $0x8] sm:$0xff pattern:$0x73625140] }
  0xa3   :  { %v312_v46 = vsel %vm311_vm5, %v4310_v8, %v308_v39  ;;  %v521_v8 = vld [vmem:[#allocation3 + $0x5e0] sm:$0xff]  ;;  %10026 = vst [vmem:[#allocation17_spill] sm:$0xff] %v5546_v13  ;;  %v5553_v19 = vld.sshfl [vmem:[#allocation1 + $0x10] sm:$0xff pattern:$0x73625140]  ;;  %v177_v39 = vadd.f32 %v5468_v35, %v135_v16  ;;  %819 = vmatpush.msra.mxu3 %v506_v21  ;;  %v5769_v13 = vld [vmem:[#allocation3 + $0x1b0] sm:$0xff] }
  0xa4   :  { %v317_v51 = vsel %vm314_vm6, %v316_v42, %v312_v46  ;;  %777 = vmatpush.msra.mxu1 %v521_v8  ;;  %10027 = vst [vmem:[#allocation18_spill] sm:$0xff] %v5551_v18  ;;  %v5555_v22 = vld.sshfl [vmem:[#allocation1 + $0x18] sm:$0xff pattern:$0x73625140]  ;;  %v497_v42 = vld [vmem:[#allocation3 + $0x520] sm:$0xff]  ;;  %v5571_v46 = vld [vmem:[#allocation3 + $0x3a8] sm:$0xff] }
  0xa5   :  { %v324_v52 = vrot.slane %v317_v51, 2  ;;  %v327_v59 = vmul.f32 %v4312_v55, %v317_v51  ;;  %10028 = vst [vmem:[#allocation19_spill] sm:$0xff] %v5553_v19  ;;  %v330_v63 = vrot.slane %v317_v51, 4  ;;  %v235_v51 = vrot.slane %v176_v32, 4  ;;  %820 = vmatpush.msra.mxu3 %v498_v43  ;;  %v481_v55 = vld [vmem:[#allocation3 + $0x4a0] sm:$0xff]  ;;  %v5616_v21 = vld [vmem:[#allocation3 + $0x268] sm:$0xff] }
  0xa6   :  { %778 = vmatpush.msra.mxu1 %v513_v11  ;;  %10029 = vst [vmem:[#allocation20_spill] sm:$0xff] %v5555_v22  ;;  %v5594_v2 = vld [vmem:[#allocation3 + $0x2a0] sm:$0xff]  ;;  %v466_v11 = vld [vmem:[#allocation3 + $0x428] sm:$0xff]  ;;  %v587_v43 = vld [vmem:[#allocation3 + $0x7f0] sm:$0xff] }
  0xa7   :  { %v326_v58 = vmul.f32 0.0, %v324_v52  ;;  %1911 = vst [vmem:[#allocation1] ss:$4 sm:$0xff] %v260_v14  ;;  %v236_v52 = vrot.slane %v177_v39, 2  ;;  %821 = vmatpush.msra.mxu3 %v490_v49  ;;  %v5626_v39 = vld [vmem:[#allocation3 + $0x220] sm:$0xff]  ;;  %v467_v19 = vld [vmem:[#allocation3 + $0x430] sm:$0xff] }
  0xa8   :  { %779 = vmatpush.msra.mxu1 %v505_v20  ;;  %v5614_v20 = vld [vmem:[#allocation3 + $0x260] sm:$0xff]  ;;  %v468_v18 = vld [vmem:[#allocation3 + $0x438] sm:$0xff]  ;;  %10058 = vst [vmem:[#allocation49_spill] sm:$0xff] %v5769_v13 }
  0xa9   :  { %v5540_v1 = vadd.f32 %v327_v59, %v326_v58  ;;  %v5584_v58 = vld [vmem:[#allocation3 + $0x328] sm:$0xff]  ;;  %v95_v59 = vpop.permute.xlu2 %94  ;;  %v262_v61 = vsel %vm248_vm1, %v235_v51, %v236_v52  ;;  %822 = vmatpush.msra.mxu3 %v482_v56  ;;  %v5632_v49 = vld [vmem:[#allocation3 + $0x1e0] sm:$0xff]  ;;  %v579_v51 = vld [vmem:[#allocation3 + $0x7b0] sm:$0xff] }
  0xaa   :  { %780 = vmatpush.msra.mxu1 %v497_v42  ;;  %v137_v6 = vmul.f32 %v5458_v26, %v95_v59  ;;  %v138_v8 = vmul.f32 %v5460_v27, %v95_v59  ;;  %v139_v9 = vmul.f32 %v5462_v28, %v95_v59  ;;  %v263_v14 = vsel %vm250_vm2, %v261_v60, %v262_v61  ;;  %v5628_v42 = vld [vmem:[#allocation3 + $0x228] sm:$0xff]  ;;  %v580_v52 = vld [vmem:[#allocation3 + $0x7b8] sm:$0xff]  ;;  %v5641_v61 = vld [vmem:[#allocation3 + $0x1a0] sm:$0xff] }
  0xab   :  { %4313 = vtanh.f32 %v5540_v1  ;;  %823 = vmatpush.msra.mxu3 %v474_v5  ;;  %v571_v5 = vld [vmem:[#allocation3 + $0x770] sm:$0xff]  ;;  %v5695_v22 = vld [vmem:[#allocation3 + $0x20] sm:$0xff] }
  0xac   :  { %781 = vmatpush.msra.mxu1 %v489_v47  ;;  %v179_v24 = vadd.f32 %v5464_v33, %v137_v6  ;;  %v180_v29 = vadd.f32 %v5466_v34, %v138_v8  ;;  %v181_v32 = vadd.f32 %v5468_v35, %v139_v9  ;;  %v588_v47 = vld [vmem:[#allocation3 + $0x7f8] sm:$0xff]  ;;  %v141_v8 = vmul.f32 %v5458_v26, %v100_v50  ;;  %v5648_v9 = vld [vmem:[#allocation3 + $0x160] sm:$0xff] }
  0xad   :  { %824 = vmatpush.msra.mxu3 %v466_v11  ;;  %v572_v6 = vld [vmem:[#allocation3 + $0x778] sm:$0xff]  ;;  %v142_v11 = vmul.f32 %v5460_v27, %v100_v50  ;;  %v475_v27 = vld [vmem:[#allocation3 + $0x470] sm:$0xff] }
  0xae   :  { %782 = vmatpush.msra.mxu1 %v481_v55  ;;  %v5605_v12 = vld.sshfl [vmem:[#allocation1] sm:$0xff pattern:$0x73625140]  ;;  %v5610_v15 = vld.sshfl [vmem:[#allocation1 + $0x8] sm:$0xff pattern:$0x73625140]  ;;  %825 = vmatmul.f32.vlgmr.msra.gmra.mxu3 %v9428_v17 }
  0xaf   :  { %10030 = vst [vmem:[#allocation21_spill] sm:$0xff] %v5605_v12  ;;  %v5612_v16 = vld.sshfl [vmem:[#allocation1 + $0x10] sm:$0xff pattern:$0x73625140]  ;;  %v237_v56 = vrot.slane %v179_v24, 6  ;;  %v239_v60 = vrot.slane %v181_v32, 2  ;;  %889 = vmatpush.msrb.mxu3 %v588_v47 }
  0xb0   :  { %10031 = vst [vmem:[#allocation22_spill] sm:$0xff] %v5610_v15  ;;  %783 = vmatpush.msra.mxu1 %v473_v4  ;;  %v5643_v4 = vld [vmem:[#allocation3 + $0x1a8] sm:$0xff]  ;;  %v564_v24 = vld [vmem:[#allocation3 + $0x738] sm:$0xff] }
  0xb1   :  { %v4314_v23 = vpop.eup %4313  ;;  %10032 = vst [vmem:[#allocation23_spill] sm:$0xff] %v5612_v16  ;;  %890 = vmatpush.msrb.mxu3 %v580_v52  ;;  %v5660_v47 = vld [vmem:[#allocation3 + $0x128] sm:$0xff]  ;;  %v184_v16 = vadd.f32 %v5466_v34, %v142_v11  ;;  %v140_v11 = vmul.f32 %v5456_v25, %v100_v50  ;;  %v476_v26 = vld [vmem:[#allocation3 + $0x478] sm:$0xff] }
  0xb2   :  { %v5559_v30 = vmul.f32 %v4314_v23, %v330_v63  ;;  %v136_v63 = vmul.f32 %v5456_v25, %v95_v59  ;;  %v5621_v23 = vld.sshfl [vmem:[#allocation1 + $0x18] sm:$0xff pattern:$0x73625140]  ;;  %784 = vmatpush.msra.mxu1 %v465_v10  ;;  %v238_v59 = vrot.slane %v180_v29, 4  ;;  %v5650_v10 = vld [vmem:[#allocation3 + $0x168] sm:$0xff]  ;;  %v508_v25 = vld [vmem:[#allocation3 + $0x578] sm:$0xff] }
  0xb3   :  { %10033 = vst [vmem:[#allocation24_spill] sm:$0xff] %v5621_v23  ;;  %785 = vmatmul.f32.vlgmr.msra.gmra.mxu1 %v9428_v17  ;;  %891 = vmatpush.msrb.mxu3 %v572_v6  ;;  %v5666_v52 = vld [vmem:[#allocation3 + $0xe8] sm:$0xff]  ;;  %v555_v17 = vld [vmem:[#allocation3 + $0x6f0] sm:$0xff]  ;;  %v556_v23 = vld [vmem:[#allocation3 + $0x6f8] sm:$0xff] }
  0xb4   :  { %605 = vmatmul.f32.vlgmr.msra.gmra.mxu0 %v5559_v30  ;;  %645 = vmatmul.f32.vlgmr.msra.gmra.mxu2 %v5559_v30  ;;  %2377 = vst [vmem:[#allocation1] ss:$4 sm:$0xff] %v263_v14  ;;  %v178_v55 = vadd.f32 %v5470_v37, %v136_v63  ;;  %v143_v14 = vmul.f32 %v5462_v28, %v100_v50  ;;  %v563_v63 = vld [vmem:[#allocation3 + $0x730] sm:$0xff] }
  0xb5   :  { %749 = vmatpush.msra.mxu0 %v5563_v40  ;;  %789 = vmatpush.msra.mxu2 %v5565_v41  ;;  %v265_v32 = vsel %vm248_vm1, %v238_v59, %v239_v60  ;;  %v548_v59 = vld [vmem:[#allocation3 + $0x6b8] sm:$0xff]  ;;  %v531_v50 = vld [vmem:[#allocation3 + $0x630] sm:$0xff] }
  0xb6   :  { %849 = vmatpush.msrb.mxu1 %v587_v43  ;;  %v264_v29 = vsel %vm246_vm0, %v178_v55, %v237_v56  ;;  %v5658_v43 = vld [vmem:[#allocation3 + $0x120] sm:$0xff]  ;;  %v183_v55 = vadd.f32 %v5464_v33, %v141_v8  ;;  %892 = vmatpush.msrb.mxu3 %v564_v24  ;;  %v547_v56 = vld [vmem:[#allocation3 + $0x6b0] sm:$0xff]  ;;  %v540_v24 = vld [vmem:[#allocation3 + $0x678] sm:$0xff] }
  0xb7   :  { %750 = vmatpush.msra.mxu0 %v5569_v44  ;;  %790 = vmatpush.msra.mxu2 %v5571_v46  ;;  %v266_v6 = vsel %vm250_vm2, %v264_v29, %v265_v32  ;;  %v5680_v8 = vld [vmem:[#allocation3 + $0xa0] sm:$0xff]  ;;  %v507_v33 = vld [vmem:[#allocation3 + $0x570] sm:$0xff] }
  0xb8   :  { %850 = vmatpush.msrb.mxu1 %v579_v51  ;;  %v5662_v51 = vld [vmem:[#allocation3 + $0xe0] sm:$0xff]  ;;  %893 = vmatpush.msrb.mxu3 %v556_v23  ;;  %v5733_v28 = vld [vmem:[#allocation3 + $0x330] sm:$0xff] }
  0xb9   :  { %751 = vmatpush.msra.mxu0 %v5576_v53  ;;  %791 = vmatpush.msra.mxu2 %v5578_v54  ;;  %v5689_v32 = vld [vmem:[#allocation3 + $0x60] sm:$0xff]  ;;  %10046 = vst [vmem:[#allocation37_spill] sm:$0xff] %v5733_v28 }
  0xba   :  { %851 = vmatpush.msrb.mxu1 %v571_v5  ;;  %v185_v5 = vadd.f32 %v5468_v35, %v143_v14  ;;  %v539_v14 = vld [vmem:[#allocation3 + $0x670] sm:$0xff]  ;;  %894 = vmatpush.msrb.mxu3 %v548_v59  ;;  %v5697_v35 = vld [vmem:[#allocation3 + $0x28] sm:$0xff] }
  0xbb   :  { %752 = vmatpush.msra.mxu0 %v5582_v57  ;;  %792 = vmatpush.msra.mxu2 %v5584_v58  ;;  %v5669_v60 = vld.sshfl [vmem:[#allocation1] sm:$0xff pattern:$0x73625140]  ;;  %v5676_v15 = vld.sshfl [vmem:[#allocation1 + $0x8] sm:$0xff pattern:$0x73625140] }
  0xbc   :  { %685 = vmatmul.f32.vlgmr.msrb.gmra.mxu0 %v5559_v30  ;;  %725 = vmatmul.f32.vlgmr.msrb.gmra.mxu2 %v5559_v30  ;;  %10034 = vst [vmem:[#allocation25_spill] sm:$0xff] %v5669_v60  ;;  %v5678_v12 = vld.sshfl [vmem:[#allocation1 + $0x10] sm:$0xff pattern:$0x73625140]  ;;  %v242_v23 = vrot.slane %v185_v5, 2  ;;  %v532_v60 = vld [vmem:[#allocation3 + $0x638] sm:$0xff] }
  0xbd   :  { %753 = vmatpush.msra.mxu0 %v5590_v62  ;;  %793 = vmatpush.msra.mxu2 %v5592_v0  ;;  %10035 = vst [vmem:[#allocation26_spill] sm:$0xff] %v5676_v15  ;;  %v5687_v29 = vld.sshfl [vmem:[#allocation1 + $0x18] sm:$0xff pattern:$0x73625140]  ;;  %v5691_v15 = vld [vmem:[#allocation3 + $0x68] sm:$0xff] }
  0xbe   :  { %852 = vmatpush.msrb.mxu1 %v563_v63  ;;  %10036 = vst [vmem:[#allocation27_spill] sm:$0xff] %v5678_v12  ;;  %v5682_v63 = vld [vmem:[#allocation3 + $0xa8] sm:$0xff]  ;;  %v240_v12 = vrot.slane %v183_v55, 6  ;;  %895 = vmatpush.msrb.mxu3 %v540_v24  ;;  %v5704_v55 = vld [vmem:[#allocation3 + $0x3f8] sm:$0xff]  ;;  %v5716_v24 = vld [vmem:[#allocation3 + $0x370] sm:$0xff] }
  0xbf   :  { %754 = vmatpush.msra.mxu0 %v5594_v2  ;;  %794 = vmatpush.msra.mxu2 %v5598_v3  ;;  %10037 = vst [vmem:[#allocation28_spill] sm:$0xff] %v5687_v29  ;;  %v182_v29 = vadd.f32 %v5470_v37, %v140_v11  ;;  %v523_v11 = vld [vmem:[#allocation3 + $0x5f0] sm:$0xff] }
  0xc0   :  { %853 = vmatpush.msrb.mxu1 %v555_v17  ;;  %2843 = vst [vmem:[#allocation1] ss:$4 sm:$0xff] %v266_v6  ;;  %v241_v17 = vrot.slane %v184_v16, 4  ;;  %v5702_v16 = vld [vmem:[#allocation3 + $0x3f0] sm:$0xff]  ;;  %896 = vmatpush.msrb.mxu3 %v532_v60  ;;  %v5712_v6 = vld [vmem:[#allocation3 + $0x3b8] sm:$0xff] }
  0xc1   :  { %755 = vmatpush.msra.mxu0 %v5614_v20  ;;  %795 = vmatpush.msra.mxu2 %v5616_v21  ;;  %v267_v59 = vsel %vm246_vm0, %v182_v29, %v240_v12  ;;  %10039 = vst [vmem:[#allocation30_spill] sm:$0xff] %v5712_v6  ;;  %v515_v60 = vld [vmem:[#allocation3 + $0x5b0] sm:$0xff]  ;;  %v516_v12 = vld [vmem:[#allocation3 + $0x5b8] sm:$0xff] }
  0xc2   :  { %854 = vmatpush.msrb.mxu1 %v547_v56  ;;  %v5706_v56 = vld [vmem:[#allocation3 + $0x3b0] sm:$0xff]  ;;  %v268_v5 = vsel %vm248_vm1, %v241_v17, %v242_v23  ;;  %10040 = vst [vmem:[#allocation31_spill] sm:$0xff] %v5716_v24 }
  0xc3   :  { %756 = vmatpush.msra.mxu0 %v5626_v39  ;;  %796 = vmatpush.msra.mxu2 %v5628_v42  ;;  %10038 = vst [vmem:[#allocation29_spill] sm:$0xff] %v5706_v56  ;;  %v269_v23 = vsel %vm250_vm2, %v267_v59, %v268_v5  ;;  %v499_v59 = vld [vmem:[#allocation3 + $0x530] sm:$0xff]  ;;  %v500_v5 = vld [vmem:[#allocation3 + $0x538] sm:$0xff] }
  0xc4   :  { %855 = vmatpush.msrb.mxu1 %v539_v14  ;;  %v524_v14 = vld [vmem:[#allocation3 + $0x5f8] sm:$0xff] }
  0xc5   :  { %757 = vmatpush.msra.mxu0 %v5632_v49  ;;  %797 = vmatpush.msra.mxu2 %v5634_v48 }
  0xc6   :  { %856 = vmatpush.msrb.mxu1 %v531_v50  ;;  %v5718_v50 = vld [vmem:[#allocation3 + $0x378] sm:$0xff]  ;;  %897 = vmatpush.msrb.mxu3 %v524_v14 }
  0xc7   :  { %758 = vmatpush.msra.mxu0 %v5641_v61  ;;  %798 = vmatpush.msra.mxu2 %v5643_v4  ;;  %10041 = vst [vmem:[#allocation32_spill] sm:$0xff] %v5718_v50  ;;  %v5722_v29 = vld.sshfl [vmem:[#allocation1] sm:$0xff pattern:$0x73625140] }
  0xc8   :  { %10042 = vst [vmem:[#allocation33_spill] sm:$0xff] %v5722_v29  ;;  %v5724_v17 = vld.sshfl [vmem:[#allocation1 + $0x8] sm:$0xff pattern:$0x73625140]  ;;  %857 = vmatpush.msrb.mxu1 %v523_v11  ;;  %v5735_v29 = vld [vmem:[#allocation3 + $0x338] sm:$0xff]  ;;  %898 = vmatpush.msrb.mxu3 %v516_v12  ;;  %v5739_v11 = vld [vmem:[#allocation3 + $0x2f0] sm:$0xff] }
  0xc9   :  { %759 = vmatpush.msra.mxu0 %v5648_v9  ;;  %799 = vmatpush.msra.mxu2 %v5650_v10  ;;  %10043 = vst [vmem:[#allocation34_spill] sm:$0xff] %v5724_v17  ;;  %v5727_v37 = vld.sshfl [vmem:[#allocation1 + $0x10] sm:$0xff pattern:$0x73625140]  ;;  %v5741_v14 = vld [vmem:[#allocation3 + $0x2f8] sm:$0xff] }
  0xca   :  { %10044 = vst [vmem:[#allocation35_spill] sm:$0xff] %v5727_v37  ;;  %v5729_v34 = vld.sshfl [vmem:[#allocation1 + $0x18] sm:$0xff pattern:$0x73625140]  ;;  %858 = vmatpush.msrb.mxu1 %v515_v60  ;;  %899 = vmatpush.msrb.mxu3 %v508_v25  ;;  %v5747_v12 = vld [vmem:[#allocation3 + $0x2b8] sm:$0xff] }
  0xcb   :  { %760 = vmatpush.msra.mxu0 %v5658_v43  ;;  %800 = vmatpush.msra.mxu2 %v5660_v47  ;;  %10045 = vst [vmem:[#allocation36_spill] sm:$0xff] %v5729_v34  ;;  %v492_v34 = vld [vmem:[#allocation3 + $0x4f8] sm:$0xff]  ;;  %v5745_v60 = vld [vmem:[#allocation3 + $0x2b0] sm:$0xff] }
  0xcc   :  { %3309 = vst [vmem:[#allocation1] ss:$4 sm:$0xff] %v269_v23  ;;  %859 = vmatpush.msrb.mxu1 %v507_v33  ;;  %v491_v23 = vld [vmem:[#allocation3 + $0x4f0] sm:$0xff]  ;;  %900 = vmatpush.msrb.mxu3 %v500_v5  ;;  %v484_v17 = vld [vmem:[#allocation3 + $0x4b8] sm:$0xff] }
  0xcd   :  { %761 = vmatpush.msra.mxu0 %v5662_v51  ;;  %801 = vmatpush.msra.mxu2 %v5666_v52  ;;  %10047 = vst [vmem:[#allocation38_spill] sm:$0xff] %v5735_v29  ;;  %v483_v37 = vld [vmem:[#allocation3 + $0x4b0] sm:$0xff]  ;;  %v5753_v25 = vld [vmem:[#allocation3 + $0x278] sm:$0xff] }
  0xce   :  { %10048 = vst [vmem:[#allocation39_spill] sm:$0xff] %v5739_v11  ;;  %860 = vmatpush.msrb.mxu1 %v499_v59  ;;  %v5751_v33 = vld [vmem:[#allocation3 + $0x270] sm:$0xff]  ;;  %901 = vmatpush.msrb.mxu3 %v492_v34  ;;  %v5759_v5 = vld [vmem:[#allocation3 + $0x238] sm:$0xff] }
  0xcf   :  { %762 = vmatpush.msra.mxu0 %v5680_v8  ;;  %802 = vmatpush.msra.mxu2 %v5682_v63  ;;  %10049 = vst [vmem:[#allocation40_spill] sm:$0xff] %v5741_v14  ;;  %v5757_v59 = vld [vmem:[#allocation3 + $0x230] sm:$0xff]  ;;  %v5765_v34 = vld [vmem:[#allocation3 + $0x1f8] sm:$0xff] }
  0xd0   :  { %10050 = vst [vmem:[#allocation41_spill] sm:$0xff] %v5745_v60  ;;  %861 = vmatpush.msrb.mxu1 %v491_v23  ;;  %902 = vmatpush.msrb.mxu3 %v484_v17  ;;  %v5763_v23 = vld [vmem:[#allocation3 + $0x1f0] sm:$0xff] }
  0xd1   :  { %763 = vmatpush.msra.mxu0 %v5689_v32  ;;  %803 = vmatpush.msra.mxu2 %v5691_v15  ;;  %10051 = vst [vmem:[#allocation42_spill] sm:$0xff] %v5747_v12  ;;  %v5775_v17 = vld [vmem:[#allocation3 + $0x170] sm:$0xff] }
  0xd2   :  { %10052 = vst [vmem:[#allocation43_spill] sm:$0xff] %v5751_v33  ;;  %862 = vmatpush.msrb.mxu1 %v483_v37  ;;  %903 = vmatpush.msrb.mxu3 %v476_v26  ;;  %v5771_v37 = vld [vmem:[#allocation3 + $0x1b8] sm:$0xff]  ;;  %v5783_v26 = vld [vmem:[#allocation3 + $0x130] sm:$0xff] }
  0xd3   :  { %764 = vmatpush.msra.mxu0 %v5695_v22  ;;  %804 = vmatpush.msra.mxu2 %v5697_v35  ;;  %10053 = vst [vmem:[#allocation44_spill] sm:$0xff] %v5753_v25 }
  0xd4   :  { %765 = vmatmul.f32.vlgmr.msra.gmra.mxu0 %v5559_v30  ;;  %805 = vmatmul.f32.vlgmr.msra.gmra.mxu2 %v5559_v30  ;;  %10054 = vst [vmem:[#allocation45_spill] sm:$0xff] %v5757_v59 }
  0xd5   :  { %829 = vmatpush.msrb.mxu0 %v5702_v16  ;;  %869 = vmatpush.msrb.mxu2 %v5704_v55  ;;  %10055 = vst [vmem:[#allocation46_spill] sm:$0xff] %v5759_v5 }
  0xd6   :  { %10056 = vst [vmem:[#allocation47_spill] sm:$0xff] %v5763_v23  ;;  %863 = vmatpush.msrb.mxu1 %v475_v27  ;;  %904 = vmatpush.msrb.mxu3 %v468_v18  ;;  %v10062_v27 = vmov 0.0   ;;  %v5787_v18 = vld [vmem:[#allocation3 + $0x7c0] sm:$0xff] }
  0xd7   :  { %830 = vmatpush.msrb.mxu0 %v5706_v56  ;;  %870 = vmatpush.msrb.mxu2 %v5712_v6  ;;  %10057 = vst [vmem:[#allocation48_spill] sm:$0xff] %v5765_v34 }
  0xd8   :  { %10059 = vst [vmem:[#allocation50_spill] sm:$0xff] %v5771_v37  ;;  %864 = vmatpush.msrb.mxu1 %v467_v19  ;;  %905 = vmatmul.f32.vlgmr.msrb.gmra.mxu3 %v10062_v27  ;;  %v5785_v19 = vld [vmem:[#allocation3 + $0x138] sm:$0xff] }
  0xd9   :  { %831 = vmatpush.msrb.mxu0 %v5716_v24  ;;  %871 = vmatpush.msrb.mxu2 %v5718_v50  ;;  %10060 = vst [vmem:[#allocation51_spill] sm:$0xff] %v5775_v17 }
  0xda   :  { %865 = vmatmul.f32.vlgmr.msrb.gmra.mxu1 %v10062_v27  ;;  %10063 = vst [vmem:[#allocation53_spill] sm:$0xff] %v5783_v26  ;;  %v5795_v27 = vld [vmem:[#allocation3 + $0xf0] sm:$0xff] }
  0xdb   :  { %832 = vmatpush.msrb.mxu0 %v5733_v28  ;;  %872 = vmatpush.msrb.mxu2 %v5735_v29  ;;  %10064 = vst [vmem:[#allocation54_spill] sm:$0xff] %v5785_v19 }
  0xdc   :  { %10065 = vst [vmem:[#allocation55_spill] sm:$0xff] %v5787_v18  ;;  %1075 = vmatpush.msra.mxu1 %v5787_v18  ;;  %v5809_v18 = vld [vmem:[#allocation3 + $0xb8] sm:$0xff] }
  0xdd   :  { %833 = vmatpush.msrb.mxu0 %v5739_v11  ;;  %873 = vmatpush.msrb.mxu2 %v5741_v14  ;;  %10067 = vst [vmem:[#allocation57_spill] sm:$0xff] %v5795_v27 }
  0xde   :  { %10072 = vst [vmem:[#allocation62_spill] sm:$0xff] %v5809_v18 }
  0xdf   :  { %834 = vmatpush.msrb.mxu0 %v5745_v60  ;;  %874 = vmatpush.msrb.mxu2 %v5747_v12 }
  0xe1   :  { %835 = vmatpush.msrb.mxu0 %v5751_v33  ;;  %875 = vmatpush.msrb.mxu2 %v5753_v25  ;;  %v5777_v25 = vld [vmem:[#allocation3 + $0x178] sm:$0xff] }
  0xe2   :  { %10061 = vst [vmem:[#allocation52_spill] sm:$0xff] %v5777_v25 }
  0xe3   :  { %836 = vmatpush.msrb.mxu0 %v5757_v59  ;;  %876 = vmatpush.msrb.mxu2 %v5759_v5 }
  0xe5   :  { %837 = vmatpush.msrb.mxu0 %v5763_v23  ;;  %877 = vmatpush.msrb.mxu2 %v5765_v34  ;;  %v5790_v34 = vld [vmem:[#allocation3 + $0x7c8] sm:$0xff] }
  0xe6   :  { %10066 = vst [vmem:[#allocation56_spill] sm:$0xff] %v5790_v34  ;;  %1115 = vmatpush.msra.mxu3 %v5790_v34  ;;  %v5802_v23 = vld [vmem:[#allocation3 + $0x788] sm:$0xff]  ;;  %v5807_v34 = vld [vmem:[#allocation3 + $0xb0] sm:$0xff] }
  0xe7   :  { %838 = vmatpush.msrb.mxu0 %v5769_v13  ;;  %878 = vmatpush.msrb.mxu2 %v5771_v37  ;;  %v5797_v13 = vld [vmem:[#allocation3 + $0xf8] sm:$0xff]  ;;  %v5799_v37 = vld [vmem:[#allocation3 + $0x780] sm:$0xff]  ;;  %10070 = vst [vmem:[#allocation60_spill] sm:$0xff] %v5802_v23 }
  0xe8   :  { %10068 = vst [vmem:[#allocation58_spill] sm:$0xff] %v5797_v13  ;;  %1076 = vmatpush.msra.mxu1 %v5799_v37  ;;  %1116 = vmatpush.msra.mxu3 %v5802_v23  ;;  %v5819_v23 = vld [vmem:[#allocation3 + $0x70] sm:$0xff] }
  0xe9   :  { %839 = vmatpush.msrb.mxu0 %v5775_v17  ;;  %879 = vmatpush.msrb.mxu2 %v5777_v25  ;;  %10069 = vst [vmem:[#allocation59_spill] sm:$0xff] %v5799_v37  ;;  %v5811_v25 = vld [vmem:[#allocation3 + $0x740] sm:$0xff]  ;;  %v5814_v17 = vld [vmem:[#allocation3 + $0x748] sm:$0xff]  ;;  %v5821_v37 = vld [vmem:[#allocation3 + $0x78] sm:$0xff] }
  0xea   :  { %10071 = vst [vmem:[#allocation61_spill] sm:$0xff] %v5807_v34  ;;  %1077 = vmatpush.msra.mxu1 %v5811_v25  ;;  %1117 = vmatpush.msra.mxu3 %v5814_v17 }
  0xeb   :  { %840 = vmatpush.msrb.mxu0 %v5783_v26  ;;  %880 = vmatpush.msrb.mxu2 %v5785_v19  ;;  %10073 = vst [vmem:[#allocation63_spill] sm:$0xff] %v5811_v25  ;;  %v5823_v19 = vld [vmem:[#allocation3 + $0x700] sm:$0xff]  ;;  %v5826_v26 = vld [vmem:[#allocation3 + $0x708] sm:$0xff]  ;;  %v5833_v25 = vld [vmem:[#allocation3 + $0x38] sm:$0xff] }
  0xec   :  { %10074 = vst [vmem:[#allocation64_spill] sm:$0xff] %v5814_v17  ;;  %1078 = vmatpush.msra.mxu1 %v5823_v19  ;;  %1118 = vmatpush.msra.mxu3 %v5826_v26  ;;  %v5831_v17 = vld [vmem:[#allocation3 + $0x30] sm:$0xff] }
  0xed   :  { %841 = vmatpush.msrb.mxu0 %v5795_v27  ;;  %881 = vmatpush.msrb.mxu2 %v5797_v13  ;;  %10075 = vst [vmem:[#allocation65_spill] sm:$0xff] %v5819_v23  ;;  %v5835_v13 = vld [vmem:[#allocation3 + $0x6c0] sm:$0xff]  ;;  %v5838_v27 = vld [vmem:[#allocation3 + $0x6c8] sm:$0xff] }
  0xee   :  { %10076 = vst [vmem:[#allocation66_spill] sm:$0xff] %v5821_v37  ;;  %1079 = vmatpush.msra.mxu1 %v5835_v13  ;;  %1119 = vmatpush.msra.mxu3 %v5838_v27 }
  0xef   :  { %10077 = vst [vmem:[#allocation67_spill] sm:$0xff] %v5823_v19  ;;  %842 = vmatpush.msrb.mxu0 %v5807_v34  ;;  %882 = vmatpush.msrb.mxu2 %v5809_v18  ;;  %v5846_v19 = vld [vmem:[#allocation3 + $0x688] sm:$0xff] }
  0xf0   :  { %10078 = vst [vmem:[#allocation68_spill] sm:$0xff] %v5826_v26  ;;  %v5843_v26 = vld [vmem:[#allocation3 + $0x680] sm:$0xff]  ;;  %1120 = vmatpush.msra.mxu3 %v5846_v19 }
  0xf1   :  { %10079 = vst [vmem:[#allocation69_spill] sm:$0xff] %v5831_v17  ;;  %843 = vmatpush.msrb.mxu0 %v5819_v23  ;;  %883 = vmatpush.msrb.mxu2 %v5821_v37  ;;  %v6196_v37 = vld [vmem:[#allocation3 + $0x18] sm:$0xff] }
  0xf2   :  { %10080 = vst [vmem:[#allocation70_spill] sm:$0xff] %v5833_v25  ;;  %1080 = vmatpush.msra.mxu1 %v5843_v26 }
  0xf3   :  { %10081 = vst [vmem:[#allocation71_spill] sm:$0xff] %v5835_v13  ;;  %844 = vmatpush.msrb.mxu0 %v5831_v17  ;;  %884 = vmatpush.msrb.mxu2 %v5833_v25  ;;  %v5856_v13 = vld [vmem:[#allocation3 + $0x3c8] sm:$0xff]  ;;  %v5865_v25 = vld [vmem:[#allocation3 + $0x380] sm:$0xff] }
  0xf4   :  { %10082 = vst [vmem:[#allocation72_spill] sm:$0xff] %v5838_v27  ;;  %845 = vmatmul.f32.vlgmr.msrb.gmra.mxu0 %v5559_v30  ;;  %885 = vmatmul.f32.vlgmr.msrb.gmra.mxu2 %v5559_v30  ;;  %v5853_v27 = vld [vmem:[#allocation3 + $0x3c0] sm:$0xff]  ;;  %v5868_v30 = vld [vmem:[#allocation3 + $0x388] sm:$0xff] }
  0xf5   :  { %10083 = vst [vmem:[#allocation73_spill] sm:$0xff] %v5843_v26  ;;  %1055 = vmatpush.msra.mxu0 %v5853_v27  ;;  %1095 = vmatpush.msra.mxu2 %v5856_v13  ;;  %v5859_v26 = vld [vmem:[#allocation3 + $0x640] sm:$0xff] }
  0xf6   :  { %10084 = vst [vmem:[#allocation74_spill] sm:$0xff] %v5846_v19  ;;  %1081 = vmatpush.msra.mxu1 %v5859_v26  ;;  %v5862_v19 = vld [vmem:[#allocation3 + $0x648] sm:$0xff] }
  0xf7   :  { %10085 = vst [vmem:[#allocation75_spill] sm:$0xff] %v5853_v27  ;;  %1121 = vmatpush.msra.mxu3 %v5862_v19  ;;  %1056 = vmatpush.msra.mxu0 %v5865_v25  ;;  %v5871_v27 = vld [vmem:[#allocation3 + $0x600] sm:$0xff] }
  0xf8   :  { %10086 = vst [vmem:[#allocation76_spill] sm:$0xff] %v5856_v13  ;;  %1096 = vmatpush.msra.mxu2 %v5868_v30  ;;  %1082 = vmatpush.msra.mxu1 %v5871_v27  ;;  %v5874_v13 = vld [vmem:[#allocation3 + $0x608] sm:$0xff] }
  0xf9   :  { %10087 = vst [vmem:[#allocation77_spill] sm:$0xff] %v5859_v26  ;;  %1122 = vmatpush.msra.mxu3 %v5874_v13  ;;  %v5877_v26 = vld [vmem:[#allocation3 + $0x340] sm:$0xff] }
  0xfa   :  { %10088 = vst [vmem:[#allocation78_spill] sm:$0xff] %v5862_v19  ;;  %1057 = vmatpush.msra.mxu0 %v5877_v26  ;;  %v5880_v19 = vld [vmem:[#allocation3 + $0x348] sm:$0xff] }
  0xfb   :  { %10089 = vst [vmem:[#allocation79_spill] sm:$0xff] %v5865_v25  ;;  %1097 = vmatpush.msra.mxu2 %v5880_v19  ;;  %v5883_v25 = vld [vmem:[#allocation3 + $0x5c0] sm:$0xff] }
  0xfc   :  { %10090 = vst [vmem:[#allocation80_spill] sm:$0xff] %v5868_v30  ;;  %1083 = vmatpush.msra.mxu1 %v5883_v25  ;;  %v5886_v30 = vld [vmem:[#allocation3 + $0x5c8] sm:$0xff] }
  0xfd   :  { %10091 = vst [vmem:[#allocation81_spill] sm:$0xff] %v5871_v27  ;;  %1123 = vmatpush.msra.mxu3 %v5886_v30  ;;  %v5889_v27 = vld [vmem:[#allocation3 + $0x300] sm:$0xff] }
  0xfe   :  { %10092 = vst [vmem:[#allocation82_spill] sm:$0xff] %v5874_v13  ;;  %1058 = vmatpush.msra.mxu0 %v5889_v27  ;;  %v5892_v13 = vld [vmem:[#allocation3 + $0x308] sm:$0xff] }
  0xff   :  { %10093 = vst [vmem:[#allocation83_spill] sm:$0xff] %v5877_v26  ;;  %1098 = vmatpush.msra.mxu2 %v5892_v13  ;;  %v5895_v26 = vld [vmem:[#allocation3 + $0x580] sm:$0xff] }
 0x100   :  { %10094 = vst [vmem:[#allocation84_spill] sm:$0xff] %v5880_v19  ;;  %1084 = vmatpush.msra.mxu1 %v5895_v26  ;;  %v5898_v19 = vld [vmem:[#allocation3 + $0x588] sm:$0xff] }
 0x101   :  { %10095 = vst [vmem:[#allocation85_spill] sm:$0xff] %v5883_v25  ;;  %1124 = vmatpush.msra.mxu3 %v5898_v19  ;;  %v5901_v25 = vld [vmem:[#allocation3 + $0x2c0] sm:$0xff] }
 0x102   :  { %10096 = vst [vmem:[#allocation86_spill] sm:$0xff] %v5886_v30  ;;  %1059 = vmatpush.msra.mxu0 %v5901_v25  ;;  %v5904_v30 = vld [vmem:[#allocation3 + $0x2c8] sm:$0xff] }
 0x103   :  { %10097 = vst [vmem:[#allocation87_spill] sm:$0xff] %v5889_v27  ;;  %1099 = vmatpush.msra.mxu2 %v5904_v30  ;;  %v5907_v27 = vld [vmem:[#allocation3 + $0x540] sm:$0xff] }
 0x104   :  { %10098 = vst [vmem:[#allocation88_spill] sm:$0xff] %v5892_v13  ;;  %1085 = vmatpush.msra.mxu1 %v5907_v27  ;;  %v5910_v13 = vld [vmem:[#allocation3 + $0x548] sm:$0xff] }
 0x105   :  { %10099 = vst [vmem:[#allocation89_spill] sm:$0xff] %v5895_v26  ;;  %1125 = vmatpush.msra.mxu3 %v5910_v13  ;;  %v5913_v26 = vld [vmem:[#allocation3 + $0x280] sm:$0xff] }
 0x106   :  { %10100 = vst [vmem:[#allocation90_spill] sm:$0xff] %v5898_v19  ;;  %1060 = vmatpush.msra.mxu0 %v5913_v26  ;;  %v5916_v19 = vld [vmem:[#allocation3 + $0x288] sm:$0xff] }
 0x107   :  { %10101 = vst [vmem:[#allocation91_spill] sm:$0xff] %v5901_v25  ;;  %1100 = vmatpush.msra.mxu2 %v5916_v19  ;;  %v5919_v25 = vld [vmem:[#allocation3 + $0x500] sm:$0xff] }
 0x108   :  { %10102 = vst [vmem:[#allocation92_spill] sm:$0xff] %v5904_v30  ;;  %1086 = vmatpush.msra.mxu1 %v5919_v25  ;;  %v5922_v30 = vld [vmem:[#allocation3 + $0x508] sm:$0xff] }
 0x109   :  { %10103 = vst [vmem:[#allocation93_spill] sm:$0xff] %v5907_v27  ;;  %1126 = vmatpush.msra.mxu3 %v5922_v30  ;;  %v5925_v27 = vld [vmem:[#allocation3 + $0x240] sm:$0xff] }
 0x10a   :  { %10104 = vst [vmem:[#allocation94_spill] sm:$0xff] %v5910_v13  ;;  %1061 = vmatpush.msra.mxu0 %v5925_v27  ;;  %v5928_v13 = vld [vmem:[#allocation3 + $0x248] sm:$0xff] }
 0x10b   :  { %10105 = vst [vmem:[#allocation95_spill] sm:$0xff] %v5913_v26  ;;  %1101 = vmatpush.msra.mxu2 %v5928_v13  ;;  %v5931_v26 = vld [vmem:[#allocation3 + $0x4c0] sm:$0xff] }
 0x10c   :  { %10106 = vst [vmem:[#allocation96_spill] sm:$0xff] %v5916_v19  ;;  %1087 = vmatpush.msra.mxu1 %v5931_v26  ;;  %v5934_v19 = vld [vmem:[#allocation3 + $0x4c8] sm:$0xff] }
 0x10d   :  { %10107 = vst [vmem:[#allocation97_spill] sm:$0xff] %v5919_v25  ;;  %1127 = vmatpush.msra.mxu3 %v5934_v19  ;;  %v5937_v25 = vld [vmem:[#allocation3 + $0x200] sm:$0xff] }
 0x10e   :  { %10108 = vst [vmem:[#allocation98_spill] sm:$0xff] %v5922_v30  ;;  %1062 = vmatpush.msra.mxu0 %v5937_v25  ;;  %v5940_v30 = vld [vmem:[#allocation3 + $0x208] sm:$0xff] }
 0x10f   :  { %10109 = vst [vmem:[#allocation99_spill] sm:$0xff] %v5925_v27  ;;  %1102 = vmatpush.msra.mxu2 %v5940_v30  ;;  %v5943_v27 = vld [vmem:[#allocation3 + $0x480] sm:$0xff] }
 0x110   :  { %10110 = vst [vmem:[#allocation100_spill] sm:$0xff] %v5928_v13  ;;  %1088 = vmatpush.msra.mxu1 %v5943_v27  ;;  %v5946_v13 = vld [vmem:[#allocation3 + $0x488] sm:$0xff] }
 0x111   :  { %10111 = vst [vmem:[#allocation101_spill] sm:$0xff] %v5931_v26  ;;  %1128 = vmatpush.msra.mxu3 %v5946_v13  ;;  %v5949_v26 = vld [vmem:[#allocation3 + $0x1c0] sm:$0xff] }
 0x112   :  { %10112 = vst [vmem:[#allocation102_spill] sm:$0xff] %v5934_v19  ;;  %1063 = vmatpush.msra.mxu0 %v5949_v26  ;;  %v5952_v19 = vld [vmem:[#allocation3 + $0x1c8] sm:$0xff] }
 0x113   :  { %10113 = vst [vmem:[#allocation103_spill] sm:$0xff] %v5937_v25  ;;  %1103 = vmatpush.msra.mxu2 %v5952_v19  ;;  %v5955_v25 = vld [vmem:[#allocation3 + $0x440] sm:$0xff] }
 0x114   :  { %10114 = vst [vmem:[#allocation104_spill] sm:$0xff] %v5940_v30  ;;  %1089 = vmatpush.msra.mxu1 %v5955_v25  ;;  %v5958_v30 = vld [vmem:[#allocation3 + $0x448] sm:$0xff] }
 0x115   :  { %10115 = vst [vmem:[#allocation105_spill] sm:$0xff] %v5943_v27  ;;  %1129 = vmatpush.msra.mxu3 %v5958_v30  ;;  %v5961_v27 = vld [vmem:[#allocation3 + $0x180] sm:$0xff] }
 0x116   :  { %10116 = vst [vmem:[#allocation106_spill] sm:$0xff] %v5946_v13  ;;  %1064 = vmatpush.msra.mxu0 %v5961_v27  ;;  %v5964_v13 = vld [vmem:[#allocation3 + $0x188] sm:$0xff] }
 0x117   :  { %10117 = vst [vmem:[#allocation107_spill] sm:$0xff] %v5949_v26  ;;  %1104 = vmatpush.msra.mxu2 %v5964_v13  ;;  %v5967_v26 = vld [vmem:[#allocation3 + $0x400] sm:$0xff] }
 0x118   :  { %10118 = vst [vmem:[#allocation108_spill] sm:$0xff] %v5952_v19  ;;  %1090 = vmatpush.msra.mxu1 %v5967_v26  ;;  %v5970_v19 = vld [vmem:[#allocation3 + $0x408] sm:$0xff] }
 0x119   :  { %10119 = vst [vmem:[#allocation109_spill] sm:$0xff] %v5955_v25  ;;  %1130 = vmatpush.msra.mxu3 %v5970_v19  ;;  %v5973_v25 = vld [vmem:[#allocation3 + $0x140] sm:$0xff] }
 0x11a   :  { %10120 = vst [vmem:[#allocation110_spill] sm:$0xff] %v5958_v30  ;;  %1065 = vmatpush.msra.mxu0 %v5973_v25  ;;  %v5976_v30 = vld [vmem:[#allocation3 + $0x148] sm:$0xff] }
 0x11b   :  { %10121 = vst [vmem:[#allocation111_spill] sm:$0xff] %v5961_v27  ;;  %1105 = vmatpush.msra.mxu2 %v5976_v30  ;;  %v5979_v27 = vld [vmem:[#allocation3 + $0x7d0] sm:$0xff] }
 0x11c   :  { %10122 = vst [vmem:[#allocation112_spill] sm:$0xff] %v5964_v13  ;;  %1155 = vmatpush.msrb.mxu1 %v5979_v27  ;;  %v5982_v13 = vld [vmem:[#allocation3 + $0x7d8] sm:$0xff] }
 0x11d   :  { %10123 = vst [vmem:[#allocation113_spill] sm:$0xff] %v5967_v26  ;;  %1195 = vmatpush.msrb.mxu3 %v5982_v13  ;;  %v5985_v26 = vld [vmem:[#allocation3 + $0x100] sm:$0xff] }
 0x11e   :  { %10124 = vst [vmem:[#allocation114_spill] sm:$0xff] %v5970_v19  ;;  %1066 = vmatpush.msra.mxu0 %v5985_v26  ;;  %v5988_v19 = vld [vmem:[#allocation3 + $0x108] sm:$0xff] }
 0x11f   :  { %10125 = vst [vmem:[#allocation115_spill] sm:$0xff] %v5973_v25  ;;  %1106 = vmatpush.msra.mxu2 %v5988_v19  ;;  %v5991_v25 = vld [vmem:[#allocation3 + $0x790] sm:$0xff] }
 0x120   :  { %10126 = vst [vmem:[#allocation116_spill] sm:$0xff] %v5976_v30  ;;  %1156 = vmatpush.msrb.mxu1 %v5991_v25  ;;  %v5994_v30 = vld [vmem:[#allocation3 + $0x798] sm:$0xff] }
 0x121   :  { %10127 = vst [vmem:[#allocation117_spill] sm:$0xff] %v5979_v27  ;;  %1196 = vmatpush.msrb.mxu3 %v5994_v30  ;;  %v5997_v27 = vld [vmem:[#allocation3 + $0xc0] sm:$0xff] }
 0x122   :  { %10128 = vst [vmem:[#allocation118_spill] sm:$0xff] %v5982_v13  ;;  %1067 = vmatpush.msra.mxu0 %v5997_v27  ;;  %v6000_v13 = vld [vmem:[#allocation3 + $0xc8] sm:$0xff] }
 0x123   :  { %10129 = vst [vmem:[#allocation119_spill] sm:$0xff] %v5985_v26  ;;  %1107 = vmatpush.msra.mxu2 %v6000_v13  ;;  %v6003_v26 = vld [vmem:[#allocation3 + $0x750] sm:$0xff] }
 0x124   :  { %10130 = vst [vmem:[#allocation120_spill] sm:$0xff] %v5988_v19  ;;  %1157 = vmatpush.msrb.mxu1 %v6003_v26  ;;  %v6006_v19 = vld [vmem:[#allocation3 + $0x758] sm:$0xff] }
 0x125   :  { %10131 = vst [vmem:[#allocation121_spill] sm:$0xff] %v5991_v25  ;;  %1197 = vmatpush.msrb.mxu3 %v6006_v19  ;;  %v6009_v25 = vld [vmem:[#allocation3 + $0x80] sm:$0xff] }
 0x126   :  { %10132 = vst [vmem:[#allocation122_spill] sm:$0xff] %v5994_v30  ;;  %1068 = vmatpush.msra.mxu0 %v6009_v25  ;;  %v6012_v30 = vld [vmem:[#allocation3 + $0x88] sm:$0xff] }
 0x127   :  { %10133 = vst [vmem:[#allocation123_spill] sm:$0xff] %v5997_v27  ;;  %1108 = vmatpush.msra.mxu2 %v6012_v30  ;;  %v6015_v27 = vld [vmem:[#allocation3 + $0x710] sm:$0xff] }
 0x128   :  { %10134 = vst [vmem:[#allocation124_spill] sm:$0xff] %v6000_v13  ;;  %1158 = vmatpush.msrb.mxu1 %v6015_v27  ;;  %v6018_v13 = vld [vmem:[#allocation3 + $0x718] sm:$0xff] }
 0x129   :  { %10135 = vst [vmem:[#allocation125_spill] sm:$0xff] %v6003_v26  ;;  %1198 = vmatpush.msrb.mxu3 %v6018_v13  ;;  %v6021_v26 = vld [vmem:[#allocation3 + $0x40] sm:$0xff] }
 0x12a   :  { %10136 = vst [vmem:[#allocation126_spill] sm:$0xff] %v6006_v19  ;;  %1069 = vmatpush.msra.mxu0 %v6021_v26  ;;  %v6024_v19 = vld [vmem:[#allocation3 + $0x48] sm:$0xff] }
 0x12b   :  { %10137 = vst [vmem:[#allocation127_spill] sm:$0xff] %v6009_v25  ;;  %1109 = vmatpush.msra.mxu2 %v6024_v19  ;;  %v6027_v25 = vld [vmem:[#allocation3 + $0x6d0] sm:$0xff] }
 0x12c   :  { %10138 = vst [vmem:[#allocation128_spill] sm:$0xff] %v6012_v30  ;;  %1159 = vmatpush.msrb.mxu1 %v6027_v25  ;;  %v6030_v30 = vld [vmem:[#allocation3 + $0x6d8] sm:$0xff] }
 0x12d   :  { %10139 = vst [vmem:[#allocation129_spill] sm:$0xff] %v6015_v27  ;;  %1199 = vmatpush.msrb.mxu3 %v6030_v30  ;;  %v6033_v27 = vld [vmem:[#allocation3] sm:$0xff] }
 0x12e   :  { %10140 = vst [vmem:[#allocation130_spill] sm:$0xff] %v6018_v13  ;;  %1070 = vmatpush.msra.mxu0 %v6033_v27  ;;  %v6036_v13 = vld [vmem:[#allocation3 + $0x8] sm:$0xff] }
 0x12f   :  { %10141 = vst [vmem:[#allocation131_spill] sm:$0xff] %v6021_v26  ;;  %1110 = vmatpush.msra.mxu2 %v6036_v13  ;;  %v6039_v26 = vld [vmem:[#allocation3 + $0x3d0] sm:$0xff] }
 0x130   :  { %10142 = vst [vmem:[#allocation132_spill] sm:$0xff] %v6024_v19  ;;  %1135 = vmatpush.msrb.mxu0 %v6039_v26  ;;  %v6042_v19 = vld [vmem:[#allocation3 + $0x3d8] sm:$0xff] }
 0x131   :  { %10143 = vst [vmem:[#allocation133_spill] sm:$0xff] %v6027_v25  ;;  %1175 = vmatpush.msrb.mxu2 %v6042_v19  ;;  %v6045_v25 = vld [vmem:[#allocation3 + $0x690] sm:$0xff] }
 0x132   :  { %10144 = vst [vmem:[#allocation134_spill] sm:$0xff] %v6030_v30  ;;  %1160 = vmatpush.msrb.mxu1 %v6045_v25  ;;  %v6048_v30 = vld [vmem:[#allocation3 + $0x698] sm:$0xff] }
 0x133   :  { %10145 = vst [vmem:[#allocation135_spill] sm:$0xff] %v6033_v27  ;;  %1200 = vmatpush.msrb.mxu3 %v6048_v30  ;;  %v6051_v27 = vld [vmem:[#allocation3 + $0x390] sm:$0xff] }
 0x134   :  { %10146 = vst [vmem:[#allocation136_spill] sm:$0xff] %v6036_v13  ;;  %1136 = vmatpush.msrb.mxu0 %v6051_v27  ;;  %v6054_v13 = vld [vmem:[#allocation3 + $0x398] sm:$0xff] }
 0x135   :  { %10147 = vst [vmem:[#allocation137_spill] sm:$0xff] %v6039_v26  ;;  %1176 = vmatpush.msrb.mxu2 %v6054_v13  ;;  %v6057_v26 = vld [vmem:[#allocation3 + $0x650] sm:$0xff] }
 0x136   :  { %10148 = vst [vmem:[#allocation138_spill] sm:$0xff] %v6042_v19  ;;  %1161 = vmatpush.msrb.mxu1 %v6057_v26  ;;  %v6060_v19 = vld [vmem:[#allocation3 + $0x658] sm:$0xff] }
 0x137   :  { %10149 = vst [vmem:[#allocation139_spill] sm:$0xff] %v6045_v25  ;;  %1201 = vmatpush.msrb.mxu3 %v6060_v19  ;;  %v6063_v25 = vld [vmem:[#allocation3 + $0x350] sm:$0xff]  ;;  %v646_v18 = vpop.f32.mrf.mxu2 }
 0x138   :  { %10150 = vst [vmem:[#allocation140_spill] sm:$0xff] %v6048_v30  ;;  %1137 = vmatpush.msrb.mxu0 %v6063_v25  ;;  %v6066_v30 = vld [vmem:[#allocation3 + $0x358] sm:$0xff] }
 0x139   :  { %10151 = vst [vmem:[#allocation141_spill] sm:$0xff] %v6051_v27  ;;  %1177 = vmatpush.msrb.mxu2 %v6066_v30  ;;  %v6069_v27 = vld [vmem:[#allocation3 + $0x610] sm:$0xff] }
 0x13a   :  { %10152 = vst [vmem:[#allocation142_spill] sm:$0xff] %v6054_v13  ;;  %1162 = vmatpush.msrb.mxu1 %v6069_v27  ;;  %v6072_v13 = vld [vmem:[#allocation3 + $0x618] sm:$0xff] }
 0x13b   :  { %10153 = vst [vmem:[#allocation143_spill] sm:$0xff] %v6057_v26  ;;  %1202 = vmatpush.msrb.mxu3 %v6072_v13  ;;  %v6075_v26 = vld [vmem:[#allocation3 + $0x310] sm:$0xff] }
 0x13c   :  { %10154 = vst [vmem:[#allocation144_spill] sm:$0xff] %v6060_v19  ;;  %1138 = vmatpush.msrb.mxu0 %v6075_v26  ;;  %v6078_v19 = vld [vmem:[#allocation3 + $0x318] sm:$0xff] }
 0x13d   :  { %10155 = vst [vmem:[#allocation145_spill] sm:$0xff] %v6063_v25  ;;  %1178 = vmatpush.msrb.mxu2 %v6078_v19  ;;  %v6081_v25 = vld [vmem:[#allocation3 + $0x5d0] sm:$0xff] }
 0x13e   :  { %10156 = vst [vmem:[#allocation146_spill] sm:$0xff] %v6066_v30  ;;  %1163 = vmatpush.msrb.mxu1 %v6081_v25  ;;  %v6084_v30 = vld [vmem:[#allocation3 + $0x5d8] sm:$0xff] }
 0x13f   :  { %10157 = vst [vmem:[#allocation147_spill] sm:$0xff] %v6069_v27  ;;  %1203 = vmatpush.msrb.mxu3 %v6084_v30  ;;  %v6087_v27 = vld [vmem:[#allocation3 + $0x2d0] sm:$0xff] }
 0x140   :  { %10158 = vst [vmem:[#allocation148_spill] sm:$0xff] %v6072_v13  ;;  %1139 = vmatpush.msrb.mxu0 %v6087_v27  ;;  %v6090_v13 = vld [vmem:[#allocation3 + $0x2d8] sm:$0xff] }
 0x141   :  { %10159 = vst [vmem:[#allocation149_spill] sm:$0xff] %v6075_v26  ;;  %1179 = vmatpush.msrb.mxu2 %v6090_v13  ;;  %v6093_v26 = vld [vmem:[#allocation3 + $0x590] sm:$0xff] }
 0x142   :  { %10160 = vst [vmem:[#allocation150_spill] sm:$0xff] %v6078_v19  ;;  %1164 = vmatpush.msrb.mxu1 %v6093_v26  ;;  %v6096_v19 = vld [vmem:[#allocation3 + $0x598] sm:$0xff] }
 0x143   :  { %10161 = vst [vmem:[#allocation151_spill] sm:$0xff] %v6081_v25  ;;  %1204 = vmatpush.msrb.mxu3 %v6096_v19  ;;  %v6099_v25 = vld [vmem:[#allocation3 + $0x290] sm:$0xff] }
 0x144   :  { %10162 = vst [vmem:[#allocation152_spill] sm:$0xff] %v6084_v30  ;;  %1140 = vmatpush.msrb.mxu0 %v6099_v25  ;;  %v6102_v30 = vld [vmem:[#allocation3 + $0x298] sm:$0xff] }
 0x145   :  { %10163 = vst [vmem:[#allocation153_spill] sm:$0xff] %v6087_v27  ;;  %1180 = vmatpush.msrb.mxu2 %v6102_v30  ;;  %v6105_v27 = vld [vmem:[#allocation3 + $0x550] sm:$0xff] }
 0x146   :  { %10164 = vst [vmem:[#allocation154_spill] sm:$0xff] %v6090_v13  ;;  %1165 = vmatpush.msrb.mxu1 %v6105_v27  ;;  %v6108_v13 = vld [vmem:[#allocation3 + $0x558] sm:$0xff] }
 0x147   :  { %10165 = vst [vmem:[#allocation155_spill] sm:$0xff] %v6093_v26  ;;  %1205 = vmatpush.msrb.mxu3 %v6108_v13  ;;  %v6111_v26 = vld [vmem:[#allocation3 + $0x250] sm:$0xff] }
 0x148   :  { %10166 = vst [vmem:[#allocation156_spill] sm:$0xff] %v6096_v19  ;;  %1141 = vmatpush.msrb.mxu0 %v6111_v26  ;;  %v6114_v19 = vld [vmem:[#allocation3 + $0x258] sm:$0xff] }
 0x149   :  { %10167 = vst [vmem:[#allocation157_spill] sm:$0xff] %v6099_v25  ;;  %1181 = vmatpush.msrb.mxu2 %v6114_v19  ;;  %v6117_v25 = vld [vmem:[#allocation3 + $0x510] sm:$0xff] }
 0x14a   :  { %10168 = vst [vmem:[#allocation158_spill] sm:$0xff] %v6102_v30  ;;  %1166 = vmatpush.msrb.mxu1 %v6117_v25  ;;  %v6120_v30 = vld [vmem:[#allocation3 + $0x518] sm:$0xff] }
 0x14b   :  { %10169 = vst [vmem:[#allocation159_spill] sm:$0xff] %v6105_v27  ;;  %1206 = vmatpush.msrb.mxu3 %v6120_v30  ;;  %v6123_v27 = vld [vmem:[#allocation3 + $0x210] sm:$0xff] }
 0x14c   :  { %10170 = vst [vmem:[#allocation160_spill] sm:$0xff] %v6108_v13  ;;  %1142 = vmatpush.msrb.mxu0 %v6123_v27  ;;  %v6126_v13 = vld [vmem:[#allocation3 + $0x218] sm:$0xff] }
 0x14d   :  { %10171 = vst [vmem:[#allocation161_spill] sm:$0xff] %v6111_v26  ;;  %1182 = vmatpush.msrb.mxu2 %v6126_v13  ;;  %v6129_v26 = vld [vmem:[#allocation3 + $0x4d0] sm:$0xff] }
 0x14e   :  { %10172 = vst [vmem:[#allocation162_spill] sm:$0xff] %v6114_v19  ;;  %1167 = vmatpush.msrb.mxu1 %v6129_v26  ;;  %v6132_v19 = vld [vmem:[#allocation3 + $0x4d8] sm:$0xff] }
 0x14f   :  { %10173 = vst [vmem:[#allocation163_spill] sm:$0xff] %v6117_v25  ;;  %1207 = vmatpush.msrb.mxu3 %v6132_v19  ;;  %v6135_v25 = vld [vmem:[#allocation3 + $0x1d0] sm:$0xff] }
 0x150   :  { %10174 = vst [vmem:[#allocation164_spill] sm:$0xff] %v6120_v30  ;;  %1143 = vmatpush.msrb.mxu0 %v6135_v25  ;;  %v6138_v30 = vld [vmem:[#allocation3 + $0x1d8] sm:$0xff] }
 0x151   :  { %10175 = vst [vmem:[#allocation165_spill] sm:$0xff] %v6123_v27  ;;  %1183 = vmatpush.msrb.mxu2 %v6138_v30  ;;  %v6141_v27 = vld [vmem:[#allocation3 + $0x490] sm:$0xff] }
 0x152   :  { %10176 = vst [vmem:[#allocation166_spill] sm:$0xff] %v6126_v13  ;;  %1168 = vmatpush.msrb.mxu1 %v6141_v27  ;;  %v6144_v13 = vld [vmem:[#allocation3 + $0x498] sm:$0xff] }
 0x153   :  { %10177 = vst [vmem:[#allocation167_spill] sm:$0xff] %v6129_v26  ;;  %1208 = vmatpush.msrb.mxu3 %v6144_v13  ;;  %v6147_v26 = vld [vmem:[#allocation3 + $0x190] sm:$0xff] }
 0x154   :  { %10178 = vst [vmem:[#allocation168_spill] sm:$0xff] %v6132_v19  ;;  %1144 = vmatpush.msrb.mxu0 %v6147_v26  ;;  %v6150_v19 = vld [vmem:[#allocation3 + $0x198] sm:$0xff] }
 0x155   :  { %10179 = vst [vmem:[#allocation169_spill] sm:$0xff] %v6135_v25  ;;  %1184 = vmatpush.msrb.mxu2 %v6150_v19  ;;  %v6153_v25 = vld [vmem:[#allocation3 + $0x450] sm:$0xff] }
 0x156   :  { %10180 = vst [vmem:[#allocation170_spill] sm:$0xff] %v6138_v30  ;;  %1169 = vmatpush.msrb.mxu1 %v6153_v25  ;;  %v6156_v30 = vld [vmem:[#allocation3 + $0x458] sm:$0xff] }
 0x157   :  { %10181 = vst [vmem:[#allocation171_spill] sm:$0xff] %v6141_v27  ;;  %1209 = vmatpush.msrb.mxu3 %v6156_v30  ;;  %v6159_v27 = vld [vmem:[#allocation3 + $0x150] sm:$0xff] }
 0x158   :  { %10182 = vst [vmem:[#allocation172_spill] sm:$0xff] %v6144_v13  ;;  %1145 = vmatpush.msrb.mxu0 %v6159_v27  ;;  %v6162_v13 = vld [vmem:[#allocation3 + $0x158] sm:$0xff] }
 0x159   :  { %10183 = vst [vmem:[#allocation173_spill] sm:$0xff] %v6147_v26  ;;  %1185 = vmatpush.msrb.mxu2 %v6162_v13  ;;  %v6165_v26 = vld [vmem:[#allocation3 + $0x410] sm:$0xff]  ;;  %1210 = vmatpush.msrb.mxu3 %v5508_v7  ;;  %v6184_v7 = vld [vmem:[#allocation3 + $0x98] sm:$0xff] }
 0x15a   :  { %10184 = vst [vmem:[#allocation174_spill] sm:$0xff] %v6150_v19  ;;  %1170 = vmatpush.msrb.mxu1 %v6165_v26  ;;  %v6169_v19 = vld [vmem:[#allocation3 + $0x110] sm:$0xff] }
 0x15b   :  { %10185 = vst [vmem:[#allocation175_spill] sm:$0xff] %v6153_v25  ;;  %1146 = vmatpush.msrb.mxu0 %v6169_v19  ;;  %v6172_v25 = vld [vmem:[#allocation3 + $0x118] sm:$0xff] }
 0x15c   :  { %10186 = vst [vmem:[#allocation176_spill] sm:$0xff] %v6156_v30  ;;  %1186 = vmatpush.msrb.mxu2 %v6172_v25  ;;  %v6175_v30 = vld [vmem:[#allocation3 + $0xd0] sm:$0xff] }
 0x15d   :  { %10187 = vst [vmem:[#allocation177_spill] sm:$0xff] %v6159_v27  ;;  %1147 = vmatpush.msrb.mxu0 %v6175_v30  ;;  %v6178_v27 = vld [vmem:[#allocation3 + $0xd8] sm:$0xff] }
 0x15e   :  { %10188 = vst [vmem:[#allocation178_spill] sm:$0xff] %v6162_v13  ;;  %1187 = vmatpush.msrb.mxu2 %v6178_v27  ;;  %v626_v13 = vpop.f32.mrf.mxu1 }
 0x15f   :  { %10189 = vst [vmem:[#allocation179_spill] sm:$0xff] %v6165_v26  ;;  %v6181_v26 = vld [vmem:[#allocation3 + $0x90] sm:$0xff] }
 0x160   :  { %10190 = vst [vmem:[#allocation180_spill] sm:$0xff] %v6169_v19  ;;  %1148 = vmatpush.msrb.mxu0 %v6181_v26  ;;  %1188 = vmatpush.msrb.mxu2 %v6184_v7  ;;  %v6187_v19 = vld [vmem:[#allocation3 + $0x50] sm:$0xff] }
 0x161   :  { %10191 = vst [vmem:[#allocation181_spill] sm:$0xff] %v6172_v25  ;;  %v6190_v25 = vld [vmem:[#allocation3 + $0x58] sm:$0xff] }
 0x162   :  { %10192 = vst [vmem:[#allocation182_spill] sm:$0xff] %v6175_v30  ;;  %1149 = vmatpush.msrb.mxu0 %v6187_v19  ;;  %1189 = vmatpush.msrb.mxu2 %v6190_v25  ;;  %v606_v30 = vpop.f32.mrf.mxu0 }
 0x163   :  { %10193 = vst [vmem:[#allocation183_spill] sm:$0xff] %v6178_v27  ;;  %v627_v17 = vadd.f32 %v626_v13, %v606_v30  ;;  %v6193_v27 = vld [vmem:[#allocation3 + $0x10] sm:$0xff] }
 0x164   :  { %10194 = vst [vmem:[#allocation184_spill] sm:$0xff] %v6181_v26  ;;  %1150 = vmatpush.msrb.mxu0 %v6193_v27  ;;  %1190 = vmatpush.msrb.mxu2 %v6196_v37  ;;  %v666_v26 = vpop.f32.mrf.mxu3 }
 0x165   :  { %10195 = vst [vmem:[#allocation185_spill] sm:$0xff] %v6184_v7  ;;  %v988_v7 = vadd.f32 %v5522_v31, %v627_v17  ;;  %v667_v34 = vadd.f32 %v666_v26, %v646_v18 }
 0x166   :  { %10196 = vst [vmem:[#allocation186_spill] sm:$0xff] %v6187_v19  ;;  %v706_v19 = vpop.f32.mrf.mxu1 }
 0x167   :  { %10197 = vst [vmem:[#allocation187_spill] sm:$0xff] %v6190_v25  ;;  %v4253_v23 = vmul.f32 -1.442695, %v988_v7  ;;  %v989_v25 = vadd.f32 %v5525_v36, %v667_v34 }
 0x168   :  { %10198 = vst [vmem:[#allocation188_spill] sm:$0xff] %v6193_v27 }
 0x169   :  { %10199 = vst [vmem:[#allocation189_spill] sm:$0xff] %v6196_v37  ;;  %4315 = vpow2.f32 %v4253_v23  ;;  %v4254_v30 = vmul.f32 -1.442695, %v989_v25  ;;  %v726_v37 = vpop.f32.mrf.mxu2 }
 0x16a   :  { %v686_v5 = vpop.f32.mrf.mxu0 }
 0x16b   :  { %v707_v13 = vadd.f32 %v706_v19, %v686_v5  ;;  %4317 = vpow2.f32 %v4254_v30 }
 0x16c   :  { %v746_v60 = vpop.f32.mrf.mxu3 }
 0x16d   :  { %v990_v59 = vadd.f32 %v5527_v38, %v707_v13  ;;  %v747_v25 = vadd.f32 %v746_v60, %v726_v37 }
 0x16f   :  { %v4316_v27 = vpop.eup %4315  ;;  %v4255_v33 = vmul.f32 -1.442695, %v990_v59  ;;  %v991_v34 = vadd.f32 %v5533_v45, %v747_v25 }
 0x170   :  { %v1001_v12 = vadd.f32 1.0, %v4316_v27 }
 0x171   :  { %4319 = vpow2.f32 %v4255_v33  ;;  %v4318_v31 = vpop.eup %4317  ;;  %v6208_v33 = vld [vmem:[%s9424_s4] sm:$0xf] }
 0x172   :  { %4321 = vrcp.f32 %v1001_v12  ;;  %v1002_v17 = vadd.f32 1.0, %v4318_v31  ;;  %v1015_v13 = vand.u32 2147483648, %v1001_v12  ;;  %v6212_v30 = vperm.slane %v6208_v33, 0  ;;  %v786_v31 = vpop.f32.mrf.mxu1  ;;  %v766_v25 = vpop.f32.mrf.mxu0 }
 0x173   :  { %vm1009_vm8 = vweird.f32 %v1001_v12  ;;  %v787_v11 = vadd.f32 %v786_v31, %v766_v25  ;;  %v806_v31 = vpop.f32.mrf.mxu2 }
 0x174   :  { %4323 = vrcp.f32 %v1002_v17  ;;  %v1028_v45 = vand.u32 2147483647, %v1002_v17  ;;  %vm1024_vm11 = vweird.f32 %v1002_v17  ;;  %v826_v6 = vpop.f32.mrf.mxu3 }
 0x176   :  { %vm1029_vm14 = vcmp.eq.f32.partialorder %v1028_v45, 8.507059e+37 }
 0x177   :  { %v4320_v7 = vpop.eup %4319 }
 0x178   :  { %v4322_v23 = vpop.eup %4321  ;;  %v6202_v26 = vadd.f32 1.0, %v4320_v7  ;;  %v1013_v7 = vand.u32 2147483647, %v1001_v12 }
 0x179   :  { %v1005_v36 = vmul.f32 %v4322_v23, %v1001_v12  ;;  %vm1010_vm7 = vweird.f32 %v4322_v23  ;;  %v909_v12 = vadd.f32 %v787_v11, %v6212_v30 }
 0x17a   :  { %4325 = vrcp.f32 %v6202_v26  ;;  %v4324_v59 = vpop.eup %4323  ;;  %vm6215_vm9 = vmor %vm1009_vm8, %vm1010_vm7  ;;  %vm1014_vm12 = vcmp.eq.f32.partialorder %v1013_v7, 8.507059e+37  ;;  %vm1039_vm3 = vweird.f32 %v6202_v26 }
 0x17b   :  { %v1006_v38 = vsub.f32 1.0, %v1005_v36  ;;  %v1020_v19 = vmul.f32 %v4324_v59, %v1002_v17  ;;  %v1030_v36 = vand.u32 2147483648, %v1002_v17  ;;  %4327 = vtanh.f32 %v991_v34 }
 0x17c   :  { %vm1025_vm10 = vweird.f32 %v4324_v59  ;;  %v4250_v34 = vmul.f32 -1.442695, %v909_v12 }
 0x17d   :  { %v1007_v5 = vmul.f32 %v4322_v23, %v1006_v38  ;;  %v1021_v60 = vsub.f32 1.0, %v1020_v19  ;;  %v1016_v19 = vor.u32 1.1754944e-38, %v1015_v13  ;;  %vm1026_vm13 = vmor %vm1024_vm11, %vm1025_vm10  ;;  %v1031_v50 = vor.u32 1.1754944e-38, %v1030_v36 }
 0x17e   :  { %4329 = vpow2.f32 %v4250_v34  ;;  %v10230_v34 = vld [vmem:[#allocation57_spill] sm:$0xff] }
 0x17f   :  { %v1008_v18 = vadd.f32 %v4322_v23, %v1007_v5  ;;  %v1022_v5 = vmul.f32 %v4324_v59, %v1021_v60  ;;  %v6223_v60 = vperm.slane %v6208_v33, 1 }
 0x180   :  { %v4326_v27 = vpop.eup %4325 }
 0x181   :  { %v1035_v37 = vmul.f32 %v4326_v27, %v6202_v26  ;;  %v1012_v14 = vsel %vm6215_vm9, %v4322_v23, %v1008_v18  ;;  %v1023_v28 = vadd.f32 %v4324_v59, %v1022_v5  ;;  %v4328_v38 = vpop.eup %4327  ;;  %vm1040_vm15 = vweird.f32 %v4326_v27 }
 0x182   :  { %v1017_v24 = vsel %vm1014_vm12, %v1016_v19, %v1012_v14  ;;  %vm1041_vm4 = vmor %vm1039_vm3, %vm1040_vm15 }
 0x183   :  { %v1036_v29 = vsub.f32 1.0, %v1035_v37  ;;  %v1027_v56 = vsel %vm1026_vm13, %v4324_v59, %v1023_v28  ;;  %v1051_v13 = vmul.f32 %v4328_v38, %v1017_v24  ;;  %v827_v37 = vadd.f32 %v826_v6, %v806_v31 }
 0x184   :  { %v1032_v18 = vsel %vm1029_vm14, %v1031_v50, %v1027_v56  ;;  %v1045_v28 = vand.u32 2147483648, %v6202_v26  ;;  %v1043_v56 = vand.u32 2147483647, %v6202_v26 }
 0x185   :  { %v1037_v23 = vmul.f32 %v4326_v27, %v1036_v29  ;;  %v1050_v17 = vmul.f32 %v1032_v18, %v5540_v1  ;;  %v910_v14 = vadd.f32 %v827_v37, %v6223_v60  ;;  %v4330_v1 = vpop.eup %4329  ;;  %v10208_v37 = vld [vmem:[#allocation29_spill] sm:$0xff] }
 0x186   :  { %v1046_v24 = vor.u32 1.1754944e-38, %v1045_v28  ;;  %vm1044_vm5 = vcmp.eq.f32.partialorder %v1043_v56, 8.507059e+37  ;;  %v6233_v36 = vadd.f32 1.0, %v4330_v1  ;;  %v10214_v1 = vld [vmem:[#allocation39_spill] sm:$0xff] }
 0x187   :  { %v6226_v11 = vadd.f32 %v1051_v13, %v1050_v17  ;;  %v1038_v7 = vadd.f32 %v4326_v27, %v1037_v23  ;;  %v4251_v59 = vmul.f32 -1.442695, %v910_v14  ;;  %v10210_v14 = vld [vmem:[#allocation31_spill] sm:$0xff] }
 0x188   :  { %vm930_vm8 = vweird.f32 %v6233_v36 }
 0x189   :  { %4331 = vtanh.f32 %v6226_v11  ;;  %v1042_v6 = vsel %vm1041_vm4, %v4326_v27, %v1038_v7 }
 0x18a   :  { %4333 = vpow2.f32 %v4251_v59  ;;  %v1047_v29 = vsel %vm1044_vm5, %v1046_v24, %v1042_v6  ;;  %v10213_v59 = vld [vmem:[#allocation38_spill] sm:$0xff]  ;;  %v10215_v6 = vld [vmem:[#allocation40_spill] sm:$0xff] }
 0x18b   :  { %4335 = vrcp.f32 %v6233_v36 }
 0x18f   :  { %v4332_v50 = vpop.eup %4331 }
 0x190   :  { %v6235_v45 = vmul.f32 %v4332_v50, %v1047_v29  ;;  %v4334_v25 = vpop.eup %4333  ;;  %v10216_v29 = vld [vmem:[#allocation41_spill] sm:$0xff] }
 0x191   :  { %v6237_v5 = vadd.f32 1.0, %v4334_v25  ;;  %v6249_v26 = vpop.eup %4335 }
 0x192   :  { %1071 = vmatmul.f32.vlgmr.msra.gmra.mxu0 %v6235_v45  ;;  %1111 = vmatmul.f32.vlgmr.msra.gmra.mxu2 %v6235_v45  ;;  %vm931_vm6 = vweird.f32 %v6249_v26 }
 0x193   :  { %1215 = vmatpush.msra.mxu0 %v5563_v40  ;;  %1255 = vmatpush.msra.mxu2 %v5565_v41  ;;  %4337 = vrcp.f32 %v6237_v5  ;;  %v926_v40 = vmul.f32 %v6249_v26, %v6233_v36  ;;  %vm945_vm9 = vweird.f32 %v6237_v5  ;;  %vm6295_vm10 = vmor %vm930_vm8, %vm931_vm6 }
 0x195   :  { %1216 = vmatpush.msra.mxu0 %v5569_v44  ;;  %1256 = vmatpush.msra.mxu2 %v5571_v46  ;;  %v866_v44 = vpop.f32.mrf.mxu1  ;;  %v6264_v46 = vperm.slane %v6208_v33, 2 }
 0x197   :  { %1217 = vmatpush.msra.mxu0 %v5576_v53  ;;  %1257 = vmatpush.msra.mxu2 %v5578_v54  ;;  %10202 = vst [vmem:[#allocation190_spill] sm:$0xff] %v6264_v46  ;;  %v846_v53 = vpop.f32.mrf.mxu0 }
 0x198   :  { %v867_v54 = vadd.f32 %v866_v44, %v846_v53  ;;  %v6345_v44 = vld [vmem:[#allocation3 + $0x7e8] sm:$0xff]  ;;  %v10220_v53 = vld [vmem:[#allocation45_spill] sm:$0xff] }
 0x199   :  { %1218 = vmatpush.msra.mxu0 %v5582_v57  ;;  %1258 = vmatpush.msra.mxu2 %v5584_v58  ;;  %v6253_v27 = vpop.eup %4337  ;;  %v927_v57 = vsub.f32 1.0, %v926_v40  ;;  %v10219_v40 = vld [vmem:[#allocation44_spill] sm:$0xff] }
 0x19a   :  { %1151 = vmatmul.f32.vlgmr.msrb.gmra.mxu0 %v6235_v45  ;;  %1191 = vmatmul.f32.vlgmr.msrb.gmra.mxu2 %v6235_v45  ;;  %v941_v41 = vmul.f32 %v6253_v27, %v6237_v5  ;;  %vm946_vm7 = vweird.f32 %v6253_v27 }
 0x19b   :  { %1219 = vmatpush.msra.mxu0 %v5590_v62  ;;  %1259 = vmatpush.msra.mxu2 %v5592_v0  ;;  %v911_v62 = vadd.f32 %v867_v54, %v6264_v46  ;;  %v906_v0 = vpop.f32.mrf.mxu3  ;;  %vm6301_vm11 = vmor %vm945_vm9, %vm946_vm7  ;;  %v10221_v54 = vld [vmem:[#allocation46_spill] sm:$0xff] }
 0x19c   :  { %v942_v58 = vsub.f32 1.0, %v941_v41  ;;  %v6342_v41 = vld [vmem:[#allocation3 + $0x7e0] sm:$0xff] }
 0x19d   :  { %1220 = vmatpush.msra.mxu0 %v5594_v2  ;;  %1260 = vmatpush.msra.mxu2 %v5598_v3  ;;  %v4252_v19 = vmul.f32 -1.442695, %v911_v62  ;;  %v6274_v2 = vperm.slane %v6208_v33, 3  ;;  %v10222_v62 = vld [vmem:[#allocation47_spill] sm:$0xff] }
 0x19e   :  { %v943_v3 = vmul.f32 %v6253_v27, %v942_v58  ;;  %v6353_v58 = vld [vmem:[#allocation3 + $0x7a8] sm:$0xff] }
 0x19f   :  { %1221 = vmatpush.msra.mxu0 %v5614_v20  ;;  %1261 = vmatpush.msra.mxu2 %v5616_v21  ;;  %10203 = vst [vmem:[#allocation191_spill] sm:$0xff] %v6274_v2  ;;  %v886_v20 = vpop.f32.mrf.mxu2  ;;  %v928_v21 = vmul.f32 %v6249_v26, %v927_v57  ;;  %4339 = vpow2.f32 %v4252_v19  ;;  %v6350_v57 = vld [vmem:[#allocation3 + $0x7a0] sm:$0xff] }
 0x1a0   :  { %v907_v12 = vadd.f32 %v906_v0, %v886_v20  ;;  %v10223_v0 = vld [vmem:[#allocation48_spill] sm:$0xff]  ;;  %v6358_v19 = vld [vmem:[#allocation3 + $0x760] sm:$0xff] }
 0x1a1   :  { %1222 = vmatpush.msra.mxu0 %v5626_v39  ;;  %1262 = vmatpush.msra.mxu2 %v5628_v42  ;;  %v929_v42 = vadd.f32 %v6249_v26, %v928_v21  ;;  %v10224_v20 = vld [vmem:[#allocation49_spill] sm:$0xff]  ;;  %v10225_v21 = vld [vmem:[#allocation50_spill] sm:$0xff] }
 0x1a2   :  { %v912_v39 = vadd.f32 %v907_v12, %v6274_v2  ;;  %v6366_v12 = vld [vmem:[#allocation3 + $0x720] sm:$0xff] }
 0x1a3   :  { %1223 = vmatpush.msra.mxu0 %v5632_v49  ;;  %1263 = vmatpush.msra.mxu2 %v5634_v48  ;;  %v944_v49 = vadd.f32 %v6253_v27, %v943_v3  ;;  %v951_v48 = vand.u32 2147483648, %v6237_v5  ;;  %v6361_v3 = vld [vmem:[#allocation3 + $0x768] sm:$0xff] }
 0x1a4   :  { %4341 = vtanh.f32 %v912_v39  ;;  %v6369_v39 = vld [vmem:[#allocation3 + $0x728] sm:$0xff] }
 0x1a5   :  { %1224 = vmatpush.msra.mxu0 %v5641_v61  ;;  %1264 = vmatpush.msra.mxu2 %v5643_v4  ;;  %v936_v61 = vand.u32 2147483648, %v6233_v36  ;;  %v4340_v33 = vpop.eup %4339  ;;  %v948_v38 = vsel %vm6301_vm11, %v6253_v27, %v944_v49  ;;  %v952_v23 = vor.u32 1.1754944e-38, %v951_v48  ;;  %v10218_v27 = vld [vmem:[#allocation43_spill] sm:$0xff]  ;;  %v10227_v49 = vld [vmem:[#allocation52_spill] sm:$0xff]  ;;  %v6376_v48 = vld [vmem:[#allocation3 + $0x6e0] sm:$0xff] }
 0x1a6   :  { %v10228_v4 = vld [vmem:[#allocation53_spill] sm:$0xff] }
 0x1a7   :  { %1225 = vmatpush.msra.mxu0 %v5648_v9  ;;  %1265 = vmatpush.msra.mxu2 %v5650_v10  ;;  %v934_v9 = vand.u32 2147483647, %v6233_v36  ;;  %v949_v10 = vand.u32 2147483647, %v6237_v5  ;;  %v937_v18 = vor.u32 1.1754944e-38, %v936_v61  ;;  %v10217_v36 = vld [vmem:[#allocation42_spill] sm:$0xff] }
 0x1a8   :  { %v6379_v61 = vld [vmem:[#allocation3 + $0x6e8] sm:$0xff] }
 0x1a9   :  { %1226 = vmatpush.msra.mxu0 %v5658_v43  ;;  %1266 = vmatpush.msra.mxu2 %v5660_v47  ;;  %v924_v43 = vadd.f32 1.0, %v4340_v33  ;;  %v933_v47 = vsel %vm6295_vm10, %v6249_v26, %v929_v42  ;;  %vm935_vm12 = vcmp.eq.f32.partialorder %v934_v9, 8.507059e+37  ;;  %vm950_vm13 = vcmp.eq.f32.partialorder %v949_v10, 8.507059e+37  ;;  %v10226_v42 = vld [vmem:[#allocation51_spill] sm:$0xff]  ;;  %v10229_v9 = vld [vmem:[#allocation54_spill] sm:$0xff]  ;;  %v6384_v10 = vld [vmem:[#allocation3 + $0x6a0] sm:$0xff] }
 0x1aa   :  { %v953_v31 = vsel %vm950_vm13, %v952_v23, %v948_v38  ;;  %v6387_v33 = vld [vmem:[#allocation3 + $0x6a8] sm:$0xff]  ;;  %v10232_v23 = vld [vmem:[#allocation61_spill] sm:$0xff] }
 0x1ab   :  { %1227 = vmatpush.msra.mxu0 %v5662_v51  ;;  %1267 = vmatpush.msra.mxu2 %v5666_v52  ;;  %4343 = vrcp.f32 %v924_v43  ;;  %v4342_v51 = vpop.eup %4341  ;;  %v938_v52 = vsel %vm935_vm12, %v937_v18, %v933_v47  ;;  %v971_v13 = vmul.f32 0.0, %v953_v31  ;;  %v966_v7 = vand.u32 2147483648, %v924_v43  ;;  %v6392_v47 = vld [vmem:[#allocation3 + $0x660] sm:$0xff]  ;;  %v6395_v38 = vld [vmem:[#allocation3 + $0x668] sm:$0xff] }
 0x1ac   :  { %v972_v17 = vmul.f32 %v4342_v51, %v938_v52  ;;  %vm960_vm15 = vweird.f32 %v924_v43  ;;  %v10233_v18 = vld [vmem:[#allocation62_spill] sm:$0xff]  ;;  %v6400_v51 = vld [vmem:[#allocation3 + $0x620] sm:$0xff] }
 0x1ad   :  { %1228 = vmatpush.msra.mxu0 %v5680_v8  ;;  %1268 = vmatpush.msra.mxu2 %v5682_v63  ;;  %v967_v24 = vor.u32 1.1754944e-38, %v966_v7  ;;  %v6403_v52 = vld [vmem:[#allocation3 + $0x628] sm:$0xff]  ;;  %v10234_v31 = vld [vmem:[#allocation65_spill] sm:$0xff] }
 0x1ae   :  { %v6323_v63 = vadd.f32 %v972_v17, %v971_v13  ;;  %v10235_v17 = vld [vmem:[#allocation66_spill] sm:$0xff]  ;;  %v6408_v13 = vld [vmem:[#allocation3 + $0x5e0] sm:$0xff] }
 0x1af   :  { %1229 = vmatpush.msra.mxu0 %v5689_v32  ;;  %1269 = vmatpush.msra.mxu2 %v5691_v15  ;;  %v10209_v15 = vld [vmem:[#allocation30_spill] sm:$0xff]  ;;  %v6428_v7 = vld [vmem:[#allocation3 + $0x560] sm:$0xff] }
 0x1b0   :  { %4345 = vtanh.f32 %v6323_v63 }
 0x1b1   :  { %1230 = vmatpush.msra.mxu0 %v5695_v22  ;;  %1270 = vmatpush.msra.mxu2 %v5697_v35  ;;  %v4344_v8 = vpop.eup %4343  ;;  %v10211_v35 = vld [vmem:[#allocation32_spill] sm:$0xff] }
 0x1b2   :  { %1231 = vmatmul.f32.vlgmr.msra.gmra.mxu0 %v6235_v45  ;;  %1271 = vmatmul.f32.vlgmr.msra.gmra.mxu2 %v6235_v45  ;;  %v956_v32 = vmul.f32 %v4344_v8, %v924_v43  ;;  %vm961_vm14 = vweird.f32 %v4344_v8 }
 0x1b3   :  { %1295 = vmatpush.msrb.mxu0 %v5702_v16  ;;  %1335 = vmatpush.msrb.mxu2 %v5704_v55  ;;  %v964_v16 = vand.u32 2147483647, %v924_v43  ;;  %v10212_v55 = vld [vmem:[#allocation37_spill] sm:$0xff]  ;;  %vm962_vm3 = vmor %vm960_vm15, %vm961_vm14  ;;  %v10231_v43 = vld [vmem:[#allocation58_spill] sm:$0xff] }
 0x1b4   :  { %v957_v22 = vsub.f32 1.0, %v956_v32  ;;  %v10236_v32 = vld [vmem:[#allocation69_spill] sm:$0xff] }
 0x1b5   :  { %1296 = vmatpush.msrb.mxu0 %v10208_v37  ;;  %1336 = vmatpush.msrb.mxu2 %v10209_v15  ;;  %vm965_vm4 = vcmp.eq.f32.partialorder %v964_v16, 8.507059e+37  ;;  %v10237_v37 = vld [vmem:[#allocation70_spill] sm:$0xff]  ;;  %v65_v15 = vld [vmem:[%s9420_s0 + $0xe] sm:$0x3]  ;;  %v10240_v16 = vld [vmem:[#allocation79_spill] sm:$0xff] }
 0x1b6   :  { %v958_v28 = vmul.f32 %v4344_v8, %v957_v22  ;;  %v4346_v25 = vpop.eup %4345  ;;  %v6421_v22 = vld [vmem:[#allocation3 + $0x5a0] sm:$0xff]  ;;  %104 = vperm.xlu1 %4304, %v65_v15   ;;  %v6503_v15 = vld [vmem:[#allocation3 + $0x738] sm:$0xff] }
 0x1b7   :  { %1297 = vmatpush.msrb.mxu0 %v10210_v14  ;;  %1337 = vmatpush.msrb.mxu2 %v10211_v35  ;;  %v6424_v14 = vld [vmem:[#allocation3 + $0x5a8] sm:$0xff]  ;;  %v10238_v35 = vld [vmem:[#allocation75_spill] sm:$0xff]  ;;  %10263 = vst [vmem:[#allocation41_spill] sm:$0xff] %v6503_v15 }
 0x1b8   :  { %v959_v56 = vadd.f32 %v4344_v8, %v958_v28  ;;  %v6431_v28 = vld [vmem:[#allocation3 + $0x568] sm:$0xff] }
 0x1b9   :  { %1298 = vmatpush.msrb.mxu0 %v10212_v55  ;;  %1338 = vmatpush.msrb.mxu2 %v10213_v59  ;;  %v6436_v55 = vld [vmem:[#allocation3 + $0x520] sm:$0xff]  ;;  %v6439_v59 = vld [vmem:[#allocation3 + $0x528] sm:$0xff] }
 0x1ba   :  { %v963_v50 = vsel %vm962_vm3, %v4344_v8, %v959_v56  ;;  %v6411_v8 = vld [vmem:[#allocation3 + $0x5e8] sm:$0xff]  ;;  %v10241_v56 = vld [vmem:[#allocation80_spill] sm:$0xff] }
 0x1bb   :  { %1299 = vmatpush.msrb.mxu0 %v10214_v1  ;;  %1339 = vmatpush.msrb.mxu2 %v10215_v6  ;;  %v968_v5 = vsel %vm965_vm4, %v967_v24, %v963_v50  ;;  %v10242_v1 = vld [vmem:[#allocation83_spill] sm:$0xff]  ;;  %v6444_v6 = vld [vmem:[#allocation3 + $0x4e0] sm:$0xff]  ;;  %v6447_v24 = vld [vmem:[#allocation3 + $0x4e8] sm:$0xff] }
 0x1bc   :  { %v6336_v26 = vmul.f32 %v4346_v25, %v968_v5  ;;  %v10243_v50 = vld [vmem:[#allocation84_spill] sm:$0xff]  ;;  %v6455_v25 = vld [vmem:[#allocation3 + $0x4a8] sm:$0xff] }
 0x1bd   :  { %1300 = vmatpush.msrb.mxu0 %v10216_v29  ;;  %1340 = vmatpush.msrb.mxu2 %v10217_v36  ;;  %v10244_v29 = vld [vmem:[#allocation87_spill] sm:$0xff]  ;;  %v6452_v36 = vld [vmem:[#allocation3 + $0x4a0] sm:$0xff]  ;;  %v10245_v5 = vld [vmem:[#allocation88_spill] sm:$0xff] }
 0x1be   :  { %1091 = vmatmul.f32.vlgmr.msra.gmra.mxu1 %v6336_v26  ;;  %1131 = vmatmul.f32.vlgmr.msra.gmra.mxu3 %v6336_v26 }
 0x1bf   :  { %1301 = vmatpush.msrb.mxu0 %v10218_v27  ;;  %1341 = vmatpush.msrb.mxu2 %v10219_v40  ;;  %v10246_v27 = vld [vmem:[#allocation91_spill] sm:$0xff]  ;;  %v6460_v40 = vld [vmem:[#allocation3 + $0x460] sm:$0xff] }
 0x1c0   :  { %1235 = vmatpush.msra.mxu1 %v6342_v41  ;;  %1275 = vmatpush.msra.mxu3 %v6345_v44 }
 0x1c1   :  { %1302 = vmatpush.msrb.mxu0 %v10220_v53  ;;  %1342 = vmatpush.msrb.mxu2 %v10221_v54  ;;  %v6463_v53 = vld [vmem:[#allocation3 + $0x468] sm:$0xff]  ;;  %v10247_v54 = vld [vmem:[#allocation92_spill] sm:$0xff] }
 0x1c2   :  { %1236 = vmatpush.msra.mxu1 %v6350_v57  ;;  %1276 = vmatpush.msra.mxu3 %v6353_v58 }
 0x1c3   :  { %1303 = vmatpush.msrb.mxu0 %v10222_v62  ;;  %1343 = vmatpush.msrb.mxu2 %v10223_v0  ;;  %v10248_v62 = vld [vmem:[#allocation95_spill] sm:$0xff]  ;;  %v6468_v0 = vld [vmem:[#allocation3 + $0x420] sm:$0xff] }
 0x1c4   :  { %1237 = vmatpush.msra.mxu1 %v6358_v19  ;;  %1277 = vmatpush.msra.mxu3 %v6361_v3 }
 0x1c5   :  { %1304 = vmatpush.msrb.mxu0 %v10224_v20  ;;  %1344 = vmatpush.msrb.mxu2 %v10225_v21  ;;  %v6471_v20 = vld [vmem:[#allocation3 + $0x428] sm:$0xff]  ;;  %v6476_v21 = vld [vmem:[#allocation3 + $0x7f0] sm:$0xff] }
 0x1c6   :  { %1238 = vmatpush.msra.mxu1 %v6366_v12  ;;  %1278 = vmatpush.msra.mxu3 %v6369_v39  ;;  %10249 = vst [vmem:[#allocation29_spill] sm:$0xff] %v6471_v20 }
 0x1c7   :  { %1305 = vmatpush.msrb.mxu0 %v10226_v42  ;;  %1345 = vmatpush.msrb.mxu2 %v10227_v49  ;;  %10250 = vst [vmem:[#allocation30_spill] sm:$0xff] %v6476_v21  ;;  %v6479_v42 = vld [vmem:[#allocation3 + $0x7f8] sm:$0xff] }
 0x1c8   :  { %1171 = vmatmul.f32.vlgmr.msrb.gmra.mxu1 %v6336_v26  ;;  %1211 = vmatmul.f32.vlgmr.msrb.gmra.mxu3 %v6336_v26  ;;  %10251 = vst [vmem:[#allocation31_spill] sm:$0xff] %v6479_v42  ;;  %v10252_v49 = vld [vmem:[#allocation96_spill] sm:$0xff] }
 0x1c9   :  { %1239 = vmatpush.msra.mxu1 %v6376_v48  ;;  %1279 = vmatpush.msra.mxu3 %v6379_v61 }
 0x1ca   :  { %1306 = vmatpush.msrb.mxu0 %v10228_v4  ;;  %1346 = vmatpush.msrb.mxu2 %v10229_v9  ;;  %v10253_v4 = vld [vmem:[#allocation99_spill] sm:$0xff] }
 0x1cb   :  { %1240 = vmatpush.msra.mxu1 %v6384_v10  ;;  %1280 = vmatpush.msra.mxu3 %v6387_v33  ;;  %v6484_v9 = vld [vmem:[#allocation3 + $0x7b0] sm:$0xff] }
 0x1cc   :  { %1307 = vmatpush.msrb.mxu0 %v10230_v34  ;;  %1347 = vmatpush.msrb.mxu2 %v10231_v43  ;;  %10254 = vst [vmem:[#allocation32_spill] sm:$0xff] %v6484_v9  ;;  %v6487_v34 = vld [vmem:[#allocation3 + $0x7b8] sm:$0xff] }
 0x1cd   :  { %1241 = vmatpush.msra.mxu1 %v6392_v47  ;;  %1281 = vmatpush.msra.mxu3 %v6395_v38  ;;  %10255 = vst [vmem:[#allocation37_spill] sm:$0xff] %v6487_v34  ;;  %v10256_v43 = vld [vmem:[#allocation100_spill] sm:$0xff] }
 0x1ce   :  { %1308 = vmatpush.msrb.mxu0 %v10232_v23  ;;  %1348 = vmatpush.msrb.mxu2 %v10233_v18  ;;  %v10257_v23 = vld [vmem:[#allocation103_spill] sm:$0xff] }
 0x1cf   :  { %1242 = vmatpush.msra.mxu1 %v6400_v51  ;;  %1282 = vmatpush.msra.mxu3 %v6403_v52  ;;  %v6492_v18 = vld [vmem:[#allocation3 + $0x770] sm:$0xff] }
 0x1d0   :  { %1309 = vmatpush.msrb.mxu0 %v10234_v31  ;;  %1349 = vmatpush.msrb.mxu2 %v10235_v17  ;;  %10258 = vst [vmem:[#allocation38_spill] sm:$0xff] %v6492_v18  ;;  %v6495_v31 = vld [vmem:[#allocation3 + $0x778] sm:$0xff] }
 0x1d1   :  { %1243 = vmatpush.msra.mxu1 %v6408_v13  ;;  %1283 = vmatpush.msra.mxu3 %v6411_v8  ;;  %10259 = vst [vmem:[#allocation39_spill] sm:$0xff] %v6495_v31  ;;  %v10260_v17 = vld [vmem:[#allocation104_spill] sm:$0xff] }
 0x1d2   :  { %1310 = vmatpush.msrb.mxu0 %v10236_v32  ;;  %1350 = vmatpush.msrb.mxu2 %v10237_v37  ;;  %v10261_v32 = vld [vmem:[#allocation107_spill] sm:$0xff] }
 0x1d3   :  { %1311 = vmatmul.f32.vlgmr.msrb.gmra.mxu0 %v6235_v45  ;;  %1351 = vmatmul.f32.vlgmr.msrb.gmra.mxu2 %v6235_v45  ;;  %v10239_v45 = vld [vmem:[#allocation76_spill] sm:$0xff]  ;;  %v6500_v37 = vld [vmem:[#allocation3 + $0x730] sm:$0xff] }
 0x1d4   :  { %1244 = vmatpush.msra.mxu1 %v6421_v22  ;;  %1284 = vmatpush.msra.mxu3 %v6424_v14  ;;  %10262 = vst [vmem:[#allocation40_spill] sm:$0xff] %v6500_v37 }
 0x1d5   :  { %1521 = vmatpush.msra.mxu0 %v10238_v35  ;;  %1561 = vmatpush.msra.mxu2 %v10239_v45  ;;  %v10264_v35 = vld [vmem:[#allocation108_spill] sm:$0xff]  ;;  %v10265_v45 = vld [vmem:[#allocation111_spill] sm:$0xff] }
 0x1d6   :  { %1245 = vmatpush.msra.mxu1 %v6428_v7  ;;  %1285 = vmatpush.msra.mxu3 %v6431_v28 }
 0x1d7   :  { %1522 = vmatpush.msra.mxu0 %v10240_v16  ;;  %1562 = vmatpush.msra.mxu2 %v10241_v56  ;;  %v6508_v16 = vld [vmem:[#allocation3 + $0x6f0] sm:$0xff]  ;;  %v6511_v56 = vld [vmem:[#allocation3 + $0x6f8] sm:$0xff] }
 0x1d8   :  { %1246 = vmatpush.msra.mxu1 %v6436_v55  ;;  %1286 = vmatpush.msra.mxu3 %v6439_v59  ;;  %10266 = vst [vmem:[#allocation42_spill] sm:$0xff] %v6508_v16 }
 0x1d9   :  { %1523 = vmatpush.msra.mxu0 %v10242_v1  ;;  %1563 = vmatpush.msra.mxu2 %v10243_v50  ;;  %10267 = vst [vmem:[#allocation43_spill] sm:$0xff] %v6511_v56  ;;  %v10268_v1 = vld [vmem:[#allocation112_spill] sm:$0xff]  ;;  %v10269_v50 = vld [vmem:[#allocation115_spill] sm:$0xff] }
 0x1da   :  { %1247 = vmatpush.msra.mxu1 %v6444_v6  ;;  %1287 = vmatpush.msra.mxu3 %v6447_v24 }
 0x1db   :  { %1524 = vmatpush.msra.mxu0 %v10244_v29  ;;  %1564 = vmatpush.msra.mxu2 %v10245_v5  ;;  %v6516_v29 = vld [vmem:[#allocation3 + $0x6b0] sm:$0xff]  ;;  %v6519_v5 = vld [vmem:[#allocation3 + $0x6b8] sm:$0xff] }
 0x1dc   :  { %1248 = vmatpush.msra.mxu1 %v6452_v36  ;;  %1288 = vmatpush.msra.mxu3 %v6455_v25  ;;  %10270 = vst [vmem:[#allocation44_spill] sm:$0xff] %v6516_v29 }
 0x1dd   :  { %1525 = vmatpush.msra.mxu0 %v10246_v27  ;;  %1565 = vmatpush.msra.mxu2 %v10247_v54  ;;  %10271 = vst [vmem:[#allocation45_spill] sm:$0xff] %v6519_v5  ;;  %v10272_v27 = vld [vmem:[#allocation116_spill] sm:$0xff]  ;;  %v10273_v54 = vld [vmem:[#allocation119_spill] sm:$0xff] }
 0x1de   :  { %1249 = vmatpush.msra.mxu1 %v6460_v40  ;;  %1289 = vmatpush.msra.mxu3 %v6463_v53 }
 0x1df   :  { %1526 = vmatpush.msra.mxu0 %v10248_v62  ;;  %1566 = vmatpush.msra.mxu2 %v10252_v49  ;;  %v6524_v62 = vld [vmem:[#allocation3 + $0x670] sm:$0xff]  ;;  %v6527_v49 = vld [vmem:[#allocation3 + $0x678] sm:$0xff] }
 0x1e0   :  { %1250 = vmatpush.msra.mxu1 %v6468_v0  ;;  %1290 = vmatpush.msra.mxu3 %v6471_v20  ;;  %10274 = vst [vmem:[#allocation46_spill] sm:$0xff] %v6524_v62 }
 0x1e1   :  { %1251 = vmatmul.f32.vlgmr.msra.gmra.mxu1 %v6336_v26  ;;  %1291 = vmatmul.f32.vlgmr.msra.gmra.mxu3 %v6336_v26  ;;  %10275 = vst [vmem:[#allocation47_spill] sm:$0xff] %v6527_v49 }
 0x1e2   :  { %1315 = vmatpush.msrb.mxu1 %v6476_v21  ;;  %1355 = vmatpush.msrb.mxu3 %v6479_v42 }
 0x1e3   :  { %1527 = vmatpush.msra.mxu0 %v10253_v4  ;;  %1567 = vmatpush.msra.mxu2 %v10256_v43  ;;  %v10276_v4 = vld [vmem:[#allocation120_spill] sm:$0xff]  ;;  %v10277_v43 = vld [vmem:[#allocation123_spill] sm:$0xff] }
 0x1e4   :  { %1316 = vmatpush.msrb.mxu1 %v6484_v9  ;;  %1356 = vmatpush.msrb.mxu3 %v6487_v34  ;;  %v10409_v34 = vld [vmem:[#allocation16_spill] sm:$0xff] }
 0x1e5   :  { %1528 = vmatpush.msra.mxu0 %v10257_v23  ;;  %1568 = vmatpush.msra.mxu2 %v10260_v17  ;;  %v6532_v23 = vld [vmem:[#allocation3 + $0x630] sm:$0xff]  ;;  %v6535_v17 = vld [vmem:[#allocation3 + $0x638] sm:$0xff] }
 0x1e6   :  { %1317 = vmatpush.msrb.mxu1 %v6492_v18  ;;  %1357 = vmatpush.msrb.mxu3 %v6495_v31  ;;  %10278 = vst [vmem:[#allocation48_spill] sm:$0xff] %v6532_v23 }
 0x1e7   :  { %1529 = vmatpush.msra.mxu0 %v10261_v32  ;;  %1569 = vmatpush.msra.mxu2 %v10264_v35  ;;  %10279 = vst [vmem:[#allocation49_spill] sm:$0xff] %v6535_v17  ;;  %v10280_v32 = vld [vmem:[#allocation124_spill] sm:$0xff]  ;;  %v10281_v35 = vld [vmem:[#allocation127_spill] sm:$0xff] }
 0x1e8   :  { %1318 = vmatpush.msrb.mxu1 %v6500_v37  ;;  %1358 = vmatpush.msrb.mxu3 %v6503_v15  ;;  %v10403_v15 = vld [vmem:[#allocation11_spill] sm:$0xff] }
 0x1e9   :  { %1530 = vmatpush.msra.mxu0 %v10265_v45  ;;  %1570 = vmatpush.msra.mxu2 %v10268_v1  ;;  %v6540_v45 = vld [vmem:[#allocation3 + $0x5f0] sm:$0xff]  ;;  %v6543_v1 = vld [vmem:[#allocation3 + $0x5f8] sm:$0xff] }
 0x1ea   :  { %1319 = vmatpush.msrb.mxu1 %v6508_v16  ;;  %1359 = vmatpush.msrb.mxu3 %v6511_v56  ;;  %10282 = vst [vmem:[#allocation50_spill] sm:$0xff] %v6540_v45 }
 0x1eb   :  { %1531 = vmatpush.msra.mxu0 %v10269_v50  ;;  %1571 = vmatpush.msra.mxu2 %v10272_v27  ;;  %10283 = vst [vmem:[#allocation51_spill] sm:$0xff] %v6543_v1  ;;  %v10284_v50 = vld [vmem:[#allocation128_spill] sm:$0xff]  ;;  %v10285_v27 = vld [vmem:[#allocation131_spill] sm:$0xff] }
 0x1ec   :  { %1320 = vmatpush.msrb.mxu1 %v6516_v29  ;;  %1360 = vmatpush.msrb.mxu3 %v6519_v5 }
 0x1ed   :  { %1532 = vmatpush.msra.mxu0 %v10273_v54  ;;  %1572 = vmatpush.msra.mxu2 %v10276_v4  ;;  %v6548_v54 = vld [vmem:[#allocation3 + $0x5b0] sm:$0xff]  ;;  %v6551_v4 = vld [vmem:[#allocation3 + $0x5b8] sm:$0xff] }
 0x1ee   :  { %1321 = vmatpush.msrb.mxu1 %v6524_v62  ;;  %1361 = vmatpush.msrb.mxu3 %v6527_v49  ;;  %10286 = vst [vmem:[#allocation52_spill] sm:$0xff] %v6548_v54 }
 0x1ef   :  { %1533 = vmatpush.msra.mxu0 %v10277_v43  ;;  %1573 = vmatpush.msra.mxu2 %v10280_v32  ;;  %10287 = vst [vmem:[#allocation53_spill] sm:$0xff] %v6551_v4  ;;  %v10288_v43 = vld [vmem:[#allocation132_spill] sm:$0xff]  ;;  %v10289_v32 = vld [vmem:[#allocation135_spill] sm:$0xff] }
 0x1f0   :  { %1322 = vmatpush.msrb.mxu1 %v6532_v23  ;;  %1362 = vmatpush.msrb.mxu3 %v6535_v17  ;;  %v10321_v17 = vld [vmem:[#allocation165_spill] sm:$0xff]  ;;  %v10393_v23 = vld [vmem:[#allocation171_spill] sm:$0xff] }
 0x1f1   :  { %1534 = vmatpush.msra.mxu0 %v10281_v35  ;;  %1574 = vmatpush.msra.mxu2 %v10284_v50  ;;  %v6556_v35 = vld [vmem:[#allocation3 + $0x570] sm:$0xff]  ;;  %v10292_v50 = vld [vmem:[#allocation136_spill] sm:$0xff] }
 0x1f2   :  { %1323 = vmatpush.msrb.mxu1 %v6540_v45  ;;  %1363 = vmatpush.msrb.mxu3 %v6543_v1  ;;  %10290 = vst [vmem:[#allocation54_spill] sm:$0xff] %v6556_v35  ;;  %v6559_v1 = vld [vmem:[#allocation3 + $0x578] sm:$0xff] }
 0x1f3   :  { %1535 = vmatpush.msra.mxu0 %v10285_v27  ;;  %1575 = vmatpush.msra.mxu2 %v10288_v43  ;;  %10291 = vst [vmem:[#allocation57_spill] sm:$0xff] %v6559_v1  ;;  %v10293_v27 = vld [vmem:[#allocation137_spill] sm:$0xff]  ;;  %v10296_v43 = vld [vmem:[#allocation138_spill] sm:$0xff]  ;;  %v10319_v45 = vld [vmem:[#allocation60_spill] sm:$0xff] }
 0x1f4   :  { %1324 = vmatpush.msrb.mxu1 %v6548_v54  ;;  %1364 = vmatpush.msrb.mxu3 %v6551_v4  ;;  %v6564_v54 = vld [vmem:[#allocation3 + $0x530] sm:$0xff]  ;;  %v6567_v4 = vld [vmem:[#allocation3 + $0x538] sm:$0xff] }
 0x1f5   :  { %1536 = vmatpush.msra.mxu0 %v10289_v32  ;;  %1576 = vmatpush.msra.mxu2 %v10292_v50  ;;  %10294 = vst [vmem:[#allocation58_spill] sm:$0xff] %v6564_v54  ;;  %v10297_v32 = vld [vmem:[#allocation141_spill] sm:$0xff]  ;;  %v10300_v50 = vld [vmem:[#allocation142_spill] sm:$0xff] }
 0x1f6   :  { %1325 = vmatpush.msrb.mxu1 %v6556_v35  ;;  %1365 = vmatpush.msrb.mxu3 %v6559_v1  ;;  %10295 = vst [vmem:[#allocation61_spill] sm:$0xff] %v6567_v4  ;;  %v6572_v35 = vld [vmem:[#allocation3 + $0x4f0] sm:$0xff]  ;;  %v6575_v1 = vld [vmem:[#allocation3 + $0x4f8] sm:$0xff] }
 0x1f7   :  { %1601 = vmatpush.msrb.mxu0 %v10293_v27  ;;  %1641 = vmatpush.msrb.mxu2 %v10296_v43  ;;  %10298 = vst [vmem:[#allocation62_spill] sm:$0xff] %v6572_v35  ;;  %v10301_v27 = vld [vmem:[#allocation145_spill] sm:$0xff]  ;;  %v10304_v43 = vld [vmem:[#allocation146_spill] sm:$0xff] }
 0x1f8   :  { %1326 = vmatpush.msrb.mxu1 %v6564_v54  ;;  %1366 = vmatpush.msrb.mxu3 %v6567_v4  ;;  %10299 = vst [vmem:[#allocation65_spill] sm:$0xff] %v6575_v1  ;;  %v6580_v54 = vld [vmem:[#allocation3 + $0x4b0] sm:$0xff]  ;;  %v6583_v4 = vld [vmem:[#allocation3 + $0x4b8] sm:$0xff] }
 0x1f9   :  { %1602 = vmatpush.msrb.mxu0 %v10297_v32  ;;  %1642 = vmatpush.msrb.mxu2 %v10300_v50  ;;  %10302 = vst [vmem:[#allocation66_spill] sm:$0xff] %v6580_v54  ;;  %v10305_v32 = vld [vmem:[#allocation149_spill] sm:$0xff]  ;;  %v10308_v50 = vld [vmem:[#allocation150_spill] sm:$0xff] }
 0x1fa   :  { %1327 = vmatpush.msrb.mxu1 %v6572_v35  ;;  %1367 = vmatpush.msrb.mxu3 %v6575_v1  ;;  %10303 = vst [vmem:[#allocation69_spill] sm:$0xff] %v6583_v4  ;;  %v6588_v35 = vld [vmem:[#allocation3 + $0x470] sm:$0xff]  ;;  %v6591_v1 = vld [vmem:[#allocation3 + $0x478] sm:$0xff] }
 0x1fb   :  { %1603 = vmatpush.msrb.mxu0 %v10301_v27  ;;  %1643 = vmatpush.msrb.mxu2 %v10304_v43  ;;  %10306 = vst [vmem:[#allocation70_spill] sm:$0xff] %v6588_v35  ;;  %v10309_v27 = vld [vmem:[#allocation153_spill] sm:$0xff]  ;;  %v10312_v43 = vld [vmem:[#allocation154_spill] sm:$0xff] }
 0x1fc   :  { %1328 = vmatpush.msrb.mxu1 %v6580_v54  ;;  %1368 = vmatpush.msrb.mxu3 %v6583_v4  ;;  %10307 = vst [vmem:[#allocation75_spill] sm:$0xff] %v6591_v1  ;;  %v6596_v54 = vld [vmem:[#allocation3 + $0x430] sm:$0xff]  ;;  %v6599_v4 = vld [vmem:[#allocation3 + $0x438] sm:$0xff] }
 0x1fd   :  { %1604 = vmatpush.msrb.mxu0 %v10305_v32  ;;  %1644 = vmatpush.msrb.mxu2 %v10308_v50  ;;  %10310 = vst [vmem:[#allocation76_spill] sm:$0xff] %v6596_v54  ;;  %v10313_v32 = vld [vmem:[#allocation157_spill] sm:$0xff]  ;;  %v10315_v50 = vld [vmem:[#allocation56_spill] sm:$0xff] }
 0x1fe   :  { %1329 = vmatpush.msrb.mxu1 %v6588_v35  ;;  %1369 = vmatpush.msrb.mxu3 %v6591_v1  ;;  %10311 = vst [vmem:[#allocation79_spill] sm:$0xff] %v6599_v4  ;;  %v10314_v1 = vld [vmem:[#allocation55_spill] sm:$0xff]  ;;  %v10317_v35 = vld [vmem:[#allocation161_spill] sm:$0xff] }
 0x1ff   :  { %1605 = vmatpush.msrb.mxu0 %v10309_v27  ;;  %1645 = vmatpush.msrb.mxu2 %v10312_v43  ;;  %v10316_v27 = vld [vmem:[#allocation158_spill] sm:$0xff]  ;;  %v10323_v43 = vld [vmem:[#allocation64_spill] sm:$0xff] }
 0x200   :  { %1330 = vmatpush.msrb.mxu1 %v6596_v54  ;;  %1370 = vmatpush.msrb.mxu3 %v6599_v4  ;;  %v10318_v54 = vld [vmem:[#allocation59_spill] sm:$0xff]  ;;  %v10320_v4 = vld [vmem:[#allocation162_spill] sm:$0xff] }
 0x201   :  { %1331 = vmatmul.f32.vlgmr.msrb.gmra.mxu1 %v6336_v26  ;;  %1371 = vmatmul.f32.vlgmr.msrb.gmra.mxu3 %v6336_v26  ;;  %v10322_v26 = vld [vmem:[#allocation63_spill] sm:$0xff] }
 0x202   :  { %1606 = vmatpush.msrb.mxu0 %v10313_v32  ;;  %1541 = vmatpush.msra.mxu1 %v10314_v1  ;;  %v10324_v32 = vld [vmem:[#allocation166_spill] sm:$0xff]  ;;  %v10325_v1 = vld [vmem:[#allocation169_spill] sm:$0xff] }
 0x203   :  { %1581 = vmatpush.msra.mxu3 %v10315_v50  ;;  %1646 = vmatpush.msrb.mxu2 %v10316_v27  ;;  %v10326_v50 = vld [vmem:[#allocation67_spill] sm:$0xff]  ;;  %v10327_v27 = vld [vmem:[#allocation68_spill] sm:$0xff] }
 0x204   :  { %1607 = vmatpush.msrb.mxu0 %v10317_v35  ;;  %1542 = vmatpush.msra.mxu1 %v10318_v54  ;;  %v10328_v35 = vld [vmem:[#allocation170_spill] sm:$0xff]  ;;  %v10329_v54 = vld [vmem:[#allocation173_spill] sm:$0xff] }
 0x205   :  { %1582 = vmatpush.msra.mxu3 %v10319_v45  ;;  %1647 = vmatpush.msrb.mxu2 %v10320_v4  ;;  %v10330_v45 = vld [vmem:[#allocation71_spill] sm:$0xff]  ;;  %v10331_v4 = vld [vmem:[#allocation72_spill] sm:$0xff] }
 0x206   :  { %1608 = vmatpush.msrb.mxu0 %v10321_v17  ;;  %1543 = vmatpush.msra.mxu1 %v10322_v26  ;;  %v10332_v17 = vld [vmem:[#allocation174_spill] sm:$0xff]  ;;  %v10333_v26 = vld [vmem:[#allocation177_spill] sm:$0xff] }
 0x207   :  { %1583 = vmatpush.msra.mxu3 %v10323_v43  ;;  %1648 = vmatpush.msrb.mxu2 %v10324_v32  ;;  %v10334_v43 = vld [vmem:[#allocation73_spill] sm:$0xff]  ;;  %v10335_v32 = vld [vmem:[#allocation74_spill] sm:$0xff] }
 0x208   :  { %1609 = vmatpush.msrb.mxu0 %v10325_v1  ;;  %1544 = vmatpush.msra.mxu1 %v10326_v50  ;;  %v10336_v1 = vld [vmem:[#allocation178_spill] sm:$0xff]  ;;  %v10337_v50 = vld [vmem:[#allocation180_spill] sm:$0xff] }
 0x209   :  { %1584 = vmatpush.msra.mxu3 %v10327_v27  ;;  %1649 = vmatpush.msrb.mxu2 %v10328_v35  ;;  %v10338_v27 = vld [vmem:[#allocation77_spill] sm:$0xff]  ;;  %v10339_v35 = vld [vmem:[#allocation78_spill] sm:$0xff] }
 0x20a   :  { %1610 = vmatpush.msrb.mxu0 %v10329_v54  ;;  %1545 = vmatpush.msra.mxu1 %v10330_v45  ;;  %v10340_v54 = vld [vmem:[#allocation181_spill] sm:$0xff]  ;;  %v10341_v45 = vld [vmem:[#allocation182_spill] sm:$0xff] }
 0x20b   :  { %1585 = vmatpush.msra.mxu3 %v10331_v4  ;;  %1650 = vmatpush.msrb.mxu2 %v10332_v17  ;;  %v10342_v4 = vld [vmem:[#allocation81_spill] sm:$0xff]  ;;  %v10343_v17 = vld [vmem:[#allocation82_spill] sm:$0xff] }
 0x20c   :  { %1611 = vmatpush.msrb.mxu0 %v10333_v26  ;;  %1546 = vmatpush.msra.mxu1 %v10334_v43  ;;  %v10344_v26 = vld [vmem:[#allocation183_spill] sm:$0xff]  ;;  %v10345_v43 = vld [vmem:[#allocation184_spill] sm:$0xff] }
 0x20d   :  { %1586 = vmatpush.msra.mxu3 %v10335_v32  ;;  %1651 = vmatpush.msrb.mxu2 %v10336_v1  ;;  %v10346_v32 = vld [vmem:[#allocation85_spill] sm:$0xff]  ;;  %v10347_v1 = vld [vmem:[#allocation86_spill] sm:$0xff] }
 0x20e   :  { %1612 = vmatpush.msrb.mxu0 %v10337_v50  ;;  %1547 = vmatpush.msra.mxu1 %v10338_v27  ;;  %v10348_v50 = vld [vmem:[#allocation185_spill] sm:$0xff]  ;;  %v10349_v27 = vld [vmem:[#allocation186_spill] sm:$0xff] }
 0x20f   :  { %1587 = vmatpush.msra.mxu3 %v10339_v35  ;;  %1652 = vmatpush.msrb.mxu2 %v10340_v54  ;;  %v10350_v35 = vld [vmem:[#allocation89_spill] sm:$0xff]  ;;  %v10351_v54 = vld [vmem:[#allocation90_spill] sm:$0xff] }
 0x210   :  { %1613 = vmatpush.msrb.mxu0 %v10341_v45  ;;  %1548 = vmatpush.msra.mxu1 %v10342_v4  ;;  %v10352_v45 = vld [vmem:[#allocation187_spill] sm:$0xff]  ;;  %v10353_v4 = vld [vmem:[#allocation188_spill] sm:$0xff] }
 0x211   :  { %1588 = vmatpush.msra.mxu3 %v10343_v17  ;;  %1653 = vmatpush.msrb.mxu2 %v10344_v26  ;;  %v10354_v17 = vld [vmem:[#allocation93_spill] sm:$0xff]  ;;  %v10355_v26 = vld [vmem:[#allocation94_spill] sm:$0xff] }
 0x212   :  { %1614 = vmatpush.msrb.mxu0 %v10345_v43  ;;  %1549 = vmatpush.msra.mxu1 %v10346_v32  ;;  %v10356_v43 = vld [vmem:[#allocation189_spill] sm:$0xff] }
 0x213   :  { %1589 = vmatpush.msra.mxu3 %v10347_v1  ;;  %1654 = vmatpush.msrb.mxu2 %v10348_v50  ;;  %v10357_v32 = vld [vmem:[#allocation97_spill] sm:$0xff]  ;;  %v10358_v1 = vld [vmem:[#allocation98_spill] sm:$0xff] }
 0x214   :  { %1615 = vmatpush.msrb.mxu0 %v10349_v27  ;;  %1550 = vmatpush.msra.mxu1 %v10350_v35  ;;  %v10359_v50 = vld [vmem:[#allocation101_spill] sm:$0xff]  ;;  %v10360_v27 = vld [vmem:[#allocation102_spill] sm:$0xff] }
 0x215   :  { %1590 = vmatpush.msra.mxu3 %v10351_v54  ;;  %1655 = vmatpush.msrb.mxu2 %v10352_v45  ;;  %v10361_v35 = vld [vmem:[#allocation105_spill] sm:$0xff]  ;;  %v10362_v54 = vld [vmem:[#allocation106_spill] sm:$0xff] }
 0x216   :  { %1616 = vmatpush.msrb.mxu0 %v10353_v4  ;;  %1551 = vmatpush.msra.mxu1 %v10354_v17  ;;  %v10363_v45 = vld [vmem:[#allocation109_spill] sm:$0xff]  ;;  %v10364_v4 = vld [vmem:[#allocation110_spill] sm:$0xff] }
 0x217   :  { %1591 = vmatpush.msra.mxu3 %v10355_v26  ;;  %1656 = vmatpush.msrb.mxu2 %v10356_v43  ;;  %v10365_v17 = vld [vmem:[#allocation113_spill] sm:$0xff]  ;;  %v10366_v26 = vld [vmem:[#allocation114_spill] sm:$0xff] }
 0x218   :  { %1552 = vmatpush.msra.mxu1 %v10357_v32  ;;  %v10367_v43 = vld [vmem:[#allocation117_spill] sm:$0xff]  ;;  %v10368_v32 = vld [vmem:[#allocation118_spill] sm:$0xff] }
 0x219   :  { %1592 = vmatpush.msra.mxu3 %v10358_v1  ;;  %v10369_v1 = vld [vmem:[#allocation121_spill] sm:$0xff] }
 0x21a   :  { %1553 = vmatpush.msra.mxu1 %v10359_v50  ;;  %v10370_v50 = vld [vmem:[#allocation122_spill] sm:$0xff] }
 0x21b   :  { %1593 = vmatpush.msra.mxu3 %v10360_v27  ;;  %v10371_v27 = vld [vmem:[#allocation125_spill] sm:$0xff] }
 0x21c   :  { %1554 = vmatpush.msra.mxu1 %v10361_v35  ;;  %v10372_v35 = vld [vmem:[#allocation126_spill] sm:$0xff] }
 0x21d   :  { %1594 = vmatpush.msra.mxu3 %v10362_v54  ;;  %v10373_v54 = vld [vmem:[#allocation129_spill] sm:$0xff] }
 0x21e   :  { %1555 = vmatpush.msra.mxu1 %v10363_v45  ;;  %v10374_v45 = vld [vmem:[#allocation130_spill] sm:$0xff] }
 0x21f   :  { %1595 = vmatpush.msra.mxu3 %v10364_v4  ;;  %v10375_v4 = vld [vmem:[#allocation133_spill] sm:$0xff] }
 0x220   :  { %1556 = vmatpush.msra.mxu1 %v10365_v17  ;;  %v10376_v17 = vld [vmem:[#allocation134_spill] sm:$0xff] }
 0x221   :  { %1596 = vmatpush.msra.mxu3 %v10366_v26  ;;  %v10377_v26 = vld [vmem:[#allocation139_spill] sm:$0xff] }
 0x222   :  { %1621 = vmatpush.msrb.mxu1 %v10367_v43  ;;  %v10378_v43 = vld [vmem:[#allocation140_spill] sm:$0xff] }
 0x223   :  { %1661 = vmatpush.msrb.mxu3 %v10368_v32  ;;  %v10379_v32 = vld [vmem:[#allocation143_spill] sm:$0xff] }
 0x224   :  { %1622 = vmatpush.msrb.mxu1 %v10369_v1  ;;  %v10380_v1 = vld [vmem:[#allocation144_spill] sm:$0xff] }
 0x225   :  { %1662 = vmatpush.msrb.mxu3 %v10370_v50  ;;  %v10381_v50 = vld [vmem:[#allocation147_spill] sm:$0xff] }
 0x226   :  { %1623 = vmatpush.msrb.mxu1 %v10371_v27  ;;  %v10382_v27 = vld [vmem:[#allocation148_spill] sm:$0xff] }
 0x227   :  { %1663 = vmatpush.msrb.mxu3 %v10372_v35  ;;  %v10383_v35 = vld [vmem:[#allocation151_spill] sm:$0xff] }
 0x228   :  { %1624 = vmatpush.msrb.mxu1 %v10373_v54  ;;  %v10384_v54 = vld [vmem:[#allocation152_spill] sm:$0xff] }
 0x229   :  { %1664 = vmatpush.msrb.mxu3 %v10374_v45  ;;  %v10385_v45 = vld [vmem:[#allocation155_spill] sm:$0xff] }
 0x22a   :  { %1625 = vmatpush.msrb.mxu1 %v10375_v4  ;;  %v10386_v4 = vld [vmem:[#allocation156_spill] sm:$0xff] }
 0x22b   :  { %1665 = vmatpush.msrb.mxu3 %v10376_v17  ;;  %v10387_v17 = vld [vmem:[#allocation159_spill] sm:$0xff] }
 0x22c   :  { %1626 = vmatpush.msrb.mxu1 %v10377_v26  ;;  %v10388_v26 = vld [vmem:[#allocation160_spill] sm:$0xff] }
 0x22d   :  { %1666 = vmatpush.msrb.mxu3 %v10378_v43  ;;  %v10389_v43 = vld [vmem:[#allocation163_spill] sm:$0xff] }
 0x22e   :  { %1627 = vmatpush.msrb.mxu1 %v10379_v32  ;;  %v10390_v32 = vld [vmem:[#allocation164_spill] sm:$0xff] }
 0x22f   :  { %1667 = vmatpush.msrb.mxu3 %v10380_v1  ;;  %v10391_v1 = vld [vmem:[#allocation167_spill] sm:$0xff] }
 0x230   :  { %1628 = vmatpush.msrb.mxu1 %v10381_v50  ;;  %v10392_v50 = vld [vmem:[#allocation168_spill] sm:$0xff] }
 0x231   :  { %1668 = vmatpush.msrb.mxu3 %v10382_v27  ;;  %v1072_v27 = vpop.f32.mrf.mxu0 }
 0x232   :  { %1629 = vmatpush.msrb.mxu1 %v10383_v35 }
 0x233   :  { %1669 = vmatpush.msrb.mxu3 %v10384_v54  ;;  %v10394_v54 = vld [vmem:[#allocation172_spill] sm:$0xff] }
 0x234   :  { %1630 = vmatpush.msrb.mxu1 %v10385_v45 }
 0x235   :  { %1670 = vmatpush.msrb.mxu3 %v10386_v4  ;;  %v10395_v4 = vld [vmem:[#allocation175_spill] sm:$0xff] }
 0x236   :  { %1631 = vmatpush.msrb.mxu1 %v10387_v17  ;;  %v10396_v17 = vld [vmem:[#allocation176_spill] sm:$0xff] }
 0x237   :  { %1671 = vmatpush.msrb.mxu3 %v10388_v26  ;;  %v10397_v26 = vld [vmem:[#allocation17_spill] sm:$0xff] }
 0x238   :  { %1632 = vmatpush.msrb.mxu1 %v10389_v43  ;;  %v10398_v43 = vld [vmem:[#allocation179_spill] sm:$0xff] }
 0x239   :  { %1672 = vmatpush.msrb.mxu3 %v10390_v32  ;;  %v6691_v32 = vld [vmem:[#allocation3 + $0x418] sm:$0xff]  ;;  %v1152_v5 = vpop.f32.mrf.mxu0 }
 0x23a   :  { %1633 = vmatpush.msrb.mxu1 %v10391_v1  ;;  %10399 = vst [vmem:[#allocation80_spill] sm:$0xff] %v6691_v32 }
 0x23b   :  { %1673 = vmatpush.msrb.mxu3 %v10392_v50  ;;  %v1092_v35 = vpop.f32.mrf.mxu1  ;;  %v1112_v50 = vpop.f32.mrf.mxu2 }
 0x23c   :  { %1634 = vmatpush.msrb.mxu1 %v10393_v23  ;;  %v1093_v45 = vadd.f32 %v1092_v35, %v1072_v27 }
 0x23d   :  { %1674 = vmatpush.msrb.mxu3 %v10394_v54  ;;  %v10400_v54 = vld [vmem:[#allocation18_spill] sm:$0xff] }
 0x23e   :  { %1635 = vmatpush.msrb.mxu1 %v10395_v4  ;;  %v1454_v49 = vadd.f32 %v10397_v26, %v1093_v45 }
 0x23f   :  { %1675 = vmatpush.msrb.mxu3 %v10396_v17  ;;  %v10401_v17 = vld [vmem:[#allocation19_spill] sm:$0xff] }
 0x240   :  { %1636 = vmatpush.msrb.mxu1 %v10398_v43  ;;  %v4259_v1 = vmul.f32 -1.442695, %v1454_v49  ;;  %v10402_v49 = vld [vmem:[#allocation10_spill] sm:$0xff] }
 0x241   :  { %1676 = vmatpush.msrb.mxu3 %v6691_v32  ;;  %v1132_v62 = vpop.f32.mrf.mxu3  ;;  %v105_v32 = vpop.permute.xlu1 %104 }
 0x242   :  { %4347 = vpow2.f32 %v4259_v1  ;;  %v1133_v23 = vadd.f32 %v1132_v62, %v1112_v50  ;;  %v145_v16 = vmul.f32 %v10402_v49, %v105_v32  ;;  %v146_v1 = vmul.f32 %v10403_v15, %v105_v32  ;;  %v10404_v50 = vld [vmem:[#allocation12_spill] sm:$0xff] }
 0x243   :  { %v147_v37 = vmul.f32 %v10404_v50, %v105_v32  ;;  %v1192_v18 = vpop.f32.mrf.mxu2 }
 0x244   :  { %v1455_v27 = vadd.f32 %v10400_v54, %v1133_v23  ;;  %v10405_v54 = vld [vmem:[#allocation9_spill] sm:$0xff] }
 0x245   :  { %v1172_v35 = vpop.f32.mrf.mxu1 }
 0x246   :  { %v1173_v4 = vadd.f32 %v1172_v35, %v1152_v5  ;;  %v4260_v29 = vmul.f32 -1.442695, %v1455_v27  ;;  %v144_v5 = vmul.f32 %v10405_v54, %v105_v32  ;;  %v10406_v27 = vld [vmem:[#allocation13_spill] sm:$0xff] }
 0x247   :  { %v187_v35 = vadd.f32 %v10406_v27, %v145_v16  ;;  %v6709_v27 = vld.sshfl [vmem:[#allocation1] sm:$0xff pattern:$0x73625140] }
 0x248   :  { %v1456_v56 = vadd.f32 %v10401_v17, %v1173_v4  ;;  %v4348_v45 = vpop.eup %4347  ;;  %4349 = vpow2.f32 %v4260_v29  ;;  %v10407_v17 = vld [vmem:[#allocation14_spill] sm:$0xff]  ;;  %v186_v15 = vadd.f32 %v10409_v34, %v144_v5  ;;  %10410 = vst [vmem:[#allocation83_spill] sm:$0xff] %v6709_v27  ;;  %v10412_v34 = vld [vmem:[#allocation20_spill] sm:$0xff] }
 0x249   :  { %v1467_v26 = vadd.f32 1.0, %v4348_v45  ;;  %v188_v29 = vadd.f32 %v10407_v17, %v146_v1  ;;  %v10408_v45 = vld [vmem:[#allocation15_spill] sm:$0xff]  ;;  %v243_v9 = vrot.slane %v187_v35, 6  ;;  %v6711_v17 = vld.sshfl [vmem:[#allocation1 + $0x8] sm:$0xff pattern:$0x73625140] }
 0x24a   :  { %v4261_v43 = vmul.f32 -1.442695, %v1456_v56  ;;  %v189_v56 = vadd.f32 %v10408_v45, %v147_v37  ;;  %10411 = vst [vmem:[#allocation84_spill] sm:$0xff] %v6711_v17 }
 0x24b   :  { %4351 = vrcp.f32 %v1467_v26  ;;  %v1212_v4 = vpop.f32.mrf.mxu3  ;;  %v244_v50 = vrot.slane %v188_v29, 4  ;;  %v270_v16 = vsel %vm246_vm0, %v186_v15, %v243_v9 }
 0x24c   :  { %4353 = vpow2.f32 %v4261_v43  ;;  %v245_v54 = vrot.slane %v189_v56, 2  ;;  %v1479_v56 = vand.u32 2147483647, %v1467_v26 }
 0x24e   :  { %v4350_v62 = vpop.eup %4349  ;;  %v271_v37 = vsel %vm248_vm1, %v244_v50, %v245_v54  ;;  %vm1475_vm1 = vweird.f32 %v1467_v26  ;;  %vm1480_vm6 = vcmp.eq.f32.partialorder %v1479_v56, 8.507059e+37 }
 0x24f   :  { %v1468_v23 = vadd.f32 1.0, %v4350_v62  ;;  %v1213_v62 = vadd.f32 %v1212_v4, %v1192_v18  ;;  %v272_v35 = vsel %vm250_vm2, %v270_v16, %v271_v37  ;;  %v6715_v18 = vld.sshfl [vmem:[#allocation1 + $0x10] sm:$0xff pattern:$0x73625140]  ;;  %v1232_v37 = vpop.f32.mrf.mxu0 }
 0x250   :  { %10413 = vst [vmem:[#allocation87_spill] sm:$0xff] %v6715_v18  ;;  %v6717_v4 = vld.sshfl [vmem:[#allocation1 + $0x18] sm:$0xff pattern:$0x73625140] }
 0x251   :  { %v4352_v31 = vpop.eup %4351  ;;  %4355 = vrcp.f32 %v1468_v23  ;;  %v1457_v5 = vadd.f32 %v10412_v34, %v1213_v62  ;;  %10414 = vst [vmem:[#allocation88_spill] sm:$0xff] %v6717_v4  ;;  %v1496_v50 = vand.u32 2147483648, %v1468_v23  ;;  %v1494_v62 = vand.u32 2147483647, %v1468_v23 }
 0x252   :  { %v4354_v43 = vpop.eup %4353  ;;  %v1471_v49 = vmul.f32 %v4352_v31, %v1467_v26  ;;  %vm1476_vm0 = vweird.f32 %v4352_v31  ;;  %3775 = vst [vmem:[#allocation1] ss:$4 sm:$0xff] %v272_v35  ;;  %vm1490_vm7 = vweird.f32 %v1468_v23 }
 0x253   :  { %v6704_v42 = vadd.f32 1.0, %v4354_v43  ;;  %v1481_v43 = vand.u32 2147483648, %v1467_v26  ;;  %vm6719_vm5 = vmor %vm1475_vm1, %vm1476_vm0  ;;  %v1497_v18 = vor.u32 1.1754944e-38, %v1496_v50  ;;  %vm1495_vm9 = vcmp.eq.f32.partialorder %v1494_v62, 8.507059e+37 }
 0x254   :  { %v1472_v32 = vsub.f32 1.0, %v1471_v49 }
 0x255   :  { %4357 = vrcp.f32 %v6704_v42  ;;  %v1482_v34 = vor.u32 1.1754944e-38, %v1481_v43  ;;  %v1272_v43 = vpop.f32.mrf.mxu2  ;;  %vm1505_vm11 = vweird.f32 %v6704_v42 }
 0x256   :  { %v1473_v1 = vmul.f32 %v4352_v31, %v1472_v32  ;;  %4359 = vtanh.f32 %v1457_v5 }
 0x257   :  { %v4356_v45 = vpop.eup %4355 }
 0x258   :  { %v1486_v29 = vmul.f32 %v4356_v45, %v1468_v23  ;;  %v1474_v9 = vadd.f32 %v4352_v31, %v1473_v1  ;;  %vm1491_vm2 = vweird.f32 %v4356_v45 }
 0x259   :  { %vm1492_vm8 = vmor %vm1490_vm7, %vm1491_vm2 }
 0x25a   :  { %v1487_v49 = vsub.f32 1.0, %v1486_v29  ;;  %v1478_v1 = vsel %vm6719_vm5, %v4352_v31, %v1474_v9 }
 0x25b   :  { %v4358_v15 = vpop.eup %4357  ;;  %v1483_v17 = vsel %vm1480_vm6, %v1482_v34, %v1478_v1  ;;  %v6741_v34 = vld [vmem:[#allocation3 + $0x3e0] sm:$0xff] }
 0x25c   :  { %v1488_v54 = vmul.f32 %v4356_v45, %v1487_v49  ;;  %v1501_v16 = vmul.f32 %v4358_v15, %v6704_v42  ;;  %v4360_v49 = vpop.eup %4359  ;;  %vm1506_vm10 = vweird.f32 %v4358_v15 }
 0x25d   :  { %v1517_v9 = vmul.f32 %v4360_v49, %v1483_v17  ;;  %vm1507_vm12 = vmor %vm1505_vm11, %vm1506_vm10  ;;  %v6763_v49 = vld [vmem:[#allocation3 + $0x320] sm:$0xff] }
 0x25e   :  { %v1252_v35 = vpop.f32.mrf.mxu1  ;;  %v1502_v26 = vsub.f32 1.0, %v1501_v16  ;;  %v1489_v29 = vadd.f32 %v4356_v45, %v1488_v54 }
 0x25f   :  { %v1253_v4 = vadd.f32 %v1252_v35, %v1232_v37  ;;  %v6750_v35 = vld [vmem:[#allocation3 + $0x3a0] sm:$0xff] }
 0x260   :  { %v1493_v27 = vsel %vm1492_vm8, %v4356_v45, %v1489_v29  ;;  %v1503_v21 = vmul.f32 %v4358_v15, %v1502_v26  ;;  %v1511_v45 = vand.u32 2147483648, %v6704_v42  ;;  %v6753_v26 = vld [vmem:[#allocation3 + $0x3a8] sm:$0xff]  ;;  %v6757_v29 = vld [vmem:[#allocation3 + $0x360] sm:$0xff] }
 0x261   :  { %v1375_v5 = vadd.f32 %v1253_v4, %v6212_v30  ;;  %v1498_v20 = vsel %vm1495_vm9, %v1497_v18, %v1493_v27 }
 0x262   :  { %v1516_v31 = vmul.f32 %v1498_v20, %v6226_v11  ;;  %v1504_v16 = vadd.f32 %v4358_v15, %v1503_v21  ;;  %v1509_v11 = vand.u32 2147483647, %v6704_v42  ;;  %v1512_v17 = vor.u32 1.1754944e-38, %v1511_v45  ;;  %v6744_v42 = vld [vmem:[#allocation3 + $0x3e8] sm:$0xff] }
 0x263   :  { %v4256_v56 = vmul.f32 -1.442695, %v1375_v5  ;;  %v6760_v5 = vld [vmem:[#allocation3 + $0x368] sm:$0xff] }
 0x264   :  { %v1292_v32 = vpop.f32.mrf.mxu3  ;;  %v6728_v23 = vadd.f32 %v1517_v9, %v1516_v31  ;;  %v1508_v27 = vsel %vm1507_vm12, %v4358_v15, %v1504_v16  ;;  %vm1510_vm13 = vcmp.eq.f32.partialorder %v1509_v11, 8.507059e+37  ;;  %v6766_v31 = vld [vmem:[#allocation3 + $0x328] sm:$0xff]  ;;  %v6791_v11 = vld [vmem:[#allocation3 + $0x260] sm:$0xff] }
 0x265   :  { %v1293_v54 = vadd.f32 %v1292_v32, %v1272_v43  ;;  %4361 = vpow2.f32 %v4256_v56  ;;  %v1513_v50 = vsel %vm1510_vm13, %v1512_v17, %v1508_v27  ;;  %v6773_v56 = vld [vmem:[#allocation3 + $0x2e0] sm:$0xff]  ;;  %v6776_v43 = vld [vmem:[#allocation3 + $0x2e8] sm:$0xff]  ;;  %10420 = vst [vmem:[#allocation96_spill] sm:$0xff] %v6791_v11  ;;  %v1312_v27 = vpop.f32.mrf.mxu0 }
 0x266   :  { %4363 = vtanh.f32 %v6728_v23  ;;  %10417 = vst [vmem:[#allocation91_spill] sm:$0xff] %v6776_v43  ;;  %v6784_v16 = vld [vmem:[#allocation3 + $0x2a8] sm:$0xff] }
 0x267   :  { %v1376_v4 = vadd.f32 %v1293_v54, %v6223_v60  ;;  %v6781_v54 = vld [vmem:[#allocation3 + $0x2a0] sm:$0xff]  ;;  %10419 = vst [vmem:[#allocation95_spill] sm:$0xff] %v6784_v16 }
 0x268   :  { %10418 = vst [vmem:[#allocation92_spill] sm:$0xff] %v6781_v54 }
 0x269   :  { %v4257_v20 = vmul.f32 -1.442695, %v1376_v4 }
 0x26b   :  { %4365 = vpow2.f32 %v4257_v20  ;;  %v4362_v18 = vpop.eup %4361  ;;  %v6794_v20 = vld [vmem:[#allocation3 + $0x268] sm:$0xff] }
 0x26c   :  { %v4364_v21 = vpop.eup %4363  ;;  %v6737_v1 = vadd.f32 1.0, %v4362_v18  ;;  %10421 = vst [vmem:[#allocation99_spill] sm:$0xff] %v6794_v20 }
 0x26d   :  { %v6735_v62 = vmul.f32 %v4364_v21, %v1513_v50  ;;  %v6797_v21 = vld [vmem:[#allocation3 + $0x220] sm:$0xff]  ;;  %v6800_v50 = vld [vmem:[#allocation3 + $0x228] sm:$0xff] }
 0x26e   :  { %4367 = vrcp.f32 %v6737_v1  ;;  %10422 = vst [vmem:[#allocation100_spill] sm:$0xff] %v6797_v21  ;;  %vm1396_vm3 = vweird.f32 %v6737_v1 }
 0x26f   :  { %1537 = vmatmul.f32.vlgmr.msra.gmra.mxu0 %v6735_v62  ;;  %1577 = vmatmul.f32.vlgmr.msra.gmra.mxu2 %v6735_v62  ;;  %10423 = vst [vmem:[#allocation103_spill] sm:$0xff] %v6800_v50 }
 0x270   :  { %1681 = vmatpush.msra.mxu0 %v6741_v34  ;;  %1721 = vmatpush.msra.mxu2 %v6744_v42 }
 0x271   :  { %v4366_v37 = vpop.eup %4365 }
 0x272   :  { %v6747_v15 = vadd.f32 1.0, %v4366_v37  ;;  %1682 = vmatpush.msra.mxu0 %v6750_v35  ;;  %1722 = vmatpush.msra.mxu2 %v6753_v26 }
 0x274   :  { %4369 = vrcp.f32 %v6747_v15  ;;  %1683 = vmatpush.msra.mxu0 %v6757_v29  ;;  %1723 = vmatpush.msra.mxu2 %v6760_v5  ;;  %v6771_v9 = vpop.eup %4367  ;;  %vm1411_vm4 = vweird.f32 %v6747_v15 }
 0x275   :  { %v1392_v45 = vmul.f32 %v6771_v9, %v6737_v1  ;;  %vm1397_vm14 = vweird.f32 %v6771_v9 }
 0x276   :  { %1684 = vmatpush.msra.mxu0 %v6763_v49  ;;  %1724 = vmatpush.msra.mxu2 %v6766_v31  ;;  %vm6847_vm0 = vmor %vm1396_vm3, %vm1397_vm14 }
 0x277   :  { %1617 = vmatmul.f32.vlgmr.msrb.gmra.mxu0 %v6735_v62  ;;  %1657 = vmatmul.f32.vlgmr.msrb.gmra.mxu2 %v6735_v62  ;;  %v1393_v37 = vsub.f32 1.0, %v1392_v45  ;;  %v1352_v45 = vpop.f32.mrf.mxu2 }
 0x278   :  { %1685 = vmatpush.msra.mxu0 %v6773_v56  ;;  %1725 = vmatpush.msra.mxu2 %v6776_v43  ;;  %v6871_v43 = vld [vmem:[#allocation3 + $0x60] sm:$0xff] }
 0x27a   :  { %v6779_v32 = vpop.eup %4369  ;;  %1686 = vmatpush.msra.mxu0 %v6781_v54  ;;  %1726 = vmatpush.msra.mxu2 %v6784_v16 }
 0x27b   :  { %v1407_v4 = vmul.f32 %v6779_v32, %v6747_v15  ;;  %vm1412_vm15 = vweird.f32 %v6779_v32 }
 0x27c   :  { %1687 = vmatpush.msra.mxu0 %v6791_v11  ;;  %1727 = vmatpush.msra.mxu2 %v6794_v20  ;;  %v6804_v11 = vld [vmem:[#allocation3 + $0x1e0] sm:$0xff]  ;;  %v6807_v20 = vld [vmem:[#allocation3 + $0x1e8] sm:$0xff]  ;;  %vm6855_vm1 = vmor %vm1411_vm4, %vm1412_vm15 }
 0x27d   :  { %v1408_v16 = vsub.f32 1.0, %v1407_v4  ;;  %10424 = vst [vmem:[#allocation104_spill] sm:$0xff] %v6804_v11 }
 0x27e   :  { %v1332_v17 = vpop.f32.mrf.mxu1  ;;  %1688 = vmatpush.msra.mxu0 %v6797_v21  ;;  %1728 = vmatpush.msra.mxu2 %v6800_v50  ;;  %10425 = vst [vmem:[#allocation107_spill] sm:$0xff] %v6807_v20  ;;  %v6813_v21 = vld [vmem:[#allocation3 + $0x1a8] sm:$0xff]  ;;  %v6818_v50 = vld [vmem:[#allocation3 + $0x160] sm:$0xff] }
 0x27f   :  { %v1333_v18 = vadd.f32 %v1332_v17, %v1312_v27  ;;  %v6810_v17 = vld [vmem:[#allocation3 + $0x1a0] sm:$0xff]  ;;  %10427 = vst [vmem:[#allocation111_spill] sm:$0xff] %v6813_v21  ;;  %v1409_v4 = vmul.f32 %v6779_v32, %v1408_v16  ;;  %v6829_v16 = vld [vmem:[#allocation3 + $0x128] sm:$0xff] }
 0x280   :  { %1689 = vmatpush.msra.mxu0 %v6804_v11  ;;  %1729 = vmatpush.msra.mxu2 %v6807_v20  ;;  %10426 = vst [vmem:[#allocation108_spill] sm:$0xff] %v6810_v17 }
 0x281   :  { %v1377_v54 = vadd.f32 %v1333_v18, %v6264_v46  ;;  %v1394_v46 = vmul.f32 %v6771_v9, %v1393_v37  ;;  %10428 = vst [vmem:[#allocation112_spill] sm:$0xff] %v6818_v50 }
 0x282   :  { %1690 = vmatpush.msra.mxu0 %v6810_v17  ;;  %1730 = vmatpush.msra.mxu2 %v6813_v21  ;;  %v6826_v21 = vld [vmem:[#allocation3 + $0x120] sm:$0xff]  ;;  %10431 = vst [vmem:[#allocation119_spill] sm:$0xff] %v6829_v16 }
 0x283   :  { %v4258_v27 = vmul.f32 -1.442695, %v1377_v54  ;;  %v6821_v54 = vld [vmem:[#allocation3 + $0x168] sm:$0xff]  ;;  %10430 = vst [vmem:[#allocation116_spill] sm:$0xff] %v6826_v21  ;;  %v1395_v37 = vadd.f32 %v6771_v9, %v1394_v46 }
 0x284   :  { %v1372_v18 = vpop.f32.mrf.mxu3  ;;  %1691 = vmatpush.msra.mxu0 %v6818_v50  ;;  %10429 = vst [vmem:[#allocation115_spill] sm:$0xff] %v6821_v54  ;;  %1731 = vmatpush.msra.mxu2 %v6821_v54 }
 0x285   :  { %4371 = vpow2.f32 %v4258_v27  ;;  %v1373_v11 = vadd.f32 %v1372_v18, %v1352_v45  ;;  %v1410_v27 = vadd.f32 %v6779_v32, %v1409_v4  ;;  %v1417_v45 = vand.u32 2147483648, %v6747_v15  ;;  %v6838_v18 = vld [vmem:[#allocation3 + $0xe0] sm:$0xff] }
 0x286   :  { %1692 = vmatpush.msra.mxu0 %v6826_v21  ;;  %1732 = vmatpush.msra.mxu2 %v6829_v16  ;;  %10432 = vst [vmem:[#allocation120_spill] sm:$0xff] %v6838_v18  ;;  %v6841_v21 = vld [vmem:[#allocation3 + $0xe8] sm:$0xff]  ;;  %v1400_v4 = vand.u32 2147483647, %v6737_v1 }
 0x287   :  { %v1378_v17 = vadd.f32 %v1373_v11, %v6274_v2  ;;  %v1402_v11 = vand.u32 2147483648, %v6737_v1  ;;  %10433 = vst [vmem:[#allocation123_spill] sm:$0xff] %v6841_v21  ;;  %v6862_v2 = vld [vmem:[#allocation3 + $0xa8] sm:$0xff]  ;;  %v1399_v1 = vsel %vm6847_vm0, %v6771_v9, %v1395_v37  ;;  %v1418_v50 = vor.u32 1.1754944e-38, %v1417_v45  ;;  %v6877_v37 = vld [vmem:[#allocation3 + $0x20] sm:$0xff]  ;;  %v6885_v45 = vld [vmem:[#allocation3 + $0x3f0] sm:$0xff] }
 0x288   :  { %1693 = vmatpush.msra.mxu0 %v6838_v18  ;;  %1733 = vmatpush.msra.mxu2 %v6841_v21  ;;  %v6859_v21 = vld [vmem:[#allocation3 + $0xa0] sm:$0xff]  ;;  %vm1401_vm5 = vcmp.eq.f32.partialorder %v1400_v4, 8.507059e+37  ;;  %v6895_v18 = vld [vmem:[#allocation3 + $0x3b8] sm:$0xff] }
 0x289   :  { %4373 = vtanh.f32 %v1378_v17  ;;  %v1415_v17 = vand.u32 2147483647, %v6747_v15  ;;  %10438 = vst [vmem:[#allocation124_spill] sm:$0xff] %v6859_v21  ;;  %v1414_v15 = vsel %vm6855_vm1, %v6779_v32, %v1410_v27  ;;  %v1403_v20 = vor.u32 1.1754944e-38, %v1402_v11  ;;  %v6880_v32 = vld [vmem:[#allocation3 + $0x28] sm:$0xff]  ;;  %v6888_v11 = vld [vmem:[#allocation3 + $0x3f8] sm:$0xff] }
 0x28a   :  { %1694 = vmatpush.msra.mxu0 %v6859_v21  ;;  %1734 = vmatpush.msra.mxu2 %v6862_v2  ;;  %v6874_v21 = vld [vmem:[#allocation3 + $0x68] sm:$0xff]  ;;  %10439 = vst [vmem:[#allocation127_spill] sm:$0xff] %v6888_v11 }
 0x28b   :  { %v4372_v16 = vpop.eup %4371  ;;  %vm1416_vm2 = vcmp.eq.f32.partialorder %v1415_v17, 8.507059e+37  ;;  %v1404_v46 = vsel %vm1401_vm5, %v1403_v20, %v1399_v1  ;;  %10441 = vst [vmem:[#allocation131_spill] sm:$0xff] %v6895_v18 }
 0x28c   :  { %v1390_v54 = vadd.f32 1.0, %v4372_v16  ;;  %1695 = vmatpush.msra.mxu0 %v6871_v43  ;;  %1735 = vmatpush.msra.mxu2 %v6874_v21  ;;  %v1419_v9 = vsel %vm1416_vm2, %v1418_v50, %v1414_v15  ;;  %v6892_v50 = vld [vmem:[#allocation3 + $0x3b0] sm:$0xff] }
 0x28d   :  { %v1437_v20 = vmul.f32 %v1419_v9, %v6323_v63  ;;  %10440 = vst [vmem:[#allocation128_spill] sm:$0xff] %v6892_v50  ;;  %v6900_v15 = vld [vmem:[#allocation3 + $0x370] sm:$0xff]  ;;  %v6909_v9 = vld [vmem:[#allocation3 + $0x338] sm:$0xff] }
 0x28e   :  { %4375 = vrcp.f32 %v1390_v54  ;;  %1696 = vmatpush.msra.mxu0 %v6877_v37  ;;  %1736 = vmatpush.msra.mxu2 %v6880_v32  ;;  %10442 = vst [vmem:[#allocation132_spill] sm:$0xff] %v6900_v15  ;;  %vm1426_vm7 = vweird.f32 %v1390_v54 }
 0x28f   :  { %v4374_v16 = vpop.eup %4373  ;;  %1697 = vmatmul.f32.vlgmr.msra.gmra.mxu0 %v6735_v62  ;;  %1737 = vmatmul.f32.vlgmr.msra.gmra.mxu2 %v6735_v62  ;;  %10445 = vst [vmem:[#allocation137_spill] sm:$0xff] %v6909_v9 }
 0x290   :  { %v1438_v27 = vmul.f32 %v4374_v16, %v1404_v46  ;;  %1761 = vmatpush.msrb.mxu0 %v6885_v45  ;;  %1801 = vmatpush.msrb.mxu2 %v6888_v11  ;;  %v6903_v16 = vld [vmem:[#allocation3 + $0x378] sm:$0xff]  ;;  %v6906_v46 = vld [vmem:[#allocation3 + $0x330] sm:$0xff] }
 0x291   :  { %10443 = vst [vmem:[#allocation135_spill] sm:$0xff] %v6903_v16  ;;  %v6925_v11 = vld [vmem:[#allocation3 + $0x270] sm:$0xff] }
 0x292   :  { %1762 = vmatpush.msrb.mxu0 %v6892_v50  ;;  %1802 = vmatpush.msrb.mxu2 %v6895_v18  ;;  %v6898_v17 = vadd.f32 %v1438_v27, %v1437_v20  ;;  %10444 = vst [vmem:[#allocation136_spill] sm:$0xff] %v6906_v46  ;;  %v1432_v27 = vand.u32 2147483648, %v1390_v54  ;;  %v1430_v18 = vand.u32 2147483647, %v1390_v54 }
 0x294   :  { %v4376_v4 = vpop.eup %4375  ;;  %1763 = vmatpush.msrb.mxu0 %v6900_v15  ;;  %1803 = vmatpush.msrb.mxu2 %v6903_v16  ;;  %4377 = vtanh.f32 %v6898_v17  ;;  %v6913_v15 = vld [vmem:[#allocation3 + $0x2f0] sm:$0xff]  ;;  %v6916_v16 = vld [vmem:[#allocation3 + $0x2f8] sm:$0xff]  ;;  %vm1431_vm9 = vcmp.eq.f32.partialorder %v1430_v18, 8.507059e+37 }
 0x295   :  { %v1422_v1 = vmul.f32 %v4376_v4, %v1390_v54  ;;  %vm1427_vm6 = vweird.f32 %v4376_v4  ;;  %10446 = vst [vmem:[#allocation138_spill] sm:$0xff] %v6913_v15  ;;  %v6943_v18 = vld [vmem:[#allocation3 + $0x1f0] sm:$0xff] }
 0x296   :  { %1764 = vmatpush.msrb.mxu0 %v6906_v46  ;;  %1804 = vmatpush.msrb.mxu2 %v6909_v9  ;;  %10447 = vst [vmem:[#allocation141_spill] sm:$0xff] %v6916_v16  ;;  %v6919_v46 = vld [vmem:[#allocation3 + $0x2b0] sm:$0xff]  ;;  %v6922_v9 = vld [vmem:[#allocation3 + $0x2b8] sm:$0xff]  ;;  %vm1428_vm8 = vmor %vm1426_vm7, %vm1427_vm6 }
 0x297   :  { %v1423_v63 = vsub.f32 1.0, %v1422_v1  ;;  %10448 = vst [vmem:[#allocation142_spill] sm:$0xff] %v6919_v46 }
 0x298   :  { %1765 = vmatpush.msrb.mxu0 %v6913_v15  ;;  %1805 = vmatpush.msrb.mxu2 %v6916_v16  ;;  %10449 = vst [vmem:[#allocation145_spill] sm:$0xff] %v6922_v9  ;;  %v6928_v15 = vld [vmem:[#allocation3 + $0x278] sm:$0xff] }
 0x299   :  { %v1424_v20 = vmul.f32 %v4376_v4, %v1423_v63  ;;  %v1433_v63 = vor.u32 1.1754944e-38, %v1432_v27  ;;  %v6954_v27 = vld [vmem:[#allocation3 + $0x1b8] sm:$0xff] }
 0x29a   :  { %1766 = vmatpush.msrb.mxu0 %v6919_v46  ;;  %1806 = vmatpush.msrb.mxu2 %v6922_v9  ;;  %v4378_v54 = vpop.eup %4377  ;;  %v6933_v46 = vld [vmem:[#allocation3 + $0x230] sm:$0xff]  ;;  %v6936_v9 = vld [vmem:[#allocation3 + $0x238] sm:$0xff] }
 0x29b   :  { %v1425_v1 = vadd.f32 %v4376_v4, %v1424_v20 }
 0x29c   :  { %1767 = vmatpush.msrb.mxu0 %v6925_v11  ;;  %1807 = vmatpush.msrb.mxu2 %v6928_v15 }
 0x29d   :  { %v1429_v50 = vsel %vm1428_vm8, %v4376_v4, %v1425_v1  ;;  %v6951_v4 = vld [vmem:[#allocation3 + $0x1b0] sm:$0xff]  ;;  %v7076_v1 = vld [vmem:[#allocation3 + $0x208] sm:$0xff] }
 0x29e   :  { %v1434_v20 = vsel %vm1431_vm9, %v1433_v63, %v1429_v50  ;;  %1768 = vmatpush.msrb.mxu0 %v6933_v46  ;;  %1808 = vmatpush.msrb.mxu2 %v6936_v9  ;;  %v6946_v50 = vld [vmem:[#allocation3 + $0x1f8] sm:$0xff]  ;;  %10472 = vst [vmem:[#allocation169_spill] sm:$0xff] %v7076_v1  ;;  %v10473_v63 = vld [vmem:[#allocation38_spill] sm:$0xff] }
 0x29f   :  { %v6931_v16 = vmul.f32 %v4378_v54, %v1434_v20  ;;  %v10474_v54 = vld [vmem:[#allocation39_spill] sm:$0xff]  ;;  %v7081_v20 = vld [vmem:[#allocation3 + $0x1c0] sm:$0xff] }
 0x2a0   :  { %1769 = vmatpush.msrb.mxu0 %v6943_v18  ;;  %1809 = vmatpush.msrb.mxu2 %v6946_v50  ;;  %10475 = vst [vmem:[#allocation67_spill] sm:$0xff] %v7081_v20 }
 0x2a1   :  { %1557 = vmatmul.f32.vlgmr.msra.gmra.mxu1 %v6931_v16  ;;  %1597 = vmatmul.f32.vlgmr.msra.gmra.mxu3 %v6931_v16 }
 0x2a2   :  { %1701 = vmatpush.msra.mxu1 %v6342_v41  ;;  %1741 = vmatpush.msra.mxu3 %v6345_v44  ;;  %v6959_v41 = vld [vmem:[#allocation3 + $0x170] sm:$0xff]  ;;  %v6962_v44 = vld [vmem:[#allocation3 + $0x178] sm:$0xff] }
 0x2a3   :  { %1770 = vmatpush.msrb.mxu0 %v6951_v4  ;;  %1810 = vmatpush.msrb.mxu2 %v6954_v27 }
 0x2a4   :  { %1702 = vmatpush.msra.mxu1 %v6350_v57  ;;  %1742 = vmatpush.msra.mxu3 %v6353_v58  ;;  %v6971_v57 = vld [vmem:[#allocation3 + $0x130] sm:$0xff]  ;;  %v6974_v58 = vld [vmem:[#allocation3 + $0x138] sm:$0xff] }
 0x2a5   :  { %1771 = vmatpush.msrb.mxu0 %v6959_v41  ;;  %1811 = vmatpush.msrb.mxu2 %v6962_v44 }
 0x2a6   :  { %1703 = vmatpush.msra.mxu1 %v6358_v19  ;;  %1743 = vmatpush.msra.mxu3 %v6361_v3  ;;  %v6979_v19 = vld [vmem:[#allocation3 + $0xf0] sm:$0xff]  ;;  %v6982_v3 = vld [vmem:[#allocation3 + $0xf8] sm:$0xff] }
 0x2a7   :  { %1772 = vmatpush.msrb.mxu0 %v6971_v57  ;;  %1812 = vmatpush.msrb.mxu2 %v6974_v58 }
 0x2a8   :  { %1704 = vmatpush.msra.mxu1 %v6366_v12  ;;  %1744 = vmatpush.msra.mxu3 %v6369_v39  ;;  %v6987_v12 = vld [vmem:[#allocation3 + $0xb0] sm:$0xff]  ;;  %v6990_v39 = vld [vmem:[#allocation3 + $0xb8] sm:$0xff] }
 0x2a9   :  { %1637 = vmatmul.f32.vlgmr.msrb.gmra.mxu1 %v6931_v16  ;;  %1677 = vmatmul.f32.vlgmr.msrb.gmra.mxu3 %v6931_v16 }
 0x2aa   :  { %1705 = vmatpush.msra.mxu1 %v6376_v48  ;;  %1745 = vmatpush.msra.mxu3 %v6379_v61  ;;  %v6995_v48 = vld [vmem:[#allocation3 + $0x70] sm:$0xff]  ;;  %v6998_v61 = vld [vmem:[#allocation3 + $0x78] sm:$0xff] }
 0x2ab   :  { %1773 = vmatpush.msrb.mxu0 %v6979_v19  ;;  %1813 = vmatpush.msrb.mxu2 %v6982_v3 }
 0x2ac   :  { %1706 = vmatpush.msra.mxu1 %v6384_v10  ;;  %1746 = vmatpush.msra.mxu3 %v6387_v33  ;;  %v7003_v10 = vld [vmem:[#allocation3 + $0x30] sm:$0xff]  ;;  %v7006_v33 = vld [vmem:[#allocation3 + $0x38] sm:$0xff] }
 0x2ad   :  { %1774 = vmatpush.msrb.mxu0 %v6987_v12  ;;  %1814 = vmatpush.msrb.mxu2 %v6990_v39  ;;  %10450 = vst [vmem:[#allocation146_spill] sm:$0xff] %v7003_v10 }
 0x2ae   :  { %1707 = vmatpush.msra.mxu1 %v6392_v47  ;;  %1747 = vmatpush.msra.mxu3 %v6395_v38  ;;  %10451 = vst [vmem:[#allocation149_spill] sm:$0xff] %v7006_v33  ;;  %v7013_v47 = vld [vmem:[#allocation3 + $0x3c0] sm:$0xff]  ;;  %v7016_v38 = vld [vmem:[#allocation3 + $0x3c8] sm:$0xff] }
 0x2af   :  { %1775 = vmatpush.msrb.mxu0 %v6995_v48  ;;  %1815 = vmatpush.msrb.mxu2 %v6998_v61  ;;  %10452 = vst [vmem:[#allocation150_spill] sm:$0xff] %v7013_v47 }
 0x2b0   :  { %1708 = vmatpush.msra.mxu1 %v6400_v51  ;;  %1748 = vmatpush.msra.mxu3 %v6403_v52  ;;  %10453 = vst [vmem:[#allocation153_spill] sm:$0xff] %v7016_v38  ;;  %v7021_v51 = vld [vmem:[#allocation3 + $0x380] sm:$0xff]  ;;  %v7024_v52 = vld [vmem:[#allocation3 + $0x388] sm:$0xff] }
 0x2b1   :  { %1776 = vmatpush.msrb.mxu0 %v7003_v10  ;;  %1816 = vmatpush.msrb.mxu2 %v7006_v33  ;;  %10454 = vst [vmem:[#allocation154_spill] sm:$0xff] %v7021_v51 }
 0x2b2   :  { %1709 = vmatpush.msra.mxu1 %v6408_v13  ;;  %1749 = vmatpush.msra.mxu3 %v6411_v8  ;;  %10455 = vst [vmem:[#allocation157_spill] sm:$0xff] %v7024_v52  ;;  %v7029_v13 = vld [vmem:[#allocation3 + $0x340] sm:$0xff]  ;;  %v7032_v8 = vld [vmem:[#allocation3 + $0x348] sm:$0xff] }
 0x2b3   :  { %1777 = vmatmul.f32.vlgmr.msrb.gmra.mxu0 %v6735_v62  ;;  %1817 = vmatmul.f32.vlgmr.msrb.gmra.mxu2 %v6735_v62  ;;  %10456 = vst [vmem:[#allocation55_spill] sm:$0xff] %v7029_v13  ;;  %v7073_v62 = vld [vmem:[#allocation3 + $0x200] sm:$0xff] }
 0x2b4   :  { %1710 = vmatpush.msra.mxu1 %v6421_v22  ;;  %1750 = vmatpush.msra.mxu3 %v6424_v14  ;;  %10457 = vst [vmem:[#allocation56_spill] sm:$0xff] %v7032_v8  ;;  %v7037_v22 = vld [vmem:[#allocation3 + $0x300] sm:$0xff]  ;;  %v7040_v14 = vld [vmem:[#allocation3 + $0x308] sm:$0xff] }
 0x2b5   :  { %1987 = vmatpush.msra.mxu0 %v7013_v47  ;;  %2027 = vmatpush.msra.mxu2 %v7016_v38  ;;  %10458 = vst [vmem:[#allocation158_spill] sm:$0xff] %v7037_v22 }
 0x2b6   :  { %1711 = vmatpush.msra.mxu1 %v6428_v7  ;;  %1751 = vmatpush.msra.mxu3 %v6431_v28  ;;  %10459 = vst [vmem:[#allocation161_spill] sm:$0xff] %v7040_v14  ;;  %v7045_v7 = vld [vmem:[#allocation3 + $0x2c0] sm:$0xff]  ;;  %v7048_v28 = vld [vmem:[#allocation3 + $0x2c8] sm:$0xff] }
 0x2b7   :  { %1988 = vmatpush.msra.mxu0 %v7021_v51  ;;  %2028 = vmatpush.msra.mxu2 %v7024_v52  ;;  %10460 = vst [vmem:[#allocation59_spill] sm:$0xff] %v7045_v7 }
 0x2b8   :  { %1712 = vmatpush.msra.mxu1 %v6436_v55  ;;  %1752 = vmatpush.msra.mxu3 %v6439_v59  ;;  %10461 = vst [vmem:[#allocation60_spill] sm:$0xff] %v7048_v28  ;;  %v7053_v55 = vld [vmem:[#allocation3 + $0x280] sm:$0xff]  ;;  %v7056_v59 = vld [vmem:[#allocation3 + $0x288] sm:$0xff] }
 0x2b9   :  { %1989 = vmatpush.msra.mxu0 %v7029_v13  ;;  %2029 = vmatpush.msra.mxu2 %v7032_v8  ;;  %10462 = vst [vmem:[#allocation162_spill] sm:$0xff] %v7053_v55 }
 0x2ba   :  { %1713 = vmatpush.msra.mxu1 %v6444_v6  ;;  %1753 = vmatpush.msra.mxu3 %v6447_v24  ;;  %10463 = vst [vmem:[#allocation165_spill] sm:$0xff] %v7056_v59  ;;  %v10464_v6 = vld [vmem:[#allocation29_spill] sm:$0xff]  ;;  %v10465_v24 = vld [vmem:[#allocation30_spill] sm:$0xff] }
 0x2bb   :  { %1990 = vmatpush.msra.mxu0 %v7037_v22  ;;  %2030 = vmatpush.msra.mxu2 %v7040_v14  ;;  %10471 = vst [vmem:[#allocation166_spill] sm:$0xff] %v7073_v62 }
 0x2bc   :  { %1714 = vmatpush.msra.mxu1 %v6452_v36  ;;  %1754 = vmatpush.msra.mxu3 %v6455_v25  ;;  %v10466_v36 = vld [vmem:[#allocation31_spill] sm:$0xff]  ;;  %v7065_v25 = vld [vmem:[#allocation3 + $0x240] sm:$0xff] }
 0x2bd   :  { %1991 = vmatpush.msra.mxu0 %v7045_v7  ;;  %2031 = vmatpush.msra.mxu2 %v7048_v28  ;;  %10467 = vst [vmem:[#allocation63_spill] sm:$0xff] %v7065_v25 }
 0x2be   :  { %1715 = vmatpush.msra.mxu1 %v6460_v40  ;;  %1755 = vmatpush.msra.mxu3 %v6463_v53  ;;  %v7068_v40 = vld [vmem:[#allocation3 + $0x248] sm:$0xff]  ;;  %v10469_v53 = vld [vmem:[#allocation32_spill] sm:$0xff] }
 0x2bf   :  { %1992 = vmatpush.msra.mxu0 %v7053_v55  ;;  %2032 = vmatpush.msra.mxu2 %v7056_v59  ;;  %10468 = vst [vmem:[#allocation64_spill] sm:$0xff] %v7068_v40 }
 0x2c0   :  { %1716 = vmatpush.msra.mxu1 %v6468_v0  ;;  %1756 = vmatpush.msra.mxu3 %v10464_v6  ;;  %v10470_v0 = vld [vmem:[#allocation37_spill] sm:$0xff]  ;;  %v7084_v6 = vld [vmem:[#allocation3 + $0x1c8] sm:$0xff] }
 0x2c1   :  { %1717 = vmatmul.f32.vlgmr.msra.gmra.mxu1 %v6931_v16  ;;  %1757 = vmatmul.f32.vlgmr.msra.gmra.mxu3 %v6931_v16  ;;  %10476 = vst [vmem:[#allocation68_spill] sm:$0xff] %v7084_v6 }
 0x2c2   :  { %1781 = vmatpush.msrb.mxu1 %v10465_v24  ;;  %1821 = vmatpush.msrb.mxu3 %v10466_v36  ;;  %v10477_v24 = vld [vmem:[#allocation40_spill] sm:$0xff]  ;;  %v10478_v36 = vld [vmem:[#allocation41_spill] sm:$0xff] }
 0x2c3   :  { %1993 = vmatpush.msra.mxu0 %v7065_v25  ;;  %2033 = vmatpush.msra.mxu2 %v7068_v40 }
 0x2c4   :  { %1782 = vmatpush.msrb.mxu1 %v10469_v53  ;;  %1822 = vmatpush.msrb.mxu3 %v10470_v0  ;;  %v7089_v53 = vld [vmem:[#allocation3 + $0x180] sm:$0xff]  ;;  %v7092_v0 = vld [vmem:[#allocation3 + $0x188] sm:$0xff] }
 0x2c5   :  { %1994 = vmatpush.msra.mxu0 %v7073_v62  ;;  %2034 = vmatpush.msra.mxu2 %v7076_v1  ;;  %10479 = vst [vmem:[#allocation170_spill] sm:$0xff] %v7089_v53  ;;  %v7440_v1 = vld [vmem:[#allocation3 + $0x410] sm:$0xff] }
 0x2c6   :  { %1783 = vmatpush.msrb.mxu1 %v10473_v63  ;;  %1823 = vmatpush.msrb.mxu3 %v10474_v54  ;;  %10480 = vst [vmem:[#allocation173_spill] sm:$0xff] %v7092_v0  ;;  %v10481_v63 = vld [vmem:[#allocation42_spill] sm:$0xff]  ;;  %v10482_v54 = vld [vmem:[#allocation43_spill] sm:$0xff] }
 0x2c7   :  { %1995 = vmatpush.msra.mxu0 %v7081_v20  ;;  %2035 = vmatpush.msra.mxu2 %v7084_v6  ;;  %v7097_v20 = vld [vmem:[#allocation3 + $0x140] sm:$0xff]  ;;  %v7100_v6 = vld [vmem:[#allocation3 + $0x148] sm:$0xff] }
 0x2c8   :  { %1784 = vmatpush.msrb.mxu1 %v10477_v24  ;;  %1824 = vmatpush.msrb.mxu3 %v10478_v36  ;;  %10483 = vst [vmem:[#allocation71_spill] sm:$0xff] %v7097_v20  ;;  %v10485_v24 = vld [vmem:[#allocation44_spill] sm:$0xff]  ;;  %v10486_v36 = vld [vmem:[#allocation45_spill] sm:$0xff] }
 0x2c9   :  { %1996 = vmatpush.msra.mxu0 %v7089_v53  ;;  %2036 = vmatpush.msra.mxu2 %v7092_v0  ;;  %10484 = vst [vmem:[#allocation72_spill] sm:$0xff] %v7100_v6  ;;  %v7105_v53 = vld [vmem:[#allocation3 + $0x100] sm:$0xff]  ;;  %v7108_v0 = vld [vmem:[#allocation3 + $0x108] sm:$0xff] }
 0x2ca   :  { %1785 = vmatpush.msrb.mxu1 %v10481_v63  ;;  %1825 = vmatpush.msrb.mxu3 %v10482_v54  ;;  %10487 = vst [vmem:[#allocation174_spill] sm:$0xff] %v7105_v53  ;;  %v10489_v63 = vld [vmem:[#allocation46_spill] sm:$0xff]  ;;  %v10490_v54 = vld [vmem:[#allocation47_spill] sm:$0xff] }
 0x2cb   :  { %1997 = vmatpush.msra.mxu0 %v7097_v20  ;;  %2037 = vmatpush.msra.mxu2 %v7100_v6  ;;  %10488 = vst [vmem:[#allocation177_spill] sm:$0xff] %v7108_v0  ;;  %v7113_v20 = vld [vmem:[#allocation3 + $0xc0] sm:$0xff]  ;;  %v7116_v6 = vld [vmem:[#allocation3 + $0xc8] sm:$0xff] }
 0x2cc   :  { %1786 = vmatpush.msrb.mxu1 %v10485_v24  ;;  %1826 = vmatpush.msrb.mxu3 %v10486_v36  ;;  %10491 = vst [vmem:[#allocation73_spill] sm:$0xff] %v7113_v20  ;;  %v10493_v24 = vld [vmem:[#allocation48_spill] sm:$0xff]  ;;  %v10494_v36 = vld [vmem:[#allocation49_spill] sm:$0xff] }
 0x2cd   :  { %1998 = vmatpush.msra.mxu0 %v7105_v53  ;;  %2038 = vmatpush.msra.mxu2 %v7108_v0  ;;  %10492 = vst [vmem:[#allocation74_spill] sm:$0xff] %v7116_v6  ;;  %v7121_v53 = vld [vmem:[#allocation3 + $0x80] sm:$0xff]  ;;  %v7124_v0 = vld [vmem:[#allocation3 + $0x88] sm:$0xff] }
 0x2ce   :  { %1787 = vmatpush.msrb.mxu1 %v10489_v63  ;;  %1827 = vmatpush.msrb.mxu3 %v10490_v54  ;;  %10495 = vst [vmem:[#allocation178_spill] sm:$0xff] %v7121_v53  ;;  %v10497_v63 = vld [vmem:[#allocation50_spill] sm:$0xff]  ;;  %v10498_v54 = vld [vmem:[#allocation51_spill] sm:$0xff] }
 0x2cf   :  { %1999 = vmatpush.msra.mxu0 %v7113_v20  ;;  %2039 = vmatpush.msra.mxu2 %v7116_v6  ;;  %10496 = vst [vmem:[#allocation180_spill] sm:$0xff] %v7124_v0  ;;  %v7129_v20 = vld [vmem:[#allocation3 + $0x40] sm:$0xff]  ;;  %v7132_v6 = vld [vmem:[#allocation3 + $0x48] sm:$0xff] }
 0x2d0   :  { %1788 = vmatpush.msrb.mxu1 %v10493_v24  ;;  %1828 = vmatpush.msrb.mxu3 %v10494_v36  ;;  %10499 = vst [vmem:[#allocation77_spill] sm:$0xff] %v7129_v20  ;;  %v10501_v24 = vld [vmem:[#allocation52_spill] sm:$0xff]  ;;  %v10502_v36 = vld [vmem:[#allocation53_spill] sm:$0xff] }
 0x2d1   :  { %2000 = vmatpush.msra.mxu0 %v7121_v53  ;;  %2040 = vmatpush.msra.mxu2 %v7124_v0  ;;  %10500 = vst [vmem:[#allocation78_spill] sm:$0xff] %v7132_v6  ;;  %v7137_v53 = vld [vmem:[#allocation3] sm:$0xff]  ;;  %v7140_v0 = vld [vmem:[#allocation3 + $0x8] sm:$0xff] }
 0x2d2   :  { %1789 = vmatpush.msrb.mxu1 %v10497_v63  ;;  %1829 = vmatpush.msrb.mxu3 %v10498_v54  ;;  %10503 = vst [vmem:[#allocation181_spill] sm:$0xff] %v7137_v53  ;;  %v10505_v63 = vld [vmem:[#allocation54_spill] sm:$0xff]  ;;  %v10506_v54 = vld [vmem:[#allocation57_spill] sm:$0xff] }
 0x2d3   :  { %2001 = vmatpush.msra.mxu0 %v7129_v20  ;;  %2041 = vmatpush.msra.mxu2 %v7132_v6  ;;  %10504 = vst [vmem:[#allocation182_spill] sm:$0xff] %v7140_v0  ;;  %v7145_v20 = vld [vmem:[#allocation3 + $0x3d0] sm:$0xff]  ;;  %v7148_v6 = vld [vmem:[#allocation3 + $0x3d8] sm:$0xff] }
 0x2d4   :  { %1790 = vmatpush.msrb.mxu1 %v10501_v24  ;;  %1830 = vmatpush.msrb.mxu3 %v10502_v36  ;;  %10507 = vst [vmem:[#allocation81_spill] sm:$0xff] %v7145_v20  ;;  %v10509_v24 = vld [vmem:[#allocation58_spill] sm:$0xff]  ;;  %v10510_v36 = vld [vmem:[#allocation61_spill] sm:$0xff] }
 0x2d5   :  { %2002 = vmatpush.msra.mxu0 %v7137_v53  ;;  %2042 = vmatpush.msra.mxu2 %v7140_v0  ;;  %10508 = vst [vmem:[#allocation82_spill] sm:$0xff] %v7148_v6  ;;  %v7153_v53 = vld [vmem:[#allocation3 + $0x390] sm:$0xff]  ;;  %v7156_v0 = vld [vmem:[#allocation3 + $0x398] sm:$0xff] }
 0x2d6   :  { %1791 = vmatpush.msrb.mxu1 %v10505_v63  ;;  %1831 = vmatpush.msrb.mxu3 %v10506_v54  ;;  %10511 = vst [vmem:[#allocation183_spill] sm:$0xff] %v7153_v53  ;;  %v10513_v63 = vld [vmem:[#allocation62_spill] sm:$0xff]  ;;  %v10514_v54 = vld [vmem:[#allocation65_spill] sm:$0xff] }
 0x2d7   :  { %2067 = vmatpush.msrb.mxu0 %v7145_v20  ;;  %2107 = vmatpush.msrb.mxu2 %v7148_v6  ;;  %10512 = vst [vmem:[#allocation184_spill] sm:$0xff] %v7156_v0  ;;  %v7161_v20 = vld [vmem:[#allocation3 + $0x350] sm:$0xff]  ;;  %v7164_v6 = vld [vmem:[#allocation3 + $0x358] sm:$0xff] }
 0x2d8   :  { %1792 = vmatpush.msrb.mxu1 %v10509_v24  ;;  %1832 = vmatpush.msrb.mxu3 %v10510_v36  ;;  %10515 = vst [vmem:[#allocation85_spill] sm:$0xff] %v7161_v20  ;;  %v10517_v24 = vld [vmem:[#allocation66_spill] sm:$0xff]  ;;  %v10518_v36 = vld [vmem:[#allocation69_spill] sm:$0xff] }
 0x2d9   :  { %2068 = vmatpush.msrb.mxu0 %v7153_v53  ;;  %2108 = vmatpush.msrb.mxu2 %v7156_v0  ;;  %10516 = vst [vmem:[#allocation86_spill] sm:$0xff] %v7164_v6  ;;  %v7169_v53 = vld [vmem:[#allocation3 + $0x310] sm:$0xff]  ;;  %v7172_v0 = vld [vmem:[#allocation3 + $0x318] sm:$0xff] }
 0x2da   :  { %1793 = vmatpush.msrb.mxu1 %v10513_v63  ;;  %1833 = vmatpush.msrb.mxu3 %v10514_v54  ;;  %10519 = vst [vmem:[#allocation185_spill] sm:$0xff] %v7169_v53  ;;  %v10521_v63 = vld [vmem:[#allocation70_spill] sm:$0xff]  ;;  %v10522_v54 = vld [vmem:[#allocation75_spill] sm:$0xff] }
 0x2db   :  { %2069 = vmatpush.msrb.mxu0 %v7161_v20  ;;  %2109 = vmatpush.msrb.mxu2 %v7164_v6  ;;  %10520 = vst [vmem:[#allocation186_spill] sm:$0xff] %v7172_v0  ;;  %v7177_v20 = vld [vmem:[#allocation3 + $0x2d0] sm:$0xff]  ;;  %v7180_v6 = vld [vmem:[#allocation3 + $0x2d8] sm:$0xff] }
 0x2dc   :  { %1794 = vmatpush.msrb.mxu1 %v10517_v24  ;;  %1834 = vmatpush.msrb.mxu3 %v10518_v36  ;;  %10523 = vst [vmem:[#allocation89_spill] sm:$0xff] %v7177_v20  ;;  %v10525_v24 = vld [vmem:[#allocation76_spill] sm:$0xff]  ;;  %v10526_v36 = vld [vmem:[#allocation79_spill] sm:$0xff] }
 0x2dd   :  { %2070 = vmatpush.msrb.mxu0 %v7169_v53  ;;  %2110 = vmatpush.msrb.mxu2 %v7172_v0  ;;  %10524 = vst [vmem:[#allocation90_spill] sm:$0xff] %v7180_v6  ;;  %v7187_v0 = vld [vmem:[#allocation3 + $0x290] sm:$0xff] }
 0x2de   :  { %1795 = vmatpush.msrb.mxu1 %v10521_v63  ;;  %1835 = vmatpush.msrb.mxu3 %v10522_v54  ;;  %10527 = vst [vmem:[#allocation187_spill] sm:$0xff] %v7187_v0  ;;  %v7190_v63 = vld [vmem:[#allocation3 + $0x298] sm:$0xff]  ;;  %v7193_v54 = vld [vmem:[#allocation3 + $0x7c0] sm:$0xff] }
 0x2df   :  { %2071 = vmatpush.msrb.mxu0 %v7177_v20  ;;  %2111 = vmatpush.msrb.mxu2 %v7180_v6  ;;  %10528 = vst [vmem:[#allocation188_spill] sm:$0xff] %v7190_v63  ;;  %v7196_v6 = vld [vmem:[#allocation3 + $0x7c8] sm:$0xff] }
 0x2e0   :  { %1796 = vmatpush.msrb.mxu1 %v10525_v24  ;;  %1836 = vmatpush.msrb.mxu3 %v10526_v36  ;;  %10529 = vst [vmem:[#allocation93_spill] sm:$0xff] %v7193_v54  ;;  %v7199_v24 = vld [vmem:[#allocation3 + $0x250] sm:$0xff]  ;;  %v7205_v36 = vld [vmem:[#allocation3 + $0x780] sm:$0xff] }
 0x2e1   :  { %1797 = vmatmul.f32.vlgmr.msrb.gmra.mxu1 %v6931_v16  ;;  %1837 = vmatmul.f32.vlgmr.msrb.gmra.mxu3 %v6931_v16  ;;  %10530 = vst [vmem:[#allocation94_spill] sm:$0xff] %v7196_v6  ;;  %v7202_v16 = vld [vmem:[#allocation3 + $0x258] sm:$0xff] }
 0x2e2   :  { %2072 = vmatpush.msrb.mxu0 %v7187_v0  ;;  %2112 = vmatpush.msrb.mxu2 %v7190_v63  ;;  %10531 = vst [vmem:[#allocation189_spill] sm:$0xff] %v7199_v24  ;;  %v7208_v63 = vld [vmem:[#allocation3 + $0x788] sm:$0xff]  ;;  %v7427_v0 = vld [vmem:[#allocation3 + $0x490] sm:$0xff] }
 0x2e3   :  { %2007 = vmatpush.msra.mxu1 %v7193_v54  ;;  %2047 = vmatpush.msra.mxu3 %v7196_v6  ;;  %10532 = vst [vmem:[#allocation97_spill] sm:$0xff] %v7202_v16  ;;  %v7211_v54 = vld [vmem:[#allocation3 + $0x210] sm:$0xff]  ;;  %v7214_v6 = vld [vmem:[#allocation3 + $0x218] sm:$0xff] }
 0x2e4   :  { %2073 = vmatpush.msrb.mxu0 %v7199_v24  ;;  %2113 = vmatpush.msrb.mxu2 %v7202_v16  ;;  %10533 = vst [vmem:[#allocation98_spill] sm:$0xff] %v7205_v36  ;;  %v7217_v24 = vld [vmem:[#allocation3 + $0x740] sm:$0xff]  ;;  %v7220_v16 = vld [vmem:[#allocation3 + $0x748] sm:$0xff] }
 0x2e5   :  { %2008 = vmatpush.msra.mxu1 %v7205_v36  ;;  %10534 = vst [vmem:[#allocation101_spill] sm:$0xff] %v7208_v63  ;;  %2048 = vmatpush.msra.mxu3 %v7208_v63  ;;  %v7223_v36 = vld [vmem:[#allocation3 + $0x1d0] sm:$0xff]  ;;  %v7226_v63 = vld [vmem:[#allocation3 + $0x1d8] sm:$0xff] }
 0x2e6   :  { %10535 = vst [vmem:[#allocation102_spill] sm:$0xff] %v7211_v54  ;;  %2074 = vmatpush.msrb.mxu0 %v7211_v54  ;;  %2114 = vmatpush.msrb.mxu2 %v7214_v6  ;;  %v7229_v54 = vld [vmem:[#allocation3 + $0x700] sm:$0xff] }
 0x2e7   :  { %10536 = vst [vmem:[#allocation105_spill] sm:$0xff] %v7214_v6  ;;  %2009 = vmatpush.msra.mxu1 %v7217_v24  ;;  %2049 = vmatpush.msra.mxu3 %v7220_v16  ;;  %v7232_v6 = vld [vmem:[#allocation3 + $0x708] sm:$0xff] }
 0x2e8   :  { %10537 = vst [vmem:[#allocation106_spill] sm:$0xff] %v7217_v24  ;;  %2075 = vmatpush.msrb.mxu0 %v7223_v36  ;;  %2115 = vmatpush.msrb.mxu2 %v7226_v63  ;;  %v7235_v24 = vld [vmem:[#allocation3 + $0x190] sm:$0xff] }
 0x2e9   :  { %10538 = vst [vmem:[#allocation109_spill] sm:$0xff] %v7220_v16  ;;  %2010 = vmatpush.msra.mxu1 %v7229_v54  ;;  %2050 = vmatpush.msra.mxu3 %v7232_v6  ;;  %v7238_v16 = vld [vmem:[#allocation3 + $0x198] sm:$0xff] }
 0x2ea   :  { %10539 = vst [vmem:[#allocation110_spill] sm:$0xff] %v7223_v36  ;;  %2076 = vmatpush.msrb.mxu0 %v7235_v24  ;;  %2116 = vmatpush.msrb.mxu2 %v7238_v16  ;;  %v7241_v36 = vld [vmem:[#allocation3 + $0x6c0] sm:$0xff] }
 0x2eb   :  { %10540 = vst [vmem:[#allocation113_spill] sm:$0xff] %v7226_v63  ;;  %2011 = vmatpush.msra.mxu1 %v7241_v36  ;;  %v7244_v63 = vld [vmem:[#allocation3 + $0x6c8] sm:$0xff] }
 0x2ec   :  { %10541 = vst [vmem:[#allocation114_spill] sm:$0xff] %v7229_v54  ;;  %2051 = vmatpush.msra.mxu3 %v7244_v63  ;;  %v7247_v54 = vld [vmem:[#allocation3 + $0x150] sm:$0xff] }
 0x2ed   :  { %10542 = vst [vmem:[#allocation117_spill] sm:$0xff] %v7232_v6  ;;  %2077 = vmatpush.msrb.mxu0 %v7247_v54  ;;  %v7250_v6 = vld [vmem:[#allocation3 + $0x158] sm:$0xff] }
 0x2ee   :  { %10543 = vst [vmem:[#allocation118_spill] sm:$0xff] %v7235_v24  ;;  %2117 = vmatpush.msrb.mxu2 %v7250_v6  ;;  %v7253_v24 = vld [vmem:[#allocation3 + $0x680] sm:$0xff] }
 0x2ef   :  { %10544 = vst [vmem:[#allocation121_spill] sm:$0xff] %v7238_v16  ;;  %2012 = vmatpush.msra.mxu1 %v7253_v24  ;;  %v7256_v16 = vld [vmem:[#allocation3 + $0x688] sm:$0xff] }
 0x2f0   :  { %10545 = vst [vmem:[#allocation122_spill] sm:$0xff] %v7241_v36  ;;  %2052 = vmatpush.msra.mxu3 %v7256_v16  ;;  %v7259_v36 = vld [vmem:[#allocation3 + $0x110] sm:$0xff] }
 0x2f1   :  { %10546 = vst [vmem:[#allocation125_spill] sm:$0xff] %v7244_v63  ;;  %2078 = vmatpush.msrb.mxu0 %v7259_v36  ;;  %v7262_v63 = vld [vmem:[#allocation3 + $0x118] sm:$0xff] }
 0x2f2   :  { %10547 = vst [vmem:[#allocation126_spill] sm:$0xff] %v7247_v54  ;;  %2118 = vmatpush.msrb.mxu2 %v7262_v63  ;;  %v7265_v54 = vld [vmem:[#allocation3 + $0x640] sm:$0xff] }
 0x2f3   :  { %10548 = vst [vmem:[#allocation129_spill] sm:$0xff] %v7250_v6  ;;  %2013 = vmatpush.msra.mxu1 %v7265_v54  ;;  %v7268_v6 = vld [vmem:[#allocation3 + $0x648] sm:$0xff] }
 0x2f4   :  { %10549 = vst [vmem:[#allocation130_spill] sm:$0xff] %v7253_v24  ;;  %2053 = vmatpush.msra.mxu3 %v7268_v6  ;;  %v7271_v24 = vld [vmem:[#allocation3 + $0xd0] sm:$0xff] }
 0x2f5   :  { %10550 = vst [vmem:[#allocation133_spill] sm:$0xff] %v7256_v16  ;;  %2079 = vmatpush.msrb.mxu0 %v7271_v24  ;;  %v7274_v16 = vld [vmem:[#allocation3 + $0xd8] sm:$0xff] }
 0x2f6   :  { %10551 = vst [vmem:[#allocation134_spill] sm:$0xff] %v7259_v36  ;;  %2119 = vmatpush.msrb.mxu2 %v7274_v16  ;;  %v7277_v36 = vld [vmem:[#allocation3 + $0x600] sm:$0xff] }
 0x2f7   :  { %10552 = vst [vmem:[#allocation139_spill] sm:$0xff] %v7262_v63  ;;  %2014 = vmatpush.msra.mxu1 %v7277_v36  ;;  %v7280_v63 = vld [vmem:[#allocation3 + $0x608] sm:$0xff] }
 0x2f8   :  { %10553 = vst [vmem:[#allocation140_spill] sm:$0xff] %v7265_v54  ;;  %2054 = vmatpush.msra.mxu3 %v7280_v63  ;;  %v7283_v54 = vld [vmem:[#allocation3 + $0x90] sm:$0xff] }
 0x2f9   :  { %10554 = vst [vmem:[#allocation143_spill] sm:$0xff] %v7268_v6  ;;  %2080 = vmatpush.msrb.mxu0 %v7283_v54  ;;  %v7286_v6 = vld [vmem:[#allocation3 + $0x98] sm:$0xff] }
 0x2fa   :  { %10555 = vst [vmem:[#allocation144_spill] sm:$0xff] %v7271_v24  ;;  %2120 = vmatpush.msrb.mxu2 %v7286_v6  ;;  %v7289_v24 = vld [vmem:[#allocation3 + $0x5c0] sm:$0xff] }
 0x2fb   :  { %10556 = vst [vmem:[#allocation147_spill] sm:$0xff] %v7274_v16  ;;  %2015 = vmatpush.msra.mxu1 %v7289_v24  ;;  %v7292_v16 = vld [vmem:[#allocation3 + $0x5c8] sm:$0xff] }
 0x2fc   :  { %10557 = vst [vmem:[#allocation148_spill] sm:$0xff] %v7277_v36  ;;  %2055 = vmatpush.msra.mxu3 %v7292_v16  ;;  %v7295_v36 = vld [vmem:[#allocation3 + $0x50] sm:$0xff] }
 0x2fd   :  { %10558 = vst [vmem:[#allocation151_spill] sm:$0xff] %v7280_v63  ;;  %2081 = vmatpush.msrb.mxu0 %v7295_v36  ;;  %v7298_v63 = vld [vmem:[#allocation3 + $0x58] sm:$0xff] }
 0x2fe   :  { %10559 = vst [vmem:[#allocation152_spill] sm:$0xff] %v7283_v54  ;;  %2121 = vmatpush.msrb.mxu2 %v7298_v63  ;;  %v7301_v54 = vld [vmem:[#allocation3 + $0x580] sm:$0xff] }
 0x2ff   :  { %10560 = vst [vmem:[#allocation155_spill] sm:$0xff] %v7286_v6  ;;  %2016 = vmatpush.msra.mxu1 %v7301_v54  ;;  %v7304_v6 = vld [vmem:[#allocation3 + $0x588] sm:$0xff] }
 0x300   :  { %10561 = vst [vmem:[#allocation156_spill] sm:$0xff] %v7289_v24  ;;  %2056 = vmatpush.msra.mxu3 %v7304_v6  ;;  %v7307_v24 = vld [vmem:[#allocation3 + $0x10] sm:$0xff] }
 0x301   :  { %10562 = vst [vmem:[#allocation159_spill] sm:$0xff] %v7292_v16  ;;  %2082 = vmatpush.msrb.mxu0 %v7307_v24  ;;  %v7310_v16 = vld [vmem:[#allocation3 + $0x18] sm:$0xff] }
 0x302   :  { %10563 = vst [vmem:[#allocation160_spill] sm:$0xff] %v7295_v36  ;;  %2122 = vmatpush.msrb.mxu2 %v7310_v16  ;;  %v7313_v36 = vld [vmem:[#allocation3 + $0x540] sm:$0xff] }
 0x303   :  { %10564 = vst [vmem:[#allocation163_spill] sm:$0xff] %v7298_v63  ;;  %2017 = vmatpush.msra.mxu1 %v7313_v36  ;;  %v7316_v63 = vld [vmem:[#allocation3 + $0x548] sm:$0xff] }
 0x304   :  { %10565 = vst [vmem:[#allocation164_spill] sm:$0xff] %v7301_v54  ;;  %2057 = vmatpush.msra.mxu3 %v7316_v63  ;;  %v7319_v54 = vld [vmem:[#allocation3 + $0x500] sm:$0xff] }
 0x305   :  { %10566 = vst [vmem:[#allocation167_spill] sm:$0xff] %v7304_v6  ;;  %2018 = vmatpush.msra.mxu1 %v7319_v54  ;;  %v7322_v6 = vld [vmem:[#allocation3 + $0x508] sm:$0xff] }
 0x306   :  { %10567 = vst [vmem:[#allocation168_spill] sm:$0xff] %v7307_v24  ;;  %2058 = vmatpush.msra.mxu3 %v7322_v6  ;;  %v7325_v24 = vld [vmem:[#allocation3 + $0x4c0] sm:$0xff] }
 0x307   :  { %10568 = vst [vmem:[#allocation171_spill] sm:$0xff] %v7310_v16  ;;  %2019 = vmatpush.msra.mxu1 %v7325_v24  ;;  %v7328_v16 = vld [vmem:[#allocation3 + $0x4c8] sm:$0xff] }
 0x308   :  { %10569 = vst [vmem:[#allocation172_spill] sm:$0xff] %v7313_v36  ;;  %2059 = vmatpush.msra.mxu3 %v7328_v16  ;;  %v7331_v36 = vld [vmem:[#allocation3 + $0x480] sm:$0xff] }
 0x309   :  { %10570 = vst [vmem:[#allocation175_spill] sm:$0xff] %v7316_v63  ;;  %2020 = vmatpush.msra.mxu1 %v7331_v36  ;;  %v7334_v63 = vld [vmem:[#allocation3 + $0x488] sm:$0xff] }
 0x30a   :  { %10571 = vst [vmem:[#allocation176_spill] sm:$0xff] %v7319_v54  ;;  %2060 = vmatpush.msra.mxu3 %v7334_v63  ;;  %v7337_v54 = vld [vmem:[#allocation3 + $0x440] sm:$0xff] }
 0x30b   :  { %10572 = vst [vmem:[#allocation17_spill] sm:$0xff] %v7322_v6  ;;  %2021 = vmatpush.msra.mxu1 %v7337_v54  ;;  %v7340_v6 = vld [vmem:[#allocation3 + $0x448] sm:$0xff] }
 0x30c   :  { %10573 = vst [vmem:[#allocation179_spill] sm:$0xff] %v7325_v24  ;;  %2061 = vmatpush.msra.mxu3 %v7340_v6  ;;  %v7343_v24 = vld [vmem:[#allocation3 + $0x400] sm:$0xff] }
 0x30d   :  { %10574 = vst [vmem:[#allocation18_spill] sm:$0xff] %v7328_v16  ;;  %2022 = vmatpush.msra.mxu1 %v7343_v24  ;;  %v7346_v16 = vld [vmem:[#allocation3 + $0x408] sm:$0xff] }
 0x30e   :  { %10575 = vst [vmem:[#allocation19_spill] sm:$0xff] %v7331_v36  ;;  %2062 = vmatpush.msra.mxu3 %v7346_v16  ;;  %v7349_v36 = vld [vmem:[#allocation3 + $0x7d0] sm:$0xff] }
 0x30f   :  { %10576 = vst [vmem:[#allocation10_spill] sm:$0xff] %v7334_v63  ;;  %2087 = vmatpush.msrb.mxu1 %v7349_v36  ;;  %v7352_v63 = vld [vmem:[#allocation3 + $0x7d8] sm:$0xff] }
 0x310   :  { %10577 = vst [vmem:[#allocation11_spill] sm:$0xff] %v7337_v54  ;;  %2127 = vmatpush.msrb.mxu3 %v7352_v63  ;;  %v7355_v54 = vld [vmem:[#allocation3 + $0x790] sm:$0xff] }
 0x311   :  { %10578 = vst [vmem:[#allocation12_spill] sm:$0xff] %v7340_v6  ;;  %2088 = vmatpush.msrb.mxu1 %v7355_v54  ;;  %v7358_v6 = vld [vmem:[#allocation3 + $0x798] sm:$0xff] }
 0x312   :  { %10579 = vst [vmem:[#allocation9_spill] sm:$0xff] %v7343_v24  ;;  %2128 = vmatpush.msrb.mxu3 %v7358_v6  ;;  %v7361_v24 = vld [vmem:[#allocation3 + $0x750] sm:$0xff] }
 0x313   :  { %10580 = vst [vmem:[#allocation13_spill] sm:$0xff] %v7346_v16  ;;  %2089 = vmatpush.msrb.mxu1 %v7361_v24  ;;  %v7364_v16 = vld [vmem:[#allocation3 + $0x758] sm:$0xff] }
 0x314   :  { %10581 = vst [vmem:[#allocation14_spill] sm:$0xff] %v7349_v36  ;;  %2129 = vmatpush.msrb.mxu3 %v7364_v16  ;;  %v7367_v36 = vld [vmem:[#allocation3 + $0x710] sm:$0xff] }
 0x315   :  { %10582 = vst [vmem:[#allocation15_spill] sm:$0xff] %v7352_v63  ;;  %2090 = vmatpush.msrb.mxu1 %v7367_v36  ;;  %v7370_v63 = vld [vmem:[#allocation3 + $0x718] sm:$0xff] }
 0x316   :  { %10583 = vst [vmem:[#allocation16_spill] sm:$0xff] %v7355_v54  ;;  %2130 = vmatpush.msrb.mxu3 %v7370_v63  ;;  %v7373_v54 = vld [vmem:[#allocation3 + $0x6d0] sm:$0xff] }
 0x317   :  { %10584 = vst [vmem:[#allocation20_spill] sm:$0xff] %v7358_v6  ;;  %2091 = vmatpush.msrb.mxu1 %v7373_v54  ;;  %v7376_v6 = vld [vmem:[#allocation3 + $0x6d8] sm:$0xff] }
 0x318   :  { %10585 = vst [vmem:[#allocation29_spill] sm:$0xff] %v7361_v24  ;;  %2131 = vmatpush.msrb.mxu3 %v7376_v6  ;;  %v7379_v24 = vld [vmem:[#allocation3 + $0x690] sm:$0xff] }
 0x319   :  { %10586 = vst [vmem:[#allocation30_spill] sm:$0xff] %v7364_v16  ;;  %2092 = vmatpush.msrb.mxu1 %v7379_v24  ;;  %v7382_v16 = vld [vmem:[#allocation3 + $0x698] sm:$0xff] }
 0x31a   :  { %10587 = vst [vmem:[#allocation31_spill] sm:$0xff] %v7367_v36  ;;  %2132 = vmatpush.msrb.mxu3 %v7382_v16  ;;  %v7385_v36 = vld [vmem:[#allocation3 + $0x650] sm:$0xff] }
 0x31b   :  { %10588 = vst [vmem:[#allocation32_spill] sm:$0xff] %v7370_v63  ;;  %2093 = vmatpush.msrb.mxu1 %v7385_v36  ;;  %v7388_v63 = vld [vmem:[#allocation3 + $0x658] sm:$0xff] }
 0x31c   :  { %10589 = vst [vmem:[#allocation37_spill] sm:$0xff] %v7373_v54  ;;  %2133 = vmatpush.msrb.mxu3 %v7388_v63  ;;  %v7391_v54 = vld [vmem:[#allocation3 + $0x610] sm:$0xff] }
 0x31d   :  { %10590 = vst [vmem:[#allocation38_spill] sm:$0xff] %v7376_v6  ;;  %2094 = vmatpush.msrb.mxu1 %v7391_v54  ;;  %v7394_v6 = vld [vmem:[#allocation3 + $0x618] sm:$0xff] }
 0x31e   :  { %10591 = vst [vmem:[#allocation39_spill] sm:$0xff] %v7379_v24  ;;  %2134 = vmatpush.msrb.mxu3 %v7394_v6  ;;  %v7397_v24 = vld [vmem:[#allocation3 + $0x5d0] sm:$0xff] }
 0x31f   :  { %10592 = vst [vmem:[#allocation40_spill] sm:$0xff] %v7382_v16  ;;  %2095 = vmatpush.msrb.mxu1 %v7397_v24  ;;  %v7400_v16 = vld [vmem:[#allocation3 + $0x5d8] sm:$0xff] }
 0x320   :  { %10593 = vst [vmem:[#allocation41_spill] sm:$0xff] %v7385_v36  ;;  %2135 = vmatpush.msrb.mxu3 %v7400_v16  ;;  %v7403_v36 = vld [vmem:[#allocation3 + $0x590] sm:$0xff] }
 0x321   :  { %10594 = vst [vmem:[#allocation42_spill] sm:$0xff] %v7388_v63  ;;  %2096 = vmatpush.msrb.mxu1 %v7403_v36  ;;  %v7406_v63 = vld [vmem:[#allocation3 + $0x598] sm:$0xff] }
 0x322   :  { %10595 = vst [vmem:[#allocation43_spill] sm:$0xff] %v7391_v54  ;;  %2136 = vmatpush.msrb.mxu3 %v7406_v63  ;;  %v7409_v54 = vld [vmem:[#allocation3 + $0x550] sm:$0xff] }
 0x323   :  { %10596 = vst [vmem:[#allocation44_spill] sm:$0xff] %v7394_v6  ;;  %2097 = vmatpush.msrb.mxu1 %v7409_v54  ;;  %v7412_v6 = vld [vmem:[#allocation3 + $0x558] sm:$0xff] }
 0x324   :  { %10597 = vst [vmem:[#allocation45_spill] sm:$0xff] %v7397_v24  ;;  %2137 = vmatpush.msrb.mxu3 %v7412_v6  ;;  %v7415_v24 = vld [vmem:[#allocation3 + $0x510] sm:$0xff]  ;;  %v1598_v40 = vpop.f32.mrf.mxu3 }
 0x325   :  { %10598 = vst [vmem:[#allocation46_spill] sm:$0xff] %v7400_v16  ;;  %2098 = vmatpush.msrb.mxu1 %v7415_v24  ;;  %v7418_v16 = vld [vmem:[#allocation3 + $0x518] sm:$0xff] }
 0x326   :  { %10599 = vst [vmem:[#allocation47_spill] sm:$0xff] %v7403_v36  ;;  %2138 = vmatpush.msrb.mxu3 %v7418_v16  ;;  %v7421_v36 = vld [vmem:[#allocation3 + $0x4d0] sm:$0xff] }
 0x327   :  { %10600 = vst [vmem:[#allocation48_spill] sm:$0xff] %v7406_v63  ;;  %2099 = vmatpush.msrb.mxu1 %v7421_v36  ;;  %v7424_v63 = vld [vmem:[#allocation3 + $0x4d8] sm:$0xff] }
 0x328   :  { %10601 = vst [vmem:[#allocation49_spill] sm:$0xff] %v7409_v54  ;;  %2139 = vmatpush.msrb.mxu3 %v7424_v63  ;;  %v1538_v54 = vpop.f32.mrf.mxu0 }
 0x329   :  { %10602 = vst [vmem:[#allocation50_spill] sm:$0xff] %v7412_v6  ;;  %2100 = vmatpush.msrb.mxu1 %v7427_v0  ;;  %v7430_v6 = vld [vmem:[#allocation3 + $0x498] sm:$0xff] }
 0x32a   :  { %10603 = vst [vmem:[#allocation51_spill] sm:$0xff] %v7415_v24  ;;  %2140 = vmatpush.msrb.mxu3 %v7430_v6  ;;  %v1558_v24 = vpop.f32.mrf.mxu1 }
 0x32b   :  { %10604 = vst [vmem:[#allocation52_spill] sm:$0xff] %v7418_v16  ;;  %v1559_v20 = vadd.f32 %v1558_v24, %v1538_v54  ;;  %v7433_v16 = vld [vmem:[#allocation3 + $0x450] sm:$0xff] }
 0x32c   :  { %10605 = vst [vmem:[#allocation53_spill] sm:$0xff] %v7421_v36  ;;  %2101 = vmatpush.msrb.mxu1 %v7433_v16  ;;  %v7436_v36 = vld [vmem:[#allocation3 + $0x458] sm:$0xff]  ;;  %v1678_v22 = vpop.f32.mrf.mxu3 }
 0x32d   :  { %10606 = vst [vmem:[#allocation54_spill] sm:$0xff] %v7424_v63  ;;  %2141 = vmatpush.msrb.mxu3 %v7436_v36  ;;  %v10611_v63 = vld [vmem:[#allocation21_spill] sm:$0xff] }
 0x32e   :  { %10607 = vst [vmem:[#allocation57_spill] sm:$0xff] %v7427_v0  ;;  %v1920_v53 = vadd.f32 %v10611_v63, %v1559_v20  ;;  %2102 = vmatpush.msrb.mxu1 %v7440_v1  ;;  %v10613_v0 = vld [vmem:[#allocation80_spill] sm:$0xff] }
 0x32f   :  { %10608 = vst [vmem:[#allocation58_spill] sm:$0xff] %v7430_v6  ;;  %2142 = vmatpush.msrb.mxu3 %v10613_v0  ;;  %v1578_v6 = vpop.f32.mrf.mxu2 }
 0x330   :  { %10609 = vst [vmem:[#allocation61_spill] sm:$0xff] %v7433_v16  ;;  %v4265_v62 = vmul.f32 -1.442695, %v1920_v53  ;;  %v1599_v54 = vadd.f32 %v1598_v40, %v1578_v6  ;;  %v1618_v24 = vpop.f32.mrf.mxu0  ;;  %v10614_v16 = vld [vmem:[#allocation22_spill] sm:$0xff] }
 0x331   :  { %10610 = vst [vmem:[#allocation62_spill] sm:$0xff] %v7436_v36  ;;  %v10615_v36 = vld [vmem:[#allocation23_spill] sm:$0xff] }
 0x332   :  { %10612 = vst [vmem:[#allocation65_spill] sm:$0xff] %v7440_v1  ;;  %4379 = vpow2.f32 %v4265_v62  ;;  %v1638_v25 = vpop.f32.mrf.mxu1  ;;  %v1921_v59 = vadd.f32 %v10614_v16, %v1599_v54 }
 0x333   :  { %v1639_v55 = vadd.f32 %v1638_v25, %v1618_v24 }
 0x334   :  { %v4266_v28 = vmul.f32 -1.442695, %v1921_v59 }
 0x335   :  { %v1922_v7 = vadd.f32 %v10615_v36, %v1639_v55 }
 0x336   :  { %4381 = vpow2.f32 %v4266_v28 }
 0x337   :  { %v4267_v63 = vmul.f32 -1.442695, %v1922_v7  ;;  %v1658_v6 = vpop.f32.mrf.mxu2  ;;  %v10616_v7 = vld [vmem:[#allocation24_spill] sm:$0xff] }
 0x338   :  { %v4380_v20 = vpop.eup %4379  ;;  %v1679_v59 = vadd.f32 %v1678_v22, %v1658_v6  ;;  %v1698_v22 = vpop.f32.mrf.mxu0 }
 0x339   :  { %v1933_v14 = vadd.f32 1.0, %v4380_v20  ;;  %4383 = vpow2.f32 %v4267_v63 }
 0x33a   :  { %v1923_v36 = vadd.f32 %v10616_v7, %v1679_v59 }
 0x33b   :  { %4385 = vrcp.f32 %v1933_v14  ;;  %v1947_v63 = vand.u32 2147483648, %v1933_v14  ;;  %vm1941_vm11 = vweird.f32 %v1933_v14 }
 0x33c   :  { %v4382_v0 = vpop.eup %4381 }
 0x33d   :  { %v1934_v53 = vadd.f32 1.0, %v4382_v0  ;;  %v1948_v7 = vor.u32 1.1754944e-38, %v1947_v63 }
 0x33f   :  { %v4384_v1 = vpop.eup %4383  ;;  %4387 = vrcp.f32 %v1934_v53  ;;  %v1962_v13 = vand.u32 2147483648, %v1934_v53  ;;  %v1960_v59 = vand.u32 2147483647, %v1934_v53  ;;  %vm1956_vm14 = vweird.f32 %v1934_v53 }
 0x340   :  { %v7446_v40 = vadd.f32 1.0, %v4384_v1  ;;  %v1945_v1 = vand.u32 2147483647, %v1933_v14 }
 0x341   :  { %v4386_v62 = vpop.eup %4385  ;;  %v1963_v51 = vor.u32 1.1754944e-38, %v1962_v13  ;;  %vm1961_vm4 = vcmp.eq.f32.partialorder %v1960_v59, 8.507059e+37 }
 0x342   :  { %v1937_v16 = vmul.f32 %v4386_v62, %v1933_v14  ;;  %4389 = vrcp.f32 %v7446_v40  ;;  %vm1942_vm10 = vweird.f32 %v4386_v62  ;;  %vm1946_vm15 = vcmp.eq.f32.partialorder %v1945_v1, 8.507059e+37 }
 0x343   :  { %vm7451_vm12 = vmor %vm1941_vm11, %vm1942_vm10  ;;  %4391 = vtanh.f32 %v1923_v36  ;;  %vm1971_vm1 = vweird.f32 %v7446_v40 }
 0x344   :  { %v1938_v55 = vsub.f32 1.0, %v1937_v16  ;;  %v1758_v63 = vpop.f32.mrf.mxu3 }
 0x345   :  { %v4388_v28 = vpop.eup %4387 }
 0x346   :  { %v1939_v25 = vmul.f32 %v4386_v62, %v1938_v55  ;;  %v1952_v54 = vmul.f32 %v4388_v28, %v1934_v53  ;;  %vm1957_vm13 = vweird.f32 %v4388_v28  ;;  %v1718_v55 = vpop.f32.mrf.mxu1 }
 0x347   :  { %vm1958_vm3 = vmor %vm1956_vm14, %vm1957_vm13 }
 0x348   :  { %v1940_v24 = vadd.f32 %v4386_v62, %v1939_v25  ;;  %v4390_v20 = vpop.eup %4389  ;;  %v1953_v0 = vsub.f32 1.0, %v1952_v54  ;;  %v1719_v54 = vadd.f32 %v1718_v55, %v1698_v22 }
 0x349   :  { %v1967_v8 = vmul.f32 %v4390_v20, %v7446_v40  ;;  %vm1972_vm0 = vweird.f32 %v4390_v20 }
 0x34a   :  { %v1954_v6 = vmul.f32 %v4388_v28, %v1953_v0  ;;  %v1944_v16 = vsel %vm7451_vm12, %v4386_v62, %v1940_v24  ;;  %v1841_v47 = vadd.f32 %v1719_v54, %v6212_v30  ;;  %v4392_v0 = vpop.eup %4391  ;;  %v1738_v62 = vpop.f32.mrf.mxu2  ;;  %vm1973_vm5 = vmor %vm1971_vm1, %vm1972_vm0 }
 0x34b   :  { %v1968_v25 = vsub.f32 1.0, %v1967_v8  ;;  %v1949_v38 = vsel %vm1946_vm15, %v1948_v7, %v1944_v16  ;;  %v1759_v22 = vadd.f32 %v1758_v63, %v1738_v62  ;;  %v10623_v7 = vld [vmem:[#allocation99_spill] sm:$0xff] }
 0x34c   :  { %v1955_v14 = vadd.f32 %v4388_v28, %v1954_v6  ;;  %v4262_v52 = vmul.f32 -1.442695, %v1841_v47  ;;  %v1983_v8 = vmul.f32 %v4392_v0, %v1949_v38  ;;  %v1975_v47 = vand.u32 2147483647, %v7446_v40  ;;  %v10625_v0 = vld [vmem:[#allocation103_spill] sm:$0xff] }
 0x34d   :  { %v1969_v33 = vmul.f32 %v4390_v20, %v1968_v25  ;;  %v1842_v13 = vadd.f32 %v1759_v22, %v6223_v60 }
 0x34e   :  { %v1959_v36 = vsel %vm1958_vm3, %v4388_v28, %v1955_v14  ;;  %4393 = vpow2.f32 %v4262_v52  ;;  %v1977_v28 = vand.u32 2147483648, %v7446_v40  ;;  %vm1976_vm2 = vcmp.eq.f32.partialorder %v1975_v47, 8.507059e+37  ;;  %v10626_v52 = vld [vmem:[#allocation190_spill] sm:$0xff]  ;;  %v10629_v47 = vld [vmem:[#allocation108_spill] sm:$0xff] }
 0x34f   :  { %v1964_v10 = vsel %vm1961_vm4, %v1963_v51, %v1959_v36  ;;  %v1970_v1 = vadd.f32 %v4390_v20, %v1969_v33  ;;  %v4263_v51 = vmul.f32 -1.442695, %v1842_v13  ;;  %v10624_v36 = vld [vmem:[#allocation100_spill] sm:$0xff] }
 0x350   :  { %v1982_v24 = vmul.f32 %v1964_v10, %v6728_v23  ;;  %v1978_v38 = vor.u32 1.1754944e-38, %v1977_v28 }
 0x351   :  { %v1974_v23 = vsel %vm1973_vm5, %v4390_v20, %v1970_v1  ;;  %v10622_v20 = vld [vmem:[#allocation96_spill] sm:$0xff] }
 0x352   :  { %v7459_v53 = vadd.f32 %v1983_v8, %v1982_v24  ;;  %v1979_v33 = vsel %vm1976_vm2, %v1978_v38, %v1974_v23  ;;  %v10627_v24 = vld [vmem:[#allocation104_spill] sm:$0xff]  ;;  %v10628_v8 = vld [vmem:[#allocation107_spill] sm:$0xff]  ;;  %v1818_v22 = vpop.f32.mrf.mxu2 }
 0x353   :  { %v10632_v38 = vld [vmem:[#allocation115_spill] sm:$0xff] }
 0x354   :  { %4395 = vtanh.f32 %v7459_v53  ;;  %v4394_v10 = vpop.eup %4393 }
 0x355   :  { %4397 = vpow2.f32 %v4263_v51  ;;  %v7468_v59 = vadd.f32 1.0, %v4394_v10  ;;  %v10630_v51 = vld [vmem:[#allocation111_spill] sm:$0xff]  ;;  %v10631_v10 = vld [vmem:[#allocation112_spill] sm:$0xff] }
 0x357   :  { %4399 = vrcp.f32 %v7468_v59  ;;  %vm1862_vm8 = vweird.f32 %v7468_v59 }
 0x35a   :  { %v4396_v6 = vpop.eup %4395 }
 0x35b   :  { %v7466_v16 = vmul.f32 %v4396_v6, %v1979_v33  ;;  %v4398_v55 = vpop.eup %4397  ;;  %v10633_v6 = vld [vmem:[#allocation191_spill] sm:$0xff] }
 0x35c   :  { %v7472_v25 = vadd.f32 1.0, %v4398_v55 }
 0x35d   :  { %2003 = vmatmul.f32.vlgmr.msra.gmra.mxu0 %v7466_v16  ;;  %2043 = vmatmul.f32.vlgmr.msra.gmra.mxu2 %v7466_v16  ;;  %v7484_v40 = vpop.eup %4399 }
 0x35e   :  { %2147 = vmatpush.msra.mxu0 %v6741_v34  ;;  %2187 = vmatpush.msra.mxu2 %v6744_v42  ;;  %4401 = vrcp.f32 %v7472_v25  ;;  %v10619_v42 = vld [vmem:[#allocation91_spill] sm:$0xff]  ;;  %vm1863_vm6 = vweird.f32 %v7484_v40  ;;  %vm1877_vm9 = vweird.f32 %v7472_v25 }
 0x35f   :  { %vm7522_vm10 = vmor %vm1862_vm8, %vm1863_vm6 }
 0x360   :  { %2148 = vmatpush.msra.mxu0 %v6750_v35  ;;  %2188 = vmatpush.msra.mxu2 %v6753_v26  ;;  %v1858_v35 = vmul.f32 %v7484_v40, %v7468_v59 }
 0x362   :  { %2149 = vmatpush.msra.mxu0 %v6757_v29  ;;  %2189 = vmatpush.msra.mxu2 %v6760_v5  ;;  %v10620_v29 = vld [vmem:[#allocation92_spill] sm:$0xff]  ;;  %v10621_v5 = vld [vmem:[#allocation95_spill] sm:$0xff] }
 0x364   :  { %2150 = vmatpush.msra.mxu0 %v6763_v49  ;;  %2190 = vmatpush.msra.mxu2 %v6766_v31  ;;  %v7488_v34 = vpop.eup %4401  ;;  %v1778_v49 = vpop.f32.mrf.mxu0 }
 0x365   :  { %2083 = vmatmul.f32.vlgmr.msrb.gmra.mxu0 %v7466_v16  ;;  %2123 = vmatmul.f32.vlgmr.msrb.gmra.mxu2 %v7466_v16  ;;  %v1873_v26 = vmul.f32 %v7488_v34, %v7472_v25  ;;  %v1798_v31 = vpop.f32.mrf.mxu1  ;;  %v1838_v13 = vpop.f32.mrf.mxu3  ;;  %vm1878_vm7 = vweird.f32 %v7488_v34 }
 0x366   :  { %2151 = vmatpush.msra.mxu0 %v6773_v56  ;;  %2191 = vmatpush.msra.mxu2 %v10619_v42  ;;  %v1799_v54 = vadd.f32 %v1798_v31, %v1778_v49  ;;  %v1859_v56 = vsub.f32 1.0, %v1858_v35  ;;  %v1839_v23 = vadd.f32 %v1838_v13, %v1818_v22  ;;  %v10634_v35 = vld [vmem:[#allocation116_spill] sm:$0xff]  ;;  %v1866_v31 = vand.u32 2147483647, %v7468_v59  ;;  %vm7532_vm11 = vmor %vm1877_vm9, %vm1878_vm7  ;;  %v10645_v13 = vld [vmem:[#allocation131_spill] sm:$0xff] }
 0x367   :  { %v1874_v14 = vsub.f32 1.0, %v1873_v26  ;;  %v10635_v26 = vld [vmem:[#allocation119_spill] sm:$0xff] }
 0x368   :  { %2152 = vmatpush.msra.mxu0 %v10620_v29  ;;  %2192 = vmatpush.msra.mxu2 %v10621_v5  ;;  %v1843_v62 = vadd.f32 %v1799_v54, %v10626_v52  ;;  %v1860_v28 = vmul.f32 %v7484_v40, %v1859_v56  ;;  %v1844_v33 = vadd.f32 %v1839_v23, %v10633_v6  ;;  %v1883_v29 = vand.u32 2147483648, %v7472_v25  ;;  %v10639_v54 = vld [vmem:[#allocation123_spill] sm:$0xff] }
 0x369   :  { %v1875_v1 = vmul.f32 %v7488_v34, %v1874_v14  ;;  %v1868_v5 = vand.u32 2147483648, %v7468_v59  ;;  %vm1867_vm12 = vcmp.eq.f32.partialorder %v1866_v31, 8.507059e+37  ;;  %v7648_v14 = vld [vmem:[#allocation3 + $0x5a0] sm:$0xff] }
 0x36a   :  { %2153 = vmatpush.msra.mxu0 %v10622_v20  ;;  %2193 = vmatpush.msra.mxu2 %v10623_v7  ;;  %v4264_v63 = vmul.f32 -1.442695, %v1843_v62  ;;  %v1861_v55 = vadd.f32 %v7484_v40, %v1860_v28  ;;  %v1881_v20 = vand.u32 2147483647, %v7472_v25  ;;  %v10638_v7 = vld [vmem:[#allocation120_spill] sm:$0xff]  ;;  %v1884_v62 = vor.u32 1.1754944e-38, %v1883_v29 }
 0x36b   :  { %v1876_v42 = vadd.f32 %v7488_v34, %v1875_v1  ;;  %v10642_v25 = vld [vmem:[#allocation124_spill] sm:$0xff] }
 0x36c   :  { %2154 = vmatpush.msra.mxu0 %v10624_v36  ;;  %2194 = vmatpush.msra.mxu2 %v10625_v0  ;;  %4403 = vpow2.f32 %v4264_v63  ;;  %v1865_v0 = vsel %vm7522_vm10, %v7484_v40, %v1861_v55  ;;  %vm1882_vm13 = vcmp.eq.f32.partialorder %v1881_v20, 8.507059e+37  ;;  %v10644_v1 = vld [vmem:[#allocation128_spill] sm:$0xff]  ;;  %v7574_v20 = vld [vmem:[#allocation3 + $0x7e0] sm:$0xff] }
 0x36d   :  { %4405 = vtanh.f32 %v1844_v33  ;;  %v1880_v59 = vsel %vm7532_vm11, %v7488_v34, %v1876_v42  ;;  %v10643_v34 = vld [vmem:[#allocation127_spill] sm:$0xff]  ;;  %v10646_v28 = vld [vmem:[#allocation132_spill] sm:$0xff]  ;;  %v10651_v33 = vld [vmem:[#allocation141_spill] sm:$0xff] }
 0x36e   :  { %2155 = vmatpush.msra.mxu0 %v10627_v24  ;;  %2195 = vmatpush.msra.mxu2 %v10628_v8  ;;  %v1869_v24 = vor.u32 1.1754944e-38, %v1868_v5  ;;  %v1885_v40 = vsel %vm1882_vm13, %v1884_v62, %v1880_v59  ;;  %v7659_v59 = vld [vmem:[#allocation3 + $0x568] sm:$0xff]  ;;  %v7664_v62 = vld [vmem:[#allocation3 + $0x520] sm:$0xff] }
 0x370   :  { %2156 = vmatpush.msra.mxu0 %v10629_v47  ;;  %2196 = vmatpush.msra.mxu2 %v10630_v51  ;;  %v1870_v63 = vsel %vm1867_vm12, %v1869_v24, %v1865_v0  ;;  %v7656_v0 = vld [vmem:[#allocation3 + $0x560] sm:$0xff]  ;;  %v7667_v24 = vld [vmem:[#allocation3 + $0x528] sm:$0xff] }
 0x372   :  { %2157 = vmatpush.msra.mxu0 %v10631_v10  ;;  %2197 = vmatpush.msra.mxu2 %v10632_v38  ;;  %v4404_v56 = vpop.eup %4403  ;;  %v10650_v38 = vld [vmem:[#allocation138_spill] sm:$0xff] }
 0x373   :  { %v1856_v36 = vadd.f32 1.0, %v4404_v56  ;;  %v4406_v8 = vpop.eup %4405  ;;  %v7625_v56 = vld [vmem:[#allocation3 + $0x668] sm:$0xff] }
 0x374   :  { %2158 = vmatpush.msra.mxu0 %v10634_v35  ;;  %2198 = vmatpush.msra.mxu2 %v10635_v26  ;;  %v1904_v22 = vmul.f32 %v4406_v8, %v1870_v63  ;;  %v10652_v35 = vld [vmem:[#allocation142_spill] sm:$0xff]  ;;  %v10653_v26 = vld [vmem:[#allocation145_spill] sm:$0xff]  ;;  %v10660_v8 = vld [vmem:[#allocation55_spill] sm:$0xff] }
 0x375   :  { %4407 = vrcp.f32 %v1856_v36  ;;  %v1898_v51 = vand.u32 2147483648, %v1856_v36  ;;  %v1896_v10 = vand.u32 2147483647, %v1856_v36  ;;  %vm1892_vm15 = vweird.f32 %v1856_v36  ;;  %v10661_v63 = vld [vmem:[#allocation56_spill] sm:$0xff] }
 0x376   :  { %2159 = vmatpush.msra.mxu0 %v10638_v7  ;;  %2199 = vmatpush.msra.mxu2 %v10639_v54  ;;  %v7577_v7 = vld [vmem:[#allocation3 + $0x7e8] sm:$0xff]  ;;  %v7622_v54 = vld [vmem:[#allocation3 + $0x660] sm:$0xff] }
 0x377   :  { %v1899_v42 = vor.u32 1.1754944e-38, %v1898_v51  ;;  %vm1897_vm4 = vcmp.eq.f32.partialorder %v1896_v10, 8.507059e+37  ;;  %v10667_v51 = vld [vmem:[#allocation165_spill] sm:$0xff]  ;;  %v7707_v10 = vld [vmem:[#allocation3 + $0x7f8] sm:$0xff] }
 0x378   :  { %2160 = vmatpush.msra.mxu0 %v10642_v25  ;;  %2200 = vmatpush.msra.mxu2 %v6862_v2  ;;  %v1903_v2 = vmul.f32 %v1885_v40, %v6898_v17  ;;  %v10648_v17 = vld [vmem:[#allocation136_spill] sm:$0xff]  ;;  %v10659_v25 = vld [vmem:[#allocation157_spill] sm:$0xff]  ;;  %10670 = vst [vmem:[#allocation70_spill] sm:$0xff] %v7707_v10 }
 0x379   :  { %v7672_v40 = vld [vmem:[#allocation3 + $0x4e0] sm:$0xff] }
 0x37a   :  { %2161 = vmatpush.msra.mxu0 %v6871_v43  ;;  %2201 = vmatpush.msra.mxu2 %v6874_v21  ;;  %v7553_v21 = vadd.f32 %v1904_v22, %v1903_v2  ;;  %v7675_v22 = vld [vmem:[#allocation3 + $0x4e8] sm:$0xff] }
 0x37b   :  { %v4408_v43 = vpop.eup %4407  ;;  %v10662_v2 = vld [vmem:[#allocation158_spill] sm:$0xff] }
 0x37c   :  { %2162 = vmatpush.msra.mxu0 %v6877_v37  ;;  %2202 = vmatpush.msra.mxu2 %v6880_v32  ;;  %v1888_v37 = vmul.f32 %v4408_v43, %v1856_v36  ;;  %v10647_v32 = vld [vmem:[#allocation135_spill] sm:$0xff]  ;;  %4409 = vtanh.f32 %v7553_v21  ;;  %vm1893_vm14 = vweird.f32 %v4408_v43  ;;  %v10657_v36 = vld [vmem:[#allocation153_spill] sm:$0xff] }
 0x37d   :  { %2163 = vmatmul.f32.vlgmr.msra.gmra.mxu0 %v7466_v16  ;;  %2203 = vmatmul.f32.vlgmr.msra.gmra.mxu2 %v7466_v16  ;;  %vm1894_vm3 = vmor %vm1892_vm15, %vm1893_vm14 }
 0x37e   :  { %2227 = vmatpush.msrb.mxu0 %v6885_v45  ;;  %2267 = vmatpush.msrb.mxu2 %v10643_v34  ;;  %v1889_v47 = vsub.f32 1.0, %v1888_v37  ;;  %v10649_v45 = vld [vmem:[#allocation137_spill] sm:$0xff]  ;;  %v10665_v37 = vld [vmem:[#allocation60_spill] sm:$0xff] }
 0x37f   :  { %v10663_v34 = vld [vmem:[#allocation161_spill] sm:$0xff] }
 0x380   :  { %2228 = vmatpush.msrb.mxu0 %v10644_v1  ;;  %2268 = vmatpush.msrb.mxu2 %v10645_v13  ;;  %v1890_v23 = vmul.f32 %v4408_v43, %v1889_v47  ;;  %v7683_v1 = vld [vmem:[#allocation3 + $0x4a8] sm:$0xff]  ;;  %v10664_v13 = vld [vmem:[#allocation59_spill] sm:$0xff] }
 0x381   :  { %v10666_v47 = vld [vmem:[#allocation162_spill] sm:$0xff] }
 0x382   :  { %2229 = vmatpush.msrb.mxu0 %v10646_v28  ;;  %2269 = vmatpush.msrb.mxu2 %v10647_v32  ;;  %v1891_v55 = vadd.f32 %v4408_v43, %v1890_v23  ;;  %v4410_v5 = vpop.eup %4409  ;;  %v7688_v28 = vld [vmem:[#allocation3 + $0x460] sm:$0xff]  ;;  %v7691_v32 = vld [vmem:[#allocation3 + $0x468] sm:$0xff]  ;;  %v7704_v23 = vld [vmem:[#allocation3 + $0x7f0] sm:$0xff] }
 0x383   :  { %10669 = vst [vmem:[#allocation69_spill] sm:$0xff] %v7704_v23 }
 0x384   :  { %2230 = vmatpush.msrb.mxu0 %v10648_v17  ;;  %2270 = vmatpush.msrb.mxu2 %v10649_v45  ;;  %v1895_v29 = vsel %vm1894_vm3, %v4408_v43, %v1891_v55  ;;  %v7680_v43 = vld [vmem:[#allocation3 + $0x4a0] sm:$0xff]  ;;  %v7699_v45 = vld [vmem:[#allocation3 + $0x428] sm:$0xff]  ;;  %v7712_v55 = vld [vmem:[#allocation3 + $0x7b0] sm:$0xff] }
 0x385   :  { %v1900_v49 = vsel %vm1897_vm4, %v1899_v42, %v1895_v29  ;;  %v7696_v17 = vld [vmem:[#allocation3 + $0x420] sm:$0xff]  ;;  %10668 = vst [vmem:[#allocation66_spill] sm:$0xff] %v7699_v45  ;;  %v7715_v42 = vld [vmem:[#allocation3 + $0x7b8] sm:$0xff]  ;;  %v7720_v29 = vld [vmem:[#allocation3 + $0x770] sm:$0xff] }
 0x386   :  { %2231 = vmatpush.msrb.mxu0 %v10650_v38  ;;  %2271 = vmatpush.msrb.mxu2 %v10651_v33  ;;  %v7568_v31 = vmul.f32 %v4410_v5, %v1900_v49  ;;  %v10671_v38 = vld [vmem:[#allocation63_spill] sm:$0xff]  ;;  %v10672_v33 = vld [vmem:[#allocation64_spill] sm:$0xff]  ;;  %10673 = vst [vmem:[#allocation75_spill] sm:$0xff] %v7712_v55 }
 0x387   :  { %10674 = vst [vmem:[#allocation76_spill] sm:$0xff] %v7715_v42  ;;  %v7723_v5 = vld [vmem:[#allocation3 + $0x778] sm:$0xff]  ;;  %v10679_v49 = vld [vmem:[#allocation67_spill] sm:$0xff] }
 0x388   :  { %2232 = vmatpush.msrb.mxu0 %v10652_v35  ;;  %2272 = vmatpush.msrb.mxu2 %v10653_v26  ;;  %v10675_v35 = vld [vmem:[#allocation166_spill] sm:$0xff]  ;;  %v10676_v26 = vld [vmem:[#allocation169_spill] sm:$0xff]  ;;  %10677 = vst [vmem:[#allocation79_spill] sm:$0xff] %v7720_v29 }
 0x389   :  { %2023 = vmatmul.f32.vlgmr.msra.gmra.mxu1 %v7568_v31  ;;  %2063 = vmatmul.f32.vlgmr.msra.gmra.mxu3 %v7568_v31  ;;  %10678 = vst [vmem:[#allocation21_spill] sm:$0xff] %v7723_v5 }
 0x38a   :  { %2233 = vmatpush.msrb.mxu0 %v6925_v11  ;;  %2273 = vmatpush.msrb.mxu2 %v6928_v15  ;;  %v7582_v11 = vld [vmem:[#allocation3 + $0x7a0] sm:$0xff]  ;;  %v7585_v15 = vld [vmem:[#allocation3 + $0x7a8] sm:$0xff] }
 0x38b   :  { %2167 = vmatpush.msra.mxu1 %v7574_v20  ;;  %2207 = vmatpush.msra.mxu3 %v7577_v7 }
 0x38c   :  { %2234 = vmatpush.msrb.mxu0 %v6933_v46  ;;  %2274 = vmatpush.msrb.mxu2 %v6936_v9  ;;  %v7590_v46 = vld [vmem:[#allocation3 + $0x760] sm:$0xff]  ;;  %v7593_v9 = vld [vmem:[#allocation3 + $0x768] sm:$0xff] }
 0x38d   :  { %2168 = vmatpush.msra.mxu1 %v7582_v11  ;;  %2208 = vmatpush.msra.mxu3 %v7585_v15 }
 0x38e   :  { %2235 = vmatpush.msrb.mxu0 %v6943_v18  ;;  %2275 = vmatpush.msrb.mxu2 %v6946_v50  ;;  %v7598_v18 = vld [vmem:[#allocation3 + $0x720] sm:$0xff]  ;;  %v7601_v50 = vld [vmem:[#allocation3 + $0x728] sm:$0xff] }
 0x38f   :  { %2169 = vmatpush.msra.mxu1 %v7590_v46  ;;  %2209 = vmatpush.msra.mxu3 %v7593_v9 }
 0x390   :  { %2236 = vmatpush.msrb.mxu0 %v6951_v4  ;;  %2276 = vmatpush.msrb.mxu2 %v6954_v27  ;;  %v7606_v4 = vld [vmem:[#allocation3 + $0x6e0] sm:$0xff]  ;;  %v7609_v27 = vld [vmem:[#allocation3 + $0x6e8] sm:$0xff] }
 0x391   :  { %2170 = vmatpush.msra.mxu1 %v7598_v18  ;;  %2210 = vmatpush.msra.mxu3 %v7601_v50 }
 0x392   :  { %2237 = vmatpush.msrb.mxu0 %v6959_v41  ;;  %2277 = vmatpush.msrb.mxu2 %v6962_v44  ;;  %v7614_v41 = vld [vmem:[#allocation3 + $0x6a0] sm:$0xff]  ;;  %v7617_v44 = vld [vmem:[#allocation3 + $0x6a8] sm:$0xff] }
 0x393   :  { %2103 = vmatmul.f32.vlgmr.msrb.gmra.mxu1 %v7568_v31  ;;  %2143 = vmatmul.f32.vlgmr.msrb.gmra.mxu3 %v7568_v31 }
 0x394   :  { %2171 = vmatpush.msra.mxu1 %v7606_v4  ;;  %2211 = vmatpush.msra.mxu3 %v7609_v27 }
 0x395   :  { %2238 = vmatpush.msrb.mxu0 %v6971_v57  ;;  %2278 = vmatpush.msrb.mxu2 %v6974_v58  ;;  %v7630_v57 = vld [vmem:[#allocation3 + $0x620] sm:$0xff]  ;;  %v7633_v58 = vld [vmem:[#allocation3 + $0x628] sm:$0xff] }
 0x396   :  { %2172 = vmatpush.msra.mxu1 %v7614_v41  ;;  %2212 = vmatpush.msra.mxu3 %v7617_v44 }
 0x397   :  { %2239 = vmatpush.msrb.mxu0 %v6979_v19  ;;  %2279 = vmatpush.msrb.mxu2 %v6982_v3  ;;  %v7638_v19 = vld [vmem:[#allocation3 + $0x5e0] sm:$0xff]  ;;  %v7641_v3 = vld [vmem:[#allocation3 + $0x5e8] sm:$0xff] }
 0x398   :  { %2173 = vmatpush.msra.mxu1 %v7622_v54  ;;  %2213 = vmatpush.msra.mxu3 %v7625_v56 }
 0x399   :  { %2240 = vmatpush.msrb.mxu0 %v6987_v12  ;;  %2280 = vmatpush.msrb.mxu2 %v6990_v39  ;;  %v10654_v12 = vld [vmem:[#allocation146_spill] sm:$0xff]  ;;  %v10655_v39 = vld [vmem:[#allocation149_spill] sm:$0xff] }
 0x39a   :  { %2174 = vmatpush.msra.mxu1 %v7630_v57  ;;  %2214 = vmatpush.msra.mxu3 %v7633_v58 }
 0x39b   :  { %2241 = vmatpush.msrb.mxu0 %v6995_v48  ;;  %2281 = vmatpush.msrb.mxu2 %v6998_v61  ;;  %v7651_v48 = vld [vmem:[#allocation3 + $0x5a8] sm:$0xff] }
 0x39c   :  { %2175 = vmatpush.msra.mxu1 %v7638_v19  ;;  %2215 = vmatpush.msra.mxu3 %v7641_v3  ;;  %v10656_v61 = vld [vmem:[#allocation150_spill] sm:$0xff] }
 0x39d   :  { %2242 = vmatpush.msrb.mxu0 %v10654_v12  ;;  %2282 = vmatpush.msrb.mxu2 %v10655_v39  ;;  %v10680_v12 = vld [vmem:[#allocation68_spill] sm:$0xff]  ;;  %v7728_v39 = vld [vmem:[#allocation3 + $0x730] sm:$0xff] }
 0x39e   :  { %2243 = vmatmul.f32.vlgmr.msrb.gmra.mxu0 %v7466_v16  ;;  %2283 = vmatmul.f32.vlgmr.msrb.gmra.mxu2 %v7466_v16  ;;  %v10658_v16 = vld [vmem:[#allocation154_spill] sm:$0xff]  ;;  %10681 = vst [vmem:[#allocation80_spill] sm:$0xff] %v7728_v39 }
 0x39f   :  { %2176 = vmatpush.msra.mxu1 %v7648_v14  ;;  %2216 = vmatpush.msra.mxu3 %v7651_v48 }
 0x3a0   :  { %2453 = vmatpush.msra.mxu0 %v10656_v61  ;;  %2493 = vmatpush.msra.mxu2 %v10657_v36  ;;  %v7731_v61 = vld [vmem:[#allocation3 + $0x738] sm:$0xff]  ;;  %v10683_v36 = vld [vmem:[#allocation170_spill] sm:$0xff] }
 0x3a1   :  { %2177 = vmatpush.msra.mxu1 %v7656_v0  ;;  %2217 = vmatpush.msra.mxu3 %v7659_v59  ;;  %10682 = vst [vmem:[#allocation22_spill] sm:$0xff] %v7731_v61 }
 0x3a2   :  { %2454 = vmatpush.msra.mxu0 %v10658_v16  ;;  %2494 = vmatpush.msra.mxu2 %v10659_v25  ;;  %v10684_v16 = vld [vmem:[#allocation173_spill] sm:$0xff]  ;;  %v7736_v25 = vld [vmem:[#allocation3 + $0x6f0] sm:$0xff] }
 0x3a3   :  { %2178 = vmatpush.msra.mxu1 %v7664_v62  ;;  %2218 = vmatpush.msra.mxu3 %v7667_v24  ;;  %10685 = vst [vmem:[#allocation23_spill] sm:$0xff] %v7736_v25 }
 0x3a4   :  { %2455 = vmatpush.msra.mxu0 %v10660_v8  ;;  %2495 = vmatpush.msra.mxu2 %v10661_v63  ;;  %v7739_v8 = vld [vmem:[#allocation3 + $0x6f8] sm:$0xff]  ;;  %v10687_v63 = vld [vmem:[#allocation71_spill] sm:$0xff] }
 0x3a5   :  { %2179 = vmatpush.msra.mxu1 %v7672_v40  ;;  %2219 = vmatpush.msra.mxu3 %v7675_v22  ;;  %10686 = vst [vmem:[#allocation24_spill] sm:$0xff] %v7739_v8 }
 0x3a6   :  { %2456 = vmatpush.msra.mxu0 %v10662_v2  ;;  %2496 = vmatpush.msra.mxu2 %v10663_v34  ;;  %v10688_v2 = vld [vmem:[#allocation72_spill] sm:$0xff]  ;;  %v7744_v34 = vld [vmem:[#allocation3 + $0x6b0] sm:$0xff] }
 0x3a7   :  { %2180 = vmatpush.msra.mxu1 %v7680_v43  ;;  %2220 = vmatpush.msra.mxu3 %v7683_v1  ;;  %10689 = vst [vmem:[#allocation91_spill] sm:$0xff] %v7744_v34 }
 0x3a8   :  { %2457 = vmatpush.msra.mxu0 %v10664_v13  ;;  %2497 = vmatpush.msra.mxu2 %v10665_v37  ;;  %v7747_v13 = vld [vmem:[#allocation3 + $0x6b8] sm:$0xff]  ;;  %v10691_v37 = vld [vmem:[#allocation174_spill] sm:$0xff] }
 0x3a9   :  { %2181 = vmatpush.msra.mxu1 %v7688_v28  ;;  %2221 = vmatpush.msra.mxu3 %v7691_v32  ;;  %10690 = vst [vmem:[#allocation92_spill] sm:$0xff] %v7747_v13 }
 0x3aa   :  { %2458 = vmatpush.msra.mxu0 %v10666_v47  ;;  %2498 = vmatpush.msra.mxu2 %v10667_v51  ;;  %v10692_v47 = vld [vmem:[#allocation177_spill] sm:$0xff]  ;;  %v7752_v51 = vld [vmem:[#allocation3 + $0x670] sm:$0xff] }
 0x3ab   :  { %2182 = vmatpush.msra.mxu1 %v7696_v17  ;;  %2222 = vmatpush.msra.mxu3 %v7699_v45  ;;  %10693 = vst [vmem:[#allocation95_spill] sm:$0xff] %v7752_v51 }
 0x3ac   :  { %2183 = vmatmul.f32.vlgmr.msra.gmra.mxu1 %v7568_v31  ;;  %2223 = vmatmul.f32.vlgmr.msra.gmra.mxu3 %v7568_v31 }
 0x3ad   :  { %2247 = vmatpush.msrb.mxu1 %v7704_v23  ;;  %2287 = vmatpush.msrb.mxu3 %v7707_v10 }
 0x3ae   :  { %2459 = vmatpush.msra.mxu0 %v10671_v38  ;;  %2499 = vmatpush.msra.mxu2 %v10672_v33  ;;  %v7755_v38 = vld [vmem:[#allocation3 + $0x678] sm:$0xff]  ;;  %v10695_v33 = vld [vmem:[#allocation73_spill] sm:$0xff] }
 0x3af   :  { %2248 = vmatpush.msrb.mxu1 %v7712_v55  ;;  %2288 = vmatpush.msrb.mxu3 %v7715_v42  ;;  %10694 = vst [vmem:[#allocation96_spill] sm:$0xff] %v7755_v38 }
 0x3b0   :  { %2460 = vmatpush.msra.mxu0 %v10675_v35  ;;  %2500 = vmatpush.msra.mxu2 %v10676_v26  ;;  %v10696_v35 = vld [vmem:[#allocation74_spill] sm:$0xff]  ;;  %v7760_v26 = vld [vmem:[#allocation3 + $0x630] sm:$0xff] }
 0x3b1   :  { %2249 = vmatpush.msrb.mxu1 %v7720_v29  ;;  %2289 = vmatpush.msrb.mxu3 %v7723_v5  ;;  %10697 = vst [vmem:[#allocation99_spill] sm:$0xff] %v7760_v26 }
 0x3b2   :  { %2461 = vmatpush.msra.mxu0 %v10679_v49  ;;  %2501 = vmatpush.msra.mxu2 %v10680_v12  ;;  %v7763_v49 = vld [vmem:[#allocation3 + $0x638] sm:$0xff]  ;;  %v10699_v12 = vld [vmem:[#allocation178_spill] sm:$0xff] }
 0x3b3   :  { %2250 = vmatpush.msrb.mxu1 %v7728_v39  ;;  %2290 = vmatpush.msrb.mxu3 %v7731_v61  ;;  %10698 = vst [vmem:[#allocation100_spill] sm:$0xff] %v7763_v49 }
 0x3b4   :  { %2462 = vmatpush.msra.mxu0 %v10683_v36  ;;  %2502 = vmatpush.msra.mxu2 %v10684_v16  ;;  %v10700_v36 = vld [vmem:[#allocation180_spill] sm:$0xff]  ;;  %v7768_v16 = vld [vmem:[#allocation3 + $0x5f0] sm:$0xff] }
 0x3b5   :  { %2251 = vmatpush.msrb.mxu1 %v7736_v25  ;;  %2291 = vmatpush.msrb.mxu3 %v7739_v8  ;;  %10701 = vst [vmem:[#allocation103_spill] sm:$0xff] %v7768_v16 }
 0x3b6   :  { %2463 = vmatpush.msra.mxu0 %v10687_v63  ;;  %2503 = vmatpush.msra.mxu2 %v10688_v2  ;;  %v7771_v63 = vld [vmem:[#allocation3 + $0x5f8] sm:$0xff]  ;;  %v10703_v2 = vld [vmem:[#allocation77_spill] sm:$0xff] }
 0x3b7   :  { %2252 = vmatpush.msrb.mxu1 %v7744_v34  ;;  %2292 = vmatpush.msrb.mxu3 %v7747_v13  ;;  %10702 = vst [vmem:[#allocation104_spill] sm:$0xff] %v7771_v63 }
 0x3b8   :  { %2464 = vmatpush.msra.mxu0 %v10691_v37  ;;  %2504 = vmatpush.msra.mxu2 %v10692_v47  ;;  %v10704_v37 = vld [vmem:[#allocation78_spill] sm:$0xff]  ;;  %v7776_v47 = vld [vmem:[#allocation3 + $0x5b0] sm:$0xff] }
 0x3b9   :  { %2253 = vmatpush.msrb.mxu1 %v7752_v51  ;;  %2293 = vmatpush.msrb.mxu3 %v7755_v38  ;;  %10705 = vst [vmem:[#allocation107_spill] sm:$0xff] %v7776_v47 }
 0x3ba   :  { %2465 = vmatpush.msra.mxu0 %v10695_v33  ;;  %2505 = vmatpush.msra.mxu2 %v10696_v35  ;;  %v7779_v33 = vld [vmem:[#allocation3 + $0x5b8] sm:$0xff]  ;;  %v10707_v35 = vld [vmem:[#allocation181_spill] sm:$0xff] }
 0x3bb   :  { %2254 = vmatpush.msrb.mxu1 %v7760_v26  ;;  %2294 = vmatpush.msrb.mxu3 %v7763_v49  ;;  %10706 = vst [vmem:[#allocation108_spill] sm:$0xff] %v7779_v33  ;;  %v10740_v49 = vld [vmem:[#allocation105_spill] sm:$0xff] }
 0x3bc   :  { %2466 = vmatpush.msra.mxu0 %v10699_v12  ;;  %2506 = vmatpush.msra.mxu2 %v10700_v36  ;;  %v10708_v12 = vld [vmem:[#allocation182_spill] sm:$0xff]  ;;  %v7784_v36 = vld [vmem:[#allocation3 + $0x570] sm:$0xff] }
 0x3bd   :  { %2255 = vmatpush.msrb.mxu1 %v7768_v16  ;;  %2295 = vmatpush.msrb.mxu3 %v7771_v63  ;;  %10709 = vst [vmem:[#allocation111_spill] sm:$0xff] %v7784_v36  ;;  %v7787_v63 = vld [vmem:[#allocation3 + $0x578] sm:$0xff]  ;;  %v10738_v16 = vld [vmem:[#allocation101_spill] sm:$0xff] }
 0x3be   :  { %2467 = vmatpush.msra.mxu0 %v10703_v2  ;;  %2507 = vmatpush.msra.mxu2 %v10704_v37  ;;  %10710 = vst [vmem:[#allocation112_spill] sm:$0xff] %v7787_v63  ;;  %v10711_v2 = vld [vmem:[#allocation81_spill] sm:$0xff]  ;;  %v10712_v37 = vld [vmem:[#allocation82_spill] sm:$0xff] }
 0x3bf   :  { %2256 = vmatpush.msrb.mxu1 %v7776_v47  ;;  %2296 = vmatpush.msrb.mxu3 %v7779_v33  ;;  %v7792_v47 = vld [vmem:[#allocation3 + $0x530] sm:$0xff]  ;;  %v7795_v33 = vld [vmem:[#allocation3 + $0x538] sm:$0xff] }
 0x3c0   :  { %2468 = vmatpush.msra.mxu0 %v10707_v35  ;;  %2508 = vmatpush.msra.mxu2 %v10708_v12  ;;  %10713 = vst [vmem:[#allocation115_spill] sm:$0xff] %v7792_v47  ;;  %v10715_v35 = vld [vmem:[#allocation183_spill] sm:$0xff]  ;;  %v10716_v12 = vld [vmem:[#allocation184_spill] sm:$0xff] }
 0x3c1   :  { %2257 = vmatpush.msrb.mxu1 %v7784_v36  ;;  %2297 = vmatpush.msrb.mxu3 %v7787_v63  ;;  %10714 = vst [vmem:[#allocation116_spill] sm:$0xff] %v7795_v33  ;;  %v7800_v36 = vld [vmem:[#allocation3 + $0x4f0] sm:$0xff]  ;;  %v7803_v63 = vld [vmem:[#allocation3 + $0x4f8] sm:$0xff] }
 0x3c2   :  { %2533 = vmatpush.msrb.mxu0 %v10711_v2  ;;  %2573 = vmatpush.msrb.mxu2 %v10712_v37  ;;  %10717 = vst [vmem:[#allocation119_spill] sm:$0xff] %v7800_v36  ;;  %v10719_v2 = vld [vmem:[#allocation85_spill] sm:$0xff]  ;;  %v10720_v37 = vld [vmem:[#allocation86_spill] sm:$0xff] }
 0x3c3   :  { %2258 = vmatpush.msrb.mxu1 %v7792_v47  ;;  %2298 = vmatpush.msrb.mxu3 %v7795_v33  ;;  %10718 = vst [vmem:[#allocation120_spill] sm:$0xff] %v7803_v63  ;;  %v7808_v47 = vld [vmem:[#allocation3 + $0x4b0] sm:$0xff]  ;;  %v7811_v33 = vld [vmem:[#allocation3 + $0x4b8] sm:$0xff] }
 0x3c4   :  { %2534 = vmatpush.msrb.mxu0 %v10715_v35  ;;  %2574 = vmatpush.msrb.mxu2 %v10716_v12  ;;  %10721 = vst [vmem:[#allocation123_spill] sm:$0xff] %v7808_v47  ;;  %v10723_v35 = vld [vmem:[#allocation185_spill] sm:$0xff]  ;;  %v10724_v12 = vld [vmem:[#allocation186_spill] sm:$0xff] }
 0x3c5   :  { %2259 = vmatpush.msrb.mxu1 %v7800_v36  ;;  %2299 = vmatpush.msrb.mxu3 %v7803_v63  ;;  %10722 = vst [vmem:[#allocation124_spill] sm:$0xff] %v7811_v33  ;;  %v7816_v36 = vld [vmem:[#allocation3 + $0x470] sm:$0xff]  ;;  %v7819_v63 = vld [vmem:[#allocation3 + $0x478] sm:$0xff] }
 0x3c6   :  { %2535 = vmatpush.msrb.mxu0 %v10719_v2  ;;  %2575 = vmatpush.msrb.mxu2 %v10720_v37  ;;  %10725 = vst [vmem:[#allocation127_spill] sm:$0xff] %v7816_v36  ;;  %v10727_v2 = vld [vmem:[#allocation89_spill] sm:$0xff]  ;;  %v10728_v37 = vld [vmem:[#allocation90_spill] sm:$0xff] }
 0x3c7   :  { %2260 = vmatpush.msrb.mxu1 %v7808_v47  ;;  %2300 = vmatpush.msrb.mxu3 %v7811_v33  ;;  %10726 = vst [vmem:[#allocation128_spill] sm:$0xff] %v7819_v63  ;;  %v7824_v47 = vld [vmem:[#allocation3 + $0x430] sm:$0xff]  ;;  %v7827_v33 = vld [vmem:[#allocation3 + $0x438] sm:$0xff] }
 0x3c8   :  { %2536 = vmatpush.msrb.mxu0 %v10723_v35  ;;  %2576 = vmatpush.msrb.mxu2 %v10724_v12  ;;  %10729 = vst [vmem:[#allocation131_spill] sm:$0xff] %v7824_v47  ;;  %v10731_v35 = vld [vmem:[#allocation187_spill] sm:$0xff]  ;;  %v10732_v12 = vld [vmem:[#allocation188_spill] sm:$0xff] }
 0x3c9   :  { %2261 = vmatpush.msrb.mxu1 %v7816_v36  ;;  %2301 = vmatpush.msrb.mxu3 %v7819_v63  ;;  %10730 = vst [vmem:[#allocation132_spill] sm:$0xff] %v7827_v33  ;;  %v10733_v63 = vld [vmem:[#allocation93_spill] sm:$0xff] }
 0x3ca   :  { %2537 = vmatpush.msrb.mxu0 %v10727_v2  ;;  %2577 = vmatpush.msrb.mxu2 %v10728_v37  ;;  %v10734_v2 = vld [vmem:[#allocation94_spill] sm:$0xff]  ;;  %v10735_v37 = vld [vmem:[#allocation189_spill] sm:$0xff] }
 0x3cb   :  { %2262 = vmatpush.msrb.mxu1 %v7824_v47  ;;  %2302 = vmatpush.msrb.mxu3 %v7827_v33  ;;  %v10736_v36 = vld [vmem:[#allocation97_spill] sm:$0xff]  ;;  %v10737_v47 = vld [vmem:[#allocation98_spill] sm:$0xff] }
 0x3cc   :  { %2263 = vmatmul.f32.vlgmr.msrb.gmra.mxu1 %v7568_v31  ;;  %2303 = vmatmul.f32.vlgmr.msrb.gmra.mxu3 %v7568_v31  ;;  %v10739_v33 = vld [vmem:[#allocation102_spill] sm:$0xff] }
 0x3cd   :  { %2538 = vmatpush.msrb.mxu0 %v10731_v35  ;;  %2578 = vmatpush.msrb.mxu2 %v10732_v12  ;;  %v10741_v31 = vld [vmem:[#allocation106_spill] sm:$0xff]  ;;  %v10742_v35 = vld [vmem:[#allocation109_spill] sm:$0xff] }
 0x3ce   :  { %2473 = vmatpush.msra.mxu1 %v10733_v63  ;;  %2513 = vmatpush.msra.mxu3 %v10734_v2  ;;  %v10743_v12 = vld [vmem:[#allocation110_spill] sm:$0xff]  ;;  %v10744_v63 = vld [vmem:[#allocation113_spill] sm:$0xff] }
 0x3cf   :  { %2539 = vmatpush.msrb.mxu0 %v10735_v37  ;;  %2579 = vmatpush.msrb.mxu2 %v10736_v36  ;;  %v10745_v2 = vld [vmem:[#allocation114_spill] sm:$0xff]  ;;  %v10746_v37 = vld [vmem:[#allocation117_spill] sm:$0xff] }
 0x3d0   :  { %2474 = vmatpush.msra.mxu1 %v10737_v47  ;;  %2514 = vmatpush.msra.mxu3 %v10738_v16  ;;  %v10747_v36 = vld [vmem:[#allocation118_spill] sm:$0xff]  ;;  %v10748_v47 = vld [vmem:[#allocation121_spill] sm:$0xff] }
 0x3d1   :  { %2540 = vmatpush.msrb.mxu0 %v10739_v33  ;;  %2580 = vmatpush.msrb.mxu2 %v10740_v49  ;;  %v10749_v16 = vld [vmem:[#allocation122_spill] sm:$0xff]  ;;  %v10750_v33 = vld [vmem:[#allocation125_spill] sm:$0xff] }
 0x3d2   :  { %2475 = vmatpush.msra.mxu1 %v10741_v31  ;;  %2515 = vmatpush.msra.mxu3 %v10742_v35  ;;  %v10751_v49 = vld [vmem:[#allocation126_spill] sm:$0xff]  ;;  %v10752_v31 = vld [vmem:[#allocation129_spill] sm:$0xff] }
 0x3d3   :  { %2541 = vmatpush.msrb.mxu0 %v10743_v12  ;;  %2581 = vmatpush.msrb.mxu2 %v10744_v63  ;;  %v10753_v35 = vld [vmem:[#allocation130_spill] sm:$0xff]  ;;  %v10754_v12 = vld [vmem:[#allocation133_spill] sm:$0xff] }
 0x3d4   :  { %2476 = vmatpush.msra.mxu1 %v10745_v2  ;;  %2516 = vmatpush.msra.mxu3 %v10746_v37  ;;  %v10755_v63 = vld [vmem:[#allocation134_spill] sm:$0xff]  ;;  %v10756_v2 = vld [vmem:[#allocation139_spill] sm:$0xff]  ;;  %v10757_v37 = vld [vmem:[#allocation140_spill] sm:$0xff] }
 0x3d5   :  { %2542 = vmatpush.msrb.mxu0 %v10747_v36  ;;  %2582 = vmatpush.msrb.mxu2 %v10748_v47  ;;  %v10758_v36 = vld [vmem:[#allocation143_spill] sm:$0xff]  ;;  %v10759_v47 = vld [vmem:[#allocation144_spill] sm:$0xff] }
 0x3d6   :  { %2477 = vmatpush.msra.mxu1 %v10749_v16  ;;  %2517 = vmatpush.msra.mxu3 %v10750_v33  ;;  %v10760_v16 = vld [vmem:[#allocation147_spill] sm:$0xff]  ;;  %v10761_v33 = vld [vmem:[#allocation148_spill] sm:$0xff] }
 0x3d7   :  { %2543 = vmatpush.msrb.mxu0 %v10751_v49  ;;  %2583 = vmatpush.msrb.mxu2 %v10752_v31  ;;  %v10762_v49 = vld [vmem:[#allocation151_spill] sm:$0xff]  ;;  %v10763_v31 = vld [vmem:[#allocation152_spill] sm:$0xff] }
 0x3d8   :  { %2478 = vmatpush.msra.mxu1 %v10753_v35  ;;  %2518 = vmatpush.msra.mxu3 %v10754_v12  ;;  %v10764_v35 = vld [vmem:[#allocation155_spill] sm:$0xff]  ;;  %v10765_v12 = vld [vmem:[#allocation156_spill] sm:$0xff] }
 0x3d9   :  { %2544 = vmatpush.msrb.mxu0 %v10755_v63  ;;  %2584 = vmatpush.msrb.mxu2 %v10756_v2  ;;  %v10766_v63 = vld [vmem:[#allocation159_spill] sm:$0xff]  ;;  %v10767_v2 = vld [vmem:[#allocation160_spill] sm:$0xff] }
 0x3da   :  { %2479 = vmatpush.msra.mxu1 %v10757_v37  ;;  %2519 = vmatpush.msra.mxu3 %v10758_v36  ;;  %v10768_v37 = vld [vmem:[#allocation163_spill] sm:$0xff]  ;;  %v10769_v36 = vld [vmem:[#allocation164_spill] sm:$0xff] }
 0x3db   :  { %2545 = vmatpush.msrb.mxu0 %v10759_v47  ;;  %2585 = vmatpush.msrb.mxu2 %v10760_v16  ;;  %v10770_v47 = vld [vmem:[#allocation167_spill] sm:$0xff]  ;;  %v10771_v16 = vld [vmem:[#allocation168_spill] sm:$0xff] }
 0x3dc   :  { %2480 = vmatpush.msra.mxu1 %v10761_v33  ;;  %2520 = vmatpush.msra.mxu3 %v10762_v49  ;;  %v10772_v33 = vld [vmem:[#allocation171_spill] sm:$0xff]  ;;  %v10773_v49 = vld [vmem:[#allocation172_spill] sm:$0xff] }
 0x3dd   :  { %2546 = vmatpush.msrb.mxu0 %v10763_v31  ;;  %2586 = vmatpush.msrb.mxu2 %v10764_v35  ;;  %v10774_v31 = vld [vmem:[#allocation175_spill] sm:$0xff]  ;;  %v10775_v35 = vld [vmem:[#allocation176_spill] sm:$0xff] }
 0x3de   :  { %2481 = vmatpush.msra.mxu1 %v10765_v12  ;;  %2521 = vmatpush.msra.mxu3 %v10766_v63  ;;  %v10776_v12 = vld [vmem:[#allocation17_spill] sm:$0xff]  ;;  %v10777_v63 = vld [vmem:[#allocation179_spill] sm:$0xff] }
 0x3df   :  { %2547 = vmatpush.msrb.mxu0 %v10767_v2  ;;  %2587 = vmatpush.msrb.mxu2 %v10768_v37  ;;  %v10778_v2 = vld [vmem:[#allocation18_spill] sm:$0xff]  ;;  %v10779_v37 = vld [vmem:[#allocation19_spill] sm:$0xff] }
 0x3e0   :  { %2482 = vmatpush.msra.mxu1 %v10769_v36  ;;  %2522 = vmatpush.msra.mxu3 %v10770_v47  ;;  %v10780_v36 = vld [vmem:[#allocation10_spill] sm:$0xff]  ;;  %v10781_v47 = vld [vmem:[#allocation11_spill] sm:$0xff] }
 0x3e1   :  { %2548 = vmatpush.msrb.mxu0 %v10771_v16  ;;  %2588 = vmatpush.msrb.mxu2 %v10772_v33  ;;  %v10782_v16 = vld [vmem:[#allocation12_spill] sm:$0xff]  ;;  %v10783_v33 = vld [vmem:[#allocation9_spill] sm:$0xff] }
 0x3e2   :  { %2483 = vmatpush.msra.mxu1 %v10773_v49  ;;  %2523 = vmatpush.msra.mxu3 %v10774_v31  ;;  %v10784_v49 = vld [vmem:[#allocation13_spill] sm:$0xff]  ;;  %v10785_v31 = vld [vmem:[#allocation14_spill] sm:$0xff] }
 0x3e4   :  { %2484 = vmatpush.msra.mxu1 %v10775_v35  ;;  %2524 = vmatpush.msra.mxu3 %v10776_v12  ;;  %v10786_v35 = vld [vmem:[#allocation15_spill] sm:$0xff]  ;;  %v10787_v12 = vld [vmem:[#allocation16_spill] sm:$0xff] }
 0x3e6   :  { %2485 = vmatpush.msra.mxu1 %v10777_v63  ;;  %2525 = vmatpush.msra.mxu3 %v10778_v2  ;;  %v10788_v63 = vld [vmem:[#allocation20_spill] sm:$0xff]  ;;  %v10789_v2 = vld [vmem:[#allocation29_spill] sm:$0xff] }
 0x3e8   :  { %2486 = vmatpush.msra.mxu1 %v10779_v37  ;;  %2526 = vmatpush.msra.mxu3 %v10780_v36  ;;  %v10790_v37 = vld [vmem:[#allocation30_spill] sm:$0xff]  ;;  %v10791_v36 = vld [vmem:[#allocation31_spill] sm:$0xff] }
 0x3ea   :  { %2487 = vmatpush.msra.mxu1 %v10781_v47  ;;  %2527 = vmatpush.msra.mxu3 %v10782_v16  ;;  %v10792_v47 = vld [vmem:[#allocation32_spill] sm:$0xff]  ;;  %v10793_v16 = vld [vmem:[#allocation37_spill] sm:$0xff] }
 0x3ec   :  { %2488 = vmatpush.msra.mxu1 %v10783_v33  ;;  %2528 = vmatpush.msra.mxu3 %v10784_v49  ;;  %v10794_v33 = vld [vmem:[#allocation38_spill] sm:$0xff]  ;;  %v10795_v49 = vld [vmem:[#allocation39_spill] sm:$0xff] }
 0x3ee   :  { %2553 = vmatpush.msrb.mxu1 %v10785_v31  ;;  %2593 = vmatpush.msrb.mxu3 %v10786_v35  ;;  %v10796_v31 = vld [vmem:[#allocation40_spill] sm:$0xff]  ;;  %v10797_v35 = vld [vmem:[#allocation41_spill] sm:$0xff] }
 0x3f0   :  { %2554 = vmatpush.msrb.mxu1 %v10787_v12  ;;  %2594 = vmatpush.msrb.mxu3 %v10788_v63  ;;  %v10798_v12 = vld [vmem:[#allocation42_spill] sm:$0xff]  ;;  %v10799_v63 = vld [vmem:[#allocation43_spill] sm:$0xff] }
 0x3f2   :  { %2555 = vmatpush.msrb.mxu1 %v10789_v2  ;;  %2595 = vmatpush.msrb.mxu3 %v10790_v37  ;;  %v10800_v2 = vld [vmem:[#allocation44_spill] sm:$0xff]  ;;  %v10801_v37 = vld [vmem:[#allocation45_spill] sm:$0xff] }
 0x3f4   :  { %2556 = vmatpush.msrb.mxu1 %v10791_v36  ;;  %2596 = vmatpush.msrb.mxu3 %v10792_v47  ;;  %v10802_v36 = vld [vmem:[#allocation46_spill] sm:$0xff]  ;;  %v10803_v47 = vld [vmem:[#allocation47_spill] sm:$0xff] }
 0x3f6   :  { %2557 = vmatpush.msrb.mxu1 %v10793_v16  ;;  %2597 = vmatpush.msrb.mxu3 %v10794_v33  ;;  %v10804_v16 = vld [vmem:[#allocation48_spill] sm:$0xff]  ;;  %v10805_v33 = vld [vmem:[#allocation49_spill] sm:$0xff] }
 0x3f8   :  { %2558 = vmatpush.msrb.mxu1 %v10795_v49  ;;  %2598 = vmatpush.msrb.mxu3 %v10796_v31  ;;  %v10806_v49 = vld [vmem:[#allocation50_spill] sm:$0xff]  ;;  %v10807_v31 = vld [vmem:[#allocation51_spill] sm:$0xff] }
 0x3fa   :  { %2559 = vmatpush.msrb.mxu1 %v10797_v35  ;;  %2599 = vmatpush.msrb.mxu3 %v10798_v12  ;;  %v10808_v35 = vld [vmem:[#allocation52_spill] sm:$0xff]  ;;  %v10809_v12 = vld [vmem:[#allocation53_spill] sm:$0xff] }
 0x3fc   :  { %2560 = vmatpush.msrb.mxu1 %v10799_v63  ;;  %2600 = vmatpush.msrb.mxu3 %v10800_v2  ;;  %v10810_v63 = vld [vmem:[#allocation54_spill] sm:$0xff]  ;;  %v2004_v2 = vpop.f32.mrf.mxu0 }
 0x3fe   :  { %2561 = vmatpush.msrb.mxu1 %v10801_v37  ;;  %2601 = vmatpush.msrb.mxu3 %v10802_v36  ;;  %v10811_v37 = vld [vmem:[#allocation57_spill] sm:$0xff]  ;;  %v10812_v36 = vld [vmem:[#allocation58_spill] sm:$0xff] }
 0x400   :  { %2562 = vmatpush.msrb.mxu1 %v10803_v47  ;;  %2602 = vmatpush.msrb.mxu3 %v10804_v16  ;;  %v10813_v16 = vld [vmem:[#allocation61_spill] sm:$0xff] }
 0x402   :  { %2563 = vmatpush.msrb.mxu1 %v10805_v33  ;;  %2603 = vmatpush.msrb.mxu3 %v10806_v49  ;;  %v10814_v33 = vld [vmem:[#allocation62_spill] sm:$0xff]  ;;  %v10815_v49 = vld [vmem:[#allocation25_spill] sm:$0xff] }
 0x404   :  { %2564 = vmatpush.msrb.mxu1 %v10807_v31  ;;  %2604 = vmatpush.msrb.mxu3 %v10808_v35  ;;  %v10816_v31 = vld [vmem:[#allocation65_spill] sm:$0xff]  ;;  %v7918_v35 = vld [vmem:[#allocation3 + $0x418] sm:$0xff] }
 0x405   :  { %10817 = vst [vmem:[#allocation135_spill] sm:$0xff] %v7918_v35 }
 0x406   :  { %2565 = vmatpush.msrb.mxu1 %v10809_v12  ;;  %2605 = vmatpush.msrb.mxu3 %v10810_v63  ;;  %v2024_v47 = vpop.f32.mrf.mxu1  ;;  %v2044_v63 = vpop.f32.mrf.mxu2 }
 0x407   :  { %v2025_v26 = vadd.f32 %v2024_v47, %v2004_v2  ;;  %v10818_v2 = vld [vmem:[#allocation26_spill] sm:$0xff] }
 0x408   :  { %2566 = vmatpush.msrb.mxu1 %v10811_v37  ;;  %2606 = vmatpush.msrb.mxu3 %v10812_v36  ;;  %v2084_v36 = vpop.f32.mrf.mxu0 }
 0x409   :  { %v2386_v38 = vadd.f32 %v10815_v49, %v2025_v26 }
 0x40a   :  { %2567 = vmatpush.msrb.mxu1 %v10813_v16  ;;  %2607 = vmatpush.msrb.mxu3 %v10814_v33  ;;  %v10819_v33 = vld [vmem:[#allocation27_spill] sm:$0xff] }
 0x40b   :  { %v4271_v12 = vmul.f32 -1.442695, %v2386_v38 }
 0x40c   :  { %2568 = vmatpush.msrb.mxu1 %v10816_v31  ;;  %2608 = vmatpush.msrb.mxu3 %v7918_v35  ;;  %v2064_v51 = vpop.f32.mrf.mxu3 }
 0x40d   :  { %4411 = vpow2.f32 %v4271_v12  ;;  %v2065_v37 = vadd.f32 %v2064_v51, %v2044_v63 }
 0x40e   :  { %v2124_v63 = vpop.f32.mrf.mxu2 }
 0x40f   :  { %v2387_v47 = vadd.f32 %v10818_v2, %v2065_v37 }
 0x410   :  { %v2104_v13 = vpop.f32.mrf.mxu1 }
 0x411   :  { %v2105_v16 = vadd.f32 %v2104_v13, %v2084_v36  ;;  %v4272_v34 = vmul.f32 -1.442695, %v2387_v47 }
 0x413   :  { %v2388_v8 = vadd.f32 %v10819_v33, %v2105_v16  ;;  %v4412_v26 = vpop.eup %4411  ;;  %4413 = vpow2.f32 %v4272_v34 }
 0x414   :  { %v2399_v31 = vadd.f32 1.0, %v4412_v26 }
 0x415   :  { %v4273_v49 = vmul.f32 -1.442695, %v2388_v8  ;;  %v10820_v8 = vld [vmem:[#allocation28_spill] sm:$0xff] }
 0x416   :  { %v2144_v61 = vpop.f32.mrf.mxu3  ;;  %v2413_v26 = vand.u32 2147483648, %v2399_v31  ;;  %vm2407_vm1 = vweird.f32 %v2399_v31 }
 0x417   :  { %4415 = vpow2.f32 %v4273_v49  ;;  %v2145_v13 = vadd.f32 %v2144_v61, %v2124_v63  ;;  %v2164_v61 = vpop.f32.mrf.mxu0 }
 0x418   :  { %4417 = vrcp.f32 %v2399_v31 }
 0x419   :  { %v4414_v35 = vpop.eup %4413  ;;  %v2389_v47 = vadd.f32 %v10820_v8, %v2145_v13  ;;  %v2414_v8 = vor.u32 1.1754944e-38, %v2413_v26 }
 0x41a   :  { %v2400_v38 = vadd.f32 1.0, %v4414_v35 }
 0x41c   :  { %4419 = vrcp.f32 %v2400_v38  ;;  %v2428_v5 = vand.u32 2147483648, %v2400_v38  ;;  %v2426_v13 = vand.u32 2147483647, %v2400_v38  ;;  %vm2422_vm6 = vweird.f32 %v2400_v38 }
 0x41d   :  { %v4416_v25 = vpop.eup %4415 }
 0x41e   :  { %v4418_v12 = vpop.eup %4417  ;;  %v7923_v51 = vadd.f32 1.0, %v4416_v25  ;;  %v2411_v25 = vand.u32 2147483647, %v2399_v31  ;;  %v2429_v42 = vor.u32 1.1754944e-38, %v2428_v5  ;;  %vm2427_vm9 = vcmp.eq.f32.partialorder %v2426_v13, 8.507059e+37 }
 0x41f   :  { %v2403_v37 = vmul.f32 %v4418_v12, %v2399_v31  ;;  %vm2408_vm0 = vweird.f32 %v4418_v12 }
 0x420   :  { %4421 = vrcp.f32 %v7923_v51  ;;  %vm7928_vm5 = vmor %vm2407_vm1, %vm2408_vm0  ;;  %vm2412_vm7 = vcmp.eq.f32.partialorder %v2411_v25, 8.507059e+37  ;;  %vm2437_vm11 = vweird.f32 %v7923_v51 }
 0x421   :  { %v2404_v36 = vsub.f32 1.0, %v2403_v37  ;;  %4423 = vtanh.f32 %v2389_v47 }
 0x422   :  { %v4420_v34 = vpop.eup %4419 }
 0x423   :  { %v2405_v2 = vmul.f32 %v4418_v12, %v2404_v36  ;;  %v2418_v16 = vmul.f32 %v4420_v34, %v2400_v38  ;;  %vm2423_vm2 = vweird.f32 %v4420_v34 }
 0x424   :  { %vm2424_vm8 = vmor %vm2422_vm6, %vm2423_vm2 }
 0x425   :  { %v2406_v33 = vadd.f32 %v4418_v12, %v2405_v2  ;;  %v2419_v49 = vsub.f32 1.0, %v2418_v16 }
 0x426   :  { %v4422_v35 = vpop.eup %4421 }
 0x427   :  { %v2433_v39 = vmul.f32 %v4422_v35, %v7923_v51  ;;  %v2420_v63 = vmul.f32 %v4420_v34, %v2419_v49  ;;  %v2410_v37 = vsel %vm7928_vm5, %v4418_v12, %v2406_v33  ;;  %v4424_v49 = vpop.eup %4423  ;;  %v2204_v12 = vpop.f32.mrf.mxu2  ;;  %vm2438_vm10 = vweird.f32 %v4422_v35 }
 0x428   :  { %v2415_v55 = vsel %vm2412_vm7, %v2414_v8, %v2410_v37  ;;  %vm2439_vm12 = vmor %vm2437_vm11, %vm2438_vm10  ;;  %v7959_v8 = vld [vmem:[#allocation3 + $0x3a0] sm:$0xff] }
 0x429   :  { %v2184_v36 = vpop.f32.mrf.mxu1  ;;  %v2434_v2 = vsub.f32 1.0, %v2433_v39  ;;  %v2421_v31 = vadd.f32 %v4420_v34, %v2420_v63  ;;  %v2449_v39 = vmul.f32 %v4424_v49, %v2415_v55  ;;  %v7971_v49 = vld [vmem:[#allocation3 + $0x320] sm:$0xff] }
 0x42a   :  { %v2185_v16 = vadd.f32 %v2184_v36, %v2164_v61 }
 0x42b   :  { %v2425_v47 = vsel %vm2424_vm8, %v4420_v34, %v2421_v31  ;;  %v2435_v23 = vmul.f32 %v4422_v35, %v2434_v2  ;;  %v2443_v34 = vand.u32 2147483648, %v7923_v51  ;;  %v7965_v31 = vld [vmem:[#allocation3 + $0x360] sm:$0xff] }
 0x42c   :  { %v2307_v10 = vadd.f32 %v2185_v16, %v6212_v30  ;;  %v2430_v45 = vsel %vm2427_vm9, %v2429_v42, %v2425_v47  ;;  %v7962_v16 = vld [vmem:[#allocation3 + $0x3a8] sm:$0xff] }
 0x42d   :  { %v2448_v33 = vmul.f32 %v2430_v45, %v7459_v53  ;;  %v2436_v25 = vadd.f32 %v4422_v35, %v2435_v23  ;;  %v2444_v55 = vor.u32 1.1754944e-38, %v2443_v34  ;;  %v7968_v47 = vld [vmem:[#allocation3 + $0x368] sm:$0xff] }
 0x42e   :  { %v4268_v29 = vmul.f32 -1.442695, %v2307_v10  ;;  %v2441_v10 = vand.u32 2147483647, %v7923_v51  ;;  %v7951_v51 = vld [vmem:[#allocation3 + $0x3e0] sm:$0xff]  ;;  %v7996_v34 = vld [vmem:[#allocation3 + $0x2a8] sm:$0xff] }
 0x42f   :  { %v2224_v26 = vpop.f32.mrf.mxu3  ;;  %v7936_v38 = vadd.f32 %v2449_v39, %v2448_v33  ;;  %v2440_v53 = vsel %vm2439_vm12, %v4422_v35, %v2436_v25  ;;  %v7954_v35 = vld [vmem:[#allocation3 + $0x3e8] sm:$0xff]  ;;  %v7983_v39 = vld [vmem:[#allocation3 + $0x2e0] sm:$0xff]  ;;  %10825 = vst [vmem:[#allocation138_spill] sm:$0xff] %v7996_v34 }
 0x430   :  { %v2225_v61 = vadd.f32 %v2224_v26, %v2204_v12  ;;  %4425 = vpow2.f32 %v4268_v29  ;;  %vm2442_vm13 = vcmp.eq.f32.partialorder %v2441_v10, 8.507059e+37  ;;  %v7974_v29 = vld [vmem:[#allocation3 + $0x328] sm:$0xff]  ;;  %v2244_v10 = vpop.f32.mrf.mxu0 }
 0x431   :  { %4427 = vtanh.f32 %v7936_v38  ;;  %v2445_v23 = vsel %vm2442_vm13, %v2444_v55, %v2440_v53  ;;  %v7986_v26 = vld [vmem:[#allocation3 + $0x2e8] sm:$0xff]  ;;  %v7999_v53 = vld [vmem:[#allocation3 + $0x260] sm:$0xff] }
 0x432   :  { %v2308_v5 = vadd.f32 %v2225_v61, %v6223_v60  ;;  %10823 = vst [vmem:[#allocation136_spill] sm:$0xff] %v7986_v26 }
 0x433   :  { %10826 = vst [vmem:[#allocation141_spill] sm:$0xff] %v7999_v53 }
 0x434   :  { %v4269_v42 = vmul.f32 -1.442695, %v2308_v5  ;;  %v7993_v5 = vld [vmem:[#allocation3 + $0x2a0] sm:$0xff] }
 0x435   :  { %10824 = vst [vmem:[#allocation137_spill] sm:$0xff] %v7993_v5 }
 0x436   :  { %4429 = vpow2.f32 %v4269_v42  ;;  %v4426_v45 = vpop.eup %4425 }
 0x437   :  { %v4428_v63 = vpop.eup %4427  ;;  %v7945_v13 = vadd.f32 1.0, %v4426_v45  ;;  %v8002_v45 = vld [vmem:[#allocation3 + $0x268] sm:$0xff] }
 0x438   :  { %v7943_v37 = vmul.f32 %v4428_v63, %v2445_v23  ;;  %10827 = vst [vmem:[#allocation142_spill] sm:$0xff] %v8002_v45 }
 0x439   :  { %4431 = vrcp.f32 %v7945_v13  ;;  %vm2328_vm3 = vweird.f32 %v7945_v13 }
 0x43a   :  { %2469 = vmatmul.f32.vlgmr.msra.gmra.mxu0 %v7943_v37  ;;  %2509 = vmatmul.f32.vlgmr.msra.gmra.mxu2 %v7943_v37 }
 0x43b   :  { %2613 = vmatpush.msra.mxu0 %v7951_v51  ;;  %2653 = vmatpush.msra.mxu2 %v7954_v35 }
 0x43c   :  { %v4430_v36 = vpop.eup %4429 }
 0x43d   :  { %v7949_v2 = vadd.f32 1.0, %v4430_v36  ;;  %2614 = vmatpush.msra.mxu0 %v7959_v8  ;;  %2654 = vmatpush.msra.mxu2 %v7962_v16  ;;  %v8005_v36 = vld [vmem:[#allocation3 + $0x220] sm:$0xff] }
 0x43e   :  { %10828 = vst [vmem:[#allocation145_spill] sm:$0xff] %v8005_v36 }
 0x43f   :  { %4433 = vrcp.f32 %v7949_v2  ;;  %2615 = vmatpush.msra.mxu0 %v7965_v31  ;;  %2655 = vmatpush.msra.mxu2 %v7968_v47  ;;  %v7977_v12 = vpop.eup %4431  ;;  %vm2343_vm4 = vweird.f32 %v7949_v2 }
 0x440   :  { %v2324_v61 = vmul.f32 %v7977_v12, %v7945_v13  ;;  %vm2329_vm14 = vweird.f32 %v7977_v12 }
 0x441   :  { %2616 = vmatpush.msra.mxu0 %v7971_v49  ;;  %2656 = vmatpush.msra.mxu2 %v7974_v29  ;;  %vm8047_vm0 = vmor %vm2328_vm3, %vm2329_vm14 }
 0x442   :  { %2549 = vmatmul.f32.vlgmr.msrb.gmra.mxu0 %v7943_v37  ;;  %2589 = vmatmul.f32.vlgmr.msrb.gmra.mxu2 %v7943_v37  ;;  %v2325_v63 = vsub.f32 1.0, %v2324_v61 }
 0x443   :  { %2617 = vmatpush.msra.mxu0 %v7983_v39  ;;  %2657 = vmatpush.msra.mxu2 %v7986_v26  ;;  %v8012_v26 = vld [vmem:[#allocation3 + $0x1e0] sm:$0xff] }
 0x444   :  { %10829 = vst [vmem:[#allocation146_spill] sm:$0xff] %v8012_v26 }
 0x445   :  { %v7981_v33 = vpop.eup %4433  ;;  %2618 = vmatpush.msra.mxu0 %v7993_v5  ;;  %2658 = vmatpush.msra.mxu2 %v7996_v34  ;;  %v8008_v5 = vld [vmem:[#allocation3 + $0x228] sm:$0xff] }
 0x446   :  { %v2339_v25 = vmul.f32 %v7981_v33, %v7949_v2  ;;  %vm2344_vm15 = vweird.f32 %v7981_v33 }
 0x447   :  { %2619 = vmatpush.msra.mxu0 %v7999_v53  ;;  %2659 = vmatpush.msra.mxu2 %v8002_v45  ;;  %v8015_v53 = vld [vmem:[#allocation3 + $0x1e8] sm:$0xff]  ;;  %v8020_v45 = vld [vmem:[#allocation3 + $0x1a0] sm:$0xff]  ;;  %vm8061_vm1 = vmor %vm2343_vm4, %vm2344_vm15 }
 0x448   :  { %v2340_v23 = vsub.f32 1.0, %v2339_v25  ;;  %10830 = vst [vmem:[#allocation149_spill] sm:$0xff] %v8015_v53  ;;  %v2284_v25 = vpop.f32.mrf.mxu2 }
 0x449   :  { %v2264_v42 = vpop.f32.mrf.mxu1  ;;  %2620 = vmatpush.msra.mxu0 %v8005_v36  ;;  %2660 = vmatpush.msra.mxu2 %v8008_v5  ;;  %v2326_v36 = vmul.f32 %v7977_v12, %v2325_v63  ;;  %10831 = vst [vmem:[#allocation150_spill] sm:$0xff] %v8020_v45 }
 0x44a   :  { %v2265_v55 = vadd.f32 %v2264_v42, %v2244_v10  ;;  %v2341_v10 = vmul.f32 %v7981_v33, %v2340_v23 }
 0x44b   :  { %2621 = vmatpush.msra.mxu0 %v8012_v26  ;;  %2661 = vmatpush.msra.mxu2 %v8015_v53  ;;  %v2327_v23 = vadd.f32 %v7977_v12, %v2326_v36 }
 0x44c   :  { %v2309_v34 = vadd.f32 %v2265_v55, %v10626_v52  ;;  %v8023_v55 = vld [vmem:[#allocation3 + $0x1a8] sm:$0xff]  ;;  %v8026_v52 = vld [vmem:[#allocation3 + $0x160] sm:$0xff] }
 0x44d   :  { %2622 = vmatpush.msra.mxu0 %v8020_v45  ;;  %10832 = vst [vmem:[#allocation153_spill] sm:$0xff] %v8023_v55  ;;  %2662 = vmatpush.msra.mxu2 %v8023_v55  ;;  %v2342_v55 = vadd.f32 %v7981_v33, %v2341_v10  ;;  %v2332_v10 = vand.u32 2147483647, %v7945_v13 }
 0x44e   :  { %v4270_v61 = vmul.f32 -1.442695, %v2309_v34  ;;  %10833 = vst [vmem:[#allocation154_spill] sm:$0xff] %v8026_v52  ;;  %v8029_v34 = vld [vmem:[#allocation3 + $0x168] sm:$0xff] }
 0x44f   :  { %v2304_v42 = vpop.f32.mrf.mxu3  ;;  %2623 = vmatpush.msra.mxu0 %v8026_v52  ;;  %10834 = vst [vmem:[#allocation157_spill] sm:$0xff] %v8029_v34  ;;  %2663 = vmatpush.msra.mxu2 %v8029_v34  ;;  %vm2333_vm5 = vcmp.eq.f32.partialorder %v2332_v10, 8.507059e+37 }
 0x450   :  { %4435 = vpow2.f32 %v4270_v61  ;;  %v2305_v26 = vadd.f32 %v2304_v42, %v2284_v25  ;;  %v8037_v61 = vld [vmem:[#allocation3 + $0x120] sm:$0xff]  ;;  %v8040_v25 = vld [vmem:[#allocation3 + $0x128] sm:$0xff]  ;;  %v2349_v42 = vand.u32 2147483648, %v7949_v2 }
 0x451   :  { %10835 = vst [vmem:[#allocation55_spill] sm:$0xff] %v8037_v61  ;;  %2624 = vmatpush.msra.mxu0 %v8037_v61  ;;  %2664 = vmatpush.msra.mxu2 %v8040_v25  ;;  %v2347_v61 = vand.u32 2147483647, %v7949_v2  ;;  %v2346_v2 = vsel %vm8061_vm1, %v7981_v33, %v2342_v55 }
 0x452   :  { %v2310_v63 = vadd.f32 %v2305_v26, %v10633_v6  ;;  %10836 = vst [vmem:[#allocation56_spill] sm:$0xff] %v8040_v25  ;;  %v2334_v26 = vand.u32 2147483648, %v7945_v13  ;;  %v8053_v6 = vld [vmem:[#allocation3 + $0xe0] sm:$0xff]  ;;  %v8056_v25 = vld [vmem:[#allocation3 + $0xe8] sm:$0xff]  ;;  %v2331_v13 = vsel %vm8047_vm0, %v7977_v12, %v2327_v23  ;;  %v2350_v45 = vor.u32 1.1754944e-38, %v2349_v42 }
 0x453   :  { %10839 = vst [vmem:[#allocation158_spill] sm:$0xff] %v8053_v6  ;;  %2625 = vmatpush.msra.mxu0 %v8053_v6  ;;  %2665 = vmatpush.msra.mxu2 %v8056_v25  ;;  %v8073_v6 = vld [vmem:[#allocation3 + $0xa0] sm:$0xff]  ;;  %vm2348_vm2 = vcmp.eq.f32.partialorder %v2347_v61, 8.507059e+37  ;;  %v8083_v12 = vld [vmem:[#allocation3 + $0x68] sm:$0xff] }
 0x454   :  { %4437 = vtanh.f32 %v2310_v63  ;;  %10840 = vst [vmem:[#allocation161_spill] sm:$0xff] %v8056_v25  ;;  %v8076_v25 = vld [vmem:[#allocation3 + $0xa8] sm:$0xff]  ;;  %v2335_v53 = vor.u32 1.1754944e-38, %v2334_v26  ;;  %v2351_v23 = vsel %vm2348_vm2, %v2350_v45, %v2346_v2  ;;  %v8086_v63 = vld [vmem:[#allocation3 + $0x20] sm:$0xff]  ;;  %v8095_v26 = vld [vmem:[#allocation3 + $0x3f0] sm:$0xff] }
 0x455   :  { %2626 = vmatpush.msra.mxu0 %v8073_v6  ;;  %2666 = vmatpush.msra.mxu2 %v8076_v25  ;;  %v8089_v42 = vld [vmem:[#allocation3 + $0x28] sm:$0xff]  ;;  %v2369_v61 = vmul.f32 %v2351_v23, %v7553_v21  ;;  %10844 = vst [vmem:[#allocation60_spill] sm:$0xff] %v8095_v26  ;;  %v8106_v2 = vld [vmem:[#allocation3 + $0x3b8] sm:$0xff] }
 0x456   :  { %v4436_v34 = vpop.eup %4435  ;;  %v2336_v55 = vsel %vm2333_vm5, %v2335_v53, %v2331_v13  ;;  %10843 = vst [vmem:[#allocation59_spill] sm:$0xff] %v8089_v42  ;;  %v8098_v53 = vld [vmem:[#allocation3 + $0x3f8] sm:$0xff]  ;;  %v8103_v13 = vld [vmem:[#allocation3 + $0x3b0] sm:$0xff] }
 0x457   :  { %v8065_v52 = vadd.f32 1.0, %v4436_v34  ;;  %v8080_v34 = vld [vmem:[#allocation3 + $0x60] sm:$0xff]  ;;  %2667 = vmatpush.msra.mxu2 %v8083_v12  ;;  %10845 = vst [vmem:[#allocation162_spill] sm:$0xff] %v8098_v53 }
 0x458   :  { %2627 = vmatpush.msra.mxu0 %v8080_v34  ;;  %10847 = vst [vmem:[#allocation63_spill] sm:$0xff] %v8103_v13 }
 0x459   :  { %4439 = vrcp.f32 %v8065_v52  ;;  %2668 = vmatpush.msra.mxu2 %v8089_v42  ;;  %10848 = vst [vmem:[#allocation64_spill] sm:$0xff] %v8106_v2  ;;  %vm2358_vm7 = vweird.f32 %v8065_v52  ;;  %v8138_v42 = vld [vmem:[#allocation3 + $0x270] sm:$0xff] }
 0x45a   :  { %v4438_v33 = vpop.eup %4437  ;;  %2628 = vmatpush.msra.mxu0 %v8086_v63  ;;  %2669 = vmatmul.f32.vlgmr.msra.gmra.mxu2 %v7943_v37 }
 0x45b   :  { %v2370_v36 = vmul.f32 %v4438_v33, %v2336_v55  ;;  %2629 = vmatmul.f32.vlgmr.msra.gmra.mxu0 %v7943_v37  ;;  %2733 = vmatpush.msrb.mxu2 %v8098_v53  ;;  %v8110_v33 = vld [vmem:[#allocation3 + $0x370] sm:$0xff]  ;;  %v8113_v55 = vld [vmem:[#allocation3 + $0x378] sm:$0xff] }
 0x45c   :  { %2693 = vmatpush.msrb.mxu0 %v8095_v26  ;;  %10849 = vst [vmem:[#allocation166_spill] sm:$0xff] %v8110_v33  ;;  %v8125_v53 = vld [vmem:[#allocation3 + $0x2f0] sm:$0xff] }
 0x45d   :  { %v8101_v10 = vadd.f32 %v2370_v36, %v2369_v61  ;;  %2734 = vmatpush.msrb.mxu2 %v8106_v2  ;;  %10850 = vst [vmem:[#allocation169_spill] sm:$0xff] %v8113_v55  ;;  %v2364_v36 = vand.u32 2147483648, %v8065_v52  ;;  %v8118_v61 = vld [vmem:[#allocation3 + $0x330] sm:$0xff]  ;;  %v8121_v2 = vld [vmem:[#allocation3 + $0x338] sm:$0xff] }
 0x45e   :  { %2694 = vmatpush.msrb.mxu0 %v8103_v13  ;;  %10851 = vst [vmem:[#allocation67_spill] sm:$0xff] %v8118_v61  ;;  %v8132_v26 = vld [vmem:[#allocation3 + $0x2b0] sm:$0xff] }
 0x45f   :  { %v4440_v45 = vpop.eup %4439  ;;  %10846 = vst [vmem:[#allocation165_spill] sm:$0xff] %v8101_v10  ;;  %2735 = vmatpush.msrb.mxu2 %v8113_v55  ;;  %4441 = vtanh.f32 %v8101_v10 }
 0x460   :  { %v2354_v21 = vmul.f32 %v4440_v45, %v8065_v52  ;;  %2695 = vmatpush.msrb.mxu0 %v8110_v33  ;;  %10852 = vst [vmem:[#allocation68_spill] sm:$0xff] %v8121_v2  ;;  %vm2359_vm6 = vweird.f32 %v4440_v45  ;;  %v2362_v33 = vand.u32 2147483647, %v8065_v52 }
 0x461   :  { %2736 = vmatpush.msrb.mxu2 %v8121_v2  ;;  %10853 = vst [vmem:[#allocation170_spill] sm:$0xff] %v8125_v53  ;;  %vm2360_vm8 = vmor %vm2358_vm7, %vm2359_vm6 }
 0x462   :  { %v2355_v23 = vsub.f32 1.0, %v2354_v21  ;;  %2696 = vmatpush.msrb.mxu0 %v8118_v61  ;;  %v8128_v21 = vld [vmem:[#allocation3 + $0x2f8] sm:$0xff]  ;;  %v2365_v61 = vor.u32 1.1754944e-38, %v2364_v36  ;;  %10854 = vst [vmem:[#allocation173_spill] sm:$0xff] %v8132_v26  ;;  %vm2363_vm9 = vcmp.eq.f32.partialorder %v2362_v33, 8.507059e+37  ;;  %v8146_v36 = vld [vmem:[#allocation3 + $0x230] sm:$0xff] }
 0x463   :  { %2737 = vmatpush.msrb.mxu2 %v8128_v21  ;;  %v8289_v33 = vld [vmem:[#allocation3 + $0x208] sm:$0xff] }
 0x464   :  { %v2356_v13 = vmul.f32 %v4440_v45, %v2355_v23  ;;  %2697 = vmatpush.msrb.mxu0 %v8125_v53  ;;  %v8135_v23 = vld [vmem:[#allocation3 + $0x2b8] sm:$0xff]  ;;  %10878 = vst [vmem:[#allocation185_spill] sm:$0xff] %v8289_v33 }
 0x465   :  { %2738 = vmatpush.msrb.mxu2 %v8135_v23  ;;  %v4442_v53 = vpop.eup %4441 }
 0x466   :  { %v2357_v55 = vadd.f32 %v4440_v45, %v2356_v13  ;;  %2698 = vmatpush.msrb.mxu0 %v8132_v26  ;;  %v8141_v13 = vld [vmem:[#allocation3 + $0x278] sm:$0xff] }
 0x467   :  { %2739 = vmatpush.msrb.mxu2 %v8141_v13  ;;  %v8149_v26 = vld [vmem:[#allocation3 + $0x238] sm:$0xff] }
 0x468   :  { %v2361_v2 = vsel %vm2360_vm8, %v4440_v45, %v2357_v55  ;;  %2699 = vmatpush.msrb.mxu0 %v8138_v42  ;;  %v8156_v45 = vld [vmem:[#allocation3 + $0x1f0] sm:$0xff] }
 0x469   :  { %v2366_v10 = vsel %vm2363_vm9, %v2365_v61, %v2361_v2  ;;  %2740 = vmatpush.msrb.mxu2 %v8149_v26  ;;  %v8167_v2 = vld [vmem:[#allocation3 + $0x1b8] sm:$0xff]  ;;  %v10879_v55 = vld [vmem:[#allocation79_spill] sm:$0xff]  ;;  %v10880_v61 = vld [vmem:[#allocation21_spill] sm:$0xff] }
 0x46a   :  { %v8144_v52 = vmul.f32 %v4442_v53, %v2366_v10  ;;  %2700 = vmatpush.msrb.mxu0 %v8146_v36  ;;  %v8159_v53 = vld [vmem:[#allocation3 + $0x1f8] sm:$0xff]  ;;  %v8164_v10 = vld [vmem:[#allocation3 + $0x1b0] sm:$0xff] }
 0x46b   :  { %2741 = vmatpush.msrb.mxu2 %v8159_v53 }
 0x46c   :  { %2489 = vmatmul.f32.vlgmr.msra.gmra.mxu1 %v8144_v52  ;;  %2529 = vmatmul.f32.vlgmr.msra.gmra.mxu3 %v8144_v52 }
 0x46d   :  { %2633 = vmatpush.msra.mxu1 %v7574_v20  ;;  %2673 = vmatpush.msra.mxu3 %v7577_v7  ;;  %v8172_v20 = vld [vmem:[#allocation3 + $0x170] sm:$0xff]  ;;  %v8175_v7 = vld [vmem:[#allocation3 + $0x178] sm:$0xff] }
 0x46e   :  { %2701 = vmatpush.msrb.mxu0 %v8156_v45  ;;  %2742 = vmatpush.msrb.mxu2 %v8167_v2 }
 0x46f   :  { %2634 = vmatpush.msra.mxu1 %v7582_v11  ;;  %2674 = vmatpush.msra.mxu3 %v7585_v15  ;;  %v8184_v11 = vld [vmem:[#allocation3 + $0x130] sm:$0xff]  ;;  %v8187_v15 = vld [vmem:[#allocation3 + $0x138] sm:$0xff] }
 0x470   :  { %2702 = vmatpush.msrb.mxu0 %v8164_v10  ;;  %2743 = vmatpush.msrb.mxu2 %v8175_v7 }
 0x471   :  { %2635 = vmatpush.msra.mxu1 %v7590_v46  ;;  %2675 = vmatpush.msra.mxu3 %v7593_v9  ;;  %v8192_v46 = vld [vmem:[#allocation3 + $0xf0] sm:$0xff]  ;;  %v8195_v9 = vld [vmem:[#allocation3 + $0xf8] sm:$0xff] }
 0x472   :  { %2703 = vmatpush.msrb.mxu0 %v8172_v20  ;;  %2744 = vmatpush.msrb.mxu2 %v8187_v15 }
 0x473   :  { %2636 = vmatpush.msra.mxu1 %v7598_v18  ;;  %2676 = vmatpush.msra.mxu3 %v7601_v50  ;;  %v8200_v18 = vld [vmem:[#allocation3 + $0xb0] sm:$0xff]  ;;  %v8203_v50 = vld [vmem:[#allocation3 + $0xb8] sm:$0xff] }
 0x474   :  { %2569 = vmatmul.f32.vlgmr.msrb.gmra.mxu1 %v8144_v52  ;;  %2609 = vmatmul.f32.vlgmr.msrb.gmra.mxu3 %v8144_v52 }
 0x475   :  { %2637 = vmatpush.msra.mxu1 %v7606_v4  ;;  %2677 = vmatpush.msra.mxu3 %v7609_v27  ;;  %v8208_v4 = vld [vmem:[#allocation3 + $0x70] sm:$0xff]  ;;  %v8211_v27 = vld [vmem:[#allocation3 + $0x78] sm:$0xff] }
 0x476   :  { %2704 = vmatpush.msrb.mxu0 %v8184_v11  ;;  %2745 = vmatpush.msrb.mxu2 %v8195_v9  ;;  %10855 = vst [vmem:[#allocation71_spill] sm:$0xff] %v8211_v27 }
 0x477   :  { %2638 = vmatpush.msra.mxu1 %v7614_v41  ;;  %2678 = vmatpush.msra.mxu3 %v7617_v44  ;;  %v8216_v41 = vld [vmem:[#allocation3 + $0x30] sm:$0xff]  ;;  %v8219_v44 = vld [vmem:[#allocation3 + $0x38] sm:$0xff] }
 0x478   :  { %2705 = vmatpush.msrb.mxu0 %v8192_v46  ;;  %2746 = vmatpush.msrb.mxu2 %v8203_v50  ;;  %10856 = vst [vmem:[#allocation72_spill] sm:$0xff] %v8216_v41 }
 0x479   :  { %2639 = vmatpush.msra.mxu1 %v7622_v54  ;;  %2679 = vmatpush.msra.mxu3 %v7625_v56  ;;  %10857 = vst [vmem:[#allocation174_spill] sm:$0xff] %v8219_v44  ;;  %v8226_v54 = vld [vmem:[#allocation3 + $0x3c0] sm:$0xff]  ;;  %v8229_v56 = vld [vmem:[#allocation3 + $0x3c8] sm:$0xff] }
 0x47a   :  { %2706 = vmatpush.msrb.mxu0 %v8200_v18  ;;  %2747 = vmatpush.msrb.mxu2 %v8211_v27  ;;  %10858 = vst [vmem:[#allocation177_spill] sm:$0xff] %v8226_v54 }
 0x47b   :  { %2640 = vmatpush.msra.mxu1 %v7630_v57  ;;  %2680 = vmatpush.msra.mxu3 %v7633_v58  ;;  %10859 = vst [vmem:[#allocation73_spill] sm:$0xff] %v8229_v56  ;;  %v8234_v57 = vld [vmem:[#allocation3 + $0x380] sm:$0xff]  ;;  %v8237_v58 = vld [vmem:[#allocation3 + $0x388] sm:$0xff] }
 0x47c   :  { %2707 = vmatpush.msrb.mxu0 %v8208_v4  ;;  %2748 = vmatpush.msrb.mxu2 %v8219_v44  ;;  %10860 = vst [vmem:[#allocation74_spill] sm:$0xff] %v8234_v57 }
 0x47d   :  { %2641 = vmatpush.msra.mxu1 %v7638_v19  ;;  %2681 = vmatpush.msra.mxu3 %v7641_v3  ;;  %10861 = vst [vmem:[#allocation178_spill] sm:$0xff] %v8237_v58  ;;  %v8242_v19 = vld [vmem:[#allocation3 + $0x340] sm:$0xff]  ;;  %v8245_v3 = vld [vmem:[#allocation3 + $0x348] sm:$0xff] }
 0x47e   :  { %2708 = vmatpush.msrb.mxu0 %v8216_v41  ;;  %2749 = vmatmul.f32.vlgmr.msrb.gmra.mxu2 %v7943_v37  ;;  %10862 = vst [vmem:[#allocation180_spill] sm:$0xff] %v8242_v19 }
 0x47f   :  { %2709 = vmatmul.f32.vlgmr.msrb.gmra.mxu0 %v7943_v37  ;;  %2642 = vmatpush.msra.mxu1 %v7648_v14  ;;  %10863 = vst [vmem:[#allocation77_spill] sm:$0xff] %v8245_v3  ;;  %v8250_v14 = vld [vmem:[#allocation3 + $0x300] sm:$0xff] }
 0x480   :  { %2682 = vmatpush.msra.mxu3 %v7651_v48  ;;  %2919 = vmatpush.msra.mxu0 %v8226_v54  ;;  %10864 = vst [vmem:[#allocation78_spill] sm:$0xff] %v8250_v14  ;;  %v8253_v48 = vld [vmem:[#allocation3 + $0x308] sm:$0xff]  ;;  %v8286_v37 = vld [vmem:[#allocation3 + $0x200] sm:$0xff] }
 0x481   :  { %2959 = vmatpush.msra.mxu2 %v8229_v56  ;;  %2643 = vmatpush.msra.mxu1 %v7656_v0  ;;  %10865 = vst [vmem:[#allocation181_spill] sm:$0xff] %v8253_v48  ;;  %v8258_v0 = vld [vmem:[#allocation3 + $0x2c0] sm:$0xff] }
 0x482   :  { %2683 = vmatpush.msra.mxu3 %v7659_v59  ;;  %2920 = vmatpush.msra.mxu0 %v8234_v57  ;;  %10866 = vst [vmem:[#allocation182_spill] sm:$0xff] %v8258_v0  ;;  %v8261_v59 = vld [vmem:[#allocation3 + $0x2c8] sm:$0xff] }
 0x483   :  { %2960 = vmatpush.msra.mxu2 %v8237_v58  ;;  %2644 = vmatpush.msra.mxu1 %v7664_v62  ;;  %10867 = vst [vmem:[#allocation81_spill] sm:$0xff] %v8261_v59  ;;  %v8266_v62 = vld [vmem:[#allocation3 + $0x280] sm:$0xff] }
 0x484   :  { %2684 = vmatpush.msra.mxu3 %v7667_v24  ;;  %2921 = vmatpush.msra.mxu0 %v8242_v19  ;;  %10868 = vst [vmem:[#allocation82_spill] sm:$0xff] %v8266_v62  ;;  %v8269_v24 = vld [vmem:[#allocation3 + $0x288] sm:$0xff] }
 0x485   :  { %2961 = vmatpush.msra.mxu2 %v8245_v3  ;;  %2645 = vmatpush.msra.mxu1 %v7672_v40  ;;  %10869 = vst [vmem:[#allocation183_spill] sm:$0xff] %v8269_v24  ;;  %v10870_v40 = vld [vmem:[#allocation66_spill] sm:$0xff] }
 0x486   :  { %2685 = vmatpush.msra.mxu3 %v7675_v22  ;;  %2922 = vmatpush.msra.mxu0 %v8250_v14  ;;  %v10871_v22 = vld [vmem:[#allocation69_spill] sm:$0xff]  ;;  %10877 = vst [vmem:[#allocation86_spill] sm:$0xff] %v8286_v37 }
 0x487   :  { %2962 = vmatpush.msra.mxu2 %v8253_v48  ;;  %2646 = vmatpush.msra.mxu1 %v7680_v43  ;;  %v10872_v43 = vld [vmem:[#allocation70_spill] sm:$0xff] }
 0x488   :  { %2686 = vmatpush.msra.mxu3 %v7683_v1  ;;  %2923 = vmatpush.msra.mxu0 %v8258_v0  ;;  %v8278_v1 = vld [vmem:[#allocation3 + $0x240] sm:$0xff] }
 0x489   :  { %2963 = vmatpush.msra.mxu2 %v8261_v59  ;;  %2647 = vmatpush.msra.mxu1 %v7688_v28  ;;  %10873 = vst [vmem:[#allocation184_spill] sm:$0xff] %v8278_v1  ;;  %v8281_v28 = vld [vmem:[#allocation3 + $0x248] sm:$0xff] }
 0x48a   :  { %2687 = vmatpush.msra.mxu3 %v7691_v32  ;;  %2924 = vmatpush.msra.mxu0 %v8266_v62  ;;  %10874 = vst [vmem:[#allocation85_spill] sm:$0xff] %v8281_v28  ;;  %v10875_v32 = vld [vmem:[#allocation75_spill] sm:$0xff] }
 0x48b   :  { %2964 = vmatpush.msra.mxu2 %v8269_v24  ;;  %2648 = vmatpush.msra.mxu1 %v7696_v17  ;;  %v10876_v17 = vld [vmem:[#allocation76_spill] sm:$0xff] }
 0x48c   :  { %2688 = vmatpush.msra.mxu3 %v10870_v40  ;;  %2649 = vmatmul.f32.vlgmr.msra.gmra.mxu1 %v8144_v52  ;;  %v8294_v40 = vld [vmem:[#allocation3 + $0x1c0] sm:$0xff] }
 0x48d   :  { %2689 = vmatmul.f32.vlgmr.msra.gmra.mxu3 %v8144_v52  ;;  %2713 = vmatpush.msrb.mxu1 %v10871_v22  ;;  %10881 = vst [vmem:[#allocation186_spill] sm:$0xff] %v8294_v40  ;;  %v8297_v22 = vld [vmem:[#allocation3 + $0x1c8] sm:$0xff] }
 0x48e   :  { %2753 = vmatpush.msrb.mxu3 %v10872_v43  ;;  %2925 = vmatpush.msra.mxu0 %v8278_v1  ;;  %10882 = vst [vmem:[#allocation89_spill] sm:$0xff] %v8297_v22  ;;  %v10883_v43 = vld [vmem:[#allocation80_spill] sm:$0xff] }
 0x48f   :  { %2965 = vmatpush.msra.mxu2 %v8281_v28  ;;  %2714 = vmatpush.msrb.mxu1 %v10875_v32  ;;  %v10884_v32 = vld [vmem:[#allocation22_spill] sm:$0xff] }
 0x490   :  { %2754 = vmatpush.msrb.mxu3 %v10876_v17  ;;  %2926 = vmatpush.msra.mxu0 %v8286_v37  ;;  %v8302_v17 = vld [vmem:[#allocation3 + $0x180] sm:$0xff]  ;;  %v8653_v37 = vld [vmem:[#allocation3 + $0x410] sm:$0xff] }
 0x491   :  { %2966 = vmatpush.msra.mxu2 %v8289_v33  ;;  %2715 = vmatpush.msrb.mxu1 %v10879_v55  ;;  %10885 = vst [vmem:[#allocation90_spill] sm:$0xff] %v8302_v17  ;;  %v8305_v33 = vld [vmem:[#allocation3 + $0x188] sm:$0xff]  ;;  %v10887_v55 = vld [vmem:[#allocation23_spill] sm:$0xff] }
 0x492   :  { %2755 = vmatpush.msrb.mxu3 %v10880_v61  ;;  %2927 = vmatpush.msra.mxu0 %v8294_v40  ;;  %10886 = vst [vmem:[#allocation187_spill] sm:$0xff] %v8305_v33  ;;  %v10888_v61 = vld [vmem:[#allocation24_spill] sm:$0xff]  ;;  %v8310_v40 = vld [vmem:[#allocation3 + $0x140] sm:$0xff] }
 0x493   :  { %2967 = vmatpush.msra.mxu2 %v8297_v22  ;;  %2716 = vmatpush.msrb.mxu1 %v10883_v43  ;;  %10889 = vst [vmem:[#allocation188_spill] sm:$0xff] %v8310_v40  ;;  %v8313_v22 = vld [vmem:[#allocation3 + $0x148] sm:$0xff]  ;;  %v10891_v43 = vld [vmem:[#allocation91_spill] sm:$0xff] }
 0x494   :  { %2756 = vmatpush.msrb.mxu3 %v10884_v32  ;;  %2928 = vmatpush.msra.mxu0 %v8302_v17  ;;  %10890 = vst [vmem:[#allocation93_spill] sm:$0xff] %v8313_v22  ;;  %v10892_v32 = vld [vmem:[#allocation92_spill] sm:$0xff]  ;;  %v8318_v17 = vld [vmem:[#allocation3 + $0x100] sm:$0xff] }
 0x495   :  { %2968 = vmatpush.msra.mxu2 %v8305_v33  ;;  %2717 = vmatpush.msrb.mxu1 %v10887_v55  ;;  %10893 = vst [vmem:[#allocation94_spill] sm:$0xff] %v8318_v17  ;;  %v8321_v33 = vld [vmem:[#allocation3 + $0x108] sm:$0xff]  ;;  %v10895_v55 = vld [vmem:[#allocation95_spill] sm:$0xff] }
 0x496   :  { %2757 = vmatpush.msrb.mxu3 %v10888_v61  ;;  %2929 = vmatpush.msra.mxu0 %v8310_v40  ;;  %10894 = vst [vmem:[#allocation189_spill] sm:$0xff] %v8321_v33  ;;  %v10896_v61 = vld [vmem:[#allocation96_spill] sm:$0xff]  ;;  %v8326_v40 = vld [vmem:[#allocation3 + $0xc0] sm:$0xff] }
 0x497   :  { %2969 = vmatpush.msra.mxu2 %v8313_v22  ;;  %2718 = vmatpush.msrb.mxu1 %v10891_v43  ;;  %10897 = vst [vmem:[#allocation97_spill] sm:$0xff] %v8326_v40  ;;  %v8329_v22 = vld [vmem:[#allocation3 + $0xc8] sm:$0xff]  ;;  %v10899_v43 = vld [vmem:[#allocation99_spill] sm:$0xff] }
 0x498   :  { %2758 = vmatpush.msrb.mxu3 %v10892_v32  ;;  %2930 = vmatpush.msra.mxu0 %v8318_v17  ;;  %10898 = vst [vmem:[#allocation98_spill] sm:$0xff] %v8329_v22  ;;  %v10900_v32 = vld [vmem:[#allocation100_spill] sm:$0xff]  ;;  %v8334_v17 = vld [vmem:[#allocation3 + $0x80] sm:$0xff] }
 0x499   :  { %2970 = vmatpush.msra.mxu2 %v8321_v33  ;;  %2719 = vmatpush.msrb.mxu1 %v10895_v55  ;;  %10901 = vst [vmem:[#allocation101_spill] sm:$0xff] %v8334_v17  ;;  %v8337_v33 = vld [vmem:[#allocation3 + $0x88] sm:$0xff]  ;;  %v10903_v55 = vld [vmem:[#allocation103_spill] sm:$0xff] }
 0x49a   :  { %2759 = vmatpush.msrb.mxu3 %v10896_v61  ;;  %2931 = vmatpush.msra.mxu0 %v8326_v40  ;;  %10902 = vst [vmem:[#allocation102_spill] sm:$0xff] %v8337_v33  ;;  %v10904_v61 = vld [vmem:[#allocation104_spill] sm:$0xff]  ;;  %v8342_v40 = vld [vmem:[#allocation3 + $0x40] sm:$0xff] }
 0x49b   :  { %2971 = vmatpush.msra.mxu2 %v8329_v22  ;;  %2720 = vmatpush.msrb.mxu1 %v10899_v43  ;;  %10905 = vst [vmem:[#allocation105_spill] sm:$0xff] %v8342_v40  ;;  %v8345_v22 = vld [vmem:[#allocation3 + $0x48] sm:$0xff]  ;;  %v10907_v43 = vld [vmem:[#allocation107_spill] sm:$0xff] }
 0x49c   :  { %2760 = vmatpush.msrb.mxu3 %v10900_v32  ;;  %2932 = vmatpush.msra.mxu0 %v8334_v17  ;;  %10906 = vst [vmem:[#allocation106_spill] sm:$0xff] %v8345_v22  ;;  %v10908_v32 = vld [vmem:[#allocation108_spill] sm:$0xff]  ;;  %v8350_v17 = vld [vmem:[#allocation3] sm:$0xff] }
 0x49d   :  { %2972 = vmatpush.msra.mxu2 %v8337_v33  ;;  %2721 = vmatpush.msrb.mxu1 %v10903_v55  ;;  %10909 = vst [vmem:[#allocation109_spill] sm:$0xff] %v8350_v17  ;;  %v8353_v33 = vld [vmem:[#allocation3 + $0x8] sm:$0xff]  ;;  %v10911_v55 = vld [vmem:[#allocation111_spill] sm:$0xff] }
 0x49e   :  { %2761 = vmatpush.msrb.mxu3 %v10904_v61  ;;  %2933 = vmatpush.msra.mxu0 %v8342_v40  ;;  %10910 = vst [vmem:[#allocation110_spill] sm:$0xff] %v8353_v33  ;;  %v10912_v61 = vld [vmem:[#allocation112_spill] sm:$0xff]  ;;  %v8358_v40 = vld [vmem:[#allocation3 + $0x3d0] sm:$0xff] }
 0x49f   :  { %2973 = vmatpush.msra.mxu2 %v8345_v22  ;;  %2722 = vmatpush.msrb.mxu1 %v10907_v43  ;;  %10913 = vst [vmem:[#allocation113_spill] sm:$0xff] %v8358_v40  ;;  %v8361_v22 = vld [vmem:[#allocation3 + $0x3d8] sm:$0xff]  ;;  %v10915_v43 = vld [vmem:[#allocation115_spill] sm:$0xff] }
 0x4a0   :  { %2762 = vmatpush.msrb.mxu3 %v10908_v32  ;;  %2934 = vmatpush.msra.mxu0 %v8350_v17  ;;  %10914 = vst [vmem:[#allocation114_spill] sm:$0xff] %v8361_v22  ;;  %v10916_v32 = vld [vmem:[#allocation116_spill] sm:$0xff]  ;;  %v8366_v17 = vld [vmem:[#allocation3 + $0x390] sm:$0xff] }
 0x4a1   :  { %2974 = vmatpush.msra.mxu2 %v8353_v33  ;;  %2723 = vmatpush.msrb.mxu1 %v10911_v55  ;;  %10917 = vst [vmem:[#allocation117_spill] sm:$0xff] %v8366_v17  ;;  %v8369_v33 = vld [vmem:[#allocation3 + $0x398] sm:$0xff]  ;;  %v10919_v55 = vld [vmem:[#allocation119_spill] sm:$0xff] }
 0x4a2   :  { %2763 = vmatpush.msrb.mxu3 %v10912_v61  ;;  %2999 = vmatpush.msrb.mxu0 %v8358_v40  ;;  %10918 = vst [vmem:[#allocation118_spill] sm:$0xff] %v8369_v33  ;;  %v10920_v61 = vld [vmem:[#allocation120_spill] sm:$0xff]  ;;  %v8374_v40 = vld [vmem:[#allocation3 + $0x350] sm:$0xff] }
 0x4a3   :  { %3039 = vmatpush.msrb.mxu2 %v8361_v22  ;;  %2724 = vmatpush.msrb.mxu1 %v10915_v43  ;;  %10921 = vst [vmem:[#allocation121_spill] sm:$0xff] %v8374_v40  ;;  %v8377_v22 = vld [vmem:[#allocation3 + $0x358] sm:$0xff]  ;;  %v10923_v43 = vld [vmem:[#allocation123_spill] sm:$0xff] }
 0x4a4   :  { %2764 = vmatpush.msrb.mxu3 %v10916_v32  ;;  %3000 = vmatpush.msrb.mxu0 %v8366_v17  ;;  %10922 = vst [vmem:[#allocation122_spill] sm:$0xff] %v8377_v22  ;;  %v10924_v32 = vld [vmem:[#allocation124_spill] sm:$0xff]  ;;  %v8382_v17 = vld [vmem:[#allocation3 + $0x310] sm:$0xff] }
 0x4a5   :  { %3040 = vmatpush.msrb.mxu2 %v8369_v33  ;;  %2725 = vmatpush.msrb.mxu1 %v10919_v55  ;;  %10925 = vst [vmem:[#allocation125_spill] sm:$0xff] %v8382_v17  ;;  %v8385_v33 = vld [vmem:[#allocation3 + $0x318] sm:$0xff]  ;;  %v10927_v55 = vld [vmem:[#allocation127_spill] sm:$0xff] }
 0x4a6   :  { %2765 = vmatpush.msrb.mxu3 %v10920_v61  ;;  %3001 = vmatpush.msrb.mxu0 %v8374_v40  ;;  %10926 = vst [vmem:[#allocation126_spill] sm:$0xff] %v8385_v33  ;;  %v10928_v61 = vld [vmem:[#allocation128_spill] sm:$0xff]  ;;  %v8390_v40 = vld [vmem:[#allocation3 + $0x2d0] sm:$0xff] }
 0x4a7   :  { %3041 = vmatpush.msrb.mxu2 %v8377_v22  ;;  %2726 = vmatpush.msrb.mxu1 %v10923_v43  ;;  %10929 = vst [vmem:[#allocation129_spill] sm:$0xff] %v8390_v40  ;;  %v8393_v22 = vld [vmem:[#allocation3 + $0x2d8] sm:$0xff]  ;;  %v10931_v43 = vld [vmem:[#allocation131_spill] sm:$0xff] }
 0x4a8   :  { %2766 = vmatpush.msrb.mxu3 %v10924_v32  ;;  %3002 = vmatpush.msrb.mxu0 %v8382_v17  ;;  %10930 = vst [vmem:[#allocation130_spill] sm:$0xff] %v8393_v22  ;;  %v10932_v32 = vld [vmem:[#allocation132_spill] sm:$0xff] }
 0x4a9   :  { %3042 = vmatpush.msrb.mxu2 %v8385_v33  ;;  %2727 = vmatpush.msrb.mxu1 %v10927_v55  ;;  %v8400_v33 = vld [vmem:[#allocation3 + $0x290] sm:$0xff]  ;;  %v8403_v55 = vld [vmem:[#allocation3 + $0x298] sm:$0xff]  ;;  %11018 = vst [vmem:[#allocation104_spill] sm:$0xff] %v8653_v37 }
 0x4aa   :  { %2767 = vmatpush.msrb.mxu3 %v10928_v61  ;;  %3003 = vmatpush.msrb.mxu0 %v8390_v40  ;;  %10933 = vst [vmem:[#allocation133_spill] sm:$0xff] %v8400_v33  ;;  %v8406_v61 = vld [vmem:[#allocation3 + $0x7c0] sm:$0xff] }
 0x4ab   :  { %3043 = vmatpush.msrb.mxu2 %v8393_v22  ;;  %2728 = vmatpush.msrb.mxu1 %v10931_v43  ;;  %10934 = vst [vmem:[#allocation134_spill] sm:$0xff] %v8403_v55  ;;  %v8409_v22 = vld [vmem:[#allocation3 + $0x7c8] sm:$0xff]  ;;  %v8412_v43 = vld [vmem:[#allocation3 + $0x250] sm:$0xff] }
 0x4ac   :  { %2768 = vmatpush.msrb.mxu3 %v10932_v32  ;;  %2729 = vmatmul.f32.vlgmr.msrb.gmra.mxu1 %v8144_v52  ;;  %10935 = vst [vmem:[#allocation139_spill] sm:$0xff] %v8406_v61  ;;  %v8418_v32 = vld [vmem:[#allocation3 + $0x780] sm:$0xff] }
 0x4ad   :  { %2769 = vmatmul.f32.vlgmr.msrb.gmra.mxu3 %v8144_v52  ;;  %3004 = vmatpush.msrb.mxu0 %v8400_v33  ;;  %10936 = vst [vmem:[#allocation140_spill] sm:$0xff] %v8409_v22  ;;  %v8415_v52 = vld [vmem:[#allocation3 + $0x258] sm:$0xff]  ;;  %v8640_v33 = vld [vmem:[#allocation3 + $0x490] sm:$0xff] }
 0x4ae   :  { %3044 = vmatpush.msrb.mxu2 %v8403_v55  ;;  %2939 = vmatpush.msra.mxu1 %v8406_v61  ;;  %10937 = vst [vmem:[#allocation143_spill] sm:$0xff] %v8412_v43  ;;  %v8421_v55 = vld [vmem:[#allocation3 + $0x788] sm:$0xff]  ;;  %v8424_v61 = vld [vmem:[#allocation3 + $0x210] sm:$0xff] }
 0x4af   :  { %2979 = vmatpush.msra.mxu3 %v8409_v22  ;;  %3005 = vmatpush.msrb.mxu0 %v8412_v43  ;;  %10938 = vst [vmem:[#allocation144_spill] sm:$0xff] %v8415_v52  ;;  %v8427_v22 = vld [vmem:[#allocation3 + $0x218] sm:$0xff]  ;;  %v8430_v43 = vld [vmem:[#allocation3 + $0x740] sm:$0xff] }
 0x4b0   :  { %3045 = vmatpush.msrb.mxu2 %v8415_v52  ;;  %10939 = vst [vmem:[#allocation147_spill] sm:$0xff] %v8418_v32  ;;  %2940 = vmatpush.msra.mxu1 %v8418_v32  ;;  %v8433_v52 = vld [vmem:[#allocation3 + $0x748] sm:$0xff]  ;;  %v8436_v32 = vld [vmem:[#allocation3 + $0x1d0] sm:$0xff] }
 0x4b1   :  { %10940 = vst [vmem:[#allocation148_spill] sm:$0xff] %v8421_v55  ;;  %2980 = vmatpush.msra.mxu3 %v8421_v55  ;;  %3006 = vmatpush.msrb.mxu0 %v8424_v61  ;;  %v8439_v55 = vld [vmem:[#allocation3 + $0x1d8] sm:$0xff] }
 0x4b2   :  { %10941 = vst [vmem:[#allocation151_spill] sm:$0xff] %v8424_v61  ;;  %3046 = vmatpush.msrb.mxu2 %v8427_v22  ;;  %2941 = vmatpush.msra.mxu1 %v8430_v43  ;;  %v8442_v61 = vld [vmem:[#allocation3 + $0x700] sm:$0xff] }
 0x4b3   :  { %10942 = vst [vmem:[#allocation152_spill] sm:$0xff] %v8427_v22  ;;  %2981 = vmatpush.msra.mxu3 %v8433_v52  ;;  %3007 = vmatpush.msrb.mxu0 %v8436_v32  ;;  %v8445_v22 = vld [vmem:[#allocation3 + $0x708] sm:$0xff] }
 0x4b4   :  { %10943 = vst [vmem:[#allocation155_spill] sm:$0xff] %v8430_v43  ;;  %3047 = vmatpush.msrb.mxu2 %v8439_v55  ;;  %2942 = vmatpush.msra.mxu1 %v8442_v61  ;;  %v8448_v43 = vld [vmem:[#allocation3 + $0x190] sm:$0xff] }
 0x4b5   :  { %10944 = vst [vmem:[#allocation156_spill] sm:$0xff] %v8433_v52  ;;  %2982 = vmatpush.msra.mxu3 %v8445_v22  ;;  %3008 = vmatpush.msrb.mxu0 %v8448_v43  ;;  %v8451_v52 = vld [vmem:[#allocation3 + $0x198] sm:$0xff] }
 0x4b6   :  { %10945 = vst [vmem:[#allocation159_spill] sm:$0xff] %v8436_v32  ;;  %3048 = vmatpush.msrb.mxu2 %v8451_v52  ;;  %v8454_v32 = vld [vmem:[#allocation3 + $0x6c0] sm:$0xff] }
 0x4b7   :  { %10946 = vst [vmem:[#allocation160_spill] sm:$0xff] %v8439_v55  ;;  %2943 = vmatpush.msra.mxu1 %v8454_v32  ;;  %v8457_v55 = vld [vmem:[#allocation3 + $0x6c8] sm:$0xff] }
 0x4b8   :  { %10947 = vst [vmem:[#allocation163_spill] sm:$0xff] %v8442_v61  ;;  %2983 = vmatpush.msra.mxu3 %v8457_v55  ;;  %v8460_v61 = vld [vmem:[#allocation3 + $0x150] sm:$0xff] }
 0x4b9   :  { %10948 = vst [vmem:[#allocation164_spill] sm:$0xff] %v8445_v22  ;;  %3009 = vmatpush.msrb.mxu0 %v8460_v61  ;;  %v8463_v22 = vld [vmem:[#allocation3 + $0x158] sm:$0xff] }
 0x4ba   :  { %10949 = vst [vmem:[#allocation167_spill] sm:$0xff] %v8448_v43  ;;  %3049 = vmatpush.msrb.mxu2 %v8463_v22  ;;  %v8466_v43 = vld [vmem:[#allocation3 + $0x680] sm:$0xff] }
 0x4bb   :  { %10950 = vst [vmem:[#allocation168_spill] sm:$0xff] %v8451_v52  ;;  %2944 = vmatpush.msra.mxu1 %v8466_v43  ;;  %v8469_v52 = vld [vmem:[#allocation3 + $0x688] sm:$0xff] }
 0x4bc   :  { %10951 = vst [vmem:[#allocation171_spill] sm:$0xff] %v8454_v32  ;;  %2984 = vmatpush.msra.mxu3 %v8469_v52  ;;  %v8472_v32 = vld [vmem:[#allocation3 + $0x110] sm:$0xff] }
 0x4bd   :  { %10952 = vst [vmem:[#allocation172_spill] sm:$0xff] %v8457_v55  ;;  %3010 = vmatpush.msrb.mxu0 %v8472_v32  ;;  %v8475_v55 = vld [vmem:[#allocation3 + $0x118] sm:$0xff] }
 0x4be   :  { %10953 = vst [vmem:[#allocation175_spill] sm:$0xff] %v8460_v61  ;;  %3050 = vmatpush.msrb.mxu2 %v8475_v55  ;;  %v8478_v61 = vld [vmem:[#allocation3 + $0x640] sm:$0xff] }
 0x4bf   :  { %10954 = vst [vmem:[#allocation176_spill] sm:$0xff] %v8463_v22  ;;  %2945 = vmatpush.msra.mxu1 %v8478_v61  ;;  %v8481_v22 = vld [vmem:[#allocation3 + $0x648] sm:$0xff] }
 0x4c0   :  { %10955 = vst [vmem:[#allocation17_spill] sm:$0xff] %v8466_v43  ;;  %2985 = vmatpush.msra.mxu3 %v8481_v22  ;;  %v8484_v43 = vld [vmem:[#allocation3 + $0xd0] sm:$0xff] }
 0x4c1   :  { %10956 = vst [vmem:[#allocation179_spill] sm:$0xff] %v8469_v52  ;;  %3011 = vmatpush.msrb.mxu0 %v8484_v43  ;;  %v8487_v52 = vld [vmem:[#allocation3 + $0xd8] sm:$0xff] }
 0x4c2   :  { %10957 = vst [vmem:[#allocation18_spill] sm:$0xff] %v8472_v32  ;;  %3051 = vmatpush.msrb.mxu2 %v8487_v52  ;;  %v8490_v32 = vld [vmem:[#allocation3 + $0x600] sm:$0xff] }
 0x4c3   :  { %10958 = vst [vmem:[#allocation19_spill] sm:$0xff] %v8475_v55  ;;  %2946 = vmatpush.msra.mxu1 %v8490_v32  ;;  %v8493_v55 = vld [vmem:[#allocation3 + $0x608] sm:$0xff] }
 0x4c4   :  { %10959 = vst [vmem:[#allocation10_spill] sm:$0xff] %v8478_v61  ;;  %2986 = vmatpush.msra.mxu3 %v8493_v55  ;;  %v8496_v61 = vld [vmem:[#allocation3 + $0x90] sm:$0xff] }
 0x4c5   :  { %10960 = vst [vmem:[#allocation11_spill] sm:$0xff] %v8481_v22  ;;  %3012 = vmatpush.msrb.mxu0 %v8496_v61  ;;  %v8499_v22 = vld [vmem:[#allocation3 + $0x98] sm:$0xff] }
 0x4c6   :  { %10961 = vst [vmem:[#allocation12_spill] sm:$0xff] %v8484_v43  ;;  %3052 = vmatpush.msrb.mxu2 %v8499_v22  ;;  %v8502_v43 = vld [vmem:[#allocation3 + $0x5c0] sm:$0xff] }
 0x4c7   :  { %10962 = vst [vmem:[#allocation9_spill] sm:$0xff] %v8487_v52  ;;  %2947 = vmatpush.msra.mxu1 %v8502_v43  ;;  %v8505_v52 = vld [vmem:[#allocation3 + $0x5c8] sm:$0xff] }
 0x4c8   :  { %10963 = vst [vmem:[#allocation13_spill] sm:$0xff] %v8490_v32  ;;  %2987 = vmatpush.msra.mxu3 %v8505_v52  ;;  %v8508_v32 = vld [vmem:[#allocation3 + $0x50] sm:$0xff] }
 0x4c9   :  { %10964 = vst [vmem:[#allocation14_spill] sm:$0xff] %v8493_v55  ;;  %3013 = vmatpush.msrb.mxu0 %v8508_v32  ;;  %v8511_v55 = vld [vmem:[#allocation3 + $0x58] sm:$0xff] }
 0x4ca   :  { %10965 = vst [vmem:[#allocation15_spill] sm:$0xff] %v8496_v61  ;;  %3053 = vmatpush.msrb.mxu2 %v8511_v55  ;;  %v8514_v61 = vld [vmem:[#allocation3 + $0x580] sm:$0xff] }
 0x4cb   :  { %10966 = vst [vmem:[#allocation16_spill] sm:$0xff] %v8499_v22  ;;  %2948 = vmatpush.msra.mxu1 %v8514_v61  ;;  %v8517_v22 = vld [vmem:[#allocation3 + $0x588] sm:$0xff] }
 0x4cc   :  { %10967 = vst [vmem:[#allocation20_spill] sm:$0xff] %v8502_v43  ;;  %2988 = vmatpush.msra.mxu3 %v8517_v22  ;;  %v8520_v43 = vld [vmem:[#allocation3 + $0x10] sm:$0xff] }
 0x4cd   :  { %10968 = vst [vmem:[#allocation29_spill] sm:$0xff] %v8505_v52  ;;  %3014 = vmatpush.msrb.mxu0 %v8520_v43  ;;  %v8523_v52 = vld [vmem:[#allocation3 + $0x18] sm:$0xff] }
 0x4ce   :  { %10969 = vst [vmem:[#allocation30_spill] sm:$0xff] %v8508_v32  ;;  %3054 = vmatpush.msrb.mxu2 %v8523_v52  ;;  %v8526_v32 = vld [vmem:[#allocation3 + $0x540] sm:$0xff] }
 0x4cf   :  { %10970 = vst [vmem:[#allocation31_spill] sm:$0xff] %v8511_v55  ;;  %2949 = vmatpush.msra.mxu1 %v8526_v32  ;;  %v8529_v55 = vld [vmem:[#allocation3 + $0x548] sm:$0xff] }
 0x4d0   :  { %10971 = vst [vmem:[#allocation32_spill] sm:$0xff] %v8514_v61  ;;  %2989 = vmatpush.msra.mxu3 %v8529_v55  ;;  %v8532_v61 = vld [vmem:[#allocation3 + $0x500] sm:$0xff] }
 0x4d1   :  { %10972 = vst [vmem:[#allocation37_spill] sm:$0xff] %v8517_v22  ;;  %2950 = vmatpush.msra.mxu1 %v8532_v61  ;;  %v8535_v22 = vld [vmem:[#allocation3 + $0x508] sm:$0xff] }
 0x4d2   :  { %10973 = vst [vmem:[#allocation38_spill] sm:$0xff] %v8520_v43  ;;  %2990 = vmatpush.msra.mxu3 %v8535_v22  ;;  %v8538_v43 = vld [vmem:[#allocation3 + $0x4c0] sm:$0xff] }
 0x4d3   :  { %10974 = vst [vmem:[#allocation39_spill] sm:$0xff] %v8523_v52  ;;  %2951 = vmatpush.msra.mxu1 %v8538_v43  ;;  %v8541_v52 = vld [vmem:[#allocation3 + $0x4c8] sm:$0xff] }
 0x4d4   :  { %10975 = vst [vmem:[#allocation40_spill] sm:$0xff] %v8526_v32  ;;  %2991 = vmatpush.msra.mxu3 %v8541_v52  ;;  %v8544_v32 = vld [vmem:[#allocation3 + $0x480] sm:$0xff] }
 0x4d5   :  { %10976 = vst [vmem:[#allocation41_spill] sm:$0xff] %v8529_v55  ;;  %2952 = vmatpush.msra.mxu1 %v8544_v32  ;;  %v8547_v55 = vld [vmem:[#allocation3 + $0x488] sm:$0xff] }
 0x4d6   :  { %10977 = vst [vmem:[#allocation42_spill] sm:$0xff] %v8532_v61  ;;  %2992 = vmatpush.msra.mxu3 %v8547_v55  ;;  %v8550_v61 = vld [vmem:[#allocation3 + $0x440] sm:$0xff] }
 0x4d7   :  { %10978 = vst [vmem:[#allocation43_spill] sm:$0xff] %v8535_v22  ;;  %2953 = vmatpush.msra.mxu1 %v8550_v61  ;;  %v8553_v22 = vld [vmem:[#allocation3 + $0x448] sm:$0xff] }
 0x4d8   :  { %10979 = vst [vmem:[#allocation44_spill] sm:$0xff] %v8538_v43  ;;  %2993 = vmatpush.msra.mxu3 %v8553_v22  ;;  %v8556_v43 = vld [vmem:[#allocation3 + $0x400] sm:$0xff] }
 0x4d9   :  { %10980 = vst [vmem:[#allocation45_spill] sm:$0xff] %v8541_v52  ;;  %2954 = vmatpush.msra.mxu1 %v8556_v43  ;;  %v8559_v52 = vld [vmem:[#allocation3 + $0x408] sm:$0xff] }
 0x4da   :  { %10981 = vst [vmem:[#allocation46_spill] sm:$0xff] %v8544_v32  ;;  %2994 = vmatpush.msra.mxu3 %v8559_v52  ;;  %v8562_v32 = vld [vmem:[#allocation3 + $0x7d0] sm:$0xff] }
 0x4db   :  { %10982 = vst [vmem:[#allocation47_spill] sm:$0xff] %v8547_v55  ;;  %3019 = vmatpush.msrb.mxu1 %v8562_v32  ;;  %v8565_v55 = vld [vmem:[#allocation3 + $0x7d8] sm:$0xff] }
 0x4dc   :  { %10983 = vst [vmem:[#allocation48_spill] sm:$0xff] %v8550_v61  ;;  %3059 = vmatpush.msrb.mxu3 %v8565_v55  ;;  %v8568_v61 = vld [vmem:[#allocation3 + $0x790] sm:$0xff] }
 0x4dd   :  { %10984 = vst [vmem:[#allocation49_spill] sm:$0xff] %v8553_v22  ;;  %3020 = vmatpush.msrb.mxu1 %v8568_v61  ;;  %v8571_v22 = vld [vmem:[#allocation3 + $0x798] sm:$0xff] }
 0x4de   :  { %10985 = vst [vmem:[#allocation50_spill] sm:$0xff] %v8556_v43  ;;  %3060 = vmatpush.msrb.mxu3 %v8571_v22  ;;  %v8574_v43 = vld [vmem:[#allocation3 + $0x750] sm:$0xff] }
 0x4df   :  { %10986 = vst [vmem:[#allocation51_spill] sm:$0xff] %v8559_v52  ;;  %3021 = vmatpush.msrb.mxu1 %v8574_v43  ;;  %v8577_v52 = vld [vmem:[#allocation3 + $0x758] sm:$0xff] }
 0x4e0   :  { %10987 = vst [vmem:[#allocation52_spill] sm:$0xff] %v8562_v32  ;;  %3061 = vmatpush.msrb.mxu3 %v8577_v52  ;;  %v8580_v32 = vld [vmem:[#allocation3 + $0x710] sm:$0xff] }
 0x4e1   :  { %10988 = vst [vmem:[#allocation53_spill] sm:$0xff] %v8565_v55  ;;  %3022 = vmatpush.msrb.mxu1 %v8580_v32  ;;  %v8583_v55 = vld [vmem:[#allocation3 + $0x718] sm:$0xff] }
 0x4e2   :  { %10989 = vst [vmem:[#allocation54_spill] sm:$0xff] %v8568_v61  ;;  %3062 = vmatpush.msrb.mxu3 %v8583_v55  ;;  %v8586_v61 = vld [vmem:[#allocation3 + $0x6d0] sm:$0xff] }
 0x4e3   :  { %10990 = vst [vmem:[#allocation57_spill] sm:$0xff] %v8571_v22  ;;  %3023 = vmatpush.msrb.mxu1 %v8586_v61  ;;  %v8589_v22 = vld [vmem:[#allocation3 + $0x6d8] sm:$0xff] }
 0x4e4   :  { %10991 = vst [vmem:[#allocation58_spill] sm:$0xff] %v8574_v43  ;;  %3063 = vmatpush.msrb.mxu3 %v8589_v22  ;;  %v8592_v43 = vld [vmem:[#allocation3 + $0x690] sm:$0xff] }
 0x4e5   :  { %10992 = vst [vmem:[#allocation61_spill] sm:$0xff] %v8577_v52  ;;  %3024 = vmatpush.msrb.mxu1 %v8592_v43  ;;  %v8595_v52 = vld [vmem:[#allocation3 + $0x698] sm:$0xff] }
 0x4e6   :  { %10993 = vst [vmem:[#allocation62_spill] sm:$0xff] %v8580_v32  ;;  %3064 = vmatpush.msrb.mxu3 %v8595_v52  ;;  %v8598_v32 = vld [vmem:[#allocation3 + $0x650] sm:$0xff] }
 0x4e7   :  { %10994 = vst [vmem:[#allocation25_spill] sm:$0xff] %v8583_v55  ;;  %3025 = vmatpush.msrb.mxu1 %v8598_v32  ;;  %v8601_v55 = vld [vmem:[#allocation3 + $0x658] sm:$0xff] }
 0x4e8   :  { %10995 = vst [vmem:[#allocation65_spill] sm:$0xff] %v8586_v61  ;;  %3065 = vmatpush.msrb.mxu3 %v8601_v55  ;;  %v8604_v61 = vld [vmem:[#allocation3 + $0x610] sm:$0xff] }
 0x4e9   :  { %10996 = vst [vmem:[#allocation26_spill] sm:$0xff] %v8589_v22  ;;  %3026 = vmatpush.msrb.mxu1 %v8604_v61  ;;  %v8607_v22 = vld [vmem:[#allocation3 + $0x618] sm:$0xff] }
 0x4ea   :  { %10997 = vst [vmem:[#allocation27_spill] sm:$0xff] %v8592_v43  ;;  %3066 = vmatpush.msrb.mxu3 %v8607_v22  ;;  %v8610_v43 = vld [vmem:[#allocation3 + $0x5d0] sm:$0xff] }
 0x4eb   :  { %10998 = vst [vmem:[#allocation28_spill] sm:$0xff] %v8595_v52  ;;  %3027 = vmatpush.msrb.mxu1 %v8610_v43  ;;  %v8613_v52 = vld [vmem:[#allocation3 + $0x5d8] sm:$0xff] }
 0x4ec   :  { %10999 = vst [vmem:[#allocation66_spill] sm:$0xff] %v8598_v32  ;;  %3067 = vmatpush.msrb.mxu3 %v8613_v52  ;;  %v8616_v32 = vld [vmem:[#allocation3 + $0x590] sm:$0xff] }
 0x4ed   :  { %11000 = vst [vmem:[#allocation69_spill] sm:$0xff] %v8601_v55  ;;  %3028 = vmatpush.msrb.mxu1 %v8616_v32  ;;  %v8619_v55 = vld [vmem:[#allocation3 + $0x598] sm:$0xff] }
 0x4ee   :  { %11001 = vst [vmem:[#allocation70_spill] sm:$0xff] %v8604_v61  ;;  %3068 = vmatpush.msrb.mxu3 %v8619_v55  ;;  %v8622_v61 = vld [vmem:[#allocation3 + $0x550] sm:$0xff] }
 0x4ef   :  { %11002 = vst [vmem:[#allocation75_spill] sm:$0xff] %v8607_v22  ;;  %3029 = vmatpush.msrb.mxu1 %v8622_v61  ;;  %v8625_v22 = vld [vmem:[#allocation3 + $0x558] sm:$0xff]  ;;  %v2530_v1 = vpop.f32.mrf.mxu3 }
 0x4f0   :  { %11003 = vst [vmem:[#allocation76_spill] sm:$0xff] %v8610_v43  ;;  %3069 = vmatpush.msrb.mxu3 %v8625_v22  ;;  %v8628_v43 = vld [vmem:[#allocation3 + $0x510] sm:$0xff] }
 0x4f1   :  { %11004 = vst [vmem:[#allocation79_spill] sm:$0xff] %v8613_v52  ;;  %3030 = vmatpush.msrb.mxu1 %v8628_v43  ;;  %v8631_v52 = vld [vmem:[#allocation3 + $0x518] sm:$0xff] }
 0x4f2   :  { %11005 = vst [vmem:[#allocation21_spill] sm:$0xff] %v8616_v32  ;;  %3070 = vmatpush.msrb.mxu3 %v8631_v52  ;;  %v8634_v32 = vld [vmem:[#allocation3 + $0x4d0] sm:$0xff] }
 0x4f3   :  { %11006 = vst [vmem:[#allocation80_spill] sm:$0xff] %v8619_v55  ;;  %3031 = vmatpush.msrb.mxu1 %v8634_v32  ;;  %v8637_v55 = vld [vmem:[#allocation3 + $0x4d8] sm:$0xff] }
 0x4f4   :  { %11007 = vst [vmem:[#allocation22_spill] sm:$0xff] %v8622_v61  ;;  %3071 = vmatpush.msrb.mxu3 %v8637_v55  ;;  %v2470_v61 = vpop.f32.mrf.mxu0 }
 0x4f5   :  { %11008 = vst [vmem:[#allocation23_spill] sm:$0xff] %v8625_v22  ;;  %3032 = vmatpush.msrb.mxu1 %v8640_v33  ;;  %v8643_v22 = vld [vmem:[#allocation3 + $0x498] sm:$0xff] }
 0x4f6   :  { %11009 = vst [vmem:[#allocation24_spill] sm:$0xff] %v8628_v43  ;;  %3072 = vmatpush.msrb.mxu3 %v8643_v22  ;;  %v2490_v43 = vpop.f32.mrf.mxu1 }
 0x4f7   :  { %11010 = vst [vmem:[#allocation91_spill] sm:$0xff] %v8631_v52  ;;  %v2491_v40 = vadd.f32 %v2490_v43, %v2470_v61  ;;  %v8646_v52 = vld [vmem:[#allocation3 + $0x450] sm:$0xff]  ;;  %v2610_v3 = vpop.f32.mrf.mxu3 }
 0x4f8   :  { %11011 = vst [vmem:[#allocation92_spill] sm:$0xff] %v8634_v32  ;;  %3033 = vmatpush.msrb.mxu1 %v8646_v52  ;;  %v8649_v32 = vld [vmem:[#allocation3 + $0x458] sm:$0xff] }
 0x4f9   :  { %11012 = vst [vmem:[#allocation95_spill] sm:$0xff] %v8637_v55  ;;  %3073 = vmatpush.msrb.mxu3 %v8649_v32  ;;  %v11017_v55 = vld [vmem:[#allocation33_spill] sm:$0xff] }
 0x4fa   :  { %11013 = vst [vmem:[#allocation96_spill] sm:$0xff] %v8640_v33  ;;  %v2852_v17 = vadd.f32 %v11017_v55, %v2491_v40  ;;  %3034 = vmatpush.msrb.mxu1 %v8653_v37  ;;  %v11019_v33 = vld [vmem:[#allocation135_spill] sm:$0xff] }
 0x4fb   :  { %11014 = vst [vmem:[#allocation99_spill] sm:$0xff] %v8643_v22  ;;  %3074 = vmatpush.msrb.mxu3 %v11019_v33  ;;  %v2510_v22 = vpop.f32.mrf.mxu2 }
 0x4fc   :  { %11015 = vst [vmem:[#allocation100_spill] sm:$0xff] %v8646_v52  ;;  %v4277_v28 = vmul.f32 -1.442695, %v2852_v17  ;;  %v2531_v61 = vadd.f32 %v2530_v1, %v2510_v22  ;;  %v2550_v43 = vpop.f32.mrf.mxu0  ;;  %v11020_v52 = vld [vmem:[#allocation34_spill] sm:$0xff] }
 0x4fd   :  { %11016 = vst [vmem:[#allocation103_spill] sm:$0xff] %v8649_v32  ;;  %v11021_v32 = vld [vmem:[#allocation35_spill] sm:$0xff] }
 0x4fe   :  { %4443 = vpow2.f32 %v4277_v28  ;;  %v2570_v24 = vpop.f32.mrf.mxu1  ;;  %v2853_v62 = vadd.f32 %v11020_v52, %v2531_v61 }
 0x4ff   :  { %v2571_v59 = vadd.f32 %v2570_v24, %v2550_v43 }
 0x500   :  { %v4278_v0 = vmul.f32 -1.442695, %v2853_v62 }
 0x501   :  { %v2854_v48 = vadd.f32 %v11021_v32, %v2571_v59 }
 0x502   :  { %4445 = vpow2.f32 %v4278_v0 }
 0x503   :  { %v4279_v55 = vmul.f32 -1.442695, %v2854_v48  ;;  %v2590_v22 = vpop.f32.mrf.mxu2  ;;  %v11022_v48 = vld [vmem:[#allocation36_spill] sm:$0xff] }
 0x504   :  { %v4444_v40 = vpop.eup %4443  ;;  %v2611_v62 = vadd.f32 %v2610_v3, %v2590_v22  ;;  %v2630_v3 = vpop.f32.mrf.mxu0 }
 0x505   :  { %v2865_v14 = vadd.f32 1.0, %v4444_v40  ;;  %4447 = vpow2.f32 %v4279_v55 }
 0x506   :  { %v2855_v32 = vadd.f32 %v11022_v48, %v2611_v62 }
 0x507   :  { %4449 = vrcp.f32 %v2865_v14  ;;  %v2879_v55 = vand.u32 2147483648, %v2865_v14  ;;  %vm2873_vm11 = vweird.f32 %v2865_v14 }
 0x508   :  { %v4446_v33 = vpop.eup %4445 }
 0x509   :  { %v2866_v17 = vadd.f32 1.0, %v4446_v33  ;;  %v2880_v48 = vor.u32 1.1754944e-38, %v2879_v55 }
 0x50b   :  { %v4448_v37 = vpop.eup %4447  ;;  %4451 = vrcp.f32 %v2866_v17  ;;  %v2894_v58 = vand.u32 2147483648, %v2866_v17  ;;  %v2892_v62 = vand.u32 2147483647, %v2866_v17  ;;  %vm2888_vm14 = vweird.f32 %v2866_v17 }
 0x50c   :  { %v8659_v1 = vadd.f32 1.0, %v4448_v37  ;;  %v2877_v37 = vand.u32 2147483647, %v2865_v14 }
 0x50d   :  { %v4450_v28 = vpop.eup %4449  ;;  %v2895_v56 = vor.u32 1.1754944e-38, %v2894_v58  ;;  %vm2893_vm4 = vcmp.eq.f32.partialorder %v2892_v62, 8.507059e+37 }
 0x50e   :  { %v2869_v52 = vmul.f32 %v4450_v28, %v2865_v14  ;;  %4453 = vrcp.f32 %v8659_v1  ;;  %vm2874_vm10 = vweird.f32 %v4450_v28  ;;  %vm2878_vm15 = vcmp.eq.f32.partialorder %v2877_v37, 8.507059e+37 }
 0x50f   :  { %vm8664_vm12 = vmor %vm2873_vm11, %vm2874_vm10  ;;  %4455 = vtanh.f32 %v2855_v32  ;;  %vm2903_vm1 = vweird.f32 %v8659_v1 }
 0x510   :  { %v2870_v59 = vsub.f32 1.0, %v2869_v52  ;;  %v2690_v55 = vpop.f32.mrf.mxu3 }
 0x511   :  { %v4452_v0 = vpop.eup %4451 }
 0x512   :  { %v2871_v24 = vmul.f32 %v4450_v28, %v2870_v59  ;;  %v2884_v61 = vmul.f32 %v4452_v0, %v2866_v17  ;;  %vm2889_vm13 = vweird.f32 %v4452_v0  ;;  %v2650_v59 = vpop.f32.mrf.mxu1 }
 0x513   :  { %vm2890_vm3 = vmor %vm2888_vm14, %vm2889_vm13 }
 0x514   :  { %v2872_v43 = vadd.f32 %v4450_v28, %v2871_v24  ;;  %v4454_v40 = vpop.eup %4453  ;;  %v2885_v33 = vsub.f32 1.0, %v2884_v61  ;;  %v2651_v61 = vadd.f32 %v2650_v59, %v2630_v3 }
 0x515   :  { %v2899_v19 = vmul.f32 %v4454_v40, %v8659_v1  ;;  %vm2904_vm0 = vweird.f32 %v4454_v40 }
 0x516   :  { %v2886_v22 = vmul.f32 %v4452_v0, %v2885_v33  ;;  %v2876_v52 = vsel %vm8664_vm12, %v4450_v28, %v2872_v43  ;;  %v2773_v44 = vadd.f32 %v2651_v61, %v6212_v30  ;;  %v4456_v33 = vpop.eup %4455  ;;  %v2670_v28 = vpop.f32.mrf.mxu2  ;;  %vm2905_vm5 = vmor %vm2903_vm1, %vm2904_vm0 }
 0x517   :  { %v2900_v24 = vsub.f32 1.0, %v2899_v19  ;;  %v2881_v54 = vsel %vm2878_vm15, %v2880_v48, %v2876_v52  ;;  %v2691_v3 = vadd.f32 %v2690_v55, %v2670_v28  ;;  %v11029_v48 = vld [vmem:[#allocation142_spill] sm:$0xff] }
 0x518   :  { %v2887_v14 = vadd.f32 %v4452_v0, %v2886_v22  ;;  %v4274_v57 = vmul.f32 -1.442695, %v2773_v44  ;;  %v2915_v19 = vmul.f32 %v4456_v33, %v2881_v54  ;;  %v2907_v44 = vand.u32 2147483647, %v8659_v1  ;;  %v11031_v33 = vld [vmem:[#allocation190_spill] sm:$0xff] }
 0x519   :  { %v2901_v41 = vmul.f32 %v4454_v40, %v2900_v24  ;;  %v2774_v58 = vadd.f32 %v2691_v3, %v6223_v60  ;;  %v11032_v28 = vld [vmem:[#allocation146_spill] sm:$0xff] }
 0x51a   :  { %v2891_v32 = vsel %vm2890_vm3, %v4452_v0, %v2887_v14  ;;  %4457 = vpow2.f32 %v4274_v57  ;;  %v2909_v0 = vand.u32 2147483648, %v8659_v1  ;;  %vm2908_vm2 = vcmp.eq.f32.partialorder %v2907_v44, 8.507059e+37  ;;  %v11035_v44 = vld [vmem:[#allocation153_spill] sm:$0xff] }
 0x51b   :  { %v2896_v27 = vsel %vm2893_vm4, %v2895_v56, %v2891_v32  ;;  %v2902_v37 = vadd.f32 %v4454_v40, %v2901_v41  ;;  %v4275_v56 = vmul.f32 -1.442695, %v2774_v58  ;;  %v11030_v32 = vld [vmem:[#allocation145_spill] sm:$0xff] }
 0x51c   :  { %v2914_v43 = vmul.f32 %v2896_v27, %v7936_v38  ;;  %v2910_v54 = vor.u32 1.1754944e-38, %v2909_v0  ;;  %v11034_v0 = vld [vmem:[#allocation150_spill] sm:$0xff] }
 0x51d   :  { %v2906_v38 = vsel %vm2905_vm5, %v4454_v40, %v2902_v37  ;;  %v11028_v40 = vld [vmem:[#allocation141_spill] sm:$0xff] }
 0x51e   :  { %v8672_v17 = vadd.f32 %v2915_v19, %v2914_v43  ;;  %v2911_v41 = vsel %vm2908_vm2, %v2910_v54, %v2906_v38  ;;  %v11033_v43 = vld [vmem:[#allocation149_spill] sm:$0xff]  ;;  %v2750_v55 = vpop.f32.mrf.mxu2 }
 0x51f   :  { %v11037_v38 = vld [vmem:[#allocation157_spill] sm:$0xff] }
 0x520   :  { %4459 = vtanh.f32 %v8672_v17  ;;  %v4458_v27 = vpop.eup %4457 }
 0x521   :  { %4461 = vpow2.f32 %v4275_v56  ;;  %v8681_v62 = vadd.f32 1.0, %v4458_v27  ;;  %v11038_v27 = vld [vmem:[#allocation191_spill] sm:$0xff] }
 0x523   :  { %4463 = vrcp.f32 %v8681_v62  ;;  %vm2794_vm8 = vweird.f32 %v8681_v62 }
 0x526   :  { %v4460_v22 = vpop.eup %4459 }
 0x527   :  { %v8679_v52 = vmul.f32 %v4460_v22, %v2911_v41  ;;  %v4462_v59 = vpop.eup %4461 }
 0x528   :  { %v8685_v24 = vadd.f32 1.0, %v4462_v59  ;;  %v11039_v59 = vld [vmem:[#allocation55_spill] sm:$0xff] }
 0x529   :  { %2935 = vmatmul.f32.vlgmr.msra.gmra.mxu0 %v8679_v52  ;;  %2975 = vmatmul.f32.vlgmr.msra.gmra.mxu2 %v8679_v52  ;;  %v8697_v1 = vpop.eup %4463 }
 0x52a   :  { %3079 = vmatpush.msra.mxu0 %v7951_v51  ;;  %3119 = vmatpush.msra.mxu2 %v7954_v35  ;;  %4465 = vrcp.f32 %v8685_v24  ;;  %v11025_v35 = vld [vmem:[#allocation136_spill] sm:$0xff]  ;;  %vm2795_vm6 = vweird.f32 %v8697_v1  ;;  %vm2809_vm9 = vweird.f32 %v8685_v24 }
 0x52b   :  { %vm8735_vm10 = vmor %vm2794_vm8, %vm2795_vm6 }
 0x52c   :  { %3080 = vmatpush.msra.mxu0 %v7959_v8  ;;  %3120 = vmatpush.msra.mxu2 %v7962_v16  ;;  %v2790_v8 = vmul.f32 %v8697_v1, %v8681_v62 }
 0x52e   :  { %3081 = vmatpush.msra.mxu0 %v7965_v31  ;;  %3121 = vmatpush.msra.mxu2 %v7968_v47  ;;  %v11026_v31 = vld [vmem:[#allocation137_spill] sm:$0xff]  ;;  %v11027_v47 = vld [vmem:[#allocation138_spill] sm:$0xff] }
 0x530   :  { %3082 = vmatpush.msra.mxu0 %v7971_v49  ;;  %3122 = vmatpush.msra.mxu2 %v7974_v29  ;;  %v8701_v51 = vpop.eup %4465  ;;  %v2710_v49 = vpop.f32.mrf.mxu0 }
 0x531   :  { %3015 = vmatmul.f32.vlgmr.msrb.gmra.mxu0 %v8679_v52  ;;  %3055 = vmatmul.f32.vlgmr.msrb.gmra.mxu2 %v8679_v52  ;;  %v2805_v16 = vmul.f32 %v8701_v51, %v8685_v24  ;;  %v2730_v29 = vpop.f32.mrf.mxu1  ;;  %v2770_v37 = vpop.f32.mrf.mxu3  ;;  %vm2810_vm7 = vweird.f32 %v8701_v51 }
 0x532   :  { %3083 = vmatpush.msra.mxu0 %v7983_v39  ;;  %3123 = vmatpush.msra.mxu2 %v11025_v35  ;;  %v2731_v61 = vadd.f32 %v2730_v29, %v2710_v49  ;;  %v2791_v39 = vsub.f32 1.0, %v2790_v8  ;;  %v2771_v56 = vadd.f32 %v2770_v37, %v2750_v55  ;;  %v11040_v35 = vld [vmem:[#allocation56_spill] sm:$0xff]  ;;  %v2815_v8 = vand.u32 2147483648, %v8685_v24  ;;  %v11043_v29 = vld [vmem:[#allocation158_spill] sm:$0xff]  ;;  %vm8745_vm11 = vmor %vm2809_vm9, %vm2810_vm7 }
 0x533   :  { %v2806_v14 = vsub.f32 1.0, %v2805_v16  ;;  %v2800_v16 = vand.u32 2147483648, %v8681_v62  ;;  %v2813_v49 = vand.u32 2147483647, %v8685_v24  ;;  %v11050_v55 = vld [vmem:[#allocation162_spill] sm:$0xff]  ;;  %v11052_v37 = vld [vmem:[#allocation64_spill] sm:$0xff] }
 0x534   :  { %3084 = vmatpush.msra.mxu0 %v11026_v31  ;;  %3124 = vmatpush.msra.mxu2 %v11027_v47  ;;  %v2775_v57 = vadd.f32 %v2731_v61, %v11031_v33  ;;  %v2792_v58 = vmul.f32 %v8697_v1, %v2791_v39  ;;  %v2776_v54 = vadd.f32 %v2771_v56, %v11038_v27  ;;  %v2798_v47 = vand.u32 2147483647, %v8681_v62  ;;  %v8861_v61 = vld [vmem:[#allocation3 + $0x5a0] sm:$0xff] }
 0x535   :  { %v2807_v3 = vmul.f32 %v8701_v51, %v2806_v14  ;;  %v2816_v24 = vor.u32 1.1754944e-38, %v2815_v8  ;;  %vm2814_vm13 = vcmp.eq.f32.partialorder %v2813_v49, 8.507059e+37  ;;  %v11058_v8 = vld [vmem:[#allocation173_spill] sm:$0xff] }
 0x536   :  { %3085 = vmatpush.msra.mxu0 %v11028_v40  ;;  %3125 = vmatpush.msra.mxu2 %v11029_v48  ;;  %v4276_v19 = vmul.f32 -1.442695, %v2775_v57  ;;  %v2793_v22 = vadd.f32 %v8697_v1, %v2792_v58  ;;  %v11044_v40 = vld [vmem:[#allocation161_spill] sm:$0xff]  ;;  %vm2799_vm12 = vcmp.eq.f32.partialorder %v2798_v47, 8.507059e+37  ;;  %v11053_v58 = vld [vmem:[#allocation166_spill] sm:$0xff] }
 0x537   :  { %v2808_v41 = vadd.f32 %v8701_v51, %v2807_v3  ;;  %v11051_v3 = vld [vmem:[#allocation63_spill] sm:$0xff] }
 0x538   :  { %3086 = vmatpush.msra.mxu0 %v11030_v32  ;;  %3126 = vmatpush.msra.mxu2 %v8008_v5  ;;  %4467 = vpow2.f32 %v4276_v19  ;;  %v11036_v5 = vld [vmem:[#allocation154_spill] sm:$0xff]  ;;  %v2797_v14 = vsel %vm8735_vm10, %v8697_v1, %v2793_v22  ;;  %v2801_v32 = vor.u32 1.1754944e-38, %v2800_v16  ;;  %v11049_v19 = vld [vmem:[#allocation60_spill] sm:$0xff] }
 0x539   :  { %4469 = vtanh.f32 %v2776_v54  ;;  %v2812_v62 = vsel %vm8745_vm11, %v8701_v51, %v2808_v41  ;;  %v11047_v51 = vld [vmem:[#allocation59_spill] sm:$0xff]  ;;  %v11057_v41 = vld [vmem:[#allocation170_spill] sm:$0xff] }
 0x53a   :  { %3087 = vmatpush.msra.mxu0 %v11032_v28  ;;  %3127 = vmatpush.msra.mxu2 %v11033_v43  ;;  %v2802_v28 = vsel %vm2799_vm12, %v2801_v32, %v2797_v14  ;;  %v2817_v1 = vsel %vm2814_vm13, %v2816_v24, %v2812_v62  ;;  %v11063_v14 = vld [vmem:[#allocation73_spill] sm:$0xff]  ;;  %v8872_v24 = vld [vmem:[#allocation3 + $0x568] sm:$0xff] }
 0x53b   :  { %v8869_v62 = vld [vmem:[#allocation3 + $0x560] sm:$0xff]  ;;  %v11065_v32 = vld [vmem:[#allocation178_spill] sm:$0xff] }
 0x53c   :  { %3088 = vmatpush.msra.mxu0 %v11034_v0  ;;  %3128 = vmatpush.msra.mxu2 %v11035_v44  ;;  %v11054_v0 = vld [vmem:[#allocation169_spill] sm:$0xff] }
 0x53e   :  { %3089 = vmatpush.msra.mxu0 %v11036_v5  ;;  %3129 = vmatpush.msra.mxu2 %v11037_v38  ;;  %v4468_v48 = vpop.eup %4467  ;;  %v11055_v5 = vld [vmem:[#allocation67_spill] sm:$0xff]  ;;  %v11056_v38 = vld [vmem:[#allocation68_spill] sm:$0xff] }
 0x53f   :  { %v2788_v39 = vadd.f32 1.0, %v4468_v48  ;;  %v4470_v57 = vpop.eup %4469  ;;  %v8854_v48 = vld [vmem:[#allocation3 + $0x5e8] sm:$0xff] }
 0x540   :  { %3090 = vmatpush.msra.mxu0 %v11039_v59  ;;  %3130 = vmatpush.msra.mxu2 %v11040_v35  ;;  %v2836_v43 = vmul.f32 %v4470_v57, %v2802_v28  ;;  %v8877_v57 = vld [vmem:[#allocation3 + $0x520] sm:$0xff]  ;;  %v8880_v28 = vld [vmem:[#allocation3 + $0x528] sm:$0xff] }
 0x541   :  { %4471 = vrcp.f32 %v2788_v39  ;;  %v2830_v56 = vand.u32 2147483648, %v2788_v39  ;;  %v2828_v22 = vand.u32 2147483647, %v2788_v39  ;;  %vm2824_vm15 = vweird.f32 %v2788_v39 }
 0x542   :  { %3091 = vmatpush.msra.mxu0 %v11043_v29  ;;  %3131 = vmatpush.msra.mxu2 %v11044_v40  ;;  %v8835_v29 = vld [vmem:[#allocation3 + $0x660] sm:$0xff]  ;;  %v8838_v40 = vld [vmem:[#allocation3 + $0x668] sm:$0xff] }
 0x543   :  { %v2831_v35 = vor.u32 1.1754944e-38, %v2830_v56  ;;  %vm2829_vm4 = vcmp.eq.f32.partialorder %v2828_v22, 8.507059e+37  ;;  %v8909_v56 = vld [vmem:[#allocation3 + $0x420] sm:$0xff]  ;;  %v11077_v22 = vld [vmem:[#allocation184_spill] sm:$0xff] }
 0x544   :  { %3092 = vmatpush.msra.mxu0 %v8073_v6  ;;  %3132 = vmatpush.msra.mxu2 %v8076_v25  ;;  %v11048_v6 = vld [vmem:[#allocation165_spill] sm:$0xff] }
 0x545   :  { %v2835_v25 = vmul.f32 %v2817_v1, %v11048_v6  ;;  %v11066_v1 = vld [vmem:[#allocation180_spill] sm:$0xff]  ;;  %v8888_v6 = vld [vmem:[#allocation3 + $0x4e8] sm:$0xff] }
 0x546   :  { %3093 = vmatpush.msra.mxu0 %v8080_v34  ;;  %3133 = vmatpush.msra.mxu2 %v8083_v12 }
 0x547   :  { %v4472_v34 = vpop.eup %4471  ;;  %v8766_v12 = vadd.f32 %v2836_v43, %v2835_v25  ;;  %v11067_v43 = vld [vmem:[#allocation77_spill] sm:$0xff]  ;;  %v11068_v25 = vld [vmem:[#allocation78_spill] sm:$0xff] }
 0x548   :  { %3094 = vmatpush.msra.mxu0 %v8086_v63  ;;  %3134 = vmatpush.msra.mxu2 %v11047_v51  ;;  %v2820_v63 = vmul.f32 %v4472_v34, %v2788_v39  ;;  %vm2825_vm14 = vweird.f32 %v4472_v34  ;;  %v11062_v39 = vld [vmem:[#allocation177_spill] sm:$0xff] }
 0x549   :  { %3095 = vmatmul.f32.vlgmr.msra.gmra.mxu0 %v8679_v52  ;;  %3135 = vmatmul.f32.vlgmr.msra.gmra.mxu2 %v8679_v52  ;;  %4473 = vtanh.f32 %v8766_v12  ;;  %vm2826_vm3 = vmor %vm2824_vm15, %vm2825_vm14  ;;  %v8885_v51 = vld [vmem:[#allocation3 + $0x4e0] sm:$0xff] }
 0x54a   :  { %3159 = vmatpush.msrb.mxu0 %v11049_v19  ;;  %3199 = vmatpush.msrb.mxu2 %v11050_v55  ;;  %v2821_v44 = vsub.f32 1.0, %v2820_v63  ;;  %v11069_v19 = vld [vmem:[#allocation181_spill] sm:$0xff] }
 0x54b   :  { %v8893_v55 = vld [vmem:[#allocation3 + $0x4a0] sm:$0xff] }
 0x54c   :  { %3160 = vmatpush.msrb.mxu0 %v11051_v3  ;;  %3200 = vmatpush.msrb.mxu2 %v11052_v37  ;;  %v2822_v54 = vmul.f32 %v4472_v34, %v2821_v44  ;;  %v11070_v3 = vld [vmem:[#allocation182_spill] sm:$0xff]  ;;  %v11071_v37 = vld [vmem:[#allocation81_spill] sm:$0xff]  ;;  %v11073_v44 = vld [vmem:[#allocation183_spill] sm:$0xff] }
 0x54d   :  { %v8901_v63 = vld [vmem:[#allocation3 + $0x460] sm:$0xff] }
 0x54e   :  { %3161 = vmatpush.msrb.mxu0 %v11053_v58  ;;  %3201 = vmatpush.msrb.mxu2 %v11054_v0  ;;  %v2823_v59 = vadd.f32 %v4472_v34, %v2822_v54  ;;  %v8904_v58 = vld [vmem:[#allocation3 + $0x468] sm:$0xff]  ;;  %v8920_v54 = vld [vmem:[#allocation3 + $0x7f8] sm:$0xff] }
 0x54f   :  { %v4474_v31 = vpop.eup %4473  ;;  %v11072_v0 = vld [vmem:[#allocation82_spill] sm:$0xff]  ;;  %11076 = vst [vmem:[#allocation111_spill] sm:$0xff] %v8920_v54 }
 0x550   :  { %3162 = vmatpush.msrb.mxu0 %v11055_v5  ;;  %3202 = vmatpush.msrb.mxu2 %v11056_v38  ;;  %v2827_v16 = vsel %vm2826_vm3, %v4472_v34, %v2823_v59  ;;  %v8896_v34 = vld [vmem:[#allocation3 + $0x4a8] sm:$0xff]  ;;  %v8917_v38 = vld [vmem:[#allocation3 + $0x7f0] sm:$0xff] }
 0x551   :  { %v2832_v47 = vsel %vm2829_vm4, %v2831_v35, %v2827_v16  ;;  %v8912_v5 = vld [vmem:[#allocation3 + $0x428] sm:$0xff]  ;;  %11075 = vst [vmem:[#allocation108_spill] sm:$0xff] %v8917_v38  ;;  %v8925_v59 = vld [vmem:[#allocation3 + $0x7b0] sm:$0xff]  ;;  %v8928_v35 = vld [vmem:[#allocation3 + $0x7b8] sm:$0xff] }
 0x552   :  { %3163 = vmatpush.msrb.mxu0 %v11057_v41  ;;  %3203 = vmatpush.msrb.mxu2 %v8128_v21  ;;  %v8781_v49 = vmul.f32 %v4474_v31, %v2832_v47  ;;  %v8787_v21 = vld [vmem:[#allocation3 + $0x7e0] sm:$0xff]  ;;  %11074 = vst [vmem:[#allocation107_spill] sm:$0xff] %v8912_v5  ;;  %v8933_v31 = vld [vmem:[#allocation3 + $0x770] sm:$0xff]  ;;  %v8936_v47 = vld [vmem:[#allocation3 + $0x778] sm:$0xff] }
 0x553   :  { %v11078_v41 = vld [vmem:[#allocation85_spill] sm:$0xff]  ;;  %11079 = vst [vmem:[#allocation112_spill] sm:$0xff] %v8925_v59 }
 0x554   :  { %3164 = vmatpush.msrb.mxu0 %v11058_v8  ;;  %3204 = vmatpush.msrb.mxu2 %v8135_v23  ;;  %v8790_v23 = vld [vmem:[#allocation3 + $0x7e8] sm:$0xff]  ;;  %11080 = vst [vmem:[#allocation115_spill] sm:$0xff] %v8928_v35  ;;  %v11082_v16 = vld [vmem:[#allocation185_spill] sm:$0xff] }
 0x555   :  { %2955 = vmatmul.f32.vlgmr.msra.gmra.mxu1 %v8781_v49  ;;  %2995 = vmatmul.f32.vlgmr.msra.gmra.mxu3 %v8781_v49  ;;  %v11081_v8 = vld [vmem:[#allocation86_spill] sm:$0xff]  ;;  %11083 = vst [vmem:[#allocation116_spill] sm:$0xff] %v8933_v31 }
 0x556   :  { %3165 = vmatpush.msrb.mxu0 %v8138_v42  ;;  %3205 = vmatpush.msrb.mxu2 %v8141_v13  ;;  %v8795_v42 = vld [vmem:[#allocation3 + $0x7a0] sm:$0xff]  ;;  %11084 = vst [vmem:[#allocation119_spill] sm:$0xff] %v8936_v47 }
 0x557   :  { %3099 = vmatpush.msra.mxu1 %v8787_v21  ;;  %3139 = vmatpush.msra.mxu3 %v8790_v23  ;;  %v8803_v13 = vld [vmem:[#allocation3 + $0x760] sm:$0xff] }
 0x558   :  { %3166 = vmatpush.msrb.mxu0 %v8146_v36  ;;  %3206 = vmatpush.msrb.mxu2 %v8149_v26  ;;  %v8798_v26 = vld [vmem:[#allocation3 + $0x7a8] sm:$0xff] }
 0x559   :  { %3100 = vmatpush.msra.mxu1 %v8795_v42  ;;  %3140 = vmatpush.msra.mxu3 %v8798_v26  ;;  %v8806_v36 = vld [vmem:[#allocation3 + $0x768] sm:$0xff] }
 0x55a   :  { %3167 = vmatpush.msrb.mxu0 %v8156_v45  ;;  %3207 = vmatpush.msrb.mxu2 %v8159_v53  ;;  %v8811_v45 = vld [vmem:[#allocation3 + $0x720] sm:$0xff]  ;;  %v8814_v53 = vld [vmem:[#allocation3 + $0x728] sm:$0xff] }
 0x55b   :  { %3101 = vmatpush.msra.mxu1 %v8803_v13  ;;  %3141 = vmatpush.msra.mxu3 %v8806_v36 }
 0x55c   :  { %3168 = vmatpush.msrb.mxu0 %v8164_v10  ;;  %3208 = vmatpush.msrb.mxu2 %v8167_v2  ;;  %v8819_v10 = vld [vmem:[#allocation3 + $0x6e0] sm:$0xff]  ;;  %v8822_v2 = vld [vmem:[#allocation3 + $0x6e8] sm:$0xff] }
 0x55d   :  { %3102 = vmatpush.msra.mxu1 %v8811_v45  ;;  %3142 = vmatpush.msra.mxu3 %v8814_v53 }
 0x55e   :  { %3169 = vmatpush.msrb.mxu0 %v8172_v20  ;;  %3209 = vmatpush.msrb.mxu2 %v8175_v7  ;;  %v8827_v20 = vld [vmem:[#allocation3 + $0x6a0] sm:$0xff]  ;;  %v8830_v7 = vld [vmem:[#allocation3 + $0x6a8] sm:$0xff] }
 0x55f   :  { %3035 = vmatmul.f32.vlgmr.msrb.gmra.mxu1 %v8781_v49  ;;  %3075 = vmatmul.f32.vlgmr.msrb.gmra.mxu3 %v8781_v49 }
 0x560   :  { %3103 = vmatpush.msra.mxu1 %v8819_v10  ;;  %3143 = vmatpush.msra.mxu3 %v8822_v2 }
 0x561   :  { %3170 = vmatpush.msrb.mxu0 %v8184_v11  ;;  %3210 = vmatpush.msrb.mxu2 %v8187_v15  ;;  %v8843_v11 = vld [vmem:[#allocation3 + $0x620] sm:$0xff]  ;;  %v8846_v15 = vld [vmem:[#allocation3 + $0x628] sm:$0xff] }
 0x562   :  { %3104 = vmatpush.msra.mxu1 %v8827_v20  ;;  %3144 = vmatpush.msra.mxu3 %v8830_v7 }
 0x563   :  { %3171 = vmatpush.msrb.mxu0 %v8192_v46  ;;  %3211 = vmatpush.msrb.mxu2 %v8195_v9  ;;  %v11059_v46 = vld [vmem:[#allocation71_spill] sm:$0xff]  ;;  %v8851_v9 = vld [vmem:[#allocation3 + $0x5e0] sm:$0xff] }
 0x564   :  { %3105 = vmatpush.msra.mxu1 %v8835_v29  ;;  %3145 = vmatpush.msra.mxu3 %v8838_v40 }
 0x565   :  { %3172 = vmatpush.msrb.mxu0 %v8200_v18  ;;  %3212 = vmatpush.msrb.mxu2 %v8203_v50  ;;  %v11060_v18 = vld [vmem:[#allocation72_spill] sm:$0xff]  ;;  %v11061_v50 = vld [vmem:[#allocation174_spill] sm:$0xff] }
 0x566   :  { %3106 = vmatpush.msra.mxu1 %v8843_v11  ;;  %3146 = vmatpush.msra.mxu3 %v8846_v15 }
 0x567   :  { %3173 = vmatpush.msrb.mxu0 %v8208_v4  ;;  %3213 = vmatpush.msrb.mxu2 %v11059_v46  ;;  %v8864_v4 = vld [vmem:[#allocation3 + $0x5a8] sm:$0xff] }
 0x568   :  { %3107 = vmatpush.msra.mxu1 %v8851_v9  ;;  %3147 = vmatpush.msra.mxu3 %v8854_v48  ;;  %v11085_v46 = vld [vmem:[#allocation186_spill] sm:$0xff] }
 0x569   :  { %3174 = vmatpush.msrb.mxu0 %v11060_v18  ;;  %3214 = vmatpush.msrb.mxu2 %v11061_v50  ;;  %v11086_v18 = vld [vmem:[#allocation89_spill] sm:$0xff]  ;;  %v8941_v50 = vld [vmem:[#allocation3 + $0x730] sm:$0xff] }
 0x56a   :  { %3175 = vmatmul.f32.vlgmr.msrb.gmra.mxu0 %v8679_v52  ;;  %3215 = vmatmul.f32.vlgmr.msrb.gmra.mxu2 %v8679_v52  ;;  %v11064_v52 = vld [vmem:[#allocation74_spill] sm:$0xff]  ;;  %11087 = vst [vmem:[#allocation120_spill] sm:$0xff] %v8941_v50 }
 0x56b   :  { %3108 = vmatpush.msra.mxu1 %v8861_v61  ;;  %3148 = vmatpush.msra.mxu3 %v8864_v4 }
 0x56c   :  { %3385 = vmatpush.msra.mxu0 %v11062_v39  ;;  %3425 = vmatpush.msra.mxu2 %v11063_v14  ;;  %v8944_v39 = vld [vmem:[#allocation3 + $0x738] sm:$0xff]  ;;  %v11089_v14 = vld [vmem:[#allocation90_spill] sm:$0xff] }
 0x56d   :  { %3109 = vmatpush.msra.mxu1 %v8869_v62  ;;  %3149 = vmatpush.msra.mxu3 %v8872_v24  ;;  %11088 = vst [vmem:[#allocation123_spill] sm:$0xff] %v8944_v39 }
 0x56e   :  { %3386 = vmatpush.msra.mxu0 %v11064_v52  ;;  %3426 = vmatpush.msra.mxu2 %v11065_v32  ;;  %v11090_v52 = vld [vmem:[#allocation187_spill] sm:$0xff] }
 0x56f   :  { %3110 = vmatpush.msra.mxu1 %v8877_v57  ;;  %3150 = vmatpush.msra.mxu3 %v8880_v28  ;;  %v8949_v32 = vld [vmem:[#allocation3 + $0x6f0] sm:$0xff] }
 0x570   :  { %3387 = vmatpush.msra.mxu0 %v11066_v1  ;;  %3427 = vmatpush.msra.mxu2 %v11067_v43  ;;  %11091 = vst [vmem:[#allocation124_spill] sm:$0xff] %v8949_v32  ;;  %v8952_v1 = vld [vmem:[#allocation3 + $0x6f8] sm:$0xff] }
 0x571   :  { %3111 = vmatpush.msra.mxu1 %v8885_v51  ;;  %3151 = vmatpush.msra.mxu3 %v8888_v6  ;;  %11092 = vst [vmem:[#allocation127_spill] sm:$0xff] %v8952_v1  ;;  %v11093_v43 = vld [vmem:[#allocation188_spill] sm:$0xff] }
 0x572   :  { %3388 = vmatpush.msra.mxu0 %v11068_v25  ;;  %3428 = vmatpush.msra.mxu2 %v11069_v19  ;;  %v11094_v25 = vld [vmem:[#allocation93_spill] sm:$0xff]  ;;  %v8957_v19 = vld [vmem:[#allocation3 + $0x6b0] sm:$0xff] }
 0x573   :  { %3112 = vmatpush.msra.mxu1 %v8893_v55  ;;  %3152 = vmatpush.msra.mxu3 %v8896_v34  ;;  %11095 = vst [vmem:[#allocation128_spill] sm:$0xff] %v8957_v19 }
 0x574   :  { %3389 = vmatpush.msra.mxu0 %v11070_v3  ;;  %3429 = vmatpush.msra.mxu2 %v11071_v37  ;;  %v8960_v3 = vld [vmem:[#allocation3 + $0x6b8] sm:$0xff]  ;;  %v11097_v37 = vld [vmem:[#allocation94_spill] sm:$0xff] }
 0x575   :  { %3113 = vmatpush.msra.mxu1 %v8901_v63  ;;  %3153 = vmatpush.msra.mxu3 %v8904_v58  ;;  %11096 = vst [vmem:[#allocation131_spill] sm:$0xff] %v8960_v3 }
 0x576   :  { %3390 = vmatpush.msra.mxu0 %v11072_v0  ;;  %3430 = vmatpush.msra.mxu2 %v11073_v44  ;;  %v11098_v0 = vld [vmem:[#allocation189_spill] sm:$0xff]  ;;  %v8965_v44 = vld [vmem:[#allocation3 + $0x670] sm:$0xff] }
 0x577   :  { %3114 = vmatpush.msra.mxu1 %v8909_v56  ;;  %3154 = vmatpush.msra.mxu3 %v8912_v5  ;;  %11099 = vst [vmem:[#allocation132_spill] sm:$0xff] %v8965_v44 }
 0x578   :  { %3115 = vmatmul.f32.vlgmr.msra.gmra.mxu1 %v8781_v49  ;;  %3155 = vmatmul.f32.vlgmr.msra.gmra.mxu3 %v8781_v49 }
 0x579   :  { %3179 = vmatpush.msrb.mxu1 %v8917_v38  ;;  %3219 = vmatpush.msrb.mxu3 %v8920_v54 }
 0x57a   :  { %3391 = vmatpush.msra.mxu0 %v11077_v22  ;;  %3431 = vmatpush.msra.mxu2 %v11078_v41  ;;  %v8968_v22 = vld [vmem:[#allocation3 + $0x678] sm:$0xff]  ;;  %v11101_v41 = vld [vmem:[#allocation97_spill] sm:$0xff] }
 0x57b   :  { %3180 = vmatpush.msrb.mxu1 %v8925_v59  ;;  %3220 = vmatpush.msrb.mxu3 %v8928_v35  ;;  %11100 = vst [vmem:[#allocation33_spill] sm:$0xff] %v8968_v22 }
 0x57c   :  { %3392 = vmatpush.msra.mxu0 %v11081_v8  ;;  %3432 = vmatpush.msra.mxu2 %v11082_v16  ;;  %v11102_v8 = vld [vmem:[#allocation98_spill] sm:$0xff]  ;;  %v8973_v16 = vld [vmem:[#allocation3 + $0x630] sm:$0xff] }
 0x57d   :  { %3181 = vmatpush.msrb.mxu1 %v8933_v31  ;;  %3221 = vmatpush.msrb.mxu3 %v8936_v47  ;;  %11103 = vst [vmem:[#allocation135_spill] sm:$0xff] %v8973_v16 }
 0x57e   :  { %3393 = vmatpush.msra.mxu0 %v11085_v46  ;;  %3433 = vmatpush.msra.mxu2 %v11086_v18  ;;  %v8976_v46 = vld [vmem:[#allocation3 + $0x638] sm:$0xff]  ;;  %v11105_v18 = vld [vmem:[#allocation101_spill] sm:$0xff] }
 0x57f   :  { %3182 = vmatpush.msrb.mxu1 %v8941_v50  ;;  %3222 = vmatpush.msrb.mxu3 %v8944_v39  ;;  %11104 = vst [vmem:[#allocation34_spill] sm:$0xff] %v8976_v46 }
 0x580   :  { %3394 = vmatpush.msra.mxu0 %v11089_v14  ;;  %3434 = vmatpush.msra.mxu2 %v11090_v52  ;;  %v11106_v14 = vld [vmem:[#allocation102_spill] sm:$0xff]  ;;  %v8981_v52 = vld [vmem:[#allocation3 + $0x5f0] sm:$0xff] }
 0x581   :  { %3183 = vmatpush.msrb.mxu1 %v8949_v32  ;;  %3223 = vmatpush.msrb.mxu3 %v8952_v1  ;;  %11107 = vst [vmem:[#allocation35_spill] sm:$0xff] %v8981_v52 }
 0x582   :  { %3395 = vmatpush.msra.mxu0 %v11093_v43  ;;  %3435 = vmatpush.msra.mxu2 %v11094_v25  ;;  %v8984_v43 = vld [vmem:[#allocation3 + $0x5f8] sm:$0xff]  ;;  %v11109_v25 = vld [vmem:[#allocation105_spill] sm:$0xff] }
 0x583   :  { %3184 = vmatpush.msrb.mxu1 %v8957_v19  ;;  %3224 = vmatpush.msrb.mxu3 %v8960_v3  ;;  %11108 = vst [vmem:[#allocation36_spill] sm:$0xff] %v8984_v43 }
 0x584   :  { %3396 = vmatpush.msra.mxu0 %v11097_v37  ;;  %3436 = vmatpush.msra.mxu2 %v11098_v0  ;;  %v11110_v37 = vld [vmem:[#allocation106_spill] sm:$0xff]  ;;  %v8989_v0 = vld [vmem:[#allocation3 + $0x5b0] sm:$0xff] }
 0x585   :  { %3185 = vmatpush.msrb.mxu1 %v8965_v44  ;;  %3225 = vmatpush.msrb.mxu3 %v8968_v22  ;;  %11111 = vst [vmem:[#allocation136_spill] sm:$0xff] %v8989_v0 }
 0x586   :  { %3397 = vmatpush.msra.mxu0 %v11101_v41  ;;  %3437 = vmatpush.msra.mxu2 %v11102_v8  ;;  %v8992_v41 = vld [vmem:[#allocation3 + $0x5b8] sm:$0xff]  ;;  %v11113_v8 = vld [vmem:[#allocation109_spill] sm:$0xff] }
 0x587   :  { %3186 = vmatpush.msrb.mxu1 %v8973_v16  ;;  %3226 = vmatpush.msrb.mxu3 %v8976_v46  ;;  %11112 = vst [vmem:[#allocation137_spill] sm:$0xff] %v8992_v41  ;;  %v11146_v46 = vld [vmem:[#allocation152_spill] sm:$0xff] }
 0x588   :  { %3398 = vmatpush.msra.mxu0 %v11105_v18  ;;  %3438 = vmatpush.msra.mxu2 %v11106_v14  ;;  %v11114_v18 = vld [vmem:[#allocation110_spill] sm:$0xff]  ;;  %v8997_v14 = vld [vmem:[#allocation3 + $0x570] sm:$0xff] }
 0x589   :  { %3187 = vmatpush.msrb.mxu1 %v8981_v52  ;;  %3227 = vmatpush.msrb.mxu3 %v8984_v43  ;;  %11115 = vst [vmem:[#allocation138_spill] sm:$0xff] %v8997_v14  ;;  %v9000_v43 = vld [vmem:[#allocation3 + $0x578] sm:$0xff] }
 0x58a   :  { %3399 = vmatpush.msra.mxu0 %v11109_v25  ;;  %3439 = vmatpush.msra.mxu2 %v11110_v37  ;;  %11116 = vst [vmem:[#allocation141_spill] sm:$0xff] %v9000_v43  ;;  %v11117_v25 = vld [vmem:[#allocation113_spill] sm:$0xff]  ;;  %v11118_v37 = vld [vmem:[#allocation114_spill] sm:$0xff]  ;;  %v11144_v52 = vld [vmem:[#allocation148_spill] sm:$0xff] }
 0x58b   :  { %3188 = vmatpush.msrb.mxu1 %v8989_v0  ;;  %3228 = vmatpush.msrb.mxu3 %v8992_v41  ;;  %v9005_v0 = vld [vmem:[#allocation3 + $0x530] sm:$0xff]  ;;  %v9008_v41 = vld [vmem:[#allocation3 + $0x538] sm:$0xff] }
 0x58c   :  { %3400 = vmatpush.msra.mxu0 %v11113_v8  ;;  %3440 = vmatpush.msra.mxu2 %v11114_v18  ;;  %11119 = vst [vmem:[#allocation142_spill] sm:$0xff] %v9005_v0  ;;  %v11121_v8 = vld [vmem:[#allocation117_spill] sm:$0xff]  ;;  %v11122_v18 = vld [vmem:[#allocation118_spill] sm:$0xff] }
 0x58d   :  { %3189 = vmatpush.msrb.mxu1 %v8997_v14  ;;  %3229 = vmatpush.msrb.mxu3 %v9000_v43  ;;  %11120 = vst [vmem:[#allocation145_spill] sm:$0xff] %v9008_v41  ;;  %v9013_v14 = vld [vmem:[#allocation3 + $0x4f0] sm:$0xff]  ;;  %v9016_v43 = vld [vmem:[#allocation3 + $0x4f8] sm:$0xff] }
 0x58e   :  { %3465 = vmatpush.msrb.mxu0 %v11117_v25  ;;  %3505 = vmatpush.msrb.mxu2 %v11118_v37  ;;  %11123 = vst [vmem:[#allocation190_spill] sm:$0xff] %v9013_v14  ;;  %v11125_v25 = vld [vmem:[#allocation121_spill] sm:$0xff]  ;;  %v11126_v37 = vld [vmem:[#allocation122_spill] sm:$0xff] }
 0x58f   :  { %3190 = vmatpush.msrb.mxu1 %v9005_v0  ;;  %3230 = vmatpush.msrb.mxu3 %v9008_v41  ;;  %11124 = vst [vmem:[#allocation146_spill] sm:$0xff] %v9016_v43  ;;  %v9021_v0 = vld [vmem:[#allocation3 + $0x4b0] sm:$0xff]  ;;  %v9024_v41 = vld [vmem:[#allocation3 + $0x4b8] sm:$0xff] }
 0x590   :  { %3466 = vmatpush.msrb.mxu0 %v11121_v8  ;;  %3506 = vmatpush.msrb.mxu2 %v11122_v18  ;;  %11127 = vst [vmem:[#allocation149_spill] sm:$0xff] %v9021_v0  ;;  %v11129_v8 = vld [vmem:[#allocation125_spill] sm:$0xff]  ;;  %v11130_v18 = vld [vmem:[#allocation126_spill] sm:$0xff] }
 0x591   :  { %3191 = vmatpush.msrb.mxu1 %v9013_v14  ;;  %3231 = vmatpush.msrb.mxu3 %v9016_v43  ;;  %11128 = vst [vmem:[#allocation150_spill] sm:$0xff] %v9024_v41  ;;  %v9029_v14 = vld [vmem:[#allocation3 + $0x470] sm:$0xff]  ;;  %v9032_v43 = vld [vmem:[#allocation3 + $0x478] sm:$0xff] }
 0x592   :  { %3467 = vmatpush.msrb.mxu0 %v11125_v25  ;;  %3507 = vmatpush.msrb.mxu2 %v11126_v37  ;;  %11131 = vst [vmem:[#allocation153_spill] sm:$0xff] %v9029_v14  ;;  %v11133_v25 = vld [vmem:[#allocation129_spill] sm:$0xff]  ;;  %v11134_v37 = vld [vmem:[#allocation130_spill] sm:$0xff] }
 0x593   :  { %3192 = vmatpush.msrb.mxu1 %v9021_v0  ;;  %3232 = vmatpush.msrb.mxu3 %v9024_v41  ;;  %11132 = vst [vmem:[#allocation154_spill] sm:$0xff] %v9032_v43  ;;  %v9037_v0 = vld [vmem:[#allocation3 + $0x430] sm:$0xff]  ;;  %v9040_v41 = vld [vmem:[#allocation3 + $0x438] sm:$0xff] }
 0x594   :  { %3468 = vmatpush.msrb.mxu0 %v11129_v8  ;;  %3508 = vmatpush.msrb.mxu2 %v11130_v18  ;;  %11135 = vst [vmem:[#allocation157_spill] sm:$0xff] %v9037_v0  ;;  %v11137_v8 = vld [vmem:[#allocation133_spill] sm:$0xff]  ;;  %v11138_v18 = vld [vmem:[#allocation134_spill] sm:$0xff] }
 0x595   :  { %3193 = vmatpush.msrb.mxu1 %v9029_v14  ;;  %3233 = vmatpush.msrb.mxu3 %v9032_v43  ;;  %11136 = vst [vmem:[#allocation191_spill] sm:$0xff] %v9040_v41  ;;  %v11139_v43 = vld [vmem:[#allocation139_spill] sm:$0xff]  ;;  %v11142_v14 = vld [vmem:[#allocation144_spill] sm:$0xff] }
 0x596   :  { %3469 = vmatpush.msrb.mxu0 %v11133_v25  ;;  %3509 = vmatpush.msrb.mxu2 %v11134_v37  ;;  %v11140_v25 = vld [vmem:[#allocation140_spill] sm:$0xff]  ;;  %v11141_v37 = vld [vmem:[#allocation143_spill] sm:$0xff] }
 0x597   :  { %3194 = vmatpush.msrb.mxu1 %v9037_v0  ;;  %3234 = vmatpush.msrb.mxu3 %v9040_v41  ;;  %v11143_v0 = vld [vmem:[#allocation147_spill] sm:$0xff] }
 0x598   :  { %3195 = vmatmul.f32.vlgmr.msrb.gmra.mxu1 %v8781_v49  ;;  %3235 = vmatmul.f32.vlgmr.msrb.gmra.mxu3 %v8781_v49  ;;  %v11145_v41 = vld [vmem:[#allocation151_spill] sm:$0xff] }
 0x599   :  { %3470 = vmatpush.msrb.mxu0 %v11137_v8  ;;  %3510 = vmatpush.msrb.mxu2 %v11138_v18  ;;  %v11147_v49 = vld [vmem:[#allocation155_spill] sm:$0xff]  ;;  %v11148_v8 = vld [vmem:[#allocation156_spill] sm:$0xff] }
 0x59a   :  { %3405 = vmatpush.msra.mxu1 %v11139_v43  ;;  %3445 = vmatpush.msra.mxu3 %v11140_v25  ;;  %v11149_v18 = vld [vmem:[#allocation159_spill] sm:$0xff]  ;;  %v11150_v43 = vld [vmem:[#allocation160_spill] sm:$0xff] }
 0x59b   :  { %3471 = vmatpush.msrb.mxu0 %v11141_v37  ;;  %3511 = vmatpush.msrb.mxu2 %v11142_v14  ;;  %v11151_v25 = vld [vmem:[#allocation163_spill] sm:$0xff]  ;;  %v11152_v37 = vld [vmem:[#allocation164_spill] sm:$0xff] }
 0x59c   :  { %3406 = vmatpush.msra.mxu1 %v11143_v0  ;;  %3446 = vmatpush.msra.mxu3 %v11144_v52  ;;  %v11153_v14 = vld [vmem:[#allocation167_spill] sm:$0xff]  ;;  %v11154_v0 = vld [vmem:[#allocation168_spill] sm:$0xff] }
 0x59d   :  { %3472 = vmatpush.msrb.mxu0 %v11145_v41  ;;  %3512 = vmatpush.msrb.mxu2 %v11146_v46  ;;  %v11155_v52 = vld [vmem:[#allocation171_spill] sm:$0xff]  ;;  %v11156_v41 = vld [vmem:[#allocation172_spill] sm:$0xff] }
 0x59e   :  { %3407 = vmatpush.msra.mxu1 %v11147_v49  ;;  %3447 = vmatpush.msra.mxu3 %v11148_v8  ;;  %v11157_v46 = vld [vmem:[#allocation175_spill] sm:$0xff]  ;;  %v11158_v49 = vld [vmem:[#allocation176_spill] sm:$0xff]  ;;  %v11159_v8 = vld [vmem:[#allocation17_spill] sm:$0xff] }
 0x59f   :  { %3473 = vmatpush.msrb.mxu0 %v11149_v18  ;;  %3513 = vmatpush.msrb.mxu2 %v11150_v43  ;;  %v11160_v18 = vld [vmem:[#allocation179_spill] sm:$0xff]  ;;  %v11161_v43 = vld [vmem:[#allocation18_spill] sm:$0xff] }
 0x5a0   :  { %3408 = vmatpush.msra.mxu1 %v11151_v25  ;;  %3448 = vmatpush.msra.mxu3 %v11152_v37  ;;  %v11162_v25 = vld [vmem:[#allocation19_spill] sm:$0xff]  ;;  %v11163_v37 = vld [vmem:[#allocation10_spill] sm:$0xff] }
 0x5a1   :  { %3474 = vmatpush.msrb.mxu0 %v11153_v14  ;;  %3514 = vmatpush.msrb.mxu2 %v11154_v0  ;;  %v11164_v14 = vld [vmem:[#allocation11_spill] sm:$0xff]  ;;  %v11165_v0 = vld [vmem:[#allocation12_spill] sm:$0xff] }
 0x5a2   :  { %3409 = vmatpush.msra.mxu1 %v11155_v52  ;;  %3449 = vmatpush.msra.mxu3 %v11156_v41  ;;  %v11166_v52 = vld [vmem:[#allocation9_spill] sm:$0xff] }
 0x5a3   :  { %3475 = vmatpush.msrb.mxu0 %v11157_v46  ;;  %3515 = vmatpush.msrb.mxu2 %v11158_v49  ;;  %v11167_v41 = vld [vmem:[#allocation13_spill] sm:$0xff]  ;;  %v11168_v46 = vld [vmem:[#allocation14_spill] sm:$0xff]  ;;  %v11169_v49 = vld [vmem:[#allocation15_spill] sm:$0xff] }
 0x5a4   :  { %3410 = vmatpush.msra.mxu1 %v11159_v8  ;;  %3450 = vmatpush.msra.mxu3 %v11160_v18  ;;  %v11170_v8 = vld [vmem:[#allocation16_spill] sm:$0xff] }
 0x5a5   :  { %3476 = vmatpush.msrb.mxu0 %v11161_v43  ;;  %3516 = vmatpush.msrb.mxu2 %v11162_v25  ;;  %v11171_v18 = vld [vmem:[#allocation20_spill] sm:$0xff]  ;;  %v11172_v43 = vld [vmem:[#allocation29_spill] sm:$0xff]  ;;  %v11173_v25 = vld [vmem:[#allocation30_spill] sm:$0xff] }
 0x5a6   :  { %3411 = vmatpush.msra.mxu1 %v11163_v37  ;;  %3451 = vmatpush.msra.mxu3 %v11164_v14  ;;  %v11174_v37 = vld [vmem:[#allocation31_spill] sm:$0xff]  ;;  %v11175_v14 = vld [vmem:[#allocation32_spill] sm:$0xff] }
 0x5a7   :  { %3477 = vmatpush.msrb.mxu0 %v11165_v0  ;;  %3517 = vmatpush.msrb.mxu2 %v11166_v52  ;;  %v11176_v0 = vld [vmem:[#allocation37_spill] sm:$0xff]  ;;  %v11177_v52 = vld [vmem:[#allocation38_spill] sm:$0xff] }
 0x5a8   :  { %3412 = vmatpush.msra.mxu1 %v11167_v41  ;;  %3452 = vmatpush.msra.mxu3 %v11168_v46  ;;  %v11178_v41 = vld [vmem:[#allocation39_spill] sm:$0xff]  ;;  %v11179_v46 = vld [vmem:[#allocation40_spill] sm:$0xff] }
 0x5a9   :  { %3478 = vmatpush.msrb.mxu0 %v11169_v49  ;;  %3518 = vmatpush.msrb.mxu2 %v11170_v8  ;;  %v11180_v49 = vld [vmem:[#allocation41_spill] sm:$0xff]  ;;  %v11181_v8 = vld [vmem:[#allocation42_spill] sm:$0xff] }
 0x5aa   :  { %3413 = vmatpush.msra.mxu1 %v11171_v18  ;;  %3453 = vmatpush.msra.mxu3 %v11172_v43  ;;  %v11182_v18 = vld [vmem:[#allocation43_spill] sm:$0xff]  ;;  %v11183_v43 = vld [vmem:[#allocation44_spill] sm:$0xff] }
 0x5ab   :  { %3479 = vmatpush.msrb.mxu0 %v11173_v25  ;;  %3519 = vmatpush.msrb.mxu2 %v11174_v37  ;;  %v11184_v25 = vld [vmem:[#allocation45_spill] sm:$0xff]  ;;  %v11185_v37 = vld [vmem:[#allocation46_spill] sm:$0xff] }
 0x5ac   :  { %3414 = vmatpush.msra.mxu1 %v11175_v14  ;;  %3454 = vmatpush.msra.mxu3 %v11176_v0  ;;  %v11186_v14 = vld [vmem:[#allocation47_spill] sm:$0xff]  ;;  %v11187_v0 = vld [vmem:[#allocation48_spill] sm:$0xff]  ;;  %v2976_v44 = vpop.f32.mrf.mxu2 }
 0x5ad   :  { %3480 = vmatpush.msrb.mxu0 %v11177_v52  ;;  %3520 = vmatpush.msrb.mxu2 %v11178_v41  ;;  %v11188_v52 = vld [vmem:[#allocation49_spill] sm:$0xff]  ;;  %v11189_v41 = vld [vmem:[#allocation50_spill] sm:$0xff] }
 0x5ae   :  { %3415 = vmatpush.msra.mxu1 %v11179_v46  ;;  %3455 = vmatpush.msra.mxu3 %v11180_v49  ;;  %v11190_v46 = vld [vmem:[#allocation51_spill] sm:$0xff]  ;;  %v11191_v49 = vld [vmem:[#allocation52_spill] sm:$0xff] }
 0x5b0   :  { %3416 = vmatpush.msra.mxu1 %v11181_v8  ;;  %3456 = vmatpush.msra.mxu3 %v11182_v18  ;;  %v11192_v8 = vld [vmem:[#allocation53_spill] sm:$0xff]  ;;  %v11193_v18 = vld [vmem:[#allocation54_spill] sm:$0xff] }
 0x5b2   :  { %3417 = vmatpush.msra.mxu1 %v11183_v43  ;;  %3457 = vmatpush.msra.mxu3 %v11184_v25  ;;  %v11194_v43 = vld [vmem:[#allocation57_spill] sm:$0xff]  ;;  %v11195_v25 = vld [vmem:[#allocation58_spill] sm:$0xff] }
 0x5b4   :  { %3418 = vmatpush.msra.mxu1 %v11185_v37  ;;  %3458 = vmatpush.msra.mxu3 %v11186_v14  ;;  %v11196_v37 = vld [vmem:[#allocation61_spill] sm:$0xff]  ;;  %v11197_v14 = vld [vmem:[#allocation62_spill] sm:$0xff] }
 0x5b6   :  { %3419 = vmatpush.msra.mxu1 %v11187_v0  ;;  %3459 = vmatpush.msra.mxu3 %v11188_v52  ;;  %v11198_v0 = vld [vmem:[#allocation25_spill] sm:$0xff] }
 0x5b7   :  { %v11199_v52 = vld [vmem:[#allocation65_spill] sm:$0xff] }
 0x5b8   :  { %3420 = vmatpush.msra.mxu1 %v11189_v41  ;;  %3460 = vmatpush.msra.mxu3 %v11190_v46  ;;  %v11200_v41 = vld [vmem:[#allocation26_spill] sm:$0xff]  ;;  %v11201_v46 = vld [vmem:[#allocation27_spill] sm:$0xff] }
 0x5ba   :  { %3485 = vmatpush.msrb.mxu1 %v11191_v49  ;;  %3525 = vmatpush.msrb.mxu3 %v11192_v8  ;;  %v11202_v49 = vld [vmem:[#allocation28_spill] sm:$0xff]  ;;  %v11203_v8 = vld [vmem:[#allocation66_spill] sm:$0xff] }
 0x5bc   :  { %3486 = vmatpush.msrb.mxu1 %v11193_v18  ;;  %3526 = vmatpush.msrb.mxu3 %v11194_v43  ;;  %v11204_v18 = vld [vmem:[#allocation69_spill] sm:$0xff]  ;;  %v11205_v43 = vld [vmem:[#allocation70_spill] sm:$0xff] }
 0x5be   :  { %3487 = vmatpush.msrb.mxu1 %v11195_v25  ;;  %3527 = vmatpush.msrb.mxu3 %v11196_v37  ;;  %v11206_v25 = vld [vmem:[#allocation75_spill] sm:$0xff]  ;;  %v11207_v37 = vld [vmem:[#allocation76_spill] sm:$0xff] }
 0x5c0   :  { %3488 = vmatpush.msrb.mxu1 %v11197_v14  ;;  %3528 = vmatpush.msrb.mxu3 %v11198_v0  ;;  %v11208_v14 = vld [vmem:[#allocation79_spill] sm:$0xff]  ;;  %v11209_v0 = vld [vmem:[#allocation21_spill] sm:$0xff] }
 0x5c2   :  { %3489 = vmatpush.msrb.mxu1 %v11199_v52  ;;  %3529 = vmatpush.msrb.mxu3 %v11200_v41  ;;  %v11210_v52 = vld [vmem:[#allocation80_spill] sm:$0xff]  ;;  %v11211_v41 = vld [vmem:[#allocation22_spill] sm:$0xff] }
 0x5c4   :  { %3490 = vmatpush.msrb.mxu1 %v11201_v46  ;;  %3530 = vmatpush.msrb.mxu3 %v11202_v49  ;;  %v11212_v46 = vld [vmem:[#allocation23_spill] sm:$0xff]  ;;  %v11213_v49 = vld [vmem:[#allocation24_spill] sm:$0xff] }
 0x5c6   :  { %3491 = vmatpush.msrb.mxu1 %v11203_v8  ;;  %3531 = vmatpush.msrb.mxu3 %v11204_v18  ;;  %v11214_v8 = vld [vmem:[#allocation91_spill] sm:$0xff]  ;;  %v11215_v18 = vld [vmem:[#allocation92_spill] sm:$0xff] }
 0x5c8   :  { %3492 = vmatpush.msrb.mxu1 %v11205_v43  ;;  %3532 = vmatpush.msrb.mxu3 %v11206_v25  ;;  %v11216_v43 = vld [vmem:[#allocation95_spill] sm:$0xff]  ;;  %v2936_v25 = vpop.f32.mrf.mxu0 }
 0x5ca   :  { %3493 = vmatpush.msrb.mxu1 %v11207_v37  ;;  %3533 = vmatpush.msrb.mxu3 %v11208_v14  ;;  %v11217_v37 = vld [vmem:[#allocation96_spill] sm:$0xff]  ;;  %v11218_v14 = vld [vmem:[#allocation99_spill] sm:$0xff] }
 0x5cc   :  { %3494 = vmatpush.msrb.mxu1 %v11209_v0  ;;  %3534 = vmatpush.msrb.mxu3 %v11210_v52  ;;  %v11219_v52 = vld [vmem:[#allocation100_spill] sm:$0xff] }
 0x5ce   :  { %3495 = vmatpush.msrb.mxu1 %v11211_v41  ;;  %3535 = vmatpush.msrb.mxu3 %v11212_v46  ;;  %v11220_v41 = vld [vmem:[#allocation103_spill] sm:$0xff] }
 0x5cf   :  { %v11221_v46 = vld [vmem:[#allocation83_spill] sm:$0xff] }
 0x5d0   :  { %3496 = vmatpush.msrb.mxu1 %v11213_v49  ;;  %3536 = vmatpush.msrb.mxu3 %v11214_v8  ;;  %v11222_v49 = vld [vmem:[#allocation104_spill] sm:$0xff] }
 0x5d1   :  { %v5258_v8 = vld [vmem:[#allocation3 + $0x418] sm:$0xff] }
 0x5d2   :  { %3497 = vmatpush.msrb.mxu1 %v11215_v18  ;;  %3537 = vmatpush.msrb.mxu3 %v11216_v43  ;;  %v2956_v0 = vpop.f32.mrf.mxu1 }
 0x5d3   :  { %v2957_v16 = vadd.f32 %v2956_v0, %v2936_v25 }
 0x5d4   :  { %3498 = vmatpush.msrb.mxu1 %v11217_v37  ;;  %3538 = vmatpush.msrb.mxu3 %v11218_v14  ;;  %v3016_v37 = vpop.f32.mrf.mxu0  ;;  %v11223_v14 = vld [vmem:[#allocation84_spill] sm:$0xff] }
 0x5d5   :  { %v3318_v22 = vadd.f32 %v11221_v46, %v2957_v16 }
 0x5d6   :  { %3499 = vmatpush.msrb.mxu1 %v11219_v52  ;;  %3539 = vmatpush.msrb.mxu3 %v11220_v41  ;;  %v11224_v52 = vld [vmem:[#allocation87_spill] sm:$0xff] }
 0x5d7   :  { %v4283_v18 = vmul.f32 -1.442695, %v3318_v22 }
 0x5d8   :  { %3500 = vmatpush.msrb.mxu1 %v11222_v49  ;;  %3540 = vmatpush.msrb.mxu3 %v5258_v8  ;;  %v2996_v43 = vpop.f32.mrf.mxu3 }
 0x5d9   :  { %4475 = vpow2.f32 %v4283_v18  ;;  %v2997_v3 = vadd.f32 %v2996_v43, %v2976_v44  ;;  %v3056_v43 = vpop.f32.mrf.mxu2 }
 0x5db   :  { %v3319_v1 = vadd.f32 %v11223_v14, %v2997_v3 }
 0x5dc   :  { %v3036_v19 = vpop.f32.mrf.mxu1 }
 0x5dd   :  { %v3037_v25 = vadd.f32 %v3036_v19, %v3016_v37  ;;  %v4284_v0 = vmul.f32 -1.442695, %v3319_v1 }
 0x5df   :  { %v3320_v32 = vadd.f32 %v11224_v52, %v3037_v25  ;;  %v4476_v41 = vpop.eup %4475  ;;  %4477 = vpow2.f32 %v4284_v0 }
 0x5e0   :  { %v3331_v46 = vadd.f32 1.0, %v4476_v41 }
 0x5e1   :  { %v4285_v16 = vmul.f32 -1.442695, %v3320_v32  ;;  %v11225_v32 = vld [vmem:[#allocation88_spill] sm:$0xff] }
 0x5e2   :  { %v3076_v39 = vpop.f32.mrf.mxu3  ;;  %vm3339_vm1 = vweird.f32 %v3331_v46 }
 0x5e3   :  { %4479 = vpow2.f32 %v4285_v16  ;;  %v3077_v1 = vadd.f32 %v3076_v39, %v3056_v43  ;;  %v3345_v16 = vand.u32 2147483648, %v3331_v46  ;;  %v3096_v39 = vpop.f32.mrf.mxu0 }
 0x5e4   :  { %4481 = vrcp.f32 %v3331_v46 }
 0x5e5   :  { %v4478_v49 = vpop.eup %4477  ;;  %v3321_v25 = vadd.f32 %v11225_v32, %v3077_v1  ;;  %v3346_v32 = vor.u32 1.1754944e-38, %v3345_v16 }
 0x5e6   :  { %v3332_v22 = vadd.f32 1.0, %v4478_v49 }
 0x5e8   :  { %4483 = vrcp.f32 %v3332_v22  ;;  %v3360_v47 = vand.u32 2147483648, %v3332_v22  ;;  %v3358_v1 = vand.u32 2147483647, %v3332_v22  ;;  %vm3354_vm6 = vweird.f32 %v3332_v22 }
 0x5e9   :  { %v4480_v8 = vpop.eup %4479 }
 0x5ea   :  { %v4482_v18 = vpop.eup %4481  ;;  %v9133_v44 = vadd.f32 1.0, %v4480_v8  ;;  %v3343_v8 = vand.u32 2147483647, %v3331_v46  ;;  %v3361_v35 = vor.u32 1.1754944e-38, %v3360_v47  ;;  %vm3359_vm9 = vcmp.eq.f32.partialorder %v3358_v1, 8.507059e+37 }
 0x5eb   :  { %v3335_v3 = vmul.f32 %v4482_v18, %v3331_v46  ;;  %vm3340_vm0 = vweird.f32 %v4482_v18 }
 0x5ec   :  { %4485 = vrcp.f32 %v9133_v44  ;;  %vm9138_vm5 = vmor %vm3339_vm1, %vm3340_vm0  ;;  %vm3344_vm7 = vcmp.eq.f32.partialorder %v3343_v8, 8.507059e+37  ;;  %vm3369_vm11 = vweird.f32 %v9133_v44 }
 0x5ed   :  { %v3336_v19 = vsub.f32 1.0, %v3335_v3  ;;  %4487 = vtanh.f32 %v3321_v25 }
 0x5ee   :  { %v4484_v14 = vpop.eup %4483 }
 0x5ef   :  { %v3337_v37 = vmul.f32 %v4482_v18, %v3336_v19  ;;  %v3350_v0 = vmul.f32 %v4484_v14, %v3332_v22  ;;  %vm3355_vm2 = vweird.f32 %v4484_v14 }
 0x5f0   :  { %vm3356_vm8 = vmor %vm3354_vm6, %vm3355_vm2 }
 0x5f1   :  { %v3338_v52 = vadd.f32 %v4482_v18, %v3337_v37  ;;  %v3351_v49 = vsub.f32 1.0, %v3350_v0 }
 0x5f2   :  { %v4486_v41 = vpop.eup %4485 }
 0x5f3   :  { %v3365_v50 = vmul.f32 %v4486_v41, %v9133_v44  ;;  %v3352_v43 = vmul.f32 %v4484_v14, %v3351_v49  ;;  %v3342_v3 = vsel %vm9138_vm5, %v4482_v18, %v3338_v52  ;;  %v4488_v49 = vpop.eup %4487  ;;  %v3136_v18 = vpop.f32.mrf.mxu2  ;;  %vm3370_vm10 = vweird.f32 %v4486_v41 }
 0x5f4   :  { %v3347_v59 = vsel %vm3344_vm7, %v3346_v32, %v3342_v3  ;;  %vm3371_vm12 = vmor %vm3369_vm11, %vm3370_vm10  ;;  %v5261_v32 = vld [vmem:[#allocation3 + $0x3a0] sm:$0xff] }
 0x5f5   :  { %v3116_v19 = vpop.f32.mrf.mxu1  ;;  %v3366_v37 = vsub.f32 1.0, %v3365_v50  ;;  %v3353_v46 = vadd.f32 %v4484_v14, %v3352_v43  ;;  %v3381_v50 = vmul.f32 %v4488_v49, %v3347_v59  ;;  %v5265_v49 = vld [vmem:[#allocation3 + $0x320] sm:$0xff] }
 0x5f6   :  { %v3117_v0 = vadd.f32 %v3116_v19, %v3096_v39 }
 0x5f7   :  { %v3357_v25 = vsel %vm3356_vm8, %v4484_v14, %v3353_v46  ;;  %v3367_v38 = vmul.f32 %v4486_v41, %v3366_v37  ;;  %v3375_v14 = vand.u32 2147483648, %v9133_v44  ;;  %v5263_v46 = vld [vmem:[#allocation3 + $0x360] sm:$0xff] }
 0x5f8   :  { %v3239_v54 = vadd.f32 %v3117_v0, %v6212_v30  ;;  %v3362_v5 = vsel %vm3359_vm9, %v3361_v35, %v3357_v25  ;;  %v5262_v0 = vld [vmem:[#allocation3 + $0x3a8] sm:$0xff] }
 0x5f9   :  { %v3380_v52 = vmul.f32 %v3362_v5, %v8672_v17  ;;  %v3368_v8 = vadd.f32 %v4486_v41, %v3367_v38  ;;  %v3376_v59 = vor.u32 1.1754944e-38, %v3375_v14  ;;  %v5264_v25 = vld [vmem:[#allocation3 + $0x368] sm:$0xff] }
 0x5fa   :  { %v4280_v31 = vmul.f32 -1.442695, %v3239_v54  ;;  %v3373_v54 = vand.u32 2147483647, %v9133_v44  ;;  %v5259_v44 = vld [vmem:[#allocation3 + $0x3e0] sm:$0xff]  ;;  %v5270_v14 = vld [vmem:[#allocation3 + $0x2a8] sm:$0xff] }
 0x5fb   :  { %v3156_v16 = vpop.f32.mrf.mxu3  ;;  %v9146_v22 = vadd.f32 %v3381_v50, %v3380_v52  ;;  %v3372_v17 = vsel %vm3371_vm12, %v4486_v41, %v3368_v8  ;;  %v5260_v41 = vld [vmem:[#allocation3 + $0x3e8] sm:$0xff]  ;;  %v5267_v50 = vld [vmem:[#allocation3 + $0x2e0] sm:$0xff] }
 0x5fc   :  { %v3157_v39 = vadd.f32 %v3156_v16, %v3136_v18  ;;  %4489 = vpow2.f32 %v4280_v31  ;;  %vm3374_vm13 = vcmp.eq.f32.partialorder %v3373_v54, 8.507059e+37  ;;  %v5266_v31 = vld [vmem:[#allocation3 + $0x328] sm:$0xff]  ;;  %v3176_v54 = vpop.f32.mrf.mxu0 }
 0x5fd   :  { %4491 = vtanh.f32 %v9146_v22  ;;  %v3377_v38 = vsel %vm3374_vm13, %v3376_v59, %v3372_v17  ;;  %v5268_v16 = vld [vmem:[#allocation3 + $0x2e8] sm:$0xff]  ;;  %v5271_v17 = vld [vmem:[#allocation3 + $0x260] sm:$0xff] }
 0x5fe   :  { %v3240_v47 = vadd.f32 %v3157_v39, %v6223_v60 }
 0x600   :  { %v4281_v35 = vmul.f32 -1.442695, %v3240_v47  ;;  %v5269_v47 = vld [vmem:[#allocation3 + $0x2a0] sm:$0xff] }
 0x602   :  { %4493 = vpow2.f32 %v4281_v35  ;;  %v4490_v5 = vpop.eup %4489 }
 0x603   :  { %v4492_v43 = vpop.eup %4491  ;;  %v9155_v1 = vadd.f32 1.0, %v4490_v5  ;;  %v5272_v5 = vld [vmem:[#allocation3 + $0x268] sm:$0xff] }
 0x604   :  { %v9153_v3 = vmul.f32 %v4492_v43, %v3377_v38 }
 0x605   :  { %4495 = vrcp.f32 %v9155_v1  ;;  %vm3260_vm3 = vweird.f32 %v9155_v1 }
 0x606   :  { %3401 = vmatmul.f32.vlgmr.msra.gmra.mxu0 %v9153_v3  ;;  %3441 = vmatmul.f32.vlgmr.msra.gmra.mxu2 %v9153_v3 }
 0x607   :  { %3545 = vmatpush.msra.mxu0 %v5259_v44  ;;  %3585 = vmatpush.msra.mxu2 %v5260_v41  ;;  %v5274_v44 = vld [vmem:[#allocation3 + $0x228] sm:$0xff] }
 0x608   :  { %v4494_v19 = vpop.eup %4493 }
 0x609   :  { %v9159_v37 = vadd.f32 1.0, %v4494_v19  ;;  %3546 = vmatpush.msra.mxu0 %v5261_v32  ;;  %3586 = vmatpush.msra.mxu2 %v5262_v0  ;;  %v5273_v19 = vld [vmem:[#allocation3 + $0x220] sm:$0xff]  ;;  %v5276_v0 = vld [vmem:[#allocation3 + $0x1e8] sm:$0xff] }
 0x60a   :  { %v5275_v32 = vld [vmem:[#allocation3 + $0x1e0] sm:$0xff] }
 0x60b   :  { %4497 = vrcp.f32 %v9159_v37  ;;  %3547 = vmatpush.msra.mxu0 %v5263_v46  ;;  %3587 = vmatpush.msra.mxu2 %v5264_v25  ;;  %v9163_v18 = vpop.eup %4495  ;;  %v3216_v25 = vpop.f32.mrf.mxu2  ;;  %vm3275_vm4 = vweird.f32 %v9159_v37 }
 0x60c   :  { %v3256_v39 = vmul.f32 %v9163_v18, %v9155_v1  ;;  %vm3261_vm14 = vweird.f32 %v9163_v18 }
 0x60d   :  { %3548 = vmatpush.msra.mxu0 %v5265_v49  ;;  %3588 = vmatpush.msra.mxu2 %v5266_v31  ;;  %vm9185_vm0 = vmor %vm3260_vm3, %vm3261_vm14 }
 0x60e   :  { %3481 = vmatmul.f32.vlgmr.msrb.gmra.mxu0 %v9153_v3  ;;  %3521 = vmatmul.f32.vlgmr.msrb.gmra.mxu2 %v9153_v3  ;;  %v3257_v43 = vsub.f32 1.0, %v3256_v39  ;;  %v5278_v39 = vld [vmem:[#allocation3 + $0x1a8] sm:$0xff] }
 0x60f   :  { %3549 = vmatpush.msra.mxu0 %v5267_v50  ;;  %3589 = vmatpush.msra.mxu2 %v5268_v16  ;;  %v5277_v16 = vld [vmem:[#allocation3 + $0x1a0] sm:$0xff] }
 0x610   :  { %v3258_v50 = vmul.f32 %v9163_v18, %v3257_v43  ;;  %v3281_v43 = vand.u32 2147483648, %v9159_v37 }
 0x611   :  { %v9167_v52 = vpop.eup %4497  ;;  %3550 = vmatpush.msra.mxu0 %v5269_v47  ;;  %3590 = vmatpush.msra.mxu2 %v5270_v14  ;;  %v5279_v47 = vld [vmem:[#allocation3 + $0x160] sm:$0xff]  ;;  %v5280_v14 = vld [vmem:[#allocation3 + $0x168] sm:$0xff] }
 0x612   :  { %v3271_v8 = vmul.f32 %v9167_v52, %v9159_v37  ;;  %vm3276_vm15 = vweird.f32 %v9167_v52 }
 0x613   :  { %3551 = vmatpush.msra.mxu0 %v5271_v17  ;;  %3591 = vmatpush.msra.mxu2 %v5272_v5  ;;  %v5281_v5 = vld [vmem:[#allocation3 + $0x120] sm:$0xff]  ;;  %vm9193_vm1 = vmor %vm3275_vm4, %vm3276_vm15 }
 0x614   :  { %v3272_v38 = vsub.f32 1.0, %v3271_v8 }
 0x615   :  { %v3196_v35 = vpop.f32.mrf.mxu1  ;;  %3552 = vmatpush.msra.mxu0 %v5273_v19  ;;  %3592 = vmatpush.msra.mxu2 %v5274_v44  ;;  %v3264_v44 = vand.u32 2147483647, %v9155_v1 }
 0x616   :  { %v3197_v59 = vadd.f32 %v3196_v35, %v3176_v54  ;;  %v3273_v49 = vmul.f32 %v9167_v52, %v3272_v38  ;;  %v3259_v35 = vadd.f32 %v9163_v18, %v3258_v50  ;;  %v3266_v38 = vand.u32 2147483648, %v9155_v1  ;;  %v5286_v50 = vld [vmem:[#allocation3 + $0xa8] sm:$0xff] }
 0x617   :  { %3553 = vmatpush.msra.mxu0 %v5275_v32  ;;  %3593 = vmatpush.msra.mxu2 %v5276_v0  ;;  %v5283_v32 = vld [vmem:[#allocation3 + $0xe0] sm:$0xff]  ;;  %v5284_v0 = vld [vmem:[#allocation3 + $0xe8] sm:$0xff]  ;;  %vm3265_vm5 = vcmp.eq.f32.partialorder %v3264_v44, 8.507059e+37  ;;  %v5293_v44 = vld [vmem:[#allocation3 + $0x3b0] sm:$0xff] }
 0x618   :  { %v3241_v41 = vadd.f32 %v3197_v59, %v11031_v33  ;;  %v3274_v17 = vadd.f32 %v9167_v52, %v3273_v49  ;;  %v5282_v59 = vld [vmem:[#allocation3 + $0x128] sm:$0xff] }
 0x619   :  { %3554 = vmatpush.msra.mxu0 %v5277_v16  ;;  %3594 = vmatpush.msra.mxu2 %v5278_v39  ;;  %v3282_v16 = vor.u32 1.1754944e-38, %v3281_v43  ;;  %v3267_v39 = vor.u32 1.1754944e-38, %v3266_v38  ;;  %v5292_v43 = vld [vmem:[#allocation3 + $0x3f8] sm:$0xff] }
 0x61a   :  { %v4282_v46 = vmul.f32 -1.442695, %v3241_v41  ;;  %v3279_v41 = vand.u32 2147483647, %v9159_v37  ;;  %v3278_v1 = vsel %vm9193_vm1, %v9167_v52, %v3274_v17  ;;  %v5285_v37 = vld [vmem:[#allocation3 + $0xa0] sm:$0xff]  ;;  %v5290_v52 = vld [vmem:[#allocation3 + $0x28] sm:$0xff] }
 0x61b   :  { %v3236_v31 = vpop.f32.mrf.mxu3  ;;  %3555 = vmatpush.msra.mxu0 %v5279_v47  ;;  %3595 = vmatpush.msra.mxu2 %v5280_v14  ;;  %v5288_v47 = vld [vmem:[#allocation3 + $0x68] sm:$0xff] }
 0x61c   :  { %4499 = vpow2.f32 %v4282_v46  ;;  %v3237_v8 = vadd.f32 %v3236_v31, %v3216_v25  ;;  %v3263_v31 = vsel %vm9185_vm0, %v9163_v18, %v3259_v35  ;;  %vm3280_vm2 = vcmp.eq.f32.partialorder %v3279_v41, 8.507059e+37  ;;  %v5294_v41 = vld [vmem:[#allocation3 + $0x3b8] sm:$0xff] }
 0x61d   :  { %3556 = vmatpush.msra.mxu0 %v5281_v5  ;;  %3596 = vmatpush.msra.mxu2 %v5282_v59  ;;  %v3268_v18 = vsel %vm3265_vm5, %v3267_v39, %v3263_v31  ;;  %v5289_v5 = vld [vmem:[#allocation3 + $0x20] sm:$0xff]  ;;  %v5291_v59 = vld [vmem:[#allocation3 + $0x3f0] sm:$0xff]  ;;  %v5300_v39 = vld [vmem:[#allocation3 + $0x2f8] sm:$0xff] }
 0x61e   :  { %v3242_v54 = vadd.f32 %v3237_v8, %v11038_v27  ;;  %v5287_v8 = vld [vmem:[#allocation3 + $0x60] sm:$0xff]  ;;  %v5297_v31 = vld [vmem:[#allocation3 + $0x330] sm:$0xff] }
 0x61f   :  { %3557 = vmatpush.msra.mxu0 %v5283_v32  ;;  %3597 = vmatpush.msra.mxu2 %v5284_v0  ;;  %v5295_v0 = vld [vmem:[#allocation3 + $0x370] sm:$0xff] }
 0x620   :  { %4501 = vtanh.f32 %v3242_v54  ;;  %v3283_v54 = vsel %vm3280_vm2, %v3282_v16, %v3278_v1  ;;  %v5298_v1 = vld [vmem:[#allocation3 + $0x338] sm:$0xff]  ;;  %v5299_v16 = vld [vmem:[#allocation3 + $0x2f0] sm:$0xff] }
 0x621   :  { %3558 = vmatpush.msra.mxu0 %v5285_v37  ;;  %3598 = vmatpush.msra.mxu2 %v5286_v50  ;;  %v3301_v17 = vmul.f32 %v3283_v54, %v8766_v12 }
 0x622   :  { %v4500_v46 = vpop.eup %4499 }
 0x623   :  { %v9197_v49 = vadd.f32 1.0, %v4500_v46  ;;  %3559 = vmatpush.msra.mxu0 %v5287_v8  ;;  %3599 = vmatpush.msra.mxu2 %v5288_v47  ;;  %v5296_v46 = vld [vmem:[#allocation3 + $0x378] sm:$0xff] }
 0x625   :  { %4503 = vrcp.f32 %v9197_v49  ;;  %3560 = vmatpush.msra.mxu0 %v5289_v5  ;;  %3600 = vmatpush.msra.mxu2 %v5290_v52  ;;  %v3296_v12 = vand.u32 2147483648, %v9197_v49  ;;  %v3294_v50 = vand.u32 2147483647, %v9197_v49  ;;  %vm3290_vm7 = vweird.f32 %v9197_v49  ;;  %v5303_v52 = vld [vmem:[#allocation3 + $0x270] sm:$0xff] }
 0x626   :  { %v4502_v14 = vpop.eup %4501  ;;  %3561 = vmatmul.f32.vlgmr.msra.gmra.mxu0 %v9153_v3  ;;  %3601 = vmatmul.f32.vlgmr.msra.gmra.mxu2 %v9153_v3 }
 0x627   :  { %v3302_v35 = vmul.f32 %v4502_v14, %v3268_v18  ;;  %3625 = vmatpush.msrb.mxu0 %v5291_v59  ;;  %3665 = vmatpush.msrb.mxu2 %v5292_v43  ;;  %v3297_v47 = vor.u32 1.1754944e-38, %v3296_v12  ;;  %v5301_v14 = vld [vmem:[#allocation3 + $0x2b0] sm:$0xff]  ;;  %v5302_v18 = vld [vmem:[#allocation3 + $0x2b8] sm:$0xff]  ;;  %vm3295_vm9 = vcmp.eq.f32.partialorder %v3294_v50, 8.507059e+37  ;;  %v11255_v12 = vld [vmem:[#allocation142_spill] sm:$0xff] }
 0x628   :  { %v5305_v43 = vld [vmem:[#allocation3 + $0x230] sm:$0xff]  ;;  %v11259_v50 = vld [vmem:[#allocation149_spill] sm:$0xff] }
 0x629   :  { %v9209_v19 = vadd.f32 %v3302_v35, %v3301_v17  ;;  %3626 = vmatpush.msrb.mxu0 %v5293_v44  ;;  %3666 = vmatpush.msrb.mxu2 %v5294_v41  ;;  %v5304_v17 = vld [vmem:[#allocation3 + $0x278] sm:$0xff]  ;;  %v5309_v41 = vld [vmem:[#allocation3 + $0x1b0] sm:$0xff] }
 0x62a   :  { %v5306_v44 = vld [vmem:[#allocation3 + $0x238] sm:$0xff] }
 0x62b   :  { %v4504_v38 = vpop.eup %4503  ;;  %3627 = vmatpush.msrb.mxu0 %v5295_v0  ;;  %3667 = vmatpush.msrb.mxu2 %v5296_v46  ;;  %4505 = vtanh.f32 %v9209_v19  ;;  %v5311_v0 = vld [vmem:[#allocation3 + $0x170] sm:$0xff]  ;;  %v11253_v46 = vld [vmem:[#allocation138_spill] sm:$0xff] }
 0x62c   :  { %v3286_v32 = vmul.f32 %v4504_v38, %v9197_v49  ;;  %vm3291_vm6 = vweird.f32 %v4504_v38  ;;  %v5307_v49 = vld [vmem:[#allocation3 + $0x1f0] sm:$0xff] }
 0x62d   :  { %3628 = vmatpush.msrb.mxu0 %v5297_v31  ;;  %3668 = vmatpush.msrb.mxu2 %v5298_v1  ;;  %vm3292_vm8 = vmor %vm3290_vm7, %vm3291_vm6  ;;  %v11256_v31 = vld [vmem:[#allocation145_spill] sm:$0xff]  ;;  %v11257_v1 = vld [vmem:[#allocation190_spill] sm:$0xff] }
 0x62e   :  { %v3287_v25 = vsub.f32 1.0, %v3286_v32  ;;  %v5310_v32 = vld [vmem:[#allocation3 + $0x1b8] sm:$0xff] }
 0x62f   :  { %3629 = vmatpush.msrb.mxu0 %v5299_v16  ;;  %3669 = vmatpush.msrb.mxu2 %v5300_v39  ;;  %v11260_v16 = vld [vmem:[#allocation150_spill] sm:$0xff]  ;;  %v11261_v39 = vld [vmem:[#allocation153_spill] sm:$0xff] }
 0x630   :  { %v3288_v37 = vmul.f32 %v4504_v38, %v3287_v25  ;;  %v11254_v25 = vld [vmem:[#allocation141_spill] sm:$0xff] }
 0x631   :  { %3630 = vmatpush.msrb.mxu0 %v5301_v14  ;;  %3670 = vmatpush.msrb.mxu2 %v5302_v18  ;;  %v4506_v35 = vpop.eup %4505  ;;  %v11264_v14 = vld [vmem:[#allocation191_spill] sm:$0xff]  ;;  %v3911_v18 = vld [vmem:[#allocation3 + $0x3e0] sm:$0xff] }
 0x632   :  { %v3289_v8 = vadd.f32 %v4504_v38, %v3288_v37  ;;  %v11258_v37 = vld [vmem:[#allocation146_spill] sm:$0xff] }
 0x633   :  { %3631 = vmatpush.msrb.mxu0 %v5303_v52  ;;  %3671 = vmatpush.msrb.mxu2 %v5304_v17  ;;  %v3903_v52 = vld [vmem:[#allocation3 + $0x360] sm:$0xff]  ;;  %v3904_v17 = vld [vmem:[#allocation3 + $0x368] sm:$0xff] }
 0x634   :  { %v3293_v54 = vsel %vm3292_vm8, %v4504_v38, %v3289_v8  ;;  %v5308_v38 = vld [vmem:[#allocation3 + $0x1f8] sm:$0xff]  ;;  %v11262_v8 = vld [vmem:[#allocation154_spill] sm:$0xff] }
 0x635   :  { %v3298_v5 = vsel %vm3295_vm9, %v3297_v47, %v3293_v54  ;;  %3632 = vmatpush.msrb.mxu0 %v5305_v43  ;;  %3672 = vmatpush.msrb.mxu2 %v5306_v44  ;;  %v11263_v47 = vld [vmem:[#allocation157_spill] sm:$0xff]  ;;  %v3912_v54 = vld [vmem:[#allocation3 + $0x3e8] sm:$0xff] }
 0x636   :  { %v9216_v59 = vmul.f32 %v4506_v35, %v3298_v5  ;;  %v3907_v35 = vld [vmem:[#allocation3 + $0x3a0] sm:$0xff]  ;;  %v3908_v5 = vld [vmem:[#allocation3 + $0x3a8] sm:$0xff] }
 0x637   :  { %3633 = vmatpush.msrb.mxu0 %v5307_v49  ;;  %3673 = vmatpush.msrb.mxu2 %v5308_v38  ;;  %v3899_v43 = vld [vmem:[#allocation3 + $0x320] sm:$0xff]  ;;  %v3900_v44 = vld [vmem:[#allocation3 + $0x328] sm:$0xff] }
 0x638   :  { %3421 = vmatmul.f32.vlgmr.msra.gmra.mxu1 %v9216_v59  ;;  %3461 = vmatmul.f32.vlgmr.msra.gmra.mxu3 %v9216_v59  ;;  %v3895_v49 = vld [vmem:[#allocation3 + $0x2e0] sm:$0xff]  ;;  %v3896_v38 = vld [vmem:[#allocation3 + $0x2e8] sm:$0xff] }
 0x639   :  { %3565 = vmatpush.msra.mxu1 %v8787_v21  ;;  %3605 = vmatpush.msra.mxu3 %v8790_v23  ;;  %v5312_v21 = vld [vmem:[#allocation3 + $0x178] sm:$0xff]  ;;  %v5313_v23 = vld [vmem:[#allocation3 + $0x130] sm:$0xff] }
 0x63a   :  { %3634 = vmatpush.msrb.mxu0 %v5309_v41  ;;  %3674 = vmatpush.msrb.mxu2 %v5310_v32  ;;  %v3892_v41 = vld [vmem:[#allocation3 + $0x2a8] sm:$0xff]  ;;  %v3887_v32 = vld [vmem:[#allocation3 + $0x260] sm:$0xff] }
 0x63b   :  { %3566 = vmatpush.msra.mxu1 %v8795_v42  ;;  %3606 = vmatpush.msra.mxu3 %v8798_v26  ;;  %v5314_v42 = vld [vmem:[#allocation3 + $0x138] sm:$0xff]  ;;  %v5315_v26 = vld [vmem:[#allocation3 + $0xf0] sm:$0xff] }
 0x63c   :  { %3635 = vmatpush.msrb.mxu0 %v5311_v0  ;;  %3675 = vmatpush.msrb.mxu2 %v5312_v21  ;;  %v3888_v0 = vld [vmem:[#allocation3 + $0x268] sm:$0xff]  ;;  %v3883_v21 = vld [vmem:[#allocation3 + $0x220] sm:$0xff] }
 0x63d   :  { %3567 = vmatpush.msra.mxu1 %v8803_v13  ;;  %3607 = vmatpush.msra.mxu3 %v8806_v36  ;;  %v5316_v13 = vld [vmem:[#allocation3 + $0xf8] sm:$0xff]  ;;  %v5317_v36 = vld [vmem:[#allocation3 + $0xb0] sm:$0xff] }
 0x63e   :  { %3636 = vmatpush.msrb.mxu0 %v5313_v23  ;;  %3676 = vmatpush.msrb.mxu2 %v5314_v42  ;;  %v3884_v23 = vld [vmem:[#allocation3 + $0x228] sm:$0xff]  ;;  %v3879_v42 = vld [vmem:[#allocation3 + $0x1e0] sm:$0xff] }
 0x63f   :  { %3568 = vmatpush.msra.mxu1 %v8811_v45  ;;  %3608 = vmatpush.msra.mxu3 %v8814_v53  ;;  %v5318_v45 = vld [vmem:[#allocation3 + $0xb8] sm:$0xff]  ;;  %v5319_v53 = vld [vmem:[#allocation3 + $0x70] sm:$0xff] }
 0x640   :  { %3501 = vmatmul.f32.vlgmr.msrb.gmra.mxu1 %v9216_v59  ;;  %3541 = vmatmul.f32.vlgmr.msrb.gmra.mxu3 %v9216_v59 }
 0x641   :  { %3569 = vmatpush.msra.mxu1 %v8819_v10  ;;  %3609 = vmatpush.msra.mxu3 %v8822_v2  ;;  %v5320_v10 = vld [vmem:[#allocation3 + $0x78] sm:$0xff]  ;;  %v5321_v2 = vld [vmem:[#allocation3 + $0x30] sm:$0xff] }
 0x642   :  { %3637 = vmatpush.msrb.mxu0 %v5315_v26  ;;  %3677 = vmatpush.msrb.mxu2 %v5316_v13  ;;  %v3880_v26 = vld [vmem:[#allocation3 + $0x1e8] sm:$0xff]  ;;  %v3875_v13 = vld [vmem:[#allocation3 + $0x1a0] sm:$0xff] }
 0x643   :  { %3570 = vmatpush.msra.mxu1 %v8827_v20  ;;  %3610 = vmatpush.msra.mxu3 %v8830_v7  ;;  %v5322_v20 = vld [vmem:[#allocation3 + $0x38] sm:$0xff]  ;;  %v11232_v7 = vld [vmem:[#allocation107_spill] sm:$0xff] }
 0x644   :  { %3638 = vmatpush.msrb.mxu0 %v5317_v36  ;;  %3678 = vmatpush.msrb.mxu2 %v5318_v45  ;;  %v3876_v36 = vld [vmem:[#allocation3 + $0x1a8] sm:$0xff] }
 0x645   :  { %3571 = vmatpush.msra.mxu1 %v8835_v29  ;;  %3611 = vmatpush.msra.mxu3 %v8838_v40  ;;  %v11233_v29 = vld [vmem:[#allocation108_spill] sm:$0xff]  ;;  %v11234_v40 = vld [vmem:[#allocation111_spill] sm:$0xff] }
 0x646   :  { %3639 = vmatpush.msrb.mxu0 %v5319_v53  ;;  %3679 = vmatpush.msrb.mxu2 %v5320_v10  ;;  %v3871_v53 = vld [vmem:[#allocation3 + $0x160] sm:$0xff]  ;;  %v3872_v10 = vld [vmem:[#allocation3 + $0x168] sm:$0xff] }
 0x647   :  { %3572 = vmatpush.msra.mxu1 %v8843_v11  ;;  %3612 = vmatpush.msra.mxu3 %v8846_v15  ;;  %v11235_v11 = vld [vmem:[#allocation112_spill] sm:$0xff]  ;;  %v11236_v15 = vld [vmem:[#allocation115_spill] sm:$0xff] }
 0x648   :  { %3640 = vmatpush.msrb.mxu0 %v5321_v2  ;;  %3680 = vmatpush.msrb.mxu2 %v5322_v20  ;;  %v3867_v20 = vld [vmem:[#allocation3 + $0x120] sm:$0xff] }
 0x649   :  { %3573 = vmatpush.msra.mxu1 %v8851_v9  ;;  %3613 = vmatpush.msra.mxu3 %v8854_v48  ;;  %v11237_v9 = vld [vmem:[#allocation116_spill] sm:$0xff]  ;;  %v11238_v48 = vld [vmem:[#allocation119_spill] sm:$0xff] }
 0x64a   :  { %3641 = vmatmul.f32.vlgmr.msrb.gmra.mxu0 %v9153_v3  ;;  %3681 = vmatmul.f32.vlgmr.msrb.gmra.mxu2 %v9153_v3  ;;  %v11252_v3 = vld [vmem:[#allocation137_spill] sm:$0xff] }
 0x64b   :  { %3574 = vmatpush.msra.mxu1 %v8861_v61  ;;  %3614 = vmatpush.msra.mxu3 %v8864_v4  ;;  %v11239_v61 = vld [vmem:[#allocation120_spill] sm:$0xff]  ;;  %v11240_v4 = vld [vmem:[#allocation123_spill] sm:$0xff] }
 0x64c   :  { %3979 = vmatpush.msra.mxu0 %v3911_v18  ;;  %4019 = vmatpush.msra.mxu2 %v3912_v54  ;;  %v3901_v18 = vld [vmem:[#allocation3 + $0x330] sm:$0xff]  ;;  %v3902_v54 = vld [vmem:[#allocation3 + $0x338] sm:$0xff] }
 0x64d   :  { %3575 = vmatpush.msra.mxu1 %v8869_v62  ;;  %3615 = vmatpush.msra.mxu3 %v8872_v24  ;;  %v11241_v62 = vld [vmem:[#allocation124_spill] sm:$0xff]  ;;  %v11242_v24 = vld [vmem:[#allocation127_spill] sm:$0xff] }
 0x64e   :  { %3980 = vmatpush.msra.mxu0 %v3907_v35  ;;  %4020 = vmatpush.msra.mxu2 %v3908_v5  ;;  %v3897_v35 = vld [vmem:[#allocation3 + $0x2f0] sm:$0xff]  ;;  %v3898_v5 = vld [vmem:[#allocation3 + $0x2f8] sm:$0xff] }
 0x64f   :  { %3576 = vmatpush.msra.mxu1 %v8877_v57  ;;  %3616 = vmatpush.msra.mxu3 %v8880_v28  ;;  %v11243_v57 = vld [vmem:[#allocation128_spill] sm:$0xff]  ;;  %v11244_v28 = vld [vmem:[#allocation131_spill] sm:$0xff] }
 0x650   :  { %3981 = vmatpush.msra.mxu0 %v3903_v52  ;;  %4021 = vmatpush.msra.mxu2 %v3904_v17  ;;  %v3893_v17 = vld [vmem:[#allocation3 + $0x2b0] sm:$0xff] }
 0x651   :  { %3577 = vmatpush.msra.mxu1 %v8885_v51  ;;  %3617 = vmatpush.msra.mxu3 %v8888_v6  ;;  %v11245_v51 = vld [vmem:[#allocation132_spill] sm:$0xff]  ;;  %v11246_v6 = vld [vmem:[#allocation33_spill] sm:$0xff] }
 0x652   :  { %3982 = vmatpush.msra.mxu0 %v3899_v43  ;;  %4022 = vmatpush.msra.mxu2 %v3900_v44  ;;  %v3894_v43 = vld [vmem:[#allocation3 + $0x2b8] sm:$0xff] }
 0x653   :  { %3578 = vmatpush.msra.mxu1 %v8893_v55  ;;  %3618 = vmatpush.msra.mxu3 %v8896_v34  ;;  %v11247_v55 = vld [vmem:[#allocation135_spill] sm:$0xff]  ;;  %v11248_v34 = vld [vmem:[#allocation34_spill] sm:$0xff] }
 0x654   :  { %3983 = vmatpush.msra.mxu0 %v3895_v49  ;;  %4023 = vmatpush.msra.mxu2 %v3896_v38 }
 0x655   :  { %3579 = vmatpush.msra.mxu1 %v8901_v63  ;;  %3619 = vmatpush.msra.mxu3 %v8904_v58  ;;  %v11249_v63 = vld [vmem:[#allocation35_spill] sm:$0xff]  ;;  %v11250_v58 = vld [vmem:[#allocation36_spill] sm:$0xff] }
 0x656   :  { %4024 = vmatpush.msra.mxu2 %v3892_v41  ;;  %v3890_v41 = vld [vmem:[#allocation3 + $0x278] sm:$0xff] }
 0x657   :  { %3580 = vmatpush.msra.mxu1 %v8909_v56  ;;  %3620 = vmatpush.msra.mxu3 %v11232_v7  ;;  %v11251_v56 = vld [vmem:[#allocation136_spill] sm:$0xff]  ;;  %v3868_v7 = vld [vmem:[#allocation3 + $0x128] sm:$0xff] }
 0x658   :  { %3581 = vmatmul.f32.vlgmr.msra.gmra.mxu1 %v9216_v59  ;;  %3621 = vmatmul.f32.vlgmr.msra.gmra.mxu3 %v9216_v59 }
 0x659   :  { %3645 = vmatpush.msrb.mxu1 %v11233_v29  ;;  %3685 = vmatpush.msrb.mxu3 %v11234_v40  ;;  %v3776_v40 = vld.sshfl [vmem:[#allocation1] sm:$0xff pattern:$0x73625140] }
 0x65a   :  { %4025 = vmatpush.msra.mxu2 %v3888_v0 }
 0x65b   :  { %3646 = vmatpush.msrb.mxu1 %v11235_v11  ;;  %3686 = vmatpush.msrb.mxu3 %v11236_v15  ;;  %v3863_v11 = vld [vmem:[#allocation3 + $0xe0] sm:$0xff]  ;;  %v3864_v15 = vld [vmem:[#allocation3 + $0xe8] sm:$0xff] }
 0x65c   :  { %4026 = vmatpush.msra.mxu2 %v3884_v23 }
 0x65d   :  { %3647 = vmatpush.msrb.mxu1 %v11237_v9  ;;  %3687 = vmatpush.msrb.mxu3 %v11238_v48  ;;  %v3859_v48 = vld [vmem:[#allocation3 + $0xa0] sm:$0xff] }
 0x65e   :  { %4027 = vmatpush.msra.mxu2 %v3880_v26  ;;  %v3976_v26 = vld [vmem:[#allocation3 + $0x7e8] sm:$0xff] }
 0x65f   :  { %3648 = vmatpush.msrb.mxu1 %v11239_v61  ;;  %3688 = vmatpush.msrb.mxu3 %v11240_v4  ;;  %v3860_v61 = vld [vmem:[#allocation3 + $0xa8] sm:$0xff] }
 0x660   :  { %4028 = vmatpush.msra.mxu2 %v3876_v36 }
 0x661   :  { %3649 = vmatpush.msrb.mxu1 %v11241_v62  ;;  %3689 = vmatpush.msrb.mxu3 %v11242_v24 }
 0x662   :  { %4029 = vmatpush.msra.mxu2 %v3872_v10  ;;  %v3971_v10 = vld [vmem:[#allocation3 + $0x7a0] sm:$0xff] }
 0x663   :  { %3650 = vmatpush.msrb.mxu1 %v11243_v57  ;;  %3690 = vmatpush.msrb.mxu3 %v11244_v28  ;;  %v3855_v57 = vld [vmem:[#allocation3 + $0x60] sm:$0xff]  ;;  %v3856_v28 = vld [vmem:[#allocation3 + $0x68] sm:$0xff] }
 0x664   :  { %4030 = vmatpush.msra.mxu2 %v3868_v7  ;;  %v3779_v7 = vld.sshfl [vmem:[#allocation1 + $0x18] sm:$0xff pattern:$0x73625140] }
 0x665   :  { %3651 = vmatpush.msrb.mxu1 %v11245_v51  ;;  %3691 = vmatpush.msrb.mxu3 %v11246_v6 }
 0x666   :  { %4031 = vmatpush.msra.mxu2 %v3864_v15  ;;  %v3968_v15 = vld [vmem:[#allocation3 + $0x768] sm:$0xff] }
 0x667   :  { %3652 = vmatpush.msrb.mxu1 %v11247_v55  ;;  %3692 = vmatpush.msrb.mxu3 %v11248_v34  ;;  %v3777_v55 = vld.sshfl [vmem:[#allocation1 + $0x8] sm:$0xff pattern:$0x73625140] }
 0x668   :  { %4032 = vmatpush.msra.mxu2 %v3860_v61 }
 0x669   :  { %3653 = vmatpush.msrb.mxu1 %v11249_v63  ;;  %3693 = vmatpush.msrb.mxu3 %v11250_v58  ;;  %v3851_v63 = vld [vmem:[#allocation3 + $0x20] sm:$0xff]  ;;  %v3852_v58 = vld [vmem:[#allocation3 + $0x28] sm:$0xff] }
 0x66a   :  { %4033 = vmatpush.msra.mxu2 %v3856_v28  ;;  %v3964_v28 = vld [vmem:[#allocation3 + $0x728] sm:$0xff] }
 0x66b   :  { %3654 = vmatpush.msrb.mxu1 %v11251_v56  ;;  %3694 = vmatpush.msrb.mxu3 %v11252_v3 }
 0x66c   :  { %4034 = vmatpush.msra.mxu2 %v3852_v58 }
 0x66d   :  { %3655 = vmatpush.msrb.mxu1 %v11253_v46  ;;  %3695 = vmatpush.msrb.mxu3 %v11254_v25  ;;  %v3913_v46 = vld [vmem:[#allocation3 + $0x3f0] sm:$0xff]  ;;  %v3914_v25 = vld [vmem:[#allocation3 + $0x3f8] sm:$0xff] }
 0x66e   :  { %4099 = vmatpush.msrb.mxu2 %v3914_v25  ;;  %v3960_v25 = vld [vmem:[#allocation3 + $0x6e8] sm:$0xff] }
 0x66f   :  { %3656 = vmatpush.msrb.mxu1 %v11255_v12  ;;  %3696 = vmatpush.msrb.mxu3 %v11256_v31  ;;  %v3778_v12 = vld.sshfl [vmem:[#allocation1 + $0x10] sm:$0xff pattern:$0x73625140] }
 0x671   :  { %3657 = vmatpush.msrb.mxu1 %v11257_v1  ;;  %3697 = vmatpush.msrb.mxu3 %v11258_v37  ;;  %v3909_v37 = vld [vmem:[#allocation3 + $0x3b0] sm:$0xff] }
 0x673   :  { %3658 = vmatpush.msrb.mxu1 %v11259_v50  ;;  %3698 = vmatpush.msrb.mxu3 %v11260_v16  ;;  %v3910_v50 = vld [vmem:[#allocation3 + $0x3b8] sm:$0xff] }
 0x674   :  { %4100 = vmatpush.msrb.mxu2 %v3910_v50 }
 0x675   :  { %3659 = vmatpush.msrb.mxu1 %v11261_v39  ;;  %3699 = vmatpush.msrb.mxu3 %v11262_v8  ;;  %v3905_v8 = vld [vmem:[#allocation3 + $0x370] sm:$0xff] }
 0x677   :  { %3660 = vmatpush.msrb.mxu1 %v11263_v47  ;;  %3700 = vmatpush.msrb.mxu3 %v11264_v14  ;;  %v3906_v47 = vld [vmem:[#allocation3 + $0x378] sm:$0xff] }
 0x678   :  { %3661 = vmatmul.f32.vlgmr.msrb.gmra.mxu1 %v9216_v59  ;;  %3701 = vmatmul.f32.vlgmr.msrb.gmra.mxu3 %v9216_v59  ;;  %v3891_v59 = vld [vmem:[#allocation3 + $0x2a0] sm:$0xff] }
 0x679   :  { %3984 = vmatpush.msra.mxu0 %v3891_v59  ;;  %4101 = vmatpush.msrb.mxu2 %v3906_v47  ;;  %v3889_v59 = vld [vmem:[#allocation3 + $0x270] sm:$0xff] }
 0x67a   :  { %4039 = vmatpush.msra.mxu3 %v3976_v26  ;;  %v3857_v26 = vld [vmem:[#allocation3 + $0x70] sm:$0xff] }
 0x67b   :  { %3985 = vmatpush.msra.mxu0 %v3887_v32  ;;  %4102 = vmatpush.msrb.mxu2 %v3902_v54  ;;  %v3865_v54 = vld [vmem:[#allocation3 + $0xf0] sm:$0xff] }
 0x67d   :  { %3986 = vmatpush.msra.mxu0 %v3883_v21  ;;  %4103 = vmatpush.msrb.mxu2 %v3898_v5 }
 0x67f   :  { %3987 = vmatpush.msra.mxu0 %v3879_v42  ;;  %4104 = vmatpush.msrb.mxu2 %v3894_v43  ;;  %v3975_v42 = vld [vmem:[#allocation3 + $0x7e0] sm:$0xff] }
 0x680   :  { %3999 = vmatpush.msra.mxu1 %v3975_v42  ;;  %v3951_v43 = vld [vmem:[#allocation3 + $0x660] sm:$0xff]  ;;  %v3948_v42 = vld [vmem:[#allocation3 + $0x628] sm:$0xff] }
 0x681   :  { %3988 = vmatpush.msra.mxu0 %v3875_v13  ;;  %4105 = vmatpush.msrb.mxu2 %v3890_v41  ;;  %v3885_v13 = vld [vmem:[#allocation3 + $0x230] sm:$0xff]  ;;  %v3947_v41 = vld [vmem:[#allocation3 + $0x620] sm:$0xff] }
 0x682   :  { %4000 = vmatpush.msra.mxu1 %v3971_v10 }
 0x683   :  { %v3402_v45 = vpop.f32.mrf.mxu0  ;;  %3989 = vmatpush.msra.mxu0 %v3871_v53 }
 0x685   :  { %3990 = vmatpush.msra.mxu0 %v3867_v20  ;;  %v3881_v20 = vld [vmem:[#allocation3 + $0x1f0] sm:$0xff] }
 0x687   :  { %3991 = vmatpush.msra.mxu0 %v3863_v11  ;;  %v3967_v11 = vld [vmem:[#allocation3 + $0x760] sm:$0xff] }
 0x688   :  { %4001 = vmatpush.msra.mxu1 %v3967_v11 }
 0x689   :  { %3992 = vmatpush.msra.mxu0 %v3859_v48  ;;  %v3442_v62 = vpop.f32.mrf.mxu2 }
 0x68b   :  { %3993 = vmatpush.msra.mxu0 %v3855_v57  ;;  %v3482_v6 = vpop.f32.mrf.mxu0  ;;  %v3963_v57 = vld [vmem:[#allocation3 + $0x720] sm:$0xff] }
 0x68c   :  { %4002 = vmatpush.msra.mxu1 %v3963_v57 }
 0x68d   :  { %3994 = vmatpush.msra.mxu0 %v3851_v63  ;;  %v3874_v63 = vld [vmem:[#allocation3 + $0x178] sm:$0xff] }
 0x68f   :  { %4059 = vmatpush.msrb.mxu0 %v3913_v46  ;;  %v3959_v46 = vld [vmem:[#allocation3 + $0x6e0] sm:$0xff] }
 0x690   :  { %4003 = vmatpush.msra.mxu1 %v3959_v46 }
 0x691   :  { %4060 = vmatpush.msrb.mxu0 %v3909_v37  ;;  %v3522_v21 = vpop.f32.mrf.mxu2  ;;  %v3870_v37 = vld [vmem:[#allocation3 + $0x138] sm:$0xff] }
 0x693   :  { %4061 = vmatpush.msrb.mxu0 %v3905_v8 }
 0x695   :  { %4062 = vmatpush.msrb.mxu0 %v3901_v18  ;;  %v3956_v18 = vld [vmem:[#allocation3 + $0x6a8] sm:$0xff] }
 0x697   :  { %4063 = vmatpush.msrb.mxu0 %v3897_v35 }
 0x699   :  { %4064 = vmatpush.msrb.mxu0 %v3893_v17  ;;  %v3866_v17 = vld [vmem:[#allocation3 + $0xf8] sm:$0xff] }
 0x69b   :  { %4065 = vmatpush.msrb.mxu0 %v3889_v59  ;;  %v3862_v59 = vld [vmem:[#allocation3 + $0xb8] sm:$0xff] }
 0x69d   :  { %4066 = vmatpush.msrb.mxu0 %v3885_v13  ;;  %v3858_v13 = vld [vmem:[#allocation3 + $0x78] sm:$0xff] }
 0x69f   :  { %4067 = vmatpush.msrb.mxu0 %v3881_v20 }
 0x6a3   :  { %v3562_v50 = vpop.f32.mrf.mxu0 }
 0x6a9   :  { %v3602_v11 = vpop.f32.mrf.mxu2 }
 0x6b5   :  { %v3422_v2 = vpop.f32.mrf.mxu1 }
 0x6b6   :  { %v3423_v29 = vadd.f32 %v3422_v2, %v3402_v45  ;;  %v3886_v45 = vld [vmem:[#allocation3 + $0x238] sm:$0xff]  ;;  %v3972_v2 = vld [vmem:[#allocation3 + $0x7a8] sm:$0xff] }
 0x6b7   :  { %4106 = vmatpush.msrb.mxu2 %v3886_v45  ;;  %4040 = vmatpush.msra.mxu3 %v3972_v2  ;;  %v3943_v45 = vld [vmem:[#allocation3 + $0x5e0] sm:$0xff] }
 0x6b8   :  { %v3784_v9 = vadd.f32 %v3776_v40, %v3423_v29  ;;  %v3882_v29 = vld [vmem:[#allocation3 + $0x1f8] sm:$0xff] }
 0x6b9   :  { %4107 = vmatpush.msrb.mxu2 %v3882_v29  ;;  %4041 = vmatpush.msra.mxu3 %v3968_v15  ;;  %v3853_v29 = vld [vmem:[#allocation3 + $0x30] sm:$0xff] }
 0x6ba   :  { %v4289_v4 = vmul.f32 -1.442695, %v3784_v9  ;;  %v3877_v9 = vld [vmem:[#allocation3 + $0x1b0] sm:$0xff] }
 0x6bb   :  { %v3462_v24 = vpop.f32.mrf.mxu3  ;;  %4068 = vmatpush.msrb.mxu0 %v3877_v9  ;;  %4042 = vmatpush.msra.mxu3 %v3964_v28 }
 0x6bc   :  { %4507 = vpow2.f32 %v4289_v4  ;;  %v3463_v51 = vadd.f32 %v3462_v24, %v3442_v62  ;;  %v3878_v4 = vld [vmem:[#allocation3 + $0x1b8] sm:$0xff] }
 0x6bd   :  { %v3502_v34 = vpop.f32.mrf.mxu1  ;;  %4108 = vmatpush.msrb.mxu2 %v3878_v4  ;;  %4043 = vmatpush.msra.mxu3 %v3960_v25  ;;  %v3940_v4 = vld [vmem:[#allocation3 + $0x5a8] sm:$0xff] }
 0x6be   :  { %v3785_v56 = vadd.f32 %v3777_v55, %v3463_v51  ;;  %v3503_v3 = vadd.f32 %v3502_v34, %v3482_v6  ;;  %v3873_v51 = vld [vmem:[#allocation3 + $0x170] sm:$0xff]  ;;  %v3936_v55 = vld [vmem:[#allocation3 + $0x568] sm:$0xff] }
 0x6bf   :  { %4069 = vmatpush.msrb.mxu0 %v3873_v51  ;;  %4109 = vmatpush.msrb.mxu2 %v3874_v63  ;;  %v3935_v51 = vld [vmem:[#allocation3 + $0x560] sm:$0xff] }
 0x6c0   :  { %v4290_v31 = vmul.f32 -1.442695, %v3785_v56  ;;  %v3786_v1 = vadd.f32 %v3778_v12, %v3503_v3  ;;  %v3869_v12 = vld [vmem:[#allocation3 + $0x130] sm:$0xff]  ;;  %4044 = vmatpush.msra.mxu3 %v3956_v18 }
 0x6c1   :  { %4070 = vmatpush.msrb.mxu0 %v3869_v12  ;;  %4110 = vmatpush.msrb.mxu2 %v3870_v37 }
 0x6c2   :  { %v4508_v16 = vpop.eup %4507  ;;  %4509 = vpow2.f32 %v4290_v31  ;;  %v4291_v39 = vmul.f32 -1.442695, %v3786_v1  ;;  %v3927_v31 = vld [vmem:[#allocation3 + $0x4e0] sm:$0xff] }
 0x6c3   :  { %v9292_v14 = vadd.f32 1.0, %v4508_v16  ;;  %v3542_v38 = vpop.f32.mrf.mxu3  ;;  %4071 = vmatpush.msrb.mxu0 %v3865_v54  ;;  %4111 = vmatpush.msrb.mxu2 %v3866_v17  ;;  %v3915_v54 = vld [vmem:[#allocation3 + $0x420] sm:$0xff]  ;;  %v3973_v17 = vld [vmem:[#allocation3 + $0x7b0] sm:$0xff] }
 0x6c4   :  { %4511 = vpow2.f32 %v4291_v39  ;;  %v3543_v36 = vadd.f32 %v3542_v38, %v3522_v21 }
 0x6c5   :  { %4513 = vrcp.f32 %v9292_v14  ;;  %vm3805_vm12 = vweird.f32 %v9292_v14  ;;  %v3811_v34 = vand.u32 2147483648, %v9292_v14  ;;  %v3809_v3 = vand.u32 2147483647, %v9292_v14  ;;  %4112 = vmatpush.msrb.mxu2 %v3862_v59  ;;  %v3965_v59 = vld [vmem:[#allocation3 + $0x730] sm:$0xff] }
 0x6c6   :  { %v3787_v61 = vadd.f32 %v3779_v7, %v3543_v36 }
 0x6c7   :  { %v3812_v5 = vor.u32 1.1754944e-38, %v3811_v34  ;;  %vm3810_vm3 = vcmp.eq.f32.partialorder %v3809_v3, 8.507059e+37  ;;  %4113 = vmatpush.msrb.mxu2 %v3858_v13  ;;  %v3932_v3 = vld [vmem:[#allocation3 + $0x528] sm:$0xff]  ;;  %v3957_v13 = vld [vmem:[#allocation3 + $0x6b0] sm:$0xff] }
 0x6c8   :  { %v4510_v52 = vpop.eup %4509 }
 0x6c9   :  { %v9295_v44 = vadd.f32 1.0, %v4510_v52 }
 0x6ca   :  { %v4512_v49 = vpop.eup %4511 }
 0x6cb   :  { %v9297_v32 = vpop.eup %4513  ;;  %4515 = vrcp.f32 %v9295_v44  ;;  %v9300_v0 = vadd.f32 1.0, %v4512_v49  ;;  %vm3820_vm14 = vweird.f32 %v9295_v44  ;;  %v3826_v1 = vand.u32 2147483648, %v9295_v44  ;;  %v3952_v49 = vld [vmem:[#allocation3 + $0x668] sm:$0xff] }
 0x6cc   :  { %v3801_v23 = vmul.f32 %v9297_v32, %v9292_v14  ;;  %vm3806_vm10 = vweird.f32 %v9297_v32  ;;  %v3824_v8 = vand.u32 2147483647, %v9295_v44  ;;  %v3955_v14 = vld [vmem:[#allocation3 + $0x6a0] sm:$0xff]  ;;  %4045 = vmatpush.msra.mxu3 %v3952_v49  ;;  %v3969_v49 = vld [vmem:[#allocation3 + $0x770] sm:$0xff] }
 0x6cd   :  { %4517 = vrcp.f32 %v9300_v0  ;;  %vm9318_vm13 = vmor %vm3805_vm12, %vm3806_vm10  ;;  %4004 = vmatpush.msra.mxu1 %v3955_v14  ;;  %vm3835_vm1 = vweird.f32 %v9300_v0  ;;  %v3839_v63 = vand.u32 2147483647, %v9300_v0 }
 0x6ce   :  { %v3802_v53 = vsub.f32 1.0, %v3801_v23  ;;  %4519 = vtanh.f32 %v3787_v61  ;;  %vm3825_vm4 = vcmp.eq.f32.partialorder %v3824_v8, 8.507059e+37  ;;  %4046 = vmatpush.msra.mxu3 %v3948_v42 }
 0x6cf   :  { %4005 = vmatpush.msra.mxu1 %v3951_v43  ;;  %vm3840_vm2 = vcmp.eq.f32.partialorder %v3839_v63, 8.507059e+37  ;;  %v3974_v43 = vld [vmem:[#allocation3 + $0x7b8] sm:$0xff] }
 0x6d0   :  { %v3803_v40 = vmul.f32 %v9297_v32, %v3802_v53  ;;  %v3944_v53 = vld [vmem:[#allocation3 + $0x5e8] sm:$0xff]  ;;  %v3938_v63 = vld [vmem:[#allocation3 + $0x578] sm:$0xff] }
 0x6d1   :  { %v9307_v48 = vpop.eup %4515  ;;  %4006 = vmatpush.msra.mxu1 %v3947_v41  ;;  %4047 = vmatpush.msra.mxu3 %v3944_v53  ;;  %v3966_v41 = vld [vmem:[#allocation3 + $0x738] sm:$0xff] }
 0x6d2   :  { %v3816_v62 = vmul.f32 %v9307_v48, %v9295_v44  ;;  %vm3821_vm11 = vweird.f32 %v9307_v48  ;;  %v3804_v24 = vadd.f32 %v9297_v32, %v3803_v40  ;;  %v3861_v44 = vld [vmem:[#allocation3 + $0xb0] sm:$0xff]  ;;  %v3854_v40 = vld [vmem:[#allocation3 + $0x38] sm:$0xff] }
 0x6d3   :  { %v9314_v6 = vpop.eup %4517  ;;  %vm9329_vm15 = vmor %vm3820_vm14, %vm3821_vm11  ;;  %4072 = vmatpush.msrb.mxu0 %v3861_v44  ;;  %4007 = vmatpush.msra.mxu1 %v3943_v45  ;;  %v3642_v45 = vpop.f32.mrf.mxu0 }
 0x6d4   :  { %v3817_v58 = vsub.f32 1.0, %v3816_v62  ;;  %v3831_v56 = vmul.f32 %v9314_v6, %v9300_v0  ;;  %v3808_v39 = vsel %vm9318_vm13, %v9297_v32, %v3804_v24  ;;  %v3827_v32 = vor.u32 1.1754944e-38, %v3826_v1  ;;  %v4520_v10 = vpop.eup %4519  ;;  %4114 = vmatpush.msrb.mxu2 %v3854_v40  ;;  %4048 = vmatpush.msra.mxu3 %v3940_v4  ;;  %v3928_v1 = vld [vmem:[#allocation3 + $0x4e8] sm:$0xff]  ;;  %v3682_v4 = vpop.f32.mrf.mxu2 }
 0x6d5   :  { %v3582_v47 = vpop.f32.mrf.mxu1  ;;  %v3813_v21 = vsel %vm3810_vm3, %v3812_v5, %v3808_v39  ;;  %4073 = vmatpush.msrb.mxu0 %v3857_v26  ;;  %vm3836_vm0 = vweird.f32 %v9314_v6  ;;  %v3977_v5 = vld [vmem:[#allocation3 + $0x7f0] sm:$0xff] }
 0x6d6   :  { %v3818_v16 = vmul.f32 %v9307_v48, %v3817_v58  ;;  %v3832_v35 = vsub.f32 1.0, %v3831_v56  ;;  %v3583_v52 = vadd.f32 %v3582_v47, %v3562_v50  ;;  %v3847_v9 = vmul.f32 %v4520_v10, %v3813_v21  ;;  %4049 = vmatpush.msra.mxu3 %v3936_v55  ;;  %vm9352_vm5 = vmor %vm3835_vm1, %vm3836_vm0  ;;  %v3931_v56 = vld [vmem:[#allocation3 + $0x520] sm:$0xff]  ;;  %v3961_v21 = vld [vmem:[#allocation3 + $0x6f0] sm:$0xff] }
 0x6d7   :  { %4074 = vmatpush.msrb.mxu0 %v3853_v29  ;;  %v3923_v50 = vld [vmem:[#allocation3 + $0x4a0] sm:$0xff] }
 0x6d8   :  { %v3819_v38 = vadd.f32 %v9307_v48, %v3818_v16  ;;  %v3705_v23 = vadd.f32 %v3583_v52, %v6212_v30  ;;  %v3833_v2 = vmul.f32 %v9314_v6, %v3832_v35  ;;  %4050 = vmatpush.msra.mxu3 %v3932_v3  ;;  %v3924_v16 = vld [vmem:[#allocation3 + $0x4a8] sm:$0xff]  ;;  %v3919_v47 = vld [vmem:[#allocation3 + $0x460] sm:$0xff]  ;;  %v3978_v52 = vld [vmem:[#allocation3 + $0x7f8] sm:$0xff] }
 0x6d9   :  { %v3916_v35 = vld [vmem:[#allocation3 + $0x428] sm:$0xff] }
 0x6da   :  { %v3823_v36 = vsel %vm9329_vm15, %v9307_v48, %v3819_v38  ;;  %v4286_v7 = vmul.f32 -1.442695, %v3705_v23  ;;  %v3939_v48 = vld [vmem:[#allocation3 + $0x5a0] sm:$0xff]  ;;  %v3834_v28 = vadd.f32 %v9314_v6, %v3833_v2  ;;  %4051 = vmatpush.msra.mxu3 %v3928_v1  ;;  %v3970_v38 = vld [vmem:[#allocation3 + $0x778] sm:$0xff]  ;;  %v3953_v2 = vld [vmem:[#allocation3 + $0x670] sm:$0xff] }
 0x6db   :  { %v3828_v20 = vsel %vm3825_vm4, %v3827_v32, %v3823_v36  ;;  %v3622_v61 = vpop.f32.mrf.mxu3  ;;  %4008 = vmatpush.msra.mxu1 %v3939_v48  ;;  %v3962_v23 = vld [vmem:[#allocation3 + $0x6f8] sm:$0xff] }
 0x6dc   :  { %v3846_v15 = vmul.f32 %v3828_v20, %v9146_v22  ;;  %v3623_v62 = vadd.f32 %v3622_v61, %v3602_v11  ;;  %4521 = vpow2.f32 %v4286_v7  ;;  %v3841_v22 = vand.u32 2147483648, %v9300_v0  ;;  %4052 = vmatpush.msra.mxu3 %v3924_v16  ;;  %v3958_v36 = vld [vmem:[#allocation3 + $0x6b8] sm:$0xff]  ;;  %v3949_v11 = vld [vmem:[#allocation3 + $0x630] sm:$0xff] }
 0x6dd   :  { %4009 = vmatpush.msra.mxu1 %v3935_v51  ;;  %v3838_v46 = vsel %vm9352_vm5, %v9314_v6, %v3834_v28  ;;  %v3920_v6 = vld [vmem:[#allocation3 + $0x468] sm:$0xff]  ;;  %v3954_v20 = vld [vmem:[#allocation3 + $0x678] sm:$0xff]  ;;  %v3945_v61 = vld [vmem:[#allocation3 + $0x5f0] sm:$0xff] }
 0x6de   :  { %v3848_v24 = vadd.f32 %v3847_v9, %v3846_v15  ;;  %v3706_v57 = vadd.f32 %v3623_v62, %v6223_v60  ;;  %v3842_v12 = vor.u32 1.1754944e-38, %v3841_v22  ;;  %4053 = vmatpush.msra.mxu3 %v3920_v6  ;;  %v3950_v15 = vld [vmem:[#allocation3 + $0x638] sm:$0xff]  ;;  %v3941_v22 = vld [vmem:[#allocation3 + $0x5b0] sm:$0xff] }
 0x6df   :  { %4010 = vmatpush.msra.mxu1 %v3931_v56  ;;  %v3946_v48 = vld [vmem:[#allocation3 + $0x5f8] sm:$0xff]  ;;  %v3929_v16 = vld [vmem:[#allocation3 + $0x4f0] sm:$0xff] }
 0x6e0   :  { %4523 = vtanh.f32 %v3848_v24  ;;  %v4287_v34 = vmul.f32 -1.442695, %v3706_v57  ;;  %v3843_v37 = vsel %vm3840_vm2, %v3842_v12, %v3838_v46  ;;  %4054 = vmatpush.msra.mxu3 %v3916_v35  ;;  %v3942_v51 = vld [vmem:[#allocation3 + $0x5b8] sm:$0xff] }
 0x6e1   :  { %4011 = vmatpush.msra.mxu1 %v3927_v31  ;;  %v3934_v12 = vld [vmem:[#allocation3 + $0x538] sm:$0xff]  ;;  %v4208_v31 = vld [vmem:[#allocation5 + $0x30] sm:$0xff] }
 0x6e2   :  { %4525 = vpow2.f32 %v4287_v34  ;;  %v4522_v25 = vpop.eup %4521  ;;  %4119 = vmatpush.msrb.mxu3 %v3978_v52  ;;  %v3937_v34 = vld [vmem:[#allocation3 + $0x570] sm:$0xff]  ;;  %v3926_v35 = vld [vmem:[#allocation3 + $0x4b8] sm:$0xff] }
 0x6e3   :  { %v9359_v39 = vadd.f32 1.0, %v4522_v25  ;;  %4012 = vmatpush.msra.mxu1 %v3923_v50  ;;  %v3933_v25 = vld [vmem:[#allocation3 + $0x530] sm:$0xff]  ;;  %v4205_v50 = vld [vmem:[#allocation5 + $0x18] sm:$0xff] }
 0x6e4   :  { %4120 = vmatpush.msrb.mxu3 %v3974_v43  ;;  %v3921_v43 = vld [vmem:[#allocation3 + $0x470] sm:$0xff] }
 0x6e5   :  { %4013 = vmatpush.msra.mxu1 %v3919_v47  ;;  %4527 = vrcp.f32 %v9359_v39  ;;  %vm3726_vm8 = vweird.f32 %v9359_v39  ;;  %v3732_v46 = vand.u32 2147483648, %v9359_v39  ;;  %v3730_v1 = vand.u32 2147483647, %v9359_v39 }
 0x6e6   :  { %v4524_v0 = vpop.eup %4523  ;;  %4121 = vmatpush.msrb.mxu3 %v3970_v38 }
 0x6e7   :  { %v3850_v8 = vmul.f32 %v4524_v0, %v3843_v37  ;;  %4014 = vmatpush.msra.mxu1 %v3915_v54  ;;  %v3925_v54 = vld [vmem:[#allocation3 + $0x4b0] sm:$0xff]  ;;  %vm3731_vm12 = vcmp.eq.f32.partialorder %v3730_v1, 8.507059e+37  ;;  %v4207_v1 = vld [vmem:[#allocation5 + $0x28] sm:$0xff] }
 0x6e8   :  { %v4526_v14 = vpop.eup %4525  ;;  %4122 = vmatpush.msrb.mxu3 %v3966_v41 }
 0x6e9   :  { %3995 = vmatmul.f32.vlgmr.msra.gmra.mxu0 %v3850_v8  ;;  %4035 = vmatmul.f32.vlgmr.msra.gmra.mxu2 %v3850_v8  ;;  %v9361_v18 = vadd.f32 1.0, %v4526_v14 }
 0x6ea   :  { %4079 = vmatpush.msrb.mxu1 %v3977_v5  ;;  %4123 = vmatpush.msrb.mxu3 %v3962_v23 }
 0x6eb   :  { %4529 = vrcp.f32 %v9361_v18  ;;  %v9365_v44 = vpop.eup %4527  ;;  %v3747_v3 = vand.u32 2147483648, %v9361_v18  ;;  %vm3741_vm9 = vweird.f32 %v9361_v18  ;;  %v3745_v0 = vand.u32 2147483647, %v9361_v18 }
 0x6ec   :  { %4080 = vmatpush.msrb.mxu1 %v3973_v17  ;;  %v3722_v42 = vmul.f32 %v9365_v44, %v9359_v39  ;;  %4124 = vmatpush.msrb.mxu3 %v3958_v36  ;;  %vm3727_vm6 = vweird.f32 %v9365_v44 }
 0x6ed   :  { %vm9387_vm10 = vmor %vm3726_vm8, %vm3727_vm6  ;;  %v3748_v14 = vor.u32 1.1754944e-38, %v3747_v3  ;;  %vm3746_vm13 = vcmp.eq.f32.partialorder %v3745_v0, 8.507059e+37  ;;  %v4210_v3 = vld [vmem:[#allocation5 + $0x40] sm:$0xff] }
 0x6ee   :  { %4081 = vmatpush.msrb.mxu1 %v3969_v49  ;;  %v3723_v7 = vsub.f32 1.0, %v3722_v42  ;;  %4125 = vmatpush.msrb.mxu3 %v3954_v20  ;;  %v3922_v49 = vld [vmem:[#allocation3 + $0x478] sm:$0xff] }
 0x6f0   :  { %4082 = vmatpush.msrb.mxu1 %v3965_v59  ;;  %v3724_v57 = vmul.f32 %v9365_v44, %v3723_v7  ;;  %4126 = vmatpush.msrb.mxu3 %v3950_v15  ;;  %v3918_v59 = vld [vmem:[#allocation3 + $0x438] sm:$0xff] }
 0x6f1   :  { %4075 = vmatmul.f32.vlgmr.msrb.gmra.mxu0 %v3850_v8  ;;  %4115 = vmatmul.f32.vlgmr.msrb.gmra.mxu2 %v3850_v8  ;;  %v9367_v32 = vpop.eup %4529  ;;  %v3930_v8 = vld [vmem:[#allocation3 + $0x4f8] sm:$0xff] }
 0x6f2   :  { %v3737_v26 = vmul.f32 %v9367_v32, %v9361_v18  ;;  %4083 = vmatpush.msrb.mxu1 %v3961_v21  ;;  %4127 = vmatpush.msrb.mxu3 %v3946_v48  ;;  %vm3742_vm7 = vweird.f32 %v9367_v32  ;;  %v3725_v58 = vadd.f32 %v9365_v44, %v3724_v57  ;;  %v3733_v18 = vor.u32 1.1754944e-38, %v3732_v46  ;;  %v4213_v57 = vld [vmem:[#allocation5 + $0x58] sm:$0xff] }
 0x6f3   :  { %vm9395_vm11 = vmor %vm3741_vm9, %vm3742_vm7  ;;  %v4209_v46 = vld [vmem:[#allocation5 + $0x38] sm:$0xff] }
 0x6f4   :  { %v3738_v29 = vsub.f32 1.0, %v3737_v26  ;;  %4084 = vmatpush.msrb.mxu1 %v3957_v13  ;;  %4128 = vmatpush.msrb.mxu3 %v3942_v51  ;;  %v3729_v6 = vsel %vm9387_vm10, %v9365_v44, %v3725_v58  ;;  %v3917_v44 = vld [vmem:[#allocation3 + $0x430] sm:$0xff] }
 0x6f5   :  { %v3662_v53 = vpop.f32.mrf.mxu1  ;;  %v3734_v52 = vsel %vm3731_vm12, %v3733_v18, %v3729_v6  ;;  %v4212_v51 = vld [vmem:[#allocation5 + $0x50] sm:$0xff]  ;;  %v4203_v18 = vld [vmem:[#allocation5 + $0x8] sm:$0xff] }
 0x6f6   :  { %v3663_v10 = vadd.f32 %v3662_v53, %v3642_v45  ;;  %4085 = vmatpush.msrb.mxu1 %v3953_v2  ;;  %v3739_v62 = vmul.f32 %v9367_v32, %v3738_v29  ;;  %4129 = vmatpush.msrb.mxu3 %v3938_v63  ;;  %v4217_v29 = vld [vmem:[#allocation5 + $0x78] sm:$0xff]  ;;  %v4211_v63 = vld [vmem:[#allocation5 + $0x48] sm:$0xff]  ;;  %v4204_v6 = vld [vmem:[#allocation5 + $0x10] sm:$0xff] }
 0x6f7   :  { %4222 = vmatpush.msra.mxu0 %v4217_v29 }
 0x6f8   :  { %v3707_v40 = vadd.f32 %v3663_v10, %v11031_v33  ;;  %4086 = vmatpush.msrb.mxu1 %v3949_v11  ;;  %v3740_v56 = vadd.f32 %v9367_v32, %v3739_v62  ;;  %4130 = vmatpush.msrb.mxu3 %v3934_v12 }
 0x6fa   :  { %v4288_v9 = vmul.f32 -1.442695, %v3707_v40  ;;  %4087 = vmatpush.msrb.mxu1 %v3945_v61  ;;  %v3744_v39 = vsel %vm9395_vm11, %v9367_v32, %v3740_v56  ;;  %4131 = vmatpush.msrb.mxu3 %v3930_v8  ;;  %v4216_v40 = vld [vmem:[#allocation5 + $0x70] sm:$0xff] }
 0x6fb   :  { %v3702_v24 = vpop.f32.mrf.mxu3  ;;  %v3749_v17 = vsel %vm3746_vm13, %v3748_v14, %v3744_v39  ;;  %4223 = vmatpush.msra.mxu0 %v4216_v40 }
 0x6fc   :  { %4531 = vpow2.f32 %v4288_v9  ;;  %v3703_v28 = vadd.f32 %v3702_v24, %v3682_v4  ;;  %4088 = vmatpush.msrb.mxu1 %v3941_v22  ;;  %4132 = vmatpush.msrb.mxu3 %v3926_v35  ;;  %v3767_v41 = vmul.f32 %v3749_v17, %v9209_v19  ;;  %v4215_v9 = vld [vmem:[#allocation5 + $0x68] sm:$0xff]  ;;  %v4214_v4 = vld [vmem:[#allocation5 + $0x60] sm:$0xff] }
 0x6fd   :  { %4224 = vmatpush.msra.mxu0 %v4215_v9 }
 0x6fe   :  { %v3708_v55 = vadd.f32 %v3703_v28, %v11038_v27  ;;  %4089 = vmatpush.msrb.mxu1 %v3937_v34  ;;  %4133 = vmatpush.msrb.mxu3 %v3922_v49 }
 0x6ff   :  { %4225 = vmatpush.msra.mxu0 %v4214_v4 }
 0x700   :  { %4533 = vtanh.f32 %v3708_v55  ;;  %4090 = vmatpush.msrb.mxu1 %v3933_v25  ;;  %4134 = vmatpush.msrb.mxu3 %v3918_v59 }
 0x701   :  { %4226 = vmatpush.msra.mxu0 %v4213_v57 }
 0x702   :  { %v4532_v37 = vpop.eup %4531  ;;  %4091 = vmatpush.msrb.mxu1 %v3929_v16 }
 0x703   :  { %v3720_v47 = vadd.f32 1.0, %v4532_v37  ;;  %4227 = vmatpush.msra.mxu0 %v4212_v51 }
 0x704   :  { %4092 = vmatpush.msrb.mxu1 %v3925_v54 }
 0x705   :  { %4535 = vrcp.f32 %v3720_v47  ;;  %v3762_v26 = vand.u32 2147483648, %v3720_v47  ;;  %v3760_v36 = vand.u32 2147483647, %v3720_v47  ;;  %vm3756_vm15 = vweird.f32 %v3720_v47  ;;  %4228 = vmatpush.msra.mxu0 %v4211_v63 }
 0x706   :  { %v4534_v5 = vpop.eup %4533  ;;  %4093 = vmatpush.msrb.mxu1 %v3921_v43 }
 0x707   :  { %v3768_v38 = vmul.f32 %v4534_v5, %v3734_v52  ;;  %v3763_v53 = vor.u32 1.1754944e-38, %v3762_v26  ;;  %vm3761_vm4 = vcmp.eq.f32.partialorder %v3760_v36, 8.507059e+37  ;;  %4229 = vmatpush.msra.mxu0 %v4210_v3  ;;  %v4202_v52 = vld [vmem:[#allocation5] sm:$0xff] }
 0x708   :  { %4094 = vmatpush.msrb.mxu1 %v3917_v44 }
 0x709   :  { %v9406_v21 = vadd.f32 %v3768_v38, %v3767_v41  ;;  %4230 = vmatpush.msra.mxu0 %v4209_v46 }
 0x70b   :  { %v4536_v32 = vpop.eup %4535  ;;  %4537 = vtanh.f32 %v9406_v21  ;;  %4231 = vmatpush.msra.mxu0 %v4208_v31 }
 0x70c   :  { %v3752_v23 = vmul.f32 %v4536_v32, %v3720_v47  ;;  %vm3757_vm14 = vweird.f32 %v4536_v32 }
 0x70d   :  { %vm3758_vm3 = vmor %vm3756_vm15, %vm3757_vm14  ;;  %4232 = vmatpush.msra.mxu0 %v4207_v1 }
 0x70e   :  { %v3753_v42 = vsub.f32 1.0, %v3752_v23 }
 0x710   :  { %v3754_v13 = vmul.f32 %v4536_v32, %v3753_v42 }
 0x711   :  { %v4538_v10 = vpop.eup %4537 }
 0x712   :  { %v3755_v45 = vadd.f32 %v4536_v32, %v3754_v13 }
 0x714   :  { %v3759_v19 = vsel %vm3758_vm3, %v4536_v32, %v3755_v45 }
 0x715   :  { %v3764_v2 = vsel %vm3761_vm4, %v3763_v53, %v3759_v19 }
 0x716   :  { %v3771_v20 = vmul.f32 %v4538_v10, %v3764_v2 }
 0x718   :  { %4015 = vmatmul.f32.vlgmr.msra.gmra.mxu1 %v3771_v20  ;;  %4055 = vmatmul.f32.vlgmr.msra.gmra.mxu3 %v3771_v20 }
 0x720   :  { %4095 = vmatmul.f32.vlgmr.msrb.gmra.mxu1 %v3771_v20  ;;  %4135 = vmatmul.f32.vlgmr.msrb.gmra.mxu3 %v3771_v20 }
 0x766   :  { %v3996_v7 = vpop.f32.mrf.mxu0 }
 0x767   :  { %v3997_v11 = vadd.f32 %v3996_v7, %v6212_v30 }
 0x76c   :  { %v4036_v48 = vpop.f32.mrf.mxu2 }
 0x76d   :  { %v4037_v28 = vadd.f32 %v4036_v48, %v6223_v60 }
 0x76e   :  { %v4076_v24 = vpop.f32.mrf.mxu0 }
 0x76f   :  { %v4077_v55 = vadd.f32 %v4076_v24, %v11031_v33  ;;  %v4206_v33 = vld [vmem:[#allocation5 + $0x20] sm:$0xff] }
 0x770   :  { %4233 = vmatpush.msra.mxu0 %v4206_v33 }
 0x772   :  { %4234 = vmatpush.msra.mxu0 %v4205_v50 }
 0x774   :  { %v4116_v39 = vpop.f32.mrf.mxu2  ;;  %4235 = vmatpush.msra.mxu0 %v4204_v6 }
 0x775   :  { %v4117_v5 = vadd.f32 %v4116_v39, %v11038_v27 }
 0x776   :  { %4236 = vmatpush.msra.mxu0 %v4203_v18 }
 0x778   :  { %4237 = vmatpush.msra.mxu0 %v4202_v52 }
 0x795   :  { %v4016_v15 = vpop.f32.mrf.mxu1 }
 0x796   :  { %v4017_v61 = vadd.f32 %v4016_v15, %v3997_v11 }
 0x798   :  { %v4292_v62 = vmul.f32 -1.442695, %v4017_v61 }
 0x79a   :  { %4539 = vpow2.f32 %v4292_v62 }
 0x79b   :  { %v4056_v22 = vpop.f32.mrf.mxu3 }
 0x79c   :  { %v4057_v30 = vadd.f32 %v4056_v22, %v4037_v28 }
 0x79d   :  { %v4096_v34 = vpop.f32.mrf.mxu1 }
 0x79e   :  { %v4293_v58 = vmul.f32 -1.442695, %v4057_v30  ;;  %v4097_v56 = vadd.f32 %v4096_v34, %v4077_v55 }
 0x7a0   :  { %v4540_v25 = vpop.eup %4539  ;;  %4541 = vpow2.f32 %v4293_v58  ;;  %v4294_v12 = vmul.f32 -1.442695, %v4097_v56 }
 0x7a1   :  { %v4148_v60 = vadd.f32 1.0, %v4540_v25 }
 0x7a2   :  { %4543 = vpow2.f32 %v4294_v12 }
 0x7a3   :  { %4545 = vrcp.f32 %v4148_v60  ;;  %v4136_v35 = vpop.f32.mrf.mxu3  ;;  %v4162_v41 = vand.u32 2147483648, %v4148_v60  ;;  %vm4156_vm1 = vweird.f32 %v4148_v60  ;;  %v4160_v42 = vand.u32 2147483647, %v4148_v60 }
 0x7a4   :  { %v4137_v49 = vadd.f32 %v4136_v35, %v4117_v5 }
 0x7a5   :  { %v4163_v53 = vor.u32 1.1754944e-38, %v4162_v41  ;;  %vm4161_vm7 = vcmp.eq.f32.partialorder %v4160_v42, 8.507059e+37 }
 0x7a6   :  { %v4542_v0 = vpop.eup %4541 }
 0x7a7   :  { %v4149_v37 = vadd.f32 1.0, %v4542_v0 }
 0x7a8   :  { %v4544_v16 = vpop.eup %4543 }
 0x7a9   :  { %v4546_v8 = vpop.eup %4545  ;;  %4547 = vrcp.f32 %v4149_v37  ;;  %v4150_v47 = vadd.f32 1.0, %v4544_v16  ;;  %v4177_v26 = vand.u32 2147483648, %v4149_v37  ;;  %v4175_v36 = vand.u32 2147483647, %v4149_v37 }
 0x7aa   :  { %v4152_v14 = vmul.f32 %v4546_v8, %v4148_v60  ;;  %vm4157_vm0 = vweird.f32 %v4546_v8  ;;  %vm4171_vm6 = vweird.f32 %v4149_v37 }
 0x7ab   :  { %4549 = vrcp.f32 %v4150_v47  ;;  %vm4158_vm5 = vmor %vm4156_vm1, %vm4157_vm0  ;;  %v4178_v10 = vor.u32 1.1754944e-38, %v4177_v26  ;;  %vm4176_vm9 = vcmp.eq.f32.partialorder %v4175_v36, 8.507059e+37  ;;  %v4192_v48 = vand.u32 2147483648, %v4150_v47 }
 0x7ac   :  { %v4153_v54 = vsub.f32 1.0, %v4152_v14  ;;  %4551 = vtanh.f32 %v4137_v49  ;;  %vm4186_vm11 = vweird.f32 %v4150_v47  ;;  %v4190_v4 = vand.u32 2147483647, %v4150_v47 }
 0x7ad   :  { %v4193_v24 = vor.u32 1.1754944e-38, %v4192_v48 }
 0x7ae   :  { %v4154_v17 = vmul.f32 %v4546_v8, %v4153_v54  ;;  %vm4191_vm13 = vcmp.eq.f32.partialorder %v4190_v4, 8.507059e+37 }
 0x7af   :  { %v4548_v43 = vpop.eup %4547 }
 0x7b0   :  { %v4167_v38 = vmul.f32 %v4548_v43, %v4149_v37  ;;  %v4155_v44 = vadd.f32 %v4546_v8, %v4154_v17  ;;  %vm4172_vm2 = vweird.f32 %v4548_v43 }
 0x7b1   :  { %v4550_v59 = vpop.eup %4549  ;;  %vm4173_vm8 = vmor %vm4171_vm6, %vm4172_vm2 }
 0x7b2   :  { %v4168_v32 = vsub.f32 1.0, %v4167_v38  ;;  %v4182_v23 = vmul.f32 %v4550_v59, %v4150_v47  ;;  %v4159_v27 = vsel %vm4158_vm5, %v4546_v8, %v4155_v44  ;;  %v4552_v7 = vpop.eup %4551  ;;  %vm4187_vm10 = vweird.f32 %v4550_v59 }
 0x7b3   :  { %v4164_v2 = vsel %vm4161_vm7, %v4163_v53, %v4159_v27  ;;  %vm4188_vm12 = vmor %vm4186_vm11, %vm4187_vm10 }
 0x7b4   :  { %v4169_v13 = vmul.f32 %v4548_v43, %v4168_v32  ;;  %v4183_v45 = vsub.f32 1.0, %v4182_v23  ;;  %v4198_v15 = vmul.f32 %v4552_v7, %v4164_v2 }
 0x7b6   :  { %v4170_v19 = vadd.f32 %v4548_v43, %v4169_v13  ;;  %v4184_v29 = vmul.f32 %v4550_v59, %v4183_v45 }
 0x7b8   :  { %v4174_v20 = vsel %vm4173_vm8, %v4548_v43, %v4170_v19  ;;  %v4185_v61 = vadd.f32 %v4550_v59, %v4184_v29 }
 0x7b9   :  { %v4179_v40 = vsel %vm4176_vm9, %v4178_v10, %v4174_v20 }
 0x7ba   :  { %v4197_v11 = vmul.f32 %v4179_v40, %v9406_v21  ;;  %v4189_v62 = vsel %vm4188_vm12, %v4550_v59, %v4185_v61  ;;  %v4306_v21 = vld [vmem:[%s9426_s6] ss:$0 sm:$0xff] }
 0x7bb   :  { %v4194_v28 = vsel %vm4191_vm13, %v4193_v24, %v4189_v62 }
 0x7bc   :  { %v4199_v9 = vadd.f32 %v4198_v15, %v4197_v11 }
 0x7be   :  { %4553 = vtanh.f32 %v4199_v9 }
 0x7c4   :  { %v4554_v57 = vpop.eup %4553 }
 0x7c5   :  { %v4201_v22 = vmul.f32 %v4554_v57, %v4194_v28 }
 0x7c7   :  { %4238 = vmatmul.f32.vlgmr.msra.gmra.mxu0 %v4201_v22 }
 0x844   :  { %v4239_v51 = vpop.f32.mrf.mxu0 }
 0x845   :  { %v4240_v55 = vadd.f32 %v4306_v21, %v4239_v51 }
 0x847   :  { %4242 = vst [vmem:[%s9427_s7] sm:$0x3] %v4240_v55 }
 0x848   :  { %4247 = vsyncpa [#allocation4], 1 }
 0x849   :  { %4248 = vsyncpa [#allocation6], 1 }

</bundles_post_ra>
